<compile_context>
chip_gen: v5e
topology: v5e:2x2
jax: 0.10.0
libtpu: 0.0.40
codegen_flags: <defaults>
</compile_context>

<pallas_src>
import functools

import jax
import jax.numpy as jnp
from jax.experimental import pallas as pl
from jax.experimental.pallas import tpu as pltpu


def _round_up(v, m):
    return ((v + m - 1) // m) * m


def _pick_row_tile(m):
    """Row tile: big enough to hide the ~0.35us per-grid-step overhead,
    >= 2 grid steps when possible (v7x has 2 TensorCores), multiple of 16
    for bf16 sublane packing on small inputs."""
    if m >= 2048:
        return 1024
    if m >= 512:
        return _round_up((m + 1) // 2, 256)
    return _round_up(m, 16)


# ----------------------------------------------------------------------------
# Kernel 1 (fused): per-point MLP 64 -> 64 -> 128 -> 1024 (Linear+ReLU) plus
# the flat-view MaxPool1d(num_points).  Requires 1024 % num_points == 0.
#
# Derivation: with M = B*N rows and G = 1024 // N, torch's flat view gives
#   pooled[b, r*G + gg] = max_{p<N} h3[b*N + r, gg*N + p]
# i.e. each ROW independently produces its own G pooled channels.  We permute
# layer-3's weight columns so pooled channel gg lives at columns {p*G + gg}:
#   w3p[:, p*G + gg] = W3[:, gg*N + p]
# then the pool over p is a binary max tree over column halves of the
# (tm, 1024) result -- no cross-row traffic, no HBM round trip, and a single
# 1024-wide RHS matmul.  The kernel writes (M, G); a free flat reshape in the
# wrapper yields the (B, 1024) pooled tensor.
# ----------------------------------------------------------------------------
def _fused_point_kernel(x_ref, w1_ref, b1_ref, w2_ref, b2_ref, w3p_ref,
                        b3p_ref, o_ref, *, g):
    h = jnp.dot(x_ref[...], w1_ref[...], preferred_element_type=jnp.float32)
    h = jnp.maximum(h + b1_ref[...], 0.0).astype(jnp.bfloat16)
    h = jnp.dot(h, w2_ref[...], preferred_element_type=jnp.float32)
    h = jnp.maximum(h + b2_ref[...], 0.0).astype(jnp.bfloat16)
    # Single full-width layer-3 matmul on the column-permuted weight.
    r = jnp.dot(h, w3p_ref[...], preferred_element_type=jnp.float32)
    r = jnp.maximum(r + b3p_ref[...], 0.0)          # (tm, 1024) f32, VMEM only
    # Flat-view MaxPool1d: binary max tree over column halves.
    width = r.shape[-1]
    while width > g:
        half = width // 2
        r = jnp.maximum(r[:, :half], r[:, half:width])
        width = half
    o_ref[...] = r.astype(o_ref.dtype)


def fused_point_mlp_maxpool(x, w1, b1, w2, b2, w3, b3, num_points):
    m = x.shape[0]
    n = num_points
    g = 1024 // n                                       # pooled channels / row
    tm = _pick_row_tile(m)
    m_pad = _round_up(m, tm)
    if m_pad != m:
        x = jnp.pad(x, ((0, m_pad - m), (0, 0)))        # padded rows sliced later

    # Column permutation (done once, tiny): w3p[:, p*g + gg] = w3[:, gg*n + p].
    w3p = w3.reshape(128, g, n).transpose(0, 2, 1).reshape(128, 1024)
    b3p = b3.reshape(1, g, n).transpose(0, 2, 1).reshape(1, 1024)

    bf = jnp.bfloat16
    kernel = functools.partial(_fused_point_kernel, g=g)
    return pl.pallas_call(
        kernel,
        out_shape=jax.ShapeDtypeStruct((m_pad, g), jnp.float32),
        grid=(m_pad // tm,),
        in_specs=[
            pl.BlockSpec((tm, 64), lambda i: (i, 0)),
            pl.BlockSpec((64, 64), lambda i: (0, 0)),
            pl.BlockSpec((1, 64), lambda i: (0, 0)),
            pl.BlockSpec((64, 128), lambda i: (0, 0)),
            pl.BlockSpec((1, 128), lambda i: (0, 0)),
            pl.BlockSpec((128, 1024), lambda i: (0, 0)),
            pl.BlockSpec((1, 1024), lambda i: (0, 0)),
        ],
        out_specs=pl.BlockSpec((tm, g), lambda i: (i, 0)),
        compiler_params=pltpu.CompilerParams(
            dimension_semantics=("parallel",), vmem_limit_bytes=32 << 20),
    )(x.astype(bf), w1.astype(bf), b1, w2.astype(bf), b2, w3p.astype(bf), b3p)


# ----------------------------------------------------------------------------
# Kernel 1b (fallback): plain per-point MLP when num_points does not divide
# 1024.  Emits the (M, 1024) activation in bf16; pooling happens in XLA.
# ----------------------------------------------------------------------------
def _point_mlp_kernel(x_ref, w1_ref, b1_ref, w2_ref, b2_ref, w3_ref, b3_ref,
                      o_ref):
    h = jnp.dot(x_ref[...], w1_ref[...], preferred_element_type=jnp.float32)
    h = jnp.maximum(h + b1_ref[...], 0.0).astype(jnp.bfloat16)
    h = jnp.dot(h, w2_ref[...], preferred_element_type=jnp.float32)
    h = jnp.maximum(h + b2_ref[...], 0.0).astype(jnp.bfloat16)
    h = jnp.dot(h, w3_ref[...], preferred_element_type=jnp.float32)
    h = jnp.maximum(h + b3_ref[...], 0.0)
    o_ref[...] = h.astype(o_ref.dtype)


def point_mlp(x, w1, b1, w2, b2, w3, b3):
    m = x.shape[0]
    tm = _pick_row_tile(m)
    m_pad = _round_up(m, tm)
    if m_pad != m:
        x = jnp.pad(x, ((0, m_pad - m), (0, 0)))
    bf = jnp.bfloat16
    return pl.pallas_call(
        _point_mlp_kernel,
        out_shape=jax.ShapeDtypeStruct((m_pad, 1024), jnp.bfloat16),
        grid=(m_pad // tm,),
        in_specs=[
            pl.BlockSpec((tm, 64), lambda i: (i, 0)),
            pl.BlockSpec((64, 64), lambda i: (0, 0)),
            pl.BlockSpec((1, 64), lambda i: (0, 0)),
            pl.BlockSpec((64, 128), lambda i: (0, 0)),
            pl.BlockSpec((1, 128), lambda i: (0, 0)),
            pl.BlockSpec((128, 1024), lambda i: (0, 0)),
            pl.BlockSpec((1, 1024), lambda i: (0, 0)),
        ],
        out_specs=pl.BlockSpec((tm, 1024), lambda i: (i, 0)),
        compiler_params=pltpu.CompilerParams(
            dimension_semantics=("parallel",), vmem_limit_bytes=32 << 20),
    )(x.astype(bf), w1.astype(bf), b1, w2.astype(bf), b2, w3.astype(bf), b3)


# ----------------------------------------------------------------------------
# Kernel 2: global MLP 1024 -> 512 -> 256 (Linear+ReLU) -> 4096 (Linear).
# The 256->4096 output columns are split over a 2-step "parallel" grid so both
# v7x TensorCores share the weight-DMA-bound work (layers 4/5 are recomputed
# per step -- negligible).  Weight blocks with constant index are fetched once.
# ----------------------------------------------------------------------------
def _global_mlp_kernel(g_ref, w4_ref, b4_ref, w5_ref, b5_ref, w6_ref, b6_ref,
                       o_ref):
    h = jnp.dot(g_ref[...], w4_ref[...], preferred_element_type=jnp.float32)
    h = jnp.maximum(h + b4_ref[...], 0.0).astype(jnp.bfloat16)
    h = jnp.dot(h, w5_ref[...], preferred_element_type=jnp.float32)
    h = jnp.maximum(h + b5_ref[...], 0.0).astype(jnp.bfloat16)
    h = jnp.dot(h, w6_ref[...], preferred_element_type=jnp.float32)
    o_ref[...] = (h + b6_ref[...]).astype(o_ref.dtype)


def global_mlp(g, w4, b4, w5, b5, w6, b6):
    b = g.shape[0]
    bf = jnp.bfloat16
    n_split = 2
    tn = 4096 // n_split
    return pl.pallas_call(
        _global_mlp_kernel,
        out_shape=jax.ShapeDtypeStruct((b, 4096), jnp.float32),
        grid=(n_split,),
        in_specs=[
            pl.BlockSpec((b, 1024), lambda i: (0, 0)),
            pl.BlockSpec((1024, 512), lambda i: (0, 0)),
            pl.BlockSpec((1, 512), lambda i: (0, 0)),
            pl.BlockSpec((512, 256), lambda i: (0, 0)),
            pl.BlockSpec((1, 256), lambda i: (0, 0)),
            pl.BlockSpec((256, tn), lambda i: (0, i)),
            pl.BlockSpec((1, tn), lambda i: (0, i)),
        ],
        out_specs=pl.BlockSpec((b, tn), lambda i: (0, i)),
        compiler_params=pltpu.CompilerParams(
            dimension_semantics=("parallel",), vmem_limit_bytes=32 << 20),
    )(g.astype(bf), w4.astype(bf), b4, w5.astype(bf), b5, w6.astype(bf), b6)


# ----------------------------------------------------------------------------
# Kernel 3: batched matmul (B, N, 64) @ (B, 64, 64) -> (B, N, 64), several
# batches per grid step to amortize per-step overhead (capped so the per-step
# VMEM stays modest).
# ----------------------------------------------------------------------------
def _bmm_kernel(x_ref, m_ref, o_ref):
    o_ref[...] = jnp.einsum(
        "bnc,bcd->bnd", x_ref[...], m_ref[...],
        preferred_element_type=jnp.float32).astype(o_ref.dtype)


def batched_matmul(x, mats):
    b, n, c = x.shape
    tb = max(1, min(b, 16, 16384 // max(n, 1)))
    b_pad = _round_up(b, tb)
    if b_pad != b:
        x = jnp.pad(x, ((0, b_pad - b), (0, 0), (0, 0)))
        mats = jnp.pad(mats, ((0, b_pad - b), (0, 0), (0, 0)))
    bf = jnp.bfloat16
    out = pl.pallas_call(
        _bmm_kernel,
        out_shape=jax.ShapeDtypeStruct((b_pad, n, c), jnp.float32),
        grid=(b_pad // tb,),
        in_specs=[
            pl.BlockSpec((tb, n, c), lambda i: (i, 0, 0)),
            pl.BlockSpec((tb, c, c), lambda i: (i, 0, 0)),
        ],
        out_specs=pl.BlockSpec((tb, n, c), lambda i: (i, 0, 0)),
        compiler_params=pltpu.CompilerParams(
            dimension_semantics=("parallel",), vmem_limit_bytes=32 << 20),
    )(x.astype(bf), mats.astype(bf))
    return out[:b]


# ----------------------------------------------------------------------------
# Parameter init (deterministic, mirrors torch.nn.Linear default U(-k, k),
# k = 1/sqrt(fan_in)). Weights stored as (in, out).
# ----------------------------------------------------------------------------
def _init_linear(key, fan_in, fan_out):
    kw, kb = jax.random.split(key)
    bound = 1.0 / float(fan_in) ** 0.5
    w = jax.random.uniform(kw, (fan_in, fan_out), jnp.float32, -bound, bound)
    b = jax.random.uniform(kb, (1, fan_out), jnp.float32, -bound, bound)
    return w, b


def init_feature_tnet_params(key):
    keys = jax.random.split(key, 6)
    w1, b1 = _init_linear(keys[0], 64, 64)
    w2, b2 = _init_linear(keys[1], 64, 128)
    w3, b3 = _init_linear(keys[2], 128, 1024)
    w4, b4 = _init_linear(keys[3], 1024, 512)
    w5, b5 = _init_linear(keys[4], 512, 256)
    w6, b6 = _init_linear(keys[5], 256, 4096)
    return dict(mlp1=(w1, b1, w2, b2, w3, b3), mlp2=(w4, b4, w5, b5, w6, b6))


# ----------------------------------------------------------------------------
# Full forward pass (glue reshapes in plain JAX, compute in Pallas kernels).
# ----------------------------------------------------------------------------
@functools.partial(jax.jit, static_argnames=("num_points",))
def feature_tnet_forward(x, params, *, num_points):
    # x: (B*N, 64)
    m_rows = x.shape[0]
    batch = m_rows // num_points

    if 1024 % num_points == 0:
        # Fused MLP + flat-view maxpool: (M, 1024//N) -> free flat reshape.
        p2d = fused_point_mlp_maxpool(x, *params["mlp1"], num_points)
        pooled = p2d[:m_rows].reshape(batch, 1024)                 # (B, 1024)
    else:
        # TODO(synk): the general flat-view MaxPool1d (num_points not dividing
        # 1024) mixes channels across rows; it is pooled with plain XLA here
        # (on the bf16 activation -- max commutes with monotone rounding and
        # the next layer consumes bf16 anyway).
        h = point_mlp(x, *params["mlp1"])                          # (M_pad, 1024) bf16
        pooled = jnp.max(
            h[:m_rows].reshape(batch, 1024, num_points),
            axis=-1).astype(jnp.float32)                           # (B, 1024)

    g = global_mlp(pooled, *params["mlp2"])                        # (B, 4096)
    matrix = g.reshape(batch, 64, 64)                              # (B, 64, 64)
    xb = x.reshape(batch, num_points, 64)                          # (B, N, 64)
    out = batched_matmul(xb, matrix)                               # (B, N, 64)
    return out.reshape(m_rows, 64)                                 # (B*N, 64)


def feature_tnet_reference(x, params, num_points):
    """Pure-JAX reference with the same precision policy (bf16 in, f32 accum)."""
    w1, b1, w2, b2, w3, b3 = params["mlp1"]
    w4, b4, w5, b5, w6, b6 = params["mlp2"]
    bf = jnp.bfloat16

    def lin(h, w, b):
        return jnp.dot(h.astype(bf), w.astype(bf),
                       preferred_element_type=jnp.float32) + b

    h = jnp.maximum(lin(x, w1, b1), 0.0)
    h = jnp.maximum(lin(h, w2, b2), 0.0)
    h = jnp.maximum(lin(h, w3, b3), 0.0)
    p = jnp.max(h.reshape(-1, 1024, num_points), axis=-1)   # torch flat view
    g = jnp.maximum(lin(p, w4, b4), 0.0)
    g = jnp.maximum(lin(g, w5, b5), 0.0)
    g = lin(g, w6, b6)
    matrix = g.reshape(-1, 64, 64)
    xb = x.reshape(-1, num_points, 64)
    out = jnp.einsum("bnc,bcd->bnd", xb.astype(bf), matrix.astype(bf),
                     preferred_element_type=jnp.float32)
    return out.reshape(-1, 64)


if __name__ == "__main__":
    key = jax.random.PRNGKey(0)
    k_params, k_x = jax.random.split(key)
    params = init_feature_tnet_params(k_params)

    # Primary small config (pool tree fully 128-lane-aligned, g = 128).
    num_points = 8
    batch = 2
    x = jax.random.normal(k_x, (batch * num_points, 64), dtype=jnp.float32)

    out = feature_tnet_forward(x, params, num_points=num_points)
    out = jax.block_until_ready(out)

    ref = feature_tnet_reference(x, params, num_points)
    assert out.shape == (batch * num_points, 64), out.shape
    max_err = float(jnp.max(jnp.abs(out - ref)))
    assert max_err < 1e-2, max_err

    # Extra coverage of the fused pool when g < 128 (sub-128 tail of the
    # max tree), per the review's correctness concern.
    for np_extra in (16, 32):
        xe = jax.random.normal(jax.random.PRNGKey(np_extra),
                               (2 * np_extra, 64), dtype=jnp.float32)
        oe = jax.block_until_ready(
            feature_tnet_forward(xe, params, num_points=np_extra))
        re = feature_tnet_reference(xe, params, np_extra)
        err_e = float(jnp.max(jnp.abs(oe - re)))
        assert err_e < 1e-2, (np_extra, err_e)

    print("KERNEL_OK")
</pallas_src>

<mosaic_0001>
module attributes {stable_mosaic.version = 11 : i64} {
  func.func @_fused_point_kernel(%arg0: i32, %arg1: memref<16x64xbf16, #tpu.memory_space<vmem>>, %arg2: memref<64x64xbf16, #tpu.memory_space<vmem>>, %arg3: memref<1x64xf32, #tpu.memory_space<vmem>>, %arg4: memref<64x128xbf16, #tpu.memory_space<vmem>>, %arg5: memref<1x128xf32, #tpu.memory_space<vmem>>, %arg6: memref<128x1024xbf16, #tpu.memory_space<vmem>>, %arg7: memref<1x1024xf32, #tpu.memory_space<vmem>>, %arg8: memref<16x128xf32, #tpu.memory_space<vmem>>) attributes {dimension_semantics = [#tpu.dimension_semantics<parallel>], iteration_bounds = array<i64: 1>, scalar_prefetch = 0 : i64, scratch_operands = 0 : i64, tpu.core_type = #tpu.core_type<tc>, window_params = [{transform_indices = @transform_0, window_bounds = array<i64: 16, 64>}, {pipeline_mode = #tpu.pipeline_mode<synchronous>, transform_indices = @transform_1, window_bounds = array<i64: 64, 64>}, {pipeline_mode = #tpu.pipeline_mode<synchronous>, transform_indices = @transform_2, window_bounds = array<i64: 1, 64>}, {pipeline_mode = #tpu.pipeline_mode<synchronous>, transform_indices = @transform_3, window_bounds = array<i64: 64, 128>}, {pipeline_mode = #tpu.pipeline_mode<synchronous>, transform_indices = @transform_4, window_bounds = array<i64: 1, 128>}, {pipeline_mode = #tpu.pipeline_mode<synchronous>, transform_indices = @transform_5, window_bounds = array<i64: 128, 1024>}, {pipeline_mode = #tpu.pipeline_mode<synchronous>, transform_indices = @transform_6, window_bounds = array<i64: 1, 1024>}, {transform_indices = @transform_7, window_bounds = array<i64: 16, 128>}]} {
    %c0 = arith.constant 0 : index
    %c0_0 = arith.constant 0 : index
    %0 = vector.load %arg1[%c0, %c0_0] : memref<16x64xbf16, #tpu.memory_space<vmem>>, vector<16x64xbf16>
    %c0_1 = arith.constant 0 : index
    %c0_2 = arith.constant 0 : index
    %1 = vector.load %arg2[%c0_1, %c0_2] : memref<64x64xbf16, #tpu.memory_space<vmem>>, vector<64x64xbf16>
    %cst = arith.constant dense<0.000000e+00> : vector<16x64xf32>
    %2 = tpu.matmul %0, %1, %cst {dimension_numbers = #tpu.dot_dimension_numbers<[1], [0], [0], [1], [0, 0, 1, 1], [], []>} : vector<16x64xbf16>, vector<64x64xbf16>, vector<16x64xf32> -> vector<16x64xf32>
    %c0_3 = arith.constant 0 : index
    %c0_4 = arith.constant 0 : index
    %3 = vector.load %arg3[%c0_3, %c0_4] : memref<1x64xf32, #tpu.memory_space<vmem>>, vector<1x64xf32>
    %4 = vector.broadcast %3 : vector<1x64xf32> to vector<16x64xf32>
    %5 = arith.addf %2, %4 : vector<16x64xf32>
    %cst_5 = arith.constant 0.000000e+00 : f32
    %6 = vector.broadcast %cst_5 : f32 to vector<16x64xf32>
    %7 = arith.maximumf %5, %6 : vector<16x64xf32>
    %8 = arith.truncf %7 : vector<16x64xf32> to vector<16x64xbf16>
    %c0_6 = arith.constant 0 : index
    %c0_7 = arith.constant 0 : index
    %9 = vector.load %arg4[%c0_6, %c0_7] : memref<64x128xbf16, #tpu.memory_space<vmem>>, vector<64x128xbf16>
    %cst_8 = arith.constant dense<0.000000e+00> : vector<16x128xf32>
    %10 = tpu.matmul %8, %9, %cst_8 {dimension_numbers = #tpu.dot_dimension_numbers<[1], [0], [0], [1], [0, 0, 1, 1], [], []>} : vector<16x64xbf16>, vector<64x128xbf16>, vector<16x128xf32> -> vector<16x128xf32>
    %c0_9 = arith.constant 0 : index
    %c0_10 = arith.constant 0 : index
    %11 = vector.load %arg5[%c0_9, %c0_10] : memref<1x128xf32, #tpu.memory_space<vmem>>, vector<1x128xf32>
    %12 = vector.broadcast %11 : vector<1x128xf32> to vector<16x128xf32>
    %13 = arith.addf %10, %12 : vector<16x128xf32>
    %cst_11 = arith.constant 0.000000e+00 : f32
    %14 = vector.broadcast %cst_11 : f32 to vector<16x128xf32>
    %15 = arith.maximumf %13, %14 : vector<16x128xf32>
    %16 = arith.truncf %15 : vector<16x128xf32> to vector<16x128xbf16>
    %c0_12 = arith.constant 0 : index
    %c0_13 = arith.constant 0 : index
    %17 = vector.load %arg6[%c0_12, %c0_13] : memref<128x1024xbf16, #tpu.memory_space<vmem>>, vector<128x1024xbf16>
    %cst_14 = arith.constant dense<0.000000e+00> : vector<16x1024xf32>
    %18 = tpu.matmul %16, %17, %cst_14 {dimension_numbers = #tpu.dot_dimension_numbers<[1], [0], [0], [1], [0, 0, 1, 1], [], []>} : vector<16x128xbf16>, vector<128x1024xbf16>, vector<16x1024xf32> -> vector<16x1024xf32>
    %c0_15 = arith.constant 0 : index
    %c0_16 = arith.constant 0 : index
    %19 = vector.load %arg7[%c0_15, %c0_16] : memref<1x1024xf32, #tpu.memory_space<vmem>>, vector<1x1024xf32>
    %20 = vector.broadcast %19 : vector<1x1024xf32> to vector<16x1024xf32>
    %21 = arith.addf %18, %20 : vector<16x1024xf32>
    %cst_17 = arith.constant 0.000000e+00 : f32
    %22 = vector.broadcast %cst_17 : f32 to vector<16x1024xf32>
    %23 = arith.maximumf %21, %22 : vector<16x1024xf32>
    %24 = vector.extract_strided_slice %23 {offsets = [0, 0], sizes = [16, 512], strides = [1, 1]} : vector<16x1024xf32> to vector<16x512xf32>
    %25 = vector.extract_strided_slice %23 {offsets = [0, 512], sizes = [16, 512], strides = [1, 1]} : vector<16x1024xf32> to vector<16x512xf32>
    %26 = arith.maximumf %24, %25 : vector<16x512xf32>
    %27 = vector.extract_strided_slice %26 {offsets = [0, 0], sizes = [16, 256], strides = [1, 1]} : vector<16x512xf32> to vector<16x256xf32>
    %28 = vector.extract_strided_slice %26 {offsets = [0, 256], sizes = [16, 256], strides = [1, 1]} : vector<16x512xf32> to vector<16x256xf32>
    %29 = arith.maximumf %27, %28 : vector<16x256xf32>
    %30 = vector.extract_strided_slice %29 {offsets = [0, 0], sizes = [16, 128], strides = [1, 1]} : vector<16x256xf32> to vector<16x128xf32>
    %31 = vector.extract_strided_slice %29 {offsets = [0, 128], sizes = [16, 128], strides = [1, 1]} : vector<16x256xf32> to vector<16x128xf32>
    %32 = arith.maximumf %30, %31 : vector<16x128xf32>
    %c0_18 = arith.constant 0 : index
    %c0_19 = arith.constant 0 : index
    %33 = vector.load %arg8[%c0_18, %c0_19] : memref<16x128xf32, #tpu.memory_space<vmem>>, vector<16x128xf32>
    tpu.vector_store %arg8[%c0_18, %c0_19], %32 {strides = array<i32>} : memref<16x128xf32, #tpu.memory_space<vmem>>, vector<16x128xf32>,
    return
  }
  func.func @transform_0(%arg0: i32) -> (i32, i32) {
    %c0_i32 = arith.constant 0 : i32
    %c0_i32_0 = arith.constant 0 : i32
    return %arg0, %c0_i32 : i32, i32
  }
  func.func @transform_1(%arg0: i32) -> (i32, i32) {
    %c0_i32 = arith.constant 0 : i32
    %c0_i32_0 = arith.constant 0 : i32
    %c0_i32_1 = arith.constant 0 : i32
    return %c0_i32, %c0_i32_0 : i32, i32
  }
  func.func @transform_2(%arg0: i32) -> (i32, i32) {
    %c0_i32 = arith.constant 0 : i32
    %c0_i32_0 = arith.constant 0 : i32
    %c0_i32_1 = arith.constant 0 : i32
    return %c0_i32, %c0_i32_0 : i32, i32
  }
  func.func @transform_3(%arg0: i32) -> (i32, i32) {
    %c0_i32 = arith.constant 0 : i32
    %c0_i32_0 = arith.constant 0 : i32
    %c0_i32_1 = arith.constant 0 : i32
    return %c0_i32, %c0_i32_0 : i32, i32
  }
  func.func @transform_4(%arg0: i32) -> (i32, i32) {
    %c0_i32 = arith.constant 0 : i32
    %c0_i32_0 = arith.constant 0 : i32
    %c0_i32_1 = arith.constant 0 : i32
    return %c0_i32, %c0_i32_0 : i32, i32
  }
  func.func @transform_5(%arg0: i32) -> (i32, i32) {
    %c0_i32 = arith.constant 0 : i32
    %c0_i32_0 = arith.constant 0 : i32
    %c0_i32_1 = arith.constant 0 : i32
    return %c0_i32, %c0_i32_0 : i32, i32
  }
  func.func @transform_6(%arg0: i32) -> (i32, i32) {
    %c0_i32 = arith.constant 0 : i32
    %c0_i32_0 = arith.constant 0 : i32
    %c0_i32_1 = arith.constant 0 : i32
    return %c0_i32, %c0_i32_0 : i32, i32
  }
  func.func @transform_7(%arg0: i32) -> (i32, i32) {
    %c0_i32 = arith.constant 0 : i32
    %c0_i32_0 = arith.constant 0 : i32
    return %arg0, %c0_i32 : i32, i32
  }
}

module attributes {stable_mosaic.version = 11 : i64} {
  func.func @_global_mlp_kernel(%arg0: i32, %arg1: memref<2x1024xbf16, #tpu.memory_space<vmem>>, %arg2: memref<1024x512xbf16, #tpu.memory_space<vmem>>, %arg3: memref<1x512xf32, #tpu.memory_space<vmem>>, %arg4: memref<512x256xbf16, #tpu.memory_space<vmem>>, %arg5: memref<1x256xf32, #tpu.memory_space<vmem>>, %arg6: memref<256x2048xbf16, #tpu.memory_space<vmem>>, %arg7: memref<1x2048xf32, #tpu.memory_space<vmem>>, %arg8: memref<2x2048xf32, #tpu.memory_space<vmem>>) attributes {dimension_semantics = [#tpu.dimension_semantics<parallel>], iteration_bounds = array<i64: 2>, scalar_prefetch = 0 : i64, scratch_operands = 0 : i64, tpu.core_type = #tpu.core_type<tc>, window_params = [{pipeline_mode = #tpu.pipeline_mode<synchronous>, transform_indices = @transform_0, window_bounds = array<i64: 2, 1024>}, {pipeline_mode = #tpu.pipeline_mode<synchronous>, transform_indices = @transform_1, window_bounds = array<i64: 1024, 512>}, {pipeline_mode = #tpu.pipeline_mode<synchronous>, transform_indices = @transform_2, window_bounds = array<i64: 1, 512>}, {pipeline_mode = #tpu.pipeline_mode<synchronous>, transform_indices = @transform_3, window_bounds = array<i64: 512, 256>}, {pipeline_mode = #tpu.pipeline_mode<synchronous>, transform_indices = @transform_4, window_bounds = array<i64: 1, 256>}, {transform_indices = @transform_5, window_bounds = array<i64: 256, 2048>}, {transform_indices = @transform_6, window_bounds = array<i64: 1, 2048>}, {transform_indices = @transform_7, window_bounds = array<i64: 2, 2048>}]} {
    %c0 = arith.constant 0 : index
    %c0_0 = arith.constant 0 : index
    %0 = vector.load %arg1[%c0, %c0_0] : memref<2x1024xbf16, #tpu.memory_space<vmem>>, vector<2x1024xbf16>
    %c0_1 = arith.constant 0 : index
    %c0_2 = arith.constant 0 : index
    %1 = vector.load %arg2[%c0_1, %c0_2] : memref<1024x512xbf16, #tpu.memory_space<vmem>>, vector<1024x512xbf16>
    %cst = arith.constant dense<0.000000e+00> : vector<2x512xf32>
    %2 = tpu.matmul %0, %1, %cst {dimension_numbers = #tpu.dot_dimension_numbers<[1], [0], [0], [1], [0, 0, 1, 1], [], []>} : vector<2x1024xbf16>, vector<1024x512xbf16>, vector<2x512xf32> -> vector<2x512xf32>
    %c0_3 = arith.constant 0 : index
    %c0_4 = arith.constant 0 : index
    %3 = vector.load %arg3[%c0_3, %c0_4] : memref<1x512xf32, #tpu.memory_space<vmem>>, vector<1x512xf32>
    %4 = vector.broadcast %3 : vector<1x512xf32> to vector<2x512xf32>
    %5 = arith.addf %2, %4 : vector<2x512xf32>
    %cst_5 = arith.constant 0.000000e+00 : f32
    %6 = vector.broadcast %cst_5 : f32 to vector<2x512xf32>
    %7 = arith.maximumf %5, %6 : vector<2x512xf32>
    %8 = arith.truncf %7 : vector<2x512xf32> to vector<2x512xbf16>
    %c0_6 = arith.constant 0 : index
    %c0_7 = arith.constant 0 : index
    %9 = vector.load %arg4[%c0_6, %c0_7] : memref<512x256xbf16, #tpu.memory_space<vmem>>, vector<512x256xbf16>
    %cst_8 = arith.constant dense<0.000000e+00> : vector<2x256xf32>
    %10 = tpu.matmul %8, %9, %cst_8 {dimension_numbers = #tpu.dot_dimension_numbers<[1], [0], [0], [1], [0, 0, 1, 1], [], []>} : vector<2x512xbf16>, vector<512x256xbf16>, vector<2x256xf32> -> vector<2x256xf32>
    %c0_9 = arith.constant 0 : index
    %c0_10 = arith.constant 0 : index
    %11 = vector.load %arg5[%c0_9, %c0_10] : memref<1x256xf32, #tpu.memory_space<vmem>>, vector<1x256xf32>
    %12 = vector.broadcast %11 : vector<1x256xf32> to vector<2x256xf32>
    %13 = arith.addf %10, %12 : vector<2x256xf32>
    %cst_11 = arith.constant 0.000000e+00 : f32
    %14 = vector.broadcast %cst_11 : f32 to vector<2x256xf32>
    %15 = arith.maximumf %13, %14 : vector<2x256xf32>
    %16 = arith.truncf %15 : vector<2x256xf32> to vector<2x256xbf16>
    %c0_12 = arith.constant 0 : index
    %c0_13 = arith.constant 0 : index
    %17 = vector.load %arg6[%c0_12, %c0_13] : memref<256x2048xbf16, #tpu.memory_space<vmem>>, vector<256x2048xbf16>
    %cst_14 = arith.constant dense<0.000000e+00> : vector<2x2048xf32>
    %18 = tpu.matmul %16, %17, %cst_14 {dimension_numbers = #tpu.dot_dimension_numbers<[1], [0], [0], [1], [0, 0, 1, 1], [], []>} : vector<2x256xbf16>, vector<256x2048xbf16>, vector<2x2048xf32> -> vector<2x2048xf32>
    %c0_15 = arith.constant 0 : index
    %c0_16 = arith.constant 0 : index
    %19 = vector.load %arg7[%c0_15, %c0_16] : memref<1x2048xf32, #tpu.memory_space<vmem>>, vector<1x2048xf32>
    %20 = vector.broadcast %19 : vector<1x2048xf32> to vector<2x2048xf32>
    %21 = arith.addf %18, %20 : vector<2x2048xf32>
    %c0_17 = arith.constant 0 : index
    %c0_18 = arith.constant 0 : index
    %22 = vector.load %arg8[%c0_17, %c0_18] : memref<2x2048xf32, #tpu.memory_space<vmem>>, vector<2x2048xf32>
    tpu.vector_store %arg8[%c0_17, %c0_18], %21 {strides = array<i32>} : memref<2x2048xf32, #tpu.memory_space<vmem>>, vector<2x2048xf32>,
    return
  }
  func.func @transform_0(%arg0: i32) -> (i32, i32) {
    %c0_i32 = arith.constant 0 : i32
    %c0_i32_0 = arith.constant 0 : i32
    %c0_i32_1 = arith.constant 0 : i32
    return %c0_i32, %c0_i32_0 : i32, i32
  }
  func.func @transform_1(%arg0: i32) -> (i32, i32) {
    %c0_i32 = arith.constant 0 : i32
    %c0_i32_0 = arith.constant 0 : i32
    %c0_i32_1 = arith.constant 0 : i32
    return %c0_i32, %c0_i32_0 : i32, i32
  }
  func.func @transform_2(%arg0: i32) -> (i32, i32) {
    %c0_i32 = arith.constant 0 : i32
    %c0_i32_0 = arith.constant 0 : i32
    %c0_i32_1 = arith.constant 0 : i32
    return %c0_i32, %c0_i32_0 : i32, i32
  }
  func.func @transform_3(%arg0: i32) -> (i32, i32) {
    %c0_i32 = arith.constant 0 : i32
    %c0_i32_0 = arith.constant 0 : i32
    %c0_i32_1 = arith.constant 0 : i32
    return %c0_i32, %c0_i32_0 : i32, i32
  }
  func.func @transform_4(%arg0: i32) -> (i32, i32) {
    %c0_i32 = arith.constant 0 : i32
    %c0_i32_0 = arith.constant 0 : i32
    %c0_i32_1 = arith.constant 0 : i32
    return %c0_i32, %c0_i32_0 : i32, i32
  }
  func.func @transform_5(%arg0: i32) -> (i32, i32) {
    %c0_i32 = arith.constant 0 : i32
    %c0_i32_0 = arith.constant 0 : i32
    return %c0_i32, %arg0 : i32, i32
  }
  func.func @transform_6(%arg0: i32) -> (i32, i32) {
    %c0_i32 = arith.constant 0 : i32
    %c0_i32_0 = arith.constant 0 : i32
    return %c0_i32, %arg0 : i32, i32
  }
  func.func @transform_7(%arg0: i32) -> (i32, i32) {
    %c0_i32 = arith.constant 0 : i32
    %c0_i32_0 = arith.constant 0 : i32
    return %c0_i32, %arg0 : i32, i32
  }
}

module attributes {stable_mosaic.version = 11 : i64} {
  func.func @_bmm_kernel(%arg0: i32, %arg1: memref<2x8x64xbf16, #tpu.memory_space<vmem>>, %arg2: memref<2x64x64xbf16, #tpu.memory_space<vmem>>, %arg3: memref<2x8x64xf32, #tpu.memory_space<vmem>>) attributes {dimension_semantics = [#tpu.dimension_semantics<parallel>], iteration_bounds = array<i64: 1>, scalar_prefetch = 0 : i64, scratch_operands = 0 : i64, tpu.core_type = #tpu.core_type<tc>, window_params = [{transform_indices = @transform_0, window_bounds = array<i64: 2, 8, 64>}, {transform_indices = @transform_1, window_bounds = array<i64: 2, 64, 64>}, {transform_indices = @transform_2, window_bounds = array<i64: 2, 8, 64>}]} {
    %c0 = arith.constant 0 : index
    %c0_0 = arith.constant 0 : index
    %c0_1 = arith.constant 0 : index
    %0 = vector.load %arg1[%c0, %c0_0, %c0_1] : memref<2x8x64xbf16, #tpu.memory_space<vmem>>, vector<2x8x64xbf16>
    %c0_2 = arith.constant 0 : index
    %c0_3 = arith.constant 0 : index
    %c0_4 = arith.constant 0 : index
    %1 = vector.load %arg2[%c0_2, %c0_3, %c0_4] : memref<2x64x64xbf16, #tpu.memory_space<vmem>>, vector<2x64x64xbf16>
    "tpu.trace_start"() <{level = 10 : i32, message = "bnc,bcd->bnd"}> : () -> ()
    %cst = arith.constant dense<0.000000e+00> : vector<2x8x64xf32>
    %2 = tpu.matmul %0, %1, %cst {dimension_numbers = #tpu.dot_dimension_numbers<[2], [1], [1], [2], [0, 0, 0, 1, 1, 2], [0], [0]>} : vector<2x8x64xbf16>, vector<2x64x64xbf16>, vector<2x8x64xf32> -> vector<2x8x64xf32>
    "tpu.trace_stop"() : () -> ()
    %c0_5 = arith.constant 0 : index
    %c0_6 = arith.constant 0 : index
    %c0_7 = arith.constant 0 : index
    %3 = vector.load %arg3[%c0_5, %c0_6, %c0_7] : memref<2x8x64xf32, #tpu.memory_space<vmem>>, vector<2x8x64xf32>
    tpu.vector_store %arg3[%c0_5, %c0_6, %c0_7], %2 {strides = array<i32>} : memref<2x8x64xf32, #tpu.memory_space<vmem>>, vector<2x8x64xf32>,
    return
  }
  func.func @transform_0(%arg0: i32) -> (i32, i32, i32) {
    %c0_i32 = arith.constant 0 : i32
    %c0_i32_0 = arith.constant 0 : i32
    %c0_i32_1 = arith.constant 0 : i32
    return %arg0, %c0_i32, %c0_i32_0 : i32, i32, i32
  }
  func.func @transform_1(%arg0: i32) -> (i32, i32, i32) {
    %c0_i32 = arith.constant 0 : i32
    %c0_i32_0 = arith.constant 0 : i32
    %c0_i32_1 = arith.constant 0 : i32
    return %arg0, %c0_i32, %c0_i32_0 : i32, i32, i32
  }
  func.func @transform_2(%arg0: i32) -> (i32, i32, i32) {
    %c0_i32 = arith.constant 0 : i32
    %c0_i32_0 = arith.constant 0 : i32
    %c0_i32_1 = arith.constant 0 : i32
    return %arg0, %c0_i32, %c0_i32_0 : i32, i32, i32
  }
}

</mosaic_0001>

<bundles_post_ra>
// kernel: feature_tnet_forward.3
= control target key start
LH: loop header
LB: loop body
LE: loop exit
PB: predicated region body
PF: predicated region fallthrough
CT: control target
= control target key end

     0   :  { %vm70_vm0 = vcmask 523264   ;;  %s1534_s1 = inlined_call_operand.vmem [shape: bf16[64,64], index: 1, kind: input, shape index: {}]   ;;  %s1535_s2 = inlined_call_operand.vmem [shape: f32[1,64], index: 2, kind: input, shape index: {}]   ;;  %s1536_s0 = inlined_call_operand.vmem [shape: bf16[16,64], index: 0, kind: input, shape index: {}]   ;;  %s1537_s4 = inlined_call_operand.vmem [shape: f32[1,128], index: 4, kind: input, shape index: {}]   ;;  %s1538_s3 = inlined_call_operand.vmem [shape: bf16[64,128], index: 3, kind: input, shape index: {}]   ;;  %s1539_s5 = inlined_call_operand.vmem [shape: bf16[128,1024], index: 5, kind: input, shape index: {}]   ;;  %s1540_s6 = inlined_call_operand.vmem [shape: f32[1,1024], index: 6, kind: input, shape index: {}]   ;;  %s1541_s7 = inlined_call_operand.vmem [shape: f32[16,128], index: 7, kind: output, shape index: {}]  }
   0x1   :  { %v995_v0 = vld [vmem:[%s1534_s1 + $0x18] sm:$0xff]  ;;  %v994_v1 = vld [vmem:[%s1534_s1 + $0x10] sm:$0xff]  ;;  %v993_v2 = vld [vmem:[%s1534_s1 + $0x8] sm:$0xff] }
   0x2   :  { %78 = vmatpush.bf16.msra.mxu0 %v995_v0  ;;  %v992_v3 = vld [vmem:[%s1534_s1] sm:$0xff]  ;;  %v999_v5 = vld [vmem:[%s1538_s3 + $0x18] sm:$0xff]  ;;  %v998_v6 = vld [vmem:[%s1538_s3 + $0x10] sm:$0xff] }
   0x3   :  { %v991_v4 = vld [vmem:[%s1536_s0] sm:$0xff]  ;;  %134 = vmatpush.bf16.msra.mxu1 %v999_v5  ;;  %v997_v7 = vld [vmem:[%s1538_s3 + $0x8] sm:$0xff] }
   0x4   :  { %v996_v8 = vld [vmem:[%s1538_s3] sm:$0xff]  ;;  %v969_v14 = vld [vmem:[%s1539_s5 + $0x1c8] sm:$0xf]  ;;  %v1057_v18 = vld [vmem:[%s1539_s5 + $0x1cc] sm:$0xf] }
   0x5   :  { %v961_v9 = vld [vmem:[%s1539_s5 + $0x1c0] sm:$0xf]  ;;  %v1056_v11 = vld [vmem:[%s1539_s5 + $0x1c4] sm:$0xf]  ;;  %v1061_v15 = vld [vmem:[%s1539_s5 + $0x1e4] sm:$0xf0] }
   0x6   :  { %79 = vmatpush.bf16.msra.mxu0 %v994_v1  ;;  %v1060_v10 = vld [vmem:[%s1539_s5 + $0x1dc] sm:$0xf0]  ;;  %v963_v13 = vld [vmem:[%s1539_s5 + $0x1e0] sm:$0xf0]  ;;  %v970_v17 = vor.u32 %v1061_v15, %v969_v14  ;;  %v971_v19 = vld [vmem:[%s1539_s5 + $0x1e8] sm:$0xf0] }
   0x7   :  { %135 = vmatpush.bf16.msra.mxu1 %v998_v6  ;;  %v962_v12 = vor.u32 %v1060_v10, %v961_v9  ;;  %v966_v16 = vor.u32 %v1056_v11, %v963_v13  ;;  %v929_v20 = vld [vmem:[%s1539_s5 + $0x180] sm:$0xf]  ;;  %v974_v21 = vor.u32 %v1057_v18, %v971_v19  ;;  %v1048_v23 = vld [vmem:[%s1539_s5 + $0x184] sm:$0xf]  ;;  %v937_v27 = vld [vmem:[%s1539_s5 + $0x188] sm:$0xf] }
   0x8   :  { %v1052_v22 = vld [vmem:[%s1539_s5 + $0x19c] sm:$0xf0]  ;;  %v931_v24 = vld [vmem:[%s1539_s5 + $0x1a0] sm:$0xf0]  ;;  %v1053_v28 = vld [vmem:[%s1539_s5 + $0x1a4] sm:$0xf0] }
   0x9   :  { %549 = vmatpush.bf16.msra.mxu2 %v962_v12  ;;  %563 = vmatpush.bf16.msra.mxu3 %v966_v16  ;;  %v930_v25 = vor.u32 %v1052_v22, %v929_v20  ;;  %v934_v26 = vor.u32 %v1048_v23, %v931_v24  ;;  %v1049_v29 = vld [vmem:[%s1539_s5 + $0x18c] sm:$0xf]  ;;  %v938_v30 = vor.u32 %v1053_v28, %v937_v27  ;;  %v897_v32 = vld [vmem:[%s1539_s5 + $0x140] sm:$0xf]  ;;  %v1040_v35 = vld [vmem:[%s1539_s5 + $0x144] sm:$0xf] }
   0xa   :  { %80 = vmatpush.bf16.msra.mxu0 %v993_v2  ;;  %v939_v31 = vld [vmem:[%s1539_s5 + $0x1a8] sm:$0xf0]  ;;  %v1044_v33 = vld [vmem:[%s1539_s5 + $0x15c] sm:$0xf0]  ;;  %v899_v36 = vld [vmem:[%s1539_s5 + $0x160] sm:$0xf0] }
   0xb   :  { %136 = vmatpush.bf16.msra.mxu1 %v997_v7  ;;  %v942_v34 = vor.u32 %v1049_v29, %v939_v31  ;;  %v905_v37 = vld [vmem:[%s1539_s5 + $0x148] sm:$0xf]  ;;  %v898_v38 = vor.u32 %v1044_v33, %v897_v32  ;;  %v1041_v40 = vld [vmem:[%s1539_s5 + $0x14c] sm:$0xf]  ;;  %v902_v42 = vor.u32 %v1040_v35, %v899_v36  ;;  %v865_v44 = vld [vmem:[%s1539_s5 + $0x100] sm:$0xf] }
   0xc   :  { %v1045_v39 = vld [vmem:[%s1539_s5 + $0x164] sm:$0xf0]  ;;  %v907_v41 = vld [vmem:[%s1539_s5 + $0x168] sm:$0xf0]  ;;  %v1036_v45 = vld [vmem:[%s1539_s5 + $0x11c] sm:$0xf0] }
   0xd   :  { %550 = vmatpush.bf16.msra.mxu2 %v930_v25  ;;  %564 = vmatpush.bf16.msra.mxu3 %v934_v26  ;;  %v906_v43 = vor.u32 %v1045_v39, %v905_v37  ;;  %v1032_v46 = vld [vmem:[%s1539_s5 + $0x104] sm:$0xf]  ;;  %v910_v47 = vor.u32 %v1041_v40, %v907_v41  ;;  %v873_v49 = vld [vmem:[%s1539_s5 + $0x108] sm:$0xf]  ;;  %v1033_v51 = vld [vmem:[%s1539_s5 + $0x10c] sm:$0xf]  ;;  %v866_v53 = vor.u32 %v1036_v45, %v865_v44 }
   0xe   :  { %81 = vmatpush.bf16.msra.mxu0 %v992_v3  ;;  %v867_v48 = vld [vmem:[%s1539_s5 + $0x120] sm:$0xf0]  ;;  %v1037_v50 = vld [vmem:[%s1539_s5 + $0x124] sm:$0xf0]  ;;  %v875_v52 = vld [vmem:[%s1539_s5 + $0x128] sm:$0xf0] }
   0xf   :  { %137 = vmatpush.bf16.msra.mxu1 %v996_v8  ;;  %v870_v54 = vor.u32 %v1032_v46, %v867_v48  ;;  %v874_v55 = vor.u32 %v1037_v50, %v873_v49  ;;  %v833_v56 = vld [vmem:[%s1539_s5 + $0xc0] sm:$0xf]  ;;  %v1024_v58 = vld [vmem:[%s1539_s5 + $0xc4] sm:$0xf]  ;;  %v878_v59 = vor.u32 %v1033_v51, %v875_v52  ;;  %v841_v61 = vld [vmem:[%s1539_s5 + $0xc8] sm:$0xf] }
  0x10   :  { %v1028_v57 = vld [vmem:[%s1539_s5 + $0xdc] sm:$0xf0]  ;;  %v835_v60 = vld [vmem:[%s1539_s5 + $0xe0] sm:$0xf0]  ;;  %v1029_v62 = vld [vmem:[%s1539_s5 + $0xe4] sm:$0xf0] }
  0x11   :  { %717 = vmatmul.msk.bf16.vlgmr.msra.gmra.mxu0 %vm70_vm0, %v991_v4  ;;  %551 = vmatpush.bf16.msra.mxu2 %v898_v38  ;;  %v1025_v63 = vld [vmem:[%s1539_s5 + $0xcc] sm:$0xf]  ;;  %v834_v1 = vor.u32 %v1028_v57, %v833_v56  ;;  %v838_v2 = vor.u32 %v1024_v58, %v835_v60  ;;  %v842_v3 = vor.u32 %v1029_v62, %v841_v61  ;;  %v801_v4 = vld [vmem:[%s1539_s5 + $0x80] sm:$0xf]  ;;  %v1016_v6 = vld [vmem:[%s1539_s5 + $0x84] sm:$0xf] }
  0x12   :  { %577 = vmatpush.bf16.msrb.mxu0 %v970_v17  ;;  %565 = vmatpush.bf16.msra.mxu3 %v902_v42  ;;  %v843_v0 = vld [vmem:[%s1539_s5 + $0xe8] sm:$0xf0]  ;;  %v1020_v5 = vld [vmem:[%s1539_s5 + $0x9c] sm:$0xf0]  ;;  %v803_v9 = vld [vmem:[%s1539_s5 + $0xa0] sm:$0xf0] }
  0x13   :  { %591 = vmatpush.bf16.msrb.mxu1 %v974_v21  ;;  %v846_v8 = vor.u32 %v1025_v63, %v843_v0  ;;  %v809_v10 = vld [vmem:[%s1539_s5 + $0x88] sm:$0xf]  ;;  %v1017_v12 = vld [vmem:[%s1539_s5 + $0x8c] sm:$0xf]  ;;  %v1064_v14 = vld [vmem:[%s1535_s2] ss:$0 sm:$0xff]  ;;  %v802_v15 = vor.u32 %v1020_v5, %v801_v4  ;;  %v806_v16 = vor.u32 %v1016_v6, %v803_v9 }
  0x14   :  { %v1021_v11 = vld [vmem:[%s1539_s5 + $0xa4] sm:$0xf0]  ;;  %v811_v13 = vld [vmem:[%s1539_s5 + $0xa8] sm:$0xf0]  ;;  %v769_v18 = vld [vmem:[%s1539_s5 + $0x40] sm:$0xf] }
  0x15   :  { %552 = vmatpush.bf16.msra.mxu2 %v866_v53  ;;  %v810_v17 = vor.u32 %v1021_v11, %v809_v10  ;;  %v1012_v19 = vld [vmem:[%s1539_s5 + $0x5c] sm:$0xf0]  ;;  %v1008_v20 = vld [vmem:[%s1539_s5 + $0x44] sm:$0xf]  ;;  %v814_v21 = vor.u32 %v1017_v12, %v811_v13  ;;  %v777_v23 = vld [vmem:[%s1539_s5 + $0x48] sm:$0xf] }
  0x16   :  { %578 = vmatpush.bf16.msrb.mxu0 %v938_v30  ;;  %566 = vmatpush.bf16.msra.mxu3 %v870_v54  ;;  %v771_v22 = vld [vmem:[%s1539_s5 + $0x60] sm:$0xf0]  ;;  %v1013_v24 = vld [vmem:[%s1539_s5 + $0x64] sm:$0xf0]  ;;  %v1009_v25 = vld [vmem:[%s1539_s5 + $0x4c] sm:$0xf]  ;;  %v770_v27 = vor.u32 %v1012_v19, %v769_v18 }
  0x17   :  { %592 = vmatpush.bf16.msrb.mxu1 %v942_v34  ;;  %v779_v26 = vld [vmem:[%s1539_s5 + $0x68] sm:$0xf0]  ;;  %v774_v29 = vor.u32 %v1008_v20, %v771_v22  ;;  %v778_v30 = vor.u32 %v1013_v24, %v777_v23  ;;  %v737_v31 = vld [vmem:[%s1539_s5] sm:$0xf]  ;;  %v1000_v35 = vld [vmem:[%s1539_s5 + $0x4] sm:$0xf] }
  0x18   :  { %v1004_v32 = vld [vmem:[%s1539_s5 + $0x1c] sm:$0xf0]  ;;  %v782_v34 = vor.u32 %v1009_v25, %v779_v26  ;;  %v739_v36 = vld [vmem:[%s1539_s5 + $0x20] sm:$0xf0]  ;;  %v745_v37 = vld [vmem:[%s1539_s5 + $0x8] sm:$0xf] }
  0x19   :  { %553 = vmatpush.bf16.msra.mxu2 %v834_v1  ;;  %v1005_v39 = vld [vmem:[%s1539_s5 + $0x24] sm:$0xf0]  ;;  %v1001_v40 = vld [vmem:[%s1539_s5 + $0xc] sm:$0xf]  ;;  %v738_v42 = vor.u32 %v1004_v32, %v737_v31  ;;  %v742_v45 = vor.u32 %v1000_v35, %v739_v36  ;;  %v977_v49 = vld [vmem:[%s1539_s5 + $0x1d0] sm:$0xf] }
  0x1a   :  { %579 = vmatpush.bf16.msrb.mxu0 %v906_v43  ;;  %567 = vmatpush.bf16.msra.mxu3 %v838_v2  ;;  %v747_v41 = vld [vmem:[%s1539_s5 + $0x28] sm:$0xf0]  ;;  %v746_v46 = vor.u32 %v1005_v39, %v745_v37  ;;  %v1062_v50 = vld [vmem:[%s1539_s5 + $0x1ec] sm:$0xf0]  ;;  %v1058_v51 = vld [vmem:[%s1539_s5 + $0x1d4] sm:$0xf] }
  0x1b   :  { %593 = vmatpush.bf16.msrb.mxu1 %v910_v47  ;;  %v750_v47 = vor.u32 %v1001_v40, %v747_v41  ;;  %v978_v52 = vor.u32 %v1062_v50, %v977_v49  ;;  %v979_v53 = vld [vmem:[%s1539_s5 + $0x1f0] sm:$0xf0]  ;;  %v985_v54 = vld [vmem:[%s1539_s5 + $0x1d8] sm:$0xf]  ;;  %v1059_v58 = vld [vmem:[%s1539_s5 + $0x1dc] sm:$0xf] }
  0x1c   :  { %v982_v56 = vor.u32 %v1058_v51, %v979_v53  ;;  %v945_v61 = vld [vmem:[%s1539_s5 + $0x190] sm:$0xf]  ;;  %v1050_v63 = vld [vmem:[%s1539_s5 + $0x194] sm:$0xf]  ;;  %v953_v2 = vld [vmem:[%s1539_s5 + $0x198] sm:$0xf] }
  0x1d   :  { %554 = vmatpush.bf16.msra.mxu2 %v802_v15  ;;  %v1054_v62 = vld [vmem:[%s1539_s5 + $0x1ac] sm:$0xf0]  ;;  %v947_v1 = vld [vmem:[%s1539_s5 + $0x1b0] sm:$0xf0]  ;;  %v1051_v6 = vld [vmem:[%s1539_s5 + $0x19c] sm:$0xf] }
  0x1e   :  { %580 = vmatpush.bf16.msrb.mxu0 %v874_v55  ;;  %568 = vmatpush.bf16.msra.mxu3 %v806_v16  ;;  %v1063_v55 = vld [vmem:[%s1539_s5 + $0x1f4] sm:$0xf0]  ;;  %v946_v0 = vor.u32 %v1054_v62, %v945_v61  ;;  %v950_v4 = vor.u32 %v1050_v63, %v947_v1  ;;  %v913_v9 = vld [vmem:[%s1539_s5 + $0x150] sm:$0xf]  ;;  %v1042_v11 = vld [vmem:[%s1539_s5 + $0x154] sm:$0xf] }
  0x1f   :  { %594 = vmatpush.bf16.msrb.mxu1 %v878_v59  ;;  %v986_v57 = vor.u32 %v1063_v55, %v985_v54  ;;  %v987_v59 = vld [vmem:[%s1539_s5 + $0x1f8] sm:$0xf0]  ;;  %v1046_v10 = vld [vmem:[%s1539_s5 + $0x16c] sm:$0xf0]  ;;  %v915_v13 = vld [vmem:[%s1539_s5 + $0x170] sm:$0xf0] }
  0x20   :  { %v990_v60 = vor.u32 %v1059_v58, %v987_v59  ;;  %v914_v12 = vor.u32 %v1046_v10, %v913_v9  ;;  %v1047_v15 = vld [vmem:[%s1539_s5 + $0x174] sm:$0xf0]  ;;  %v918_v16 = vor.u32 %v1042_v11, %v915_v13  ;;  %v1043_v18 = vld [vmem:[%s1539_s5 + $0x15c] sm:$0xf]  ;;  %v1038_v22 = vld [vmem:[%s1539_s5 + $0x12c] sm:$0xf0] }
  0x21   :  { %555 = vmatpush.bf16.msra.mxu2 %v770_v27  ;;  %v923_v19 = vld [vmem:[%s1539_s5 + $0x178] sm:$0xf0]  ;;  %v1034_v23 = vld [vmem:[%s1539_s5 + $0x114] sm:$0xf]  ;;  %v889_v26 = vld [vmem:[%s1539_s5 + $0x118] sm:$0xf] }
  0x22   :  { %581 = vmatpush.bf16.msrb.mxu0 %v842_v3  ;;  %569 = vmatpush.bf16.msra.mxu3 %v774_v29  ;;  %v1055_v3 = vld [vmem:[%s1539_s5 + $0x1b4] sm:$0xf0]  ;;  %v926_v20 = vor.u32 %v1043_v18, %v923_v19  ;;  %v883_v25 = vld [vmem:[%s1539_s5 + $0x130] sm:$0xf0]  ;;  %v891_v31 = vld [vmem:[%s1539_s5 + $0x138] sm:$0xf0] }
  0x23   :  { %595 = vmatpush.bf16.msrb.mxu1 %v846_v8  ;;  %v954_v5 = vor.u32 %v1055_v3, %v953_v2  ;;  %v1039_v27 = vld [vmem:[%s1539_s5 + $0x134] sm:$0xf0]  ;;  %v1026_v35 = vld [vmem:[%s1539_s5 + $0xd4] sm:$0xf]  ;;  %v1019_v53 = vld [vmem:[%s1539_s5 + $0x9c] sm:$0xf] }
  0x24   :  { %v890_v29 = vor.u32 %v1039_v27, %v889_v26  ;;  %v851_v37 = vld [vmem:[%s1539_s5 + $0xf0] sm:$0xf0]  ;;  %v1031_v39 = vld [vmem:[%s1539_s5 + $0xf4] sm:$0xf0]  ;;  %v827_v55 = vld [vmem:[%s1539_s5 + $0xb8] sm:$0xf0] }
  0x25   :  { %556 = vmatpush.bf16.msra.mxu2 %v738_v42  ;;  %v854_v40 = vor.u32 %v1026_v35, %v851_v37  ;;  %v1027_v42 = vld [vmem:[%s1539_s5 + $0xdc] sm:$0xf]  ;;  %v825_v51 = vld [vmem:[%s1539_s5 + $0x98] sm:$0xf]  ;;  %v830_v58 = vor.u32 %v1019_v53, %v827_v55  ;;  %v1010_v59 = vld [vmem:[%s1539_s5 + $0x54] sm:$0xf] }
  0x26   :  { %582 = vmatpush.bf16.msrb.mxu0 %v810_v17  ;;  %570 = vmatpush.bf16.msra.mxu3 %v742_v45  ;;  %v793_v61 = vld [vmem:[%s1539_s5 + $0x58] sm:$0xf]  ;;  %v795_v1 = vld [vmem:[%s1539_s5 + $0x78] sm:$0xf0]  ;;  %v1065_v18 = vld [vmem:[%s1537_s4] ss:$0 sm:$0xff] }
  0x27   :  { %596 = vmatpush.bf16.msrb.mxu1 %v814_v21  ;;  %v881_v21 = vld [vmem:[%s1539_s5 + $0x110] sm:$0xf]  ;;  %v1015_v63 = vld [vmem:[%s1539_s5 + $0x74] sm:$0xf0]  ;;  %v1003_v11 = vld [vmem:[%s1539_s5 + $0x1c] sm:$0xf] }
  0x28   :  { %v882_v24 = vor.u32 %v1038_v22, %v881_v21  ;;  %v794_v3 = vor.u32 %v1015_v63, %v793_v61  ;;  %v761_v9 = vld [vmem:[%s1539_s5 + $0x18] sm:$0xf] }
  0x29   :  { %605 = vmatpush.bf16.msrb.mxu2 %v978_v52  ;;  %v1023_v52 = vld [vmem:[%s1539_s5 + $0xb4] sm:$0xf0] }
  0x2a   :  { %583 = vmatpush.bf16.msrb.mxu0 %v778_v30  ;;  %619 = vmatpush.bf16.msrb.mxu3 %v982_v56  ;;  %v1035_v30 = vld [vmem:[%s1539_s5 + $0x11c] sm:$0xf]  ;;  %v826_v54 = vor.u32 %v1023_v52, %v825_v51  ;;  %v785_v56 = vld [vmem:[%s1539_s5 + $0x50] sm:$0xf]  ;;  %v1007_v10 = vld [vmem:[%s1539_s5 + $0x34] sm:$0xf0] }
  0x2b   :  { %597 = vmatpush.bf16.msrb.mxu1 %v782_v34  ;;  %v894_v32 = vor.u32 %v1035_v30, %v891_v31  ;;  %v1030_v34 = vld [vmem:[%s1539_s5 + $0xec] sm:$0xf0]  ;;  %v211_v31 = vld [vmem:[%s1540_s6] sm:$0xff] }
  0x2c   :  { %v220_v35 = vperm.slane %v211_v31, 7  ;;  %v216_v37 = vperm.slane %v211_v31, 3 }
  0x2d   :  { %606 = vmatpush.bf16.msrb.mxu2 %v946_v0  ;;  %v1011_v0 = vld [vmem:[%s1539_s5 + $0x5c] sm:$0xf] }
  0x2e   :  { %584 = vmatpush.bf16.msrb.mxu0 %v746_v46  ;;  %620 = vmatpush.bf16.msrb.mxu3 %v950_v4  ;;  %v1022_v46 = vld [vmem:[%s1539_s5 + $0xac] sm:$0xf0] }
  0x2f   :  { %598 = vmatpush.bf16.msrb.mxu1 %v750_v47  ;;  %v1018_v47 = vld [vmem:[%s1539_s5 + $0x94] sm:$0xf]  ;;  %v753_v4 = vld [vmem:[%s1539_s5 + $0x10] sm:$0xf] }
  0x31   :  { %607 = vmatpush.bf16.msrb.mxu2 %v914_v12  ;;  %v763_v12 = vld [vmem:[%s1539_s5 + $0x38] sm:$0xf0] }
  0x32   :  { %633 = vmatpush.bf16.msra.mxu0 %v986_v57  ;;  %621 = vmatpush.bf16.msrb.mxu3 %v918_v16  ;;  %v1014_v57 = vld [vmem:[%s1539_s5 + $0x6c] sm:$0xf0]  ;;  %v766_v16 = vor.u32 %v1003_v11, %v763_v12 }
  0x33   :  { %v786_v62 = vor.u32 %v1014_v57, %v785_v56 }
  0x35   :  { %608 = vmatpush.bf16.msrb.mxu2 %v882_v24 }
  0x36   :  { %634 = vmatpush.bf16.msra.mxu0 %v954_v5  ;;  %v1006_v5 = vld [vmem:[%s1539_s5 + $0x2c] sm:$0xf0] }
  0x37   :  { %v754_v13 = vor.u32 %v1006_v5, %v753_v4 }
  0x8e   :  { %v83_v7 = vpop.f32.mrf.mxu0 }
  0x8f   :  { %v84_v28 = vadd.f32 %v1064_v14, %v83_v7  ;;  %v955_v7 = vld [vmem:[%s1539_s5 + $0x1b8] sm:$0xf0] }
  0x90   :  { %v958_v8 = vor.u32 %v1051_v6, %v955_v7  ;;  %v1002_v6 = vld [vmem:[%s1539_s5 + $0x14] sm:$0xf]  ;;  %v798_v7 = vor.u32 %v1011_v0, %v795_v1 }
  0x91   :  { %v88_v43 = vmax.f32 %v84_v28, 0.0  ;;  %v886_v28 = vor.u32 %v1034_v23, %v883_v25 }
  0x93   :  { %622 = vmatpush.bf16.msrb.mxu3 %v886_v28 }
  0x96   :  { %v85_v33 = vpop.f32.mrf.mxu0 }
  0x97   :  { %v86_v38 = vadd.f32 %v1064_v14, %v85_v33  ;;  %v921_v14 = vld [vmem:[%s1539_s5 + $0x158] sm:$0xf]  ;;  %v849_v33 = vld [vmem:[%s1539_s5 + $0xd0] sm:$0xf]  ;;  %623 = vmatpush.bf16.msrb.mxu3 %v854_v40 }
  0x98   :  { %v922_v17 = vor.u32 %v1047_v15, %v921_v14  ;;  %v850_v36 = vor.u32 %v1030_v34, %v849_v33  ;;  %v762_v15 = vor.u32 %v1007_v10, %v761_v9  ;;  %v219_v34 = vperm.slane %v211_v31, 6 }
  0x99   :  { %v89_v44 = vmax.f32 %v86_v38, 0.0  ;;  %v857_v38 = vld [vmem:[%s1539_s5 + $0xd8] sm:$0xf] }
  0x9a   :  { %635 = vmatpush.bf16.msra.mxu0 %v922_v17  ;;  %v858_v41 = vor.u32 %v1031_v39, %v857_v38  ;;  %609 = vmatpush.bf16.msrb.mxu2 %v850_v36  ;;  %v215_v36 = vperm.slane %v211_v31, 2  ;;  %v213_v38 = vperm.slane %v211_v31, 0  ;;  %v214_v39 = vperm.slane %v211_v31, 1 }
  0x9b   :  { %v90_v48 = vpack.c.bf16 %v89_v44, %v88_v43  ;;  %v859_v43 = vld [vmem:[%s1539_s5 + $0xf8] sm:$0xf0]  ;;  %v817_v44 = vld [vmem:[%s1539_s5 + $0x90] sm:$0xf] }
  0x9c   :  { %v862_v45 = vor.u32 %v1027_v42, %v859_v43  ;;  %v818_v49 = vor.u32 %v1022_v46, %v817_v44  ;;  %v217_v44 = vperm.slane %v211_v31, 4 }
  0x9d   :  { %734 = vmatmul.msk.bf16.vlgmr.msra.gmra.mxu1 %vm70_vm0, %v90_v48  ;;  %v819_v48 = vld [vmem:[%s1539_s5 + $0xb0] sm:$0xf0] }
  0x9e   :  { %647 = vmatpush.bf16.msra.mxu1 %v990_v60  ;;  %636 = vmatpush.bf16.msra.mxu0 %v890_v29  ;;  %v822_v50 = vor.u32 %v1018_v47, %v819_v48  ;;  %v787_v60 = vld [vmem:[%s1539_s5 + $0x70] sm:$0xf0] }
  0x9f   :  { %610 = vmatpush.bf16.msrb.mxu2 %v818_v49  ;;  %v790_v2 = vor.u32 %v1010_v59, %v787_v60 }
  0xa0   :  { %624 = vmatpush.bf16.msrb.mxu3 %v822_v50 }
  0xa2   :  { %648 = vmatpush.bf16.msra.mxu1 %v958_v8  ;;  %637 = vmatpush.bf16.msra.mxu0 %v858_v41  ;;  %v755_v8 = vld [vmem:[%s1539_s5 + $0x30] sm:$0xf0] }
  0xa3   :  { %611 = vmatpush.bf16.msrb.mxu2 %v786_v62  ;;  %v758_v14 = vor.u32 %v1002_v6, %v755_v8 }
  0xa4   :  { %625 = vmatpush.bf16.msrb.mxu3 %v790_v2 }
  0xa6   :  { %649 = vmatpush.bf16.msra.mxu1 %v926_v20  ;;  %638 = vmatpush.bf16.msra.mxu0 %v826_v54 }
  0xa7   :  { %612 = vmatpush.bf16.msrb.mxu2 %v754_v13 }
  0xa8   :  { %626 = vmatpush.bf16.msrb.mxu3 %v758_v14 }
  0xaa   :  { %650 = vmatpush.bf16.msra.mxu1 %v894_v32  ;;  %639 = vmatpush.bf16.msra.mxu0 %v794_v3 }
  0xae   :  { %651 = vmatpush.bf16.msra.mxu1 %v862_v45  ;;  %640 = vmatpush.bf16.msra.mxu0 %v762_v15  ;;  %v218_v45 = vperm.slane %v211_v31, 5 }
  0xb2   :  { %652 = vmatpush.bf16.msra.mxu1 %v830_v58 }
  0xb6   :  { %653 = vmatpush.bf16.msra.mxu1 %v798_v7 }
  0xba   :  { %654 = vmatpush.bf16.msra.mxu1 %v766_v16 }
 0x11a   :  { %v139_v17 = vpop.f32.mrf.mxu1 }
 0x11b   :  { %v140_v19 = vadd.f32 %v1065_v18, %v139_v17 }
 0x11d   :  { %v144_v22 = vmax.f32 %v140_v19, 0.0 }
 0x122   :  { %v141_v20 = vpop.f32.mrf.mxu1 }
 0x123   :  { %v142_v21 = vadd.f32 %v1065_v18, %v141_v20 }
 0x125   :  { %v145_v23 = vmax.f32 %v142_v21, 0.0 }
 0x127   :  { %v146_v24 = vpack.c.bf16 %v145_v23, %v144_v22 }
 0x129   :  { %557 = vmatmul.bf16.vlgmr.msra.gmra.mxu2 %v146_v24  ;;  %571 = vmatmul.bf16.vlgmr.msra.gmra.mxu3 %v146_v24 }
 0x12a   :  { %585 = vmatmul.bf16.vlgmr.msrb.gmra.mxu0 %v146_v24  ;;  %599 = vmatmul.bf16.vlgmr.msrb.gmra.mxu1 %v146_v24 }
 0x139   :  { %613 = vmatmul.bf16.vlgmr.msrb.gmra.mxu2 %v146_v24  ;;  %627 = vmatmul.bf16.vlgmr.msrb.gmra.mxu3 %v146_v24 }
 0x13a   :  { %641 = vmatmul.bf16.vlgmr.msra.gmra.mxu0 %v146_v24  ;;  %655 = vmatmul.bf16.vlgmr.msra.gmra.mxu1 %v146_v24 }
 0x1a7   :  { %v586_v25 = vpop.f32.mrf.mxu0  ;;  %v600_v26 = vpop.f32.mrf.mxu1 }
 0x1a8   :  { %v587_v46 = vadd.f32 %v586_v25, %v215_v36  ;;  %v601_v47 = vadd.f32 %v600_v26, %v216_v37 }
 0x1aa   :  { %v663_v56 = vmax.f32 %v587_v46, 0.0  ;;  %v664_v57 = vmax.f32 %v601_v47, 0.0 }
 0x1ac   :  { %v558_v27 = vpop.f32.mrf.mxu2  ;;  %v572_v28 = vpop.f32.mrf.mxu3 }
 0x1ad   :  { %v559_v48 = vadd.f32 %v558_v27, %v213_v38  ;;  %v573_v49 = vadd.f32 %v572_v28, %v214_v39 }
 0x1af   :  { %v588_v29 = vpop.f32.mrf.mxu0  ;;  %v602_v30 = vpop.f32.mrf.mxu1  ;;  %v661_v58 = vmax.f32 %v559_v48, 0.0  ;;  %v662_v59 = vmax.f32 %v573_v49, 0.0 }
 0x1b0   :  { %v589_v6 = vadd.f32 %v588_v29, %v215_v36  ;;  %v603_v7 = vadd.f32 %v602_v30, %v216_v37 }
 0x1b2   :  { %v671_v19 = vmax.f32 %v589_v6, 0.0  ;;  %v672_v20 = vmax.f32 %v603_v7, 0.0 }
 0x1b4   :  { %v560_v32 = vpop.f32.mrf.mxu2  ;;  %v574_v33 = vpop.f32.mrf.mxu3 }
 0x1b5   :  { %v561_v8 = vadd.f32 %v560_v32, %v213_v38  ;;  %v575_v9 = vadd.f32 %v574_v33, %v214_v39 }
 0x1b7   :  { %v642_v40 = vpop.f32.mrf.mxu0  ;;  %v656_v41 = vpop.f32.mrf.mxu1  ;;  %v669_v21 = vmax.f32 %v561_v8, 0.0  ;;  %v670_v22 = vmax.f32 %v575_v9, 0.0 }
 0x1b8   :  { %v643_v42 = vadd.f32 %v642_v40, %v219_v34  ;;  %v657_v43 = vadd.f32 %v656_v41, %v220_v35 }
 0x1ba   :  { %v667_v50 = vmax.f32 %v643_v42, 0.0  ;;  %v668_v53 = vmax.f32 %v657_v43, 0.0 }
 0x1bc   :  { %v614_v51 = vpop.f32.mrf.mxu2  ;;  %v628_v52 = vpop.f32.mrf.mxu3  ;;  %v679_v0 = vmax.f32 %v663_v56, %v667_v50  ;;  %v680_v2 = vmax.f32 %v664_v57, %v668_v53 }
 0x1bd   :  { %v615_v54 = vadd.f32 %v614_v51, %v217_v44  ;;  %v629_v55 = vadd.f32 %v628_v52, %v218_v45 }
 0x1bf   :  { %v665_v60 = vmax.f32 %v615_v54, 0.0  ;;  %v666_v61 = vmax.f32 %v629_v55, 0.0  ;;  %v644_v62 = vpop.f32.mrf.mxu0  ;;  %v658_v63 = vpop.f32.mrf.mxu1 }
 0x1c0   :  { %v645_v1 = vadd.f32 %v644_v62, %v219_v34  ;;  %v659_v5 = vadd.f32 %v658_v63, %v220_v35 }
 0x1c1   :  { %v677_v3 = vmax.f32 %v661_v58, %v665_v60  ;;  %v678_v4 = vmax.f32 %v662_v59, %v666_v61 }
 0x1c2   :  { %v675_v12 = vmax.f32 %v645_v1, 0.0  ;;  %v676_v16 = vmax.f32 %v659_v5, 0.0 }
 0x1c3   :  { %v685_v10 = vmax.f32 %v677_v3, %v679_v0  ;;  %v686_v11 = vmax.f32 %v678_v4, %v680_v2 }
 0x1c4   :  { %v616_v13 = vpop.f32.mrf.mxu2  ;;  %v630_v14 = vpop.f32.mrf.mxu3  ;;  %v683_v25 = vmax.f32 %v671_v19, %v675_v12  ;;  %v684_v26 = vmax.f32 %v672_v20, %v676_v16 }
 0x1c5   :  { %v689_v15 = vmax.f32 %v685_v10, %v686_v11  ;;  %v617_v17 = vadd.f32 %v616_v13, %v217_v44  ;;  %v631_v18 = vadd.f32 %v630_v14, %v218_v45 }
 0x1c7   :  { %691 = vst [vmem:[%s1541_s7] sm:$0xff] %v689_v15  ;;  %v673_v23 = vmax.f32 %v617_v17, 0.0  ;;  %v674_v24 = vmax.f32 %v631_v18, 0.0 }
 0x1c9   :  { %v681_v27 = vmax.f32 %v669_v21, %v673_v23  ;;  %v682_v28 = vmax.f32 %v670_v22, %v674_v24 }
 0x1cb   :  { %v687_v29 = vmax.f32 %v681_v27, %v683_v25  ;;  %v688_v30 = vmax.f32 %v682_v28, %v684_v26 }
 0x1cd   :  { %v690_v31 = vmax.f32 %v687_v29, %v688_v30 }
 0x1cf   :  { %692 = vst [vmem:[%s1541_s7 + $0x8] sm:$0xff] %v690_v31 }

// kernel: feature_tnet_forward.5
= control target key start
LH: loop header
LB: loop body
LE: loop exit
PB: predicated region body
PF: predicated region fallthrough
CT: control target
= control target key end

     0   :  { %s254_s0 = inlined_call_operand.vmem [shape: bf16[2,8,64], index: 0, kind: input, shape index: {}]   ;;  %s255_s1 = inlined_call_operand.vmem [shape: bf16[2,64,64], index: 1, kind: input, shape index: {}]   ;;  %s256_s2 = inlined_call_operand.hbm [shape: f32[2,8,64], index: 2, kind: output, shape index: {}]  }
   0x1   :  { %v169_v0 = vld [vmem:[%s255_s1 + $0x18] sm:$0xff]  ;;  %v168_v2 = vld [vmem:[%s255_s1 + $0x10] sm:$0xff] }
   0x2   :  { %v173_v1 = vld [vmem:[%s255_s1 + $0x38] sm:$0xff]  ;;  %63 = vmatpush.bf16.msra.mxu0 %v169_v0  ;;  %v172_v3 = vld [vmem:[%s255_s1 + $0x30] sm:$0xff] }
   0x3   :  { %103 = vmatpush.bf16.msra.mxu1 %v173_v1 }
   0x4   :  { %7 = vsyncpa [#allocation3], 0  ;;  %v167_v4 = vld [vmem:[%s255_s1 + $0x8] sm:$0xff]  ;;  %v166_v6 = vld [vmem:[%s255_s1] sm:$0xff]  ;;  %vm55_vm0 = vcmask 523264   ;;  %s203_s29 = smov [#allocation2]  }
   0x5   :  { %v171_v5 = vld [vmem:[%s255_s1 + $0x28] sm:$0xff]  ;;  %v170_v7 = vld [vmem:[%s255_s1 + $0x20] sm:$0xff]  ;;  %s118_s30 = sshll.u32 %s203_s29, 4  ;;  %s120_s5 = sshll.u32 %s256_s2, 4  ;;  %s119_s30 = int_to_ptr.vmem [resolvable:$true] %s118_s30  ;;  %s121_s5 = int_to_ptr.hbm [resolvable:$true] %s120_s5 }
   0x6   :  { %64 = vmatpush.bf16.msra.mxu0 %v168_v2  ;;  %v13_v8 = vld [vmem:[%s254_s0] sm:$0xf]  ;;  %v14_v9 = vld [vmem:[%s254_s0 + $0x4] sm:$0xf]  ;;  %s204_s1 = smov 128   ;;  %s205_s6 = smov 8  }
   0x7   :  { %104 = vmatpush.bf16.msra.mxu1 %v172_v3 }
   0xa   :  { %65 = vmatpush.bf16.msra.mxu0 %v167_v4 }
   0xb   :  { %105 = vmatpush.bf16.msra.mxu1 %v171_v5 }
   0xe   :  { %66 = vmatpush.bf16.msra.mxu0 %v166_v6 }
   0xf   :  { %106 = vmatpush.bf16.msra.mxu1 %v170_v7 }
  0x11   :  { %148 = vmatmul.msk.bf16.vlgmr.msra.gmra.mxu0 %vm55_vm0, %v13_v8 }
  0x12   :  { %165 = vmatmul.msk.bf16.vlgmr.msra.gmra.mxu1 %vm55_vm0, %v14_v9 }
  0x8e   :  { %v68_v10 = vpop.f32.mrf.mxu0 }
  0x8f   :  { %v108_v11 = vpop.f32.mrf.mxu1  ;;  %112 = vst.msk [vmem:[#allocation2] sm:$0xff] %vm55_vm0, %v68_v10 }
  0x90   :  { %113 = vst.msk [vmem:[#allocation2 + $0x8] sm:$0xff] %vm55_vm0, %v108_v11 }
  0x91   :  { %126 = dma.vmem_to_hbm [thread:$0]  %s119_s30, 256, %s121_s5, [#allocation3], %s204_s1, %s204_s1, %s205_s6  }
  0x96   :  { %v70_v12 = vpop.f32.mrf.mxu0 }
  0x97   :  { %v110_v13 = vpop.f32.mrf.mxu1 }
  0x98   :  { %201 = dma.done.wait [#allocation3], 256  }
  0x99   :  { %202 = vsyncadd [#allocation3], 4294967040 }
  0x9a   :  { %131 = vsyncpa [#allocation3], 1 }

// kernel: feature_tnet_forward.4
= control target key start
LH: loop header
LB: loop body
LE: loop exit
PB: predicated region body
PF: predicated region fallthrough
CT: control target
= control target key end

     0   :  { %s8419_s24 = smov 0   ;;  %s8421_s25 = smov 0   ;;  %s11639_s0 = inlined_call_operand.vmem [shape: bf16[2,1024], index: 0, kind: input, shape index: {}]   ;;  %s11640_s1 = inlined_call_operand.vmem [shape: bf16[1024,512], index: 1, kind: input, shape index: {}]   ;;  %s11641_s2 = inlined_call_operand.vmem [shape: f32[1,512], index: 2, kind: input, shape index: {}]   ;;  %s11642_s3 = inlined_call_operand.vmem [shape: bf16[512,256], index: 3, kind: input, shape index: {}]   ;;  %s11643_s4 = inlined_call_operand.vmem [shape: f32[1,256], index: 4, kind: input, shape index: {}]   ;;  %s11644_s5 = inlined_call_operand.vmem [shape: bf16[256,4096], index: 5, kind: input, shape index: {}]   ;;  %s11645_s6 = inlined_call_operand.vmem [shape: f32[1,4096], index: 6, kind: input, shape index: {}]   ;;  %s11646_s7 = inlined_call_operand.vmem [shape: f32[2,4096], index: 7, kind: output, shape index: {}]  }
   0x1   :  { %s8423_s26 = smov 0  }
   0x2 LB: > { %s5427_s27 = sadd.s32 4294967295, %s8377_s26   ;;  %s8436_s28 = sadd.s32 1, %s8377_s26   ;;  %s8377_s26 = sphi %s8423_s26, %s11649_s26   ;;  %s8373_s25 = sphi %s8421_s25, %s11648_s25   ;;  %s8369_s24 = sphi %s8419_s24, %s11647_s24  }
   0x3   : > { %s126_s29 = ssub.s32 %s8377_s26, %s8436_s28  ;;  %s129_s30 = sadd.s32 1, %s8373_s25 }
   0x4   : > { %p127_p0 = scmp.eq.s32.totalorder %s126_s29, 0  ;;  %p136_p1 = scmp.ne.s32.totalorder %s8373_s25, %s8369_s24 }
   0x5   : > { %p137_p2 = scmp.eq.s32.totalorder %s8377_s26, 0  ;;  %p5430_p4 = scmp.ge.s32.totalorder %s8377_s26, 2 }
   0x6   : > { %s8445_s8 = scalar_select %p127_p0, %s8373_s25, %s129_s30  }
   0x7   : > { %p138_p3 = por %p137_p2, %p136_p1  ;;  %229 = sbr.rel (%p5430_p4) target bundleno = 272 (0x110), region = 36 }
   0xc   : > { %232 = sbr.rel (!%p138_p3) target bundleno = 272 (0x110), region = 40  ;;  %s234_s9 = sand.u32 (%p138_p3), 1, %s8373_s25  }
   0xd   : > { %s7745_s10 = sshll.u32 (%p138_p3), %s8377_s26, 6  ;;  %s5431_s11 = sshll.u32 (%p138_p3), %s234_s9, 11 }
   0xe   : > { %s8453_s14 = scalar_lea.vmem (%p138_p3), %s11644_s5, %s7745_s10  ;;  %s8458_s15 = scalar_lea.vmem (%p138_p3), [#allocation2], %s5431_s11 }
   0xf   : > { %v252_v0 = vld [vmem:[%s8453_s14] sm:$0xff] (%p138_p3)  ;;  %v254_v1 = vld [vmem:[%s8453_s14 + $0x8] sm:$0xff] (%p138_p3)  ;;  %v256_v2 = vld [vmem:[%s8453_s14 + $0x10] sm:$0xff] (%p138_p3) }
  0x10   : > { %253 = vst [vmem:[%s8458_s15] sm:$0xff] (%p138_p3), %v252_v0  ;;  %v258_v3 = vld [vmem:[%s8453_s14 + $0x18] sm:$0xff] (%p138_p3)  ;;  %v260_v4 = vld [vmem:[%s8453_s14 + $0x20] sm:$0xff] (%p138_p3)  ;;  %v262_v5 = vld [vmem:[%s8453_s14 + $0x28] sm:$0xff] (%p138_p3) }
  0x11   : > { %255 = vst [vmem:[%s8458_s15 + $0x8] sm:$0xff] %v254_v1  ;;  %v264_v6 = vld [vmem:[%s8453_s14 + $0x30] sm:$0xff]  ;;  %v266_v7 = vld [vmem:[%s8453_s14 + $0x38] sm:$0xff]  ;;  %v268_v8 = vld [vmem:[%s8453_s14 + $0x80] sm:$0xff] }
  0x12   : > { %257 = vst [vmem:[%s8458_s15 + $0x10] sm:$0xff] %v256_v2  ;;  %v270_v9 = vld [vmem:[%s8453_s14 + $0x88] sm:$0xff]  ;;  %v272_v10 = vld [vmem:[%s8453_s14 + $0x90] sm:$0xff]  ;;  %v274_v11 = vld [vmem:[%s8453_s14 + $0x98] sm:$0xff] }
  0x13   : > { %259 = vst [vmem:[%s8458_s15 + $0x18] sm:$0xff] %v258_v3  ;;  %v276_v12 = vld [vmem:[%s8453_s14 + $0xa0] sm:$0xff]  ;;  %v278_v13 = vld [vmem:[%s8453_s14 + $0xa8] sm:$0xff]  ;;  %v280_v14 = vld [vmem:[%s8453_s14 + $0xb0] sm:$0xff] }
  0x14   : > { %261 = vst [vmem:[%s8458_s15 + $0x20] sm:$0xff] %v260_v4  ;;  %v282_v15 = vld [vmem:[%s8453_s14 + $0xb8] sm:$0xff]  ;;  %v284_v16 = vld [vmem:[%s8453_s14 + $0x100] sm:$0xff]  ;;  %v286_v17 = vld [vmem:[%s8453_s14 + $0x108] sm:$0xff] }
  0x15   : > { %263 = vst [vmem:[%s8458_s15 + $0x28] sm:$0xff] %v262_v5  ;;  %v288_v18 = vld [vmem:[%s8453_s14 + $0x110] sm:$0xff]  ;;  %v290_v19 = vld [vmem:[%s8453_s14 + $0x118] sm:$0xff]  ;;  %v292_v20 = vld [vmem:[%s8453_s14 + $0x120] sm:$0xff] }
  0x16   : > { %265 = vst [vmem:[%s8458_s15 + $0x30] sm:$0xff] %v264_v6  ;;  %v294_v21 = vld [vmem:[%s8453_s14 + $0x128] sm:$0xff]  ;;  %v296_v22 = vld [vmem:[%s8453_s14 + $0x130] sm:$0xff]  ;;  %v298_v23 = vld [vmem:[%s8453_s14 + $0x138] sm:$0xff] }
  0x17   : > { %267 = vst [vmem:[%s8458_s15 + $0x38] sm:$0xff] %v266_v7  ;;  %v300_v24 = vld [vmem:[%s8453_s14 + $0x180] sm:$0xff]  ;;  %v302_v25 = vld [vmem:[%s8453_s14 + $0x188] sm:$0xff]  ;;  %v304_v26 = vld [vmem:[%s8453_s14 + $0x190] sm:$0xff] }
  0x18   : > { %269 = vst [vmem:[%s8458_s15 + $0x40] sm:$0xff] %v268_v8  ;;  %v306_v27 = vld [vmem:[%s8453_s14 + $0x198] sm:$0xff]  ;;  %v308_v28 = vld [vmem:[%s8453_s14 + $0x1a0] sm:$0xff]  ;;  %v310_v29 = vld [vmem:[%s8453_s14 + $0x1a8] sm:$0xff] }
  0x19   : > { %271 = vst [vmem:[%s8458_s15 + $0x48] sm:$0xff] %v270_v9  ;;  %v312_v30 = vld [vmem:[%s8453_s14 + $0x1b0] sm:$0xff]  ;;  %v314_v31 = vld [vmem:[%s8453_s14 + $0x1b8] sm:$0xff]  ;;  %v316_v32 = vld [vmem:[%s8453_s14 + $0x200] sm:$0xff] }
  0x1a   : > { %273 = vst [vmem:[%s8458_s15 + $0x50] sm:$0xff] %v272_v10  ;;  %v318_v33 = vld [vmem:[%s8453_s14 + $0x208] sm:$0xff]  ;;  %v320_v34 = vld [vmem:[%s8453_s14 + $0x210] sm:$0xff]  ;;  %v322_v35 = vld [vmem:[%s8453_s14 + $0x218] sm:$0xff] }
  0x1b   : > { %275 = vst [vmem:[%s8458_s15 + $0x58] sm:$0xff] %v274_v11  ;;  %v324_v36 = vld [vmem:[%s8453_s14 + $0x220] sm:$0xff]  ;;  %v326_v37 = vld [vmem:[%s8453_s14 + $0x228] sm:$0xff]  ;;  %v328_v38 = vld [vmem:[%s8453_s14 + $0x230] sm:$0xff] }
  0x1c   : > { %277 = vst [vmem:[%s8458_s15 + $0x60] sm:$0xff] %v276_v12  ;;  %v330_v39 = vld [vmem:[%s8453_s14 + $0x238] sm:$0xff]  ;;  %v332_v40 = vld [vmem:[%s8453_s14 + $0x280] sm:$0xff]  ;;  %v334_v41 = vld [vmem:[%s8453_s14 + $0x288] sm:$0xff] }
  0x1d   : > { %279 = vst [vmem:[%s8458_s15 + $0x68] sm:$0xff] %v278_v13  ;;  %v336_v42 = vld [vmem:[%s8453_s14 + $0x290] sm:$0xff]  ;;  %v338_v43 = vld [vmem:[%s8453_s14 + $0x298] sm:$0xff]  ;;  %v340_v44 = vld [vmem:[%s8453_s14 + $0x2a0] sm:$0xff] }
  0x1e   : > { %281 = vst [vmem:[%s8458_s15 + $0x70] sm:$0xff] %v280_v14  ;;  %v342_v45 = vld [vmem:[%s8453_s14 + $0x2a8] sm:$0xff]  ;;  %v344_v46 = vld [vmem:[%s8453_s14 + $0x2b0] sm:$0xff]  ;;  %v346_v47 = vld [vmem:[%s8453_s14 + $0x2b8] sm:$0xff] }
  0x1f   : > { %283 = vst [vmem:[%s8458_s15 + $0x78] sm:$0xff] %v282_v15  ;;  %v348_v48 = vld [vmem:[%s8453_s14 + $0x300] sm:$0xff]  ;;  %v350_v49 = vld [vmem:[%s8453_s14 + $0x308] sm:$0xff]  ;;  %v352_v50 = vld [vmem:[%s8453_s14 + $0x310] sm:$0xff] }
  0x20   : > { %285 = vst [vmem:[%s8458_s15 + $0x80] sm:$0xff] %v284_v16  ;;  %v354_v51 = vld [vmem:[%s8453_s14 + $0x318] sm:$0xff]  ;;  %v356_v52 = vld [vmem:[%s8453_s14 + $0x320] sm:$0xff]  ;;  %v358_v53 = vld [vmem:[%s8453_s14 + $0x328] sm:$0xff] }
  0x21   : > { %287 = vst [vmem:[%s8458_s15 + $0x88] sm:$0xff] %v286_v17  ;;  %v360_v54 = vld [vmem:[%s8453_s14 + $0x330] sm:$0xff]  ;;  %v362_v55 = vld [vmem:[%s8453_s14 + $0x338] sm:$0xff]  ;;  %v364_v56 = vld [vmem:[%s8453_s14 + $0x380] sm:$0xff] }
  0x22   : > { %289 = vst [vmem:[%s8458_s15 + $0x90] sm:$0xff] %v288_v18  ;;  %v366_v57 = vld [vmem:[%s8453_s14 + $0x388] sm:$0xff]  ;;  %v368_v58 = vld [vmem:[%s8453_s14 + $0x390] sm:$0xff]  ;;  %v370_v59 = vld [vmem:[%s8453_s14 + $0x398] sm:$0xff] }
  0x23   : > { %291 = vst [vmem:[%s8458_s15 + $0x98] sm:$0xff] %v290_v19  ;;  %v372_v60 = vld [vmem:[%s8453_s14 + $0x3a0] sm:$0xff]  ;;  %v374_v61 = vld [vmem:[%s8453_s14 + $0x3a8] sm:$0xff]  ;;  %v376_v62 = vld [vmem:[%s8453_s14 + $0x3b0] sm:$0xff] }
  0x24   : > { %293 = vst [vmem:[%s8458_s15 + $0xa0] sm:$0xff] %v292_v20  ;;  %v378_v63 = vld [vmem:[%s8453_s14 + $0x3b8] sm:$0xff]  ;;  %v380_v0 = vld [vmem:[%s8453_s14 + $0x400] sm:$0xff]  ;;  %v382_v1 = vld [vmem:[%s8453_s14 + $0x408] sm:$0xff] }
  0x25   : > { %295 = vst [vmem:[%s8458_s15 + $0xa8] sm:$0xff] %v294_v21  ;;  %v384_v2 = vld [vmem:[%s8453_s14 + $0x410] sm:$0xff]  ;;  %v386_v3 = vld [vmem:[%s8453_s14 + $0x418] sm:$0xff]  ;;  %v388_v4 = vld [vmem:[%s8453_s14 + $0x420] sm:$0xff] }
  0x26   : > { %297 = vst [vmem:[%s8458_s15 + $0xb0] sm:$0xff] %v296_v22  ;;  %v390_v5 = vld [vmem:[%s8453_s14 + $0x428] sm:$0xff]  ;;  %v392_v6 = vld [vmem:[%s8453_s14 + $0x430] sm:$0xff]  ;;  %v394_v7 = vld [vmem:[%s8453_s14 + $0x438] sm:$0xff] }
  0x27   : > { %299 = vst [vmem:[%s8458_s15 + $0xb8] sm:$0xff] %v298_v23  ;;  %v396_v8 = vld [vmem:[%s8453_s14 + $0x480] sm:$0xff]  ;;  %v398_v9 = vld [vmem:[%s8453_s14 + $0x488] sm:$0xff]  ;;  %v400_v10 = vld [vmem:[%s8453_s14 + $0x490] sm:$0xff] }
  0x28   : > { %301 = vst [vmem:[%s8458_s15 + $0xc0] sm:$0xff] %v300_v24  ;;  %v402_v11 = vld [vmem:[%s8453_s14 + $0x498] sm:$0xff]  ;;  %v404_v12 = vld [vmem:[%s8453_s14 + $0x4a0] sm:$0xff]  ;;  %v406_v13 = vld [vmem:[%s8453_s14 + $0x4a8] sm:$0xff] }
  0x29   : > { %303 = vst [vmem:[%s8458_s15 + $0xc8] sm:$0xff] %v302_v25  ;;  %v408_v14 = vld [vmem:[%s8453_s14 + $0x4b0] sm:$0xff]  ;;  %v410_v15 = vld [vmem:[%s8453_s14 + $0x4b8] sm:$0xff]  ;;  %v412_v16 = vld [vmem:[%s8453_s14 + $0x500] sm:$0xff] }
  0x2a   : > { %305 = vst [vmem:[%s8458_s15 + $0xd0] sm:$0xff] %v304_v26  ;;  %v414_v17 = vld [vmem:[%s8453_s14 + $0x508] sm:$0xff]  ;;  %v416_v18 = vld [vmem:[%s8453_s14 + $0x510] sm:$0xff]  ;;  %v418_v19 = vld [vmem:[%s8453_s14 + $0x518] sm:$0xff] }
  0x2b   : > { %307 = vst [vmem:[%s8458_s15 + $0xd8] sm:$0xff] %v306_v27  ;;  %v420_v20 = vld [vmem:[%s8453_s14 + $0x520] sm:$0xff]  ;;  %v422_v21 = vld [vmem:[%s8453_s14 + $0x528] sm:$0xff]  ;;  %v424_v22 = vld [vmem:[%s8453_s14 + $0x530] sm:$0xff] }
  0x2c   : > { %309 = vst [vmem:[%s8458_s15 + $0xe0] sm:$0xff] %v308_v28  ;;  %v426_v23 = vld [vmem:[%s8453_s14 + $0x538] sm:$0xff]  ;;  %v428_v24 = vld [vmem:[%s8453_s14 + $0x580] sm:$0xff]  ;;  %v430_v25 = vld [vmem:[%s8453_s14 + $0x588] sm:$0xff] }
  0x2d   : > { %311 = vst [vmem:[%s8458_s15 + $0xe8] sm:$0xff] %v310_v29  ;;  %v432_v26 = vld [vmem:[%s8453_s14 + $0x590] sm:$0xff]  ;;  %v434_v27 = vld [vmem:[%s8453_s14 + $0x598] sm:$0xff]  ;;  %v436_v28 = vld [vmem:[%s8453_s14 + $0x5a0] sm:$0xff] }
  0x2e   : > { %313 = vst [vmem:[%s8458_s15 + $0xf0] sm:$0xff] %v312_v30  ;;  %v438_v29 = vld [vmem:[%s8453_s14 + $0x5a8] sm:$0xff]  ;;  %v440_v30 = vld [vmem:[%s8453_s14 + $0x5b0] sm:$0xff] }
  0x2f   : > { %315 = vst [vmem:[%s8458_s15 + $0xf8] sm:$0xff] %v314_v31  ;;  %v442_v31 = vld [vmem:[%s8453_s14 + $0x5b8] sm:$0xff] }
  0x30   : > { %317 = vst [vmem:[%s8458_s15 + $0x100] sm:$0xff] %v316_v32  ;;  %v444_v32 = vld [vmem:[%s8453_s14 + $0x600] sm:$0xff] }
  0x31   : > { %319 = vst [vmem:[%s8458_s15 + $0x108] sm:$0xff] %v318_v33  ;;  %v446_v33 = vld [vmem:[%s8453_s14 + $0x608] sm:$0xff] }
  0x32   : > { %321 = vst [vmem:[%s8458_s15 + $0x110] sm:$0xff] %v320_v34  ;;  %v448_v34 = vld [vmem:[%s8453_s14 + $0x610] sm:$0xff] }
  0x33   : > { %323 = vst [vmem:[%s8458_s15 + $0x118] sm:$0xff] %v322_v35  ;;  %v450_v35 = vld [vmem:[%s8453_s14 + $0x618] sm:$0xff] }
  0x34   : > { %325 = vst [vmem:[%s8458_s15 + $0x120] sm:$0xff] %v324_v36  ;;  %v452_v36 = vld [vmem:[%s8453_s14 + $0x620] sm:$0xff] }
  0x35   : > { %327 = vst [vmem:[%s8458_s15 + $0x128] sm:$0xff] %v326_v37  ;;  %v454_v37 = vld [vmem:[%s8453_s14 + $0x628] sm:$0xff] }
  0x36   : > { %329 = vst [vmem:[%s8458_s15 + $0x130] sm:$0xff] %v328_v38  ;;  %v456_v38 = vld [vmem:[%s8453_s14 + $0x630] sm:$0xff] }
  0x37   : > { %331 = vst [vmem:[%s8458_s15 + $0x138] sm:$0xff] %v330_v39  ;;  %v458_v39 = vld [vmem:[%s8453_s14 + $0x638] sm:$0xff] }
  0x38   : > { %333 = vst [vmem:[%s8458_s15 + $0x140] sm:$0xff] %v332_v40  ;;  %v460_v40 = vld [vmem:[%s8453_s14 + $0x680] sm:$0xff] }
  0x39   : > { %335 = vst [vmem:[%s8458_s15 + $0x148] sm:$0xff] %v334_v41  ;;  %v462_v41 = vld [vmem:[%s8453_s14 + $0x688] sm:$0xff] }
  0x3a   : > { %337 = vst [vmem:[%s8458_s15 + $0x150] sm:$0xff] %v336_v42  ;;  %v464_v42 = vld [vmem:[%s8453_s14 + $0x690] sm:$0xff] }
  0x3b   : > { %339 = vst [vmem:[%s8458_s15 + $0x158] sm:$0xff] %v338_v43  ;;  %v466_v43 = vld [vmem:[%s8453_s14 + $0x698] sm:$0xff] }
  0x3c   : > { %341 = vst [vmem:[%s8458_s15 + $0x160] sm:$0xff] %v340_v44  ;;  %v468_v44 = vld [vmem:[%s8453_s14 + $0x6a0] sm:$0xff] }
  0x3d   : > { %343 = vst [vmem:[%s8458_s15 + $0x168] sm:$0xff] %v342_v45  ;;  %v470_v45 = vld [vmem:[%s8453_s14 + $0x6a8] sm:$0xff] }
  0x3e   : > { %345 = vst [vmem:[%s8458_s15 + $0x170] sm:$0xff] %v344_v46  ;;  %v472_v46 = vld [vmem:[%s8453_s14 + $0x6b0] sm:$0xff] }
  0x3f   : > { %347 = vst [vmem:[%s8458_s15 + $0x178] sm:$0xff] %v346_v47  ;;  %v474_v47 = vld [vmem:[%s8453_s14 + $0x6b8] sm:$0xff] }
  0x40   : > { %349 = vst [vmem:[%s8458_s15 + $0x180] sm:$0xff] %v348_v48  ;;  %v476_v48 = vld [vmem:[%s8453_s14 + $0x700] sm:$0xff] }
  0x41   : > { %351 = vst [vmem:[%s8458_s15 + $0x188] sm:$0xff] %v350_v49  ;;  %v478_v49 = vld [vmem:[%s8453_s14 + $0x708] sm:$0xff] }
  0x42   : > { %353 = vst [vmem:[%s8458_s15 + $0x190] sm:$0xff] %v352_v50  ;;  %v480_v50 = vld [vmem:[%s8453_s14 + $0x710] sm:$0xff] }
  0x43   : > { %355 = vst [vmem:[%s8458_s15 + $0x198] sm:$0xff] %v354_v51  ;;  %v482_v51 = vld [vmem:[%s8453_s14 + $0x718] sm:$0xff] }
  0x44   : > { %357 = vst [vmem:[%s8458_s15 + $0x1a0] sm:$0xff] %v356_v52  ;;  %v484_v52 = vld [vmem:[%s8453_s14 + $0x720] sm:$0xff] }
  0x45   : > { %359 = vst [vmem:[%s8458_s15 + $0x1a8] sm:$0xff] %v358_v53  ;;  %v486_v53 = vld [vmem:[%s8453_s14 + $0x728] sm:$0xff] }
  0x46   : > { %361 = vst [vmem:[%s8458_s15 + $0x1b0] sm:$0xff] %v360_v54  ;;  %v488_v54 = vld [vmem:[%s8453_s14 + $0x730] sm:$0xff] }
  0x47   : > { %363 = vst [vmem:[%s8458_s15 + $0x1b8] sm:$0xff] %v362_v55  ;;  %v490_v55 = vld [vmem:[%s8453_s14 + $0x738] sm:$0xff] }
  0x48   : > { %365 = vst [vmem:[%s8458_s15 + $0x1c0] sm:$0xff] %v364_v56  ;;  %v492_v56 = vld [vmem:[%s8453_s14 + $0x780] sm:$0xff] }
  0x49   : > { %367 = vst [vmem:[%s8458_s15 + $0x1c8] sm:$0xff] %v366_v57  ;;  %v494_v57 = vld [vmem:[%s8453_s14 + $0x788] sm:$0xff] }
  0x4a   : > { %369 = vst [vmem:[%s8458_s15 + $0x1d0] sm:$0xff] %v368_v58  ;;  %v496_v58 = vld [vmem:[%s8453_s14 + $0x790] sm:$0xff] }
  0x4b   : > { %371 = vst [vmem:[%s8458_s15 + $0x1d8] sm:$0xff] %v370_v59  ;;  %v498_v59 = vld [vmem:[%s8453_s14 + $0x798] sm:$0xff] }
  0x4c   : > { %373 = vst [vmem:[%s8458_s15 + $0x1e0] sm:$0xff] %v372_v60  ;;  %v500_v60 = vld [vmem:[%s8453_s14 + $0x7a0] sm:$0xff] }
  0x4d   : > { %375 = vst [vmem:[%s8458_s15 + $0x1e8] sm:$0xff] %v374_v61  ;;  %v502_v61 = vld [vmem:[%s8453_s14 + $0x7a8] sm:$0xff] }
  0x4e   : > { %377 = vst [vmem:[%s8458_s15 + $0x1f0] sm:$0xff] %v376_v62  ;;  %v504_v62 = vld [vmem:[%s8453_s14 + $0x7b0] sm:$0xff] }
  0x4f   : > { %379 = vst [vmem:[%s8458_s15 + $0x1f8] sm:$0xff] %v378_v63  ;;  %v506_v63 = vld [vmem:[%s8453_s14 + $0x7b8] sm:$0xff] }
  0x50   : > { %381 = vst [vmem:[%s8458_s15 + $0x200] sm:$0xff] %v380_v0  ;;  %v508_v0 = vld [vmem:[%s8453_s14 + $0x800] sm:$0xff] }
  0x51   : > { %383 = vst [vmem:[%s8458_s15 + $0x208] sm:$0xff] %v382_v1  ;;  %v510_v1 = vld [vmem:[%s8453_s14 + $0x808] sm:$0xff] }
  0x52   : > { %385 = vst [vmem:[%s8458_s15 + $0x210] sm:$0xff] %v384_v2  ;;  %v512_v2 = vld [vmem:[%s8453_s14 + $0x810] sm:$0xff] }
  0x53   : > { %387 = vst [vmem:[%s8458_s15 + $0x218] sm:$0xff] %v386_v3  ;;  %v514_v3 = vld [vmem:[%s8453_s14 + $0x818] sm:$0xff] }
  0x54   : > { %389 = vst [vmem:[%s8458_s15 + $0x220] sm:$0xff] %v388_v4  ;;  %v516_v4 = vld [vmem:[%s8453_s14 + $0x820] sm:$0xff] }
  0x55   : > { %391 = vst [vmem:[%s8458_s15 + $0x228] sm:$0xff] %v390_v5  ;;  %v518_v5 = vld [vmem:[%s8453_s14 + $0x828] sm:$0xff] }
  0x56   : > { %393 = vst [vmem:[%s8458_s15 + $0x230] sm:$0xff] %v392_v6  ;;  %v520_v6 = vld [vmem:[%s8453_s14 + $0x830] sm:$0xff] }
  0x57   : > { %395 = vst [vmem:[%s8458_s15 + $0x238] sm:$0xff] %v394_v7  ;;  %v522_v7 = vld [vmem:[%s8453_s14 + $0x838] sm:$0xff] }
  0x58   : > { %397 = vst [vmem:[%s8458_s15 + $0x240] sm:$0xff] %v396_v8  ;;  %v524_v8 = vld [vmem:[%s8453_s14 + $0x880] sm:$0xff] }
  0x59   : > { %399 = vst [vmem:[%s8458_s15 + $0x248] sm:$0xff] %v398_v9  ;;  %v526_v9 = vld [vmem:[%s8453_s14 + $0x888] sm:$0xff] }
  0x5a   : > { %401 = vst [vmem:[%s8458_s15 + $0x250] sm:$0xff] %v400_v10  ;;  %v528_v10 = vld [vmem:[%s8453_s14 + $0x890] sm:$0xff] }
  0x5b   : > { %403 = vst [vmem:[%s8458_s15 + $0x258] sm:$0xff] %v402_v11  ;;  %v530_v11 = vld [vmem:[%s8453_s14 + $0x898] sm:$0xff] }
  0x5c   : > { %405 = vst [vmem:[%s8458_s15 + $0x260] sm:$0xff] %v404_v12  ;;  %v532_v12 = vld [vmem:[%s8453_s14 + $0x8a0] sm:$0xff] }
  0x5d   : > { %407 = vst [vmem:[%s8458_s15 + $0x268] sm:$0xff] %v406_v13  ;;  %v534_v13 = vld [vmem:[%s8453_s14 + $0x8a8] sm:$0xff] }
  0x5e   : > { %409 = vst [vmem:[%s8458_s15 + $0x270] sm:$0xff] %v408_v14  ;;  %v536_v14 = vld [vmem:[%s8453_s14 + $0x8b0] sm:$0xff] }
  0x5f   : > { %411 = vst [vmem:[%s8458_s15 + $0x278] sm:$0xff] %v410_v15  ;;  %v538_v15 = vld [vmem:[%s8453_s14 + $0x8b8] sm:$0xff] }
  0x60   : > { %413 = vst [vmem:[%s8458_s15 + $0x280] sm:$0xff] %v412_v16  ;;  %v540_v16 = vld [vmem:[%s8453_s14 + $0x900] sm:$0xff] }
  0x61   : > { %415 = vst [vmem:[%s8458_s15 + $0x288] sm:$0xff] %v414_v17  ;;  %v542_v17 = vld [vmem:[%s8453_s14 + $0x908] sm:$0xff] }
  0x62   : > { %417 = vst [vmem:[%s8458_s15 + $0x290] sm:$0xff] %v416_v18  ;;  %v544_v18 = vld [vmem:[%s8453_s14 + $0x910] sm:$0xff] }
  0x63   : > { %419 = vst [vmem:[%s8458_s15 + $0x298] sm:$0xff] %v418_v19  ;;  %v546_v19 = vld [vmem:[%s8453_s14 + $0x918] sm:$0xff] }
  0x64   : > { %421 = vst [vmem:[%s8458_s15 + $0x2a0] sm:$0xff] %v420_v20  ;;  %v548_v20 = vld [vmem:[%s8453_s14 + $0x920] sm:$0xff] }
  0x65   : > { %423 = vst [vmem:[%s8458_s15 + $0x2a8] sm:$0xff] %v422_v21  ;;  %v550_v21 = vld [vmem:[%s8453_s14 + $0x928] sm:$0xff] }
  0x66   : > { %425 = vst [vmem:[%s8458_s15 + $0x2b0] sm:$0xff] %v424_v22  ;;  %v552_v22 = vld [vmem:[%s8453_s14 + $0x930] sm:$0xff] }
  0x67   : > { %427 = vst [vmem:[%s8458_s15 + $0x2b8] sm:$0xff] %v426_v23  ;;  %v554_v23 = vld [vmem:[%s8453_s14 + $0x938] sm:$0xff] }
  0x68   : > { %429 = vst [vmem:[%s8458_s15 + $0x2c0] sm:$0xff] %v428_v24  ;;  %v556_v24 = vld [vmem:[%s8453_s14 + $0x980] sm:$0xff] }
  0x69   : > { %431 = vst [vmem:[%s8458_s15 + $0x2c8] sm:$0xff] %v430_v25  ;;  %v558_v25 = vld [vmem:[%s8453_s14 + $0x988] sm:$0xff] }
  0x6a   : > { %433 = vst [vmem:[%s8458_s15 + $0x2d0] sm:$0xff] %v432_v26  ;;  %v560_v26 = vld [vmem:[%s8453_s14 + $0x990] sm:$0xff] }
  0x6b   : > { %435 = vst [vmem:[%s8458_s15 + $0x2d8] sm:$0xff] %v434_v27  ;;  %v562_v27 = vld [vmem:[%s8453_s14 + $0x998] sm:$0xff] }
  0x6c   : > { %437 = vst [vmem:[%s8458_s15 + $0x2e0] sm:$0xff] %v436_v28  ;;  %v564_v28 = vld [vmem:[%s8453_s14 + $0x9a0] sm:$0xff] }
  0x6d   : > { %439 = vst [vmem:[%s8458_s15 + $0x2e8] sm:$0xff] %v438_v29  ;;  %v566_v29 = vld [vmem:[%s8453_s14 + $0x9a8] sm:$0xff] }
  0x6e   : > { %441 = vst [vmem:[%s8458_s15 + $0x2f0] sm:$0xff] %v440_v30  ;;  %v568_v30 = vld [vmem:[%s8453_s14 + $0x9b0] sm:$0xff] }
  0x6f   : > { %443 = vst [vmem:[%s8458_s15 + $0x2f8] sm:$0xff] %v442_v31  ;;  %v570_v31 = vld [vmem:[%s8453_s14 + $0x9b8] sm:$0xff] }
  0x70   : > { %445 = vst [vmem:[%s8458_s15 + $0x300] sm:$0xff] %v444_v32  ;;  %v572_v32 = vld [vmem:[%s8453_s14 + $0xa00] sm:$0xff] }
  0x71   : > { %447 = vst [vmem:[%s8458_s15 + $0x308] sm:$0xff] %v446_v33  ;;  %v574_v33 = vld [vmem:[%s8453_s14 + $0xa08] sm:$0xff] }
  0x72   : > { %449 = vst [vmem:[%s8458_s15 + $0x310] sm:$0xff] %v448_v34  ;;  %v576_v34 = vld [vmem:[%s8453_s14 + $0xa10] sm:$0xff] }
  0x73   : > { %451 = vst [vmem:[%s8458_s15 + $0x318] sm:$0xff] %v450_v35  ;;  %v578_v35 = vld [vmem:[%s8453_s14 + $0xa18] sm:$0xff] }
  0x74   : > { %453 = vst [vmem:[%s8458_s15 + $0x320] sm:$0xff] %v452_v36  ;;  %v580_v36 = vld [vmem:[%s8453_s14 + $0xa20] sm:$0xff] }
  0x75   : > { %455 = vst [vmem:[%s8458_s15 + $0x328] sm:$0xff] %v454_v37  ;;  %v582_v37 = vld [vmem:[%s8453_s14 + $0xa28] sm:$0xff] }
  0x76   : > { %457 = vst [vmem:[%s8458_s15 + $0x330] sm:$0xff] %v456_v38  ;;  %v584_v38 = vld [vmem:[%s8453_s14 + $0xa30] sm:$0xff] }
  0x77   : > { %459 = vst [vmem:[%s8458_s15 + $0x338] sm:$0xff] %v458_v39  ;;  %v586_v39 = vld [vmem:[%s8453_s14 + $0xa38] sm:$0xff] }
  0x78   : > { %461 = vst [vmem:[%s8458_s15 + $0x340] sm:$0xff] %v460_v40  ;;  %v588_v40 = vld [vmem:[%s8453_s14 + $0xa80] sm:$0xff] }
  0x79   : > { %463 = vst [vmem:[%s8458_s15 + $0x348] sm:$0xff] %v462_v41  ;;  %v590_v41 = vld [vmem:[%s8453_s14 + $0xa88] sm:$0xff] }
  0x7a   : > { %465 = vst [vmem:[%s8458_s15 + $0x350] sm:$0xff] %v464_v42  ;;  %v592_v42 = vld [vmem:[%s8453_s14 + $0xa90] sm:$0xff] }
  0x7b   : > { %467 = vst [vmem:[%s8458_s15 + $0x358] sm:$0xff] %v466_v43  ;;  %v594_v43 = vld [vmem:[%s8453_s14 + $0xa98] sm:$0xff] }
  0x7c   : > { %469 = vst [vmem:[%s8458_s15 + $0x360] sm:$0xff] %v468_v44  ;;  %v596_v44 = vld [vmem:[%s8453_s14 + $0xaa0] sm:$0xff] }
  0x7d   : > { %471 = vst [vmem:[%s8458_s15 + $0x368] sm:$0xff] %v470_v45  ;;  %v598_v45 = vld [vmem:[%s8453_s14 + $0xaa8] sm:$0xff] }
  0x7e   : > { %473 = vst [vmem:[%s8458_s15 + $0x370] sm:$0xff] %v472_v46  ;;  %v600_v46 = vld [vmem:[%s8453_s14 + $0xab0] sm:$0xff] }
  0x7f   : > { %475 = vst [vmem:[%s8458_s15 + $0x378] sm:$0xff] %v474_v47  ;;  %v602_v47 = vld [vmem:[%s8453_s14 + $0xab8] sm:$0xff] }
  0x80   : > { %477 = vst [vmem:[%s8458_s15 + $0x380] sm:$0xff] %v476_v48  ;;  %v604_v48 = vld [vmem:[%s8453_s14 + $0xb00] sm:$0xff] }
  0x81   : > { %479 = vst [vmem:[%s8458_s15 + $0x388] sm:$0xff] %v478_v49  ;;  %v606_v49 = vld [vmem:[%s8453_s14 + $0xb08] sm:$0xff] }
  0x82   : > { %481 = vst [vmem:[%s8458_s15 + $0x390] sm:$0xff] %v480_v50  ;;  %v608_v50 = vld [vmem:[%s8453_s14 + $0xb10] sm:$0xff] }
  0x83   : > { %483 = vst [vmem:[%s8458_s15 + $0x398] sm:$0xff] %v482_v51  ;;  %v610_v51 = vld [vmem:[%s8453_s14 + $0xb18] sm:$0xff] }
  0x84   : > { %485 = vst [vmem:[%s8458_s15 + $0x3a0] sm:$0xff] %v484_v52  ;;  %v612_v52 = vld [vmem:[%s8453_s14 + $0xb20] sm:$0xff] }
  0x85   : > { %487 = vst [vmem:[%s8458_s15 + $0x3a8] sm:$0xff] %v486_v53  ;;  %v614_v53 = vld [vmem:[%s8453_s14 + $0xb28] sm:$0xff] }
  0x86   : > { %489 = vst [vmem:[%s8458_s15 + $0x3b0] sm:$0xff] %v488_v54  ;;  %v616_v54 = vld [vmem:[%s8453_s14 + $0xb30] sm:$0xff] }
  0x87   : > { %491 = vst [vmem:[%s8458_s15 + $0x3b8] sm:$0xff] %v490_v55  ;;  %v618_v55 = vld [vmem:[%s8453_s14 + $0xb38] sm:$0xff] }
  0x88   : > { %493 = vst [vmem:[%s8458_s15 + $0x3c0] sm:$0xff] %v492_v56  ;;  %v620_v56 = vld [vmem:[%s8453_s14 + $0xb80] sm:$0xff] }
  0x89   : > { %495 = vst [vmem:[%s8458_s15 + $0x3c8] sm:$0xff] %v494_v57  ;;  %v622_v57 = vld [vmem:[%s8453_s14 + $0xb88] sm:$0xff] }
  0x8a   : > { %497 = vst [vmem:[%s8458_s15 + $0x3d0] sm:$0xff] %v496_v58  ;;  %v624_v58 = vld [vmem:[%s8453_s14 + $0xb90] sm:$0xff] }
  0x8b   : > { %499 = vst [vmem:[%s8458_s15 + $0x3d8] sm:$0xff] %v498_v59  ;;  %v626_v59 = vld [vmem:[%s8453_s14 + $0xb98] sm:$0xff] }
  0x8c   : > { %501 = vst [vmem:[%s8458_s15 + $0x3e0] sm:$0xff] %v500_v60  ;;  %v628_v60 = vld [vmem:[%s8453_s14 + $0xba0] sm:$0xff] }
  0x8d   : > { %503 = vst [vmem:[%s8458_s15 + $0x3e8] sm:$0xff] %v502_v61  ;;  %v630_v61 = vld [vmem:[%s8453_s14 + $0xba8] sm:$0xff] }
  0x8e   : > { %505 = vst [vmem:[%s8458_s15 + $0x3f0] sm:$0xff] %v504_v62  ;;  %v632_v62 = vld [vmem:[%s8453_s14 + $0xbb0] sm:$0xff] }
  0x8f   : > { %507 = vst [vmem:[%s8458_s15 + $0x3f8] sm:$0xff] %v506_v63  ;;  %v634_v63 = vld [vmem:[%s8453_s14 + $0xbb8] sm:$0xff] }
  0x90   : > { %509 = vst [vmem:[%s8458_s15 + $0x400] sm:$0xff] %v508_v0  ;;  %v636_v0 = vld [vmem:[%s8453_s14 + $0xc00] sm:$0xff] }
  0x91   : > { %511 = vst [vmem:[%s8458_s15 + $0x408] sm:$0xff] %v510_v1  ;;  %v638_v1 = vld [vmem:[%s8453_s14 + $0xc08] sm:$0xff] }
  0x92   : > { %513 = vst [vmem:[%s8458_s15 + $0x410] sm:$0xff] %v512_v2  ;;  %v640_v2 = vld [vmem:[%s8453_s14 + $0xc10] sm:$0xff] }
  0x93   : > { %515 = vst [vmem:[%s8458_s15 + $0x418] sm:$0xff] %v514_v3  ;;  %v642_v3 = vld [vmem:[%s8453_s14 + $0xc18] sm:$0xff] }
  0x94   : > { %517 = vst [vmem:[%s8458_s15 + $0x420] sm:$0xff] %v516_v4  ;;  %v644_v4 = vld [vmem:[%s8453_s14 + $0xc20] sm:$0xff] }
  0x95   : > { %519 = vst [vmem:[%s8458_s15 + $0x428] sm:$0xff] %v518_v5  ;;  %v646_v5 = vld [vmem:[%s8453_s14 + $0xc28] sm:$0xff] }
  0x96   : > { %521 = vst [vmem:[%s8458_s15 + $0x430] sm:$0xff] %v520_v6  ;;  %v648_v6 = vld [vmem:[%s8453_s14 + $0xc30] sm:$0xff] }
  0x97   : > { %523 = vst [vmem:[%s8458_s15 + $0x438] sm:$0xff] %v522_v7  ;;  %v650_v7 = vld [vmem:[%s8453_s14 + $0xc38] sm:$0xff] }
  0x98   : > { %525 = vst [vmem:[%s8458_s15 + $0x440] sm:$0xff] %v524_v8  ;;  %v652_v8 = vld [vmem:[%s8453_s14 + $0xc80] sm:$0xff] }
  0x99   : > { %527 = vst [vmem:[%s8458_s15 + $0x448] sm:$0xff] %v526_v9  ;;  %v654_v9 = vld [vmem:[%s8453_s14 + $0xc88] sm:$0xff] }
  0x9a   : > { %529 = vst [vmem:[%s8458_s15 + $0x450] sm:$0xff] %v528_v10  ;;  %v656_v10 = vld [vmem:[%s8453_s14 + $0xc90] sm:$0xff] }
  0x9b   : > { %531 = vst [vmem:[%s8458_s15 + $0x458] sm:$0xff] %v530_v11  ;;  %v658_v11 = vld [vmem:[%s8453_s14 + $0xc98] sm:$0xff] }
  0x9c   : > { %533 = vst [vmem:[%s8458_s15 + $0x460] sm:$0xff] %v532_v12  ;;  %v660_v12 = vld [vmem:[%s8453_s14 + $0xca0] sm:$0xff] }
  0x9d   : > { %535 = vst [vmem:[%s8458_s15 + $0x468] sm:$0xff] %v534_v13  ;;  %v662_v13 = vld [vmem:[%s8453_s14 + $0xca8] sm:$0xff] }
  0x9e   : > { %537 = vst [vmem:[%s8458_s15 + $0x470] sm:$0xff] %v536_v14  ;;  %v664_v14 = vld [vmem:[%s8453_s14 + $0xcb0] sm:$0xff] }
  0x9f   : > { %539 = vst [vmem:[%s8458_s15 + $0x478] sm:$0xff] %v538_v15  ;;  %v666_v15 = vld [vmem:[%s8453_s14 + $0xcb8] sm:$0xff] }
  0xa0   : > { %541 = vst [vmem:[%s8458_s15 + $0x480] sm:$0xff] %v540_v16  ;;  %v668_v16 = vld [vmem:[%s8453_s14 + $0xd00] sm:$0xff] }
  0xa1   : > { %543 = vst [vmem:[%s8458_s15 + $0x488] sm:$0xff] %v542_v17  ;;  %v670_v17 = vld [vmem:[%s8453_s14 + $0xd08] sm:$0xff] }
  0xa2   : > { %545 = vst [vmem:[%s8458_s15 + $0x490] sm:$0xff] %v544_v18  ;;  %v672_v18 = vld [vmem:[%s8453_s14 + $0xd10] sm:$0xff] }
  0xa3   : > { %547 = vst [vmem:[%s8458_s15 + $0x498] sm:$0xff] %v546_v19  ;;  %v674_v19 = vld [vmem:[%s8453_s14 + $0xd18] sm:$0xff] }
  0xa4   : > { %549 = vst [vmem:[%s8458_s15 + $0x4a0] sm:$0xff] %v548_v20  ;;  %v676_v20 = vld [vmem:[%s8453_s14 + $0xd20] sm:$0xff] }
  0xa5   : > { %551 = vst [vmem:[%s8458_s15 + $0x4a8] sm:$0xff] %v550_v21  ;;  %v678_v21 = vld [vmem:[%s8453_s14 + $0xd28] sm:$0xff] }
  0xa6   : > { %553 = vst [vmem:[%s8458_s15 + $0x4b0] sm:$0xff] %v552_v22  ;;  %v680_v22 = vld [vmem:[%s8453_s14 + $0xd30] sm:$0xff] }
  0xa7   : > { %555 = vst [vmem:[%s8458_s15 + $0x4b8] sm:$0xff] %v554_v23  ;;  %v682_v23 = vld [vmem:[%s8453_s14 + $0xd38] sm:$0xff] }
  0xa8   : > { %557 = vst [vmem:[%s8458_s15 + $0x4c0] sm:$0xff] %v556_v24  ;;  %v684_v24 = vld [vmem:[%s8453_s14 + $0xd80] sm:$0xff] }
  0xa9   : > { %559 = vst [vmem:[%s8458_s15 + $0x4c8] sm:$0xff] %v558_v25  ;;  %v686_v25 = vld [vmem:[%s8453_s14 + $0xd88] sm:$0xff] }
  0xaa   : > { %561 = vst [vmem:[%s8458_s15 + $0x4d0] sm:$0xff] %v560_v26  ;;  %v688_v26 = vld [vmem:[%s8453_s14 + $0xd90] sm:$0xff] }
  0xab   : > { %563 = vst [vmem:[%s8458_s15 + $0x4d8] sm:$0xff] %v562_v27  ;;  %v690_v27 = vld [vmem:[%s8453_s14 + $0xd98] sm:$0xff] }
  0xac   : > { %565 = vst [vmem:[%s8458_s15 + $0x4e0] sm:$0xff] %v564_v28  ;;  %v692_v28 = vld [vmem:[%s8453_s14 + $0xda0] sm:$0xff] }
  0xad   : > { %567 = vst [vmem:[%s8458_s15 + $0x4e8] sm:$0xff] %v566_v29  ;;  %v694_v29 = vld [vmem:[%s8453_s14 + $0xda8] sm:$0xff] }
  0xae   : > { %569 = vst [vmem:[%s8458_s15 + $0x4f0] sm:$0xff] %v568_v30  ;;  %v696_v30 = vld [vmem:[%s8453_s14 + $0xdb0] sm:$0xff] }
  0xaf   : > { %571 = vst [vmem:[%s8458_s15 + $0x4f8] sm:$0xff] %v570_v31  ;;  %v698_v31 = vld [vmem:[%s8453_s14 + $0xdb8] sm:$0xff] }
  0xb0   : > { %573 = vst [vmem:[%s8458_s15 + $0x500] sm:$0xff] %v572_v32  ;;  %v700_v32 = vld [vmem:[%s8453_s14 + $0xe00] sm:$0xff] }
  0xb1   : > { %575 = vst [vmem:[%s8458_s15 + $0x508] sm:$0xff] %v574_v33  ;;  %v702_v33 = vld [vmem:[%s8453_s14 + $0xe08] sm:$0xff] }
  0xb2   : > { %577 = vst [vmem:[%s8458_s15 + $0x510] sm:$0xff] %v576_v34  ;;  %v704_v34 = vld [vmem:[%s8453_s14 + $0xe10] sm:$0xff] }
  0xb3   : > { %579 = vst [vmem:[%s8458_s15 + $0x518] sm:$0xff] %v578_v35  ;;  %v706_v35 = vld [vmem:[%s8453_s14 + $0xe18] sm:$0xff] }
  0xb4   : > { %581 = vst [vmem:[%s8458_s15 + $0x520] sm:$0xff] %v580_v36  ;;  %v708_v36 = vld [vmem:[%s8453_s14 + $0xe20] sm:$0xff] }
  0xb5   : > { %583 = vst [vmem:[%s8458_s15 + $0x528] sm:$0xff] %v582_v37  ;;  %v710_v37 = vld [vmem:[%s8453_s14 + $0xe28] sm:$0xff] }
  0xb6   : > { %585 = vst [vmem:[%s8458_s15 + $0x530] sm:$0xff] %v584_v38  ;;  %v712_v38 = vld [vmem:[%s8453_s14 + $0xe30] sm:$0xff] }
  0xb7   : > { %587 = vst [vmem:[%s8458_s15 + $0x538] sm:$0xff] %v586_v39  ;;  %v714_v39 = vld [vmem:[%s8453_s14 + $0xe38] sm:$0xff] }
  0xb8   : > { %589 = vst [vmem:[%s8458_s15 + $0x540] sm:$0xff] %v588_v40  ;;  %v716_v40 = vld [vmem:[%s8453_s14 + $0xe80] sm:$0xff] }
  0xb9   : > { %591 = vst [vmem:[%s8458_s15 + $0x548] sm:$0xff] %v590_v41  ;;  %v718_v41 = vld [vmem:[%s8453_s14 + $0xe88] sm:$0xff] }
  0xba   : > { %593 = vst [vmem:[%s8458_s15 + $0x550] sm:$0xff] %v592_v42  ;;  %v720_v42 = vld [vmem:[%s8453_s14 + $0xe90] sm:$0xff] }
  0xbb   : > { %595 = vst [vmem:[%s8458_s15 + $0x558] sm:$0xff] %v594_v43  ;;  %v722_v43 = vld [vmem:[%s8453_s14 + $0xe98] sm:$0xff] }
  0xbc   : > { %597 = vst [vmem:[%s8458_s15 + $0x560] sm:$0xff] %v596_v44  ;;  %v724_v44 = vld [vmem:[%s8453_s14 + $0xea0] sm:$0xff] }
  0xbd   : > { %599 = vst [vmem:[%s8458_s15 + $0x568] sm:$0xff] %v598_v45  ;;  %v726_v45 = vld [vmem:[%s8453_s14 + $0xea8] sm:$0xff] }
  0xbe   : > { %601 = vst [vmem:[%s8458_s15 + $0x570] sm:$0xff] %v600_v46  ;;  %v728_v46 = vld [vmem:[%s8453_s14 + $0xeb0] sm:$0xff] }
  0xbf   : > { %603 = vst [vmem:[%s8458_s15 + $0x578] sm:$0xff] %v602_v47  ;;  %v730_v47 = vld [vmem:[%s8453_s14 + $0xeb8] sm:$0xff] }
  0xc0   : > { %605 = vst [vmem:[%s8458_s15 + $0x580] sm:$0xff] %v604_v48  ;;  %v732_v48 = vld [vmem:[%s8453_s14 + $0xf00] sm:$0xff] }
  0xc1   : > { %607 = vst [vmem:[%s8458_s15 + $0x588] sm:$0xff] %v606_v49  ;;  %v734_v49 = vld [vmem:[%s8453_s14 + $0xf08] sm:$0xff] }
  0xc2   : > { %609 = vst [vmem:[%s8458_s15 + $0x590] sm:$0xff] %v608_v50  ;;  %v736_v50 = vld [vmem:[%s8453_s14 + $0xf10] sm:$0xff] }
  0xc3   : > { %611 = vst [vmem:[%s8458_s15 + $0x598] sm:$0xff] %v610_v51  ;;  %v738_v51 = vld [vmem:[%s8453_s14 + $0xf18] sm:$0xff] }
  0xc4   : > { %613 = vst [vmem:[%s8458_s15 + $0x5a0] sm:$0xff] %v612_v52  ;;  %v740_v52 = vld [vmem:[%s8453_s14 + $0xf20] sm:$0xff] }
  0xc5   : > { %615 = vst [vmem:[%s8458_s15 + $0x5a8] sm:$0xff] %v614_v53  ;;  %v742_v53 = vld [vmem:[%s8453_s14 + $0xf28] sm:$0xff] }
  0xc6   : > { %617 = vst [vmem:[%s8458_s15 + $0x5b0] sm:$0xff] %v616_v54  ;;  %v744_v54 = vld [vmem:[%s8453_s14 + $0xf30] sm:$0xff] }
  0xc7   : > { %619 = vst [vmem:[%s8458_s15 + $0x5b8] sm:$0xff] %v618_v55  ;;  %v746_v55 = vld [vmem:[%s8453_s14 + $0xf38] sm:$0xff] }
  0xc8   : > { %621 = vst [vmem:[%s8458_s15 + $0x5c0] sm:$0xff] %v620_v56  ;;  %v748_v56 = vld [vmem:[%s8453_s14 + $0xf80] sm:$0xff] }
  0xc9   : > { %623 = vst [vmem:[%s8458_s15 + $0x5c8] sm:$0xff] %v622_v57  ;;  %v750_v57 = vld [vmem:[%s8453_s14 + $0xf88] sm:$0xff] }
  0xca   : > { %625 = vst [vmem:[%s8458_s15 + $0x5d0] sm:$0xff] %v624_v58  ;;  %v752_v58 = vld [vmem:[%s8453_s14 + $0xf90] sm:$0xff] }
  0xcb   : > { %627 = vst [vmem:[%s8458_s15 + $0x5d8] sm:$0xff] %v626_v59  ;;  %v754_v59 = vld [vmem:[%s8453_s14 + $0xf98] sm:$0xff] }
  0xcc   : > { %629 = vst [vmem:[%s8458_s15 + $0x5e0] sm:$0xff] %v628_v60  ;;  %v756_v60 = vld [vmem:[%s8453_s14 + $0xfa0] sm:$0xff] }
  0xcd   : > { %631 = vst [vmem:[%s8458_s15 + $0x5e8] sm:$0xff] %v630_v61  ;;  %v758_v61 = vld [vmem:[%s8453_s14 + $0xfa8] sm:$0xff] }
  0xce   : > { %633 = vst [vmem:[%s8458_s15 + $0x5f0] sm:$0xff] %v632_v62  ;;  %v760_v62 = vld [vmem:[%s8453_s14 + $0xfb0] sm:$0xff] }
  0xcf   : > { %635 = vst [vmem:[%s8458_s15 + $0x5f8] sm:$0xff] %v634_v63  ;;  %v762_v63 = vld [vmem:[%s8453_s14 + $0xfb8] sm:$0xff] }
  0xd0   : > { %637 = vst [vmem:[%s8458_s15 + $0x600] sm:$0xff] %v636_v0 }
  0xd1   : > { %639 = vst [vmem:[%s8458_s15 + $0x608] sm:$0xff] %v638_v1 }
  0xd2   : > { %641 = vst [vmem:[%s8458_s15 + $0x610] sm:$0xff] %v640_v2 }
  0xd3   : > { %643 = vst [vmem:[%s8458_s15 + $0x618] sm:$0xff] %v642_v3 }
  0xd4   : > { %645 = vst [vmem:[%s8458_s15 + $0x620] sm:$0xff] %v644_v4 }
  0xd5   : > { %647 = vst [vmem:[%s8458_s15 + $0x628] sm:$0xff] %v646_v5 }
  0xd6   : > { %649 = vst [vmem:[%s8458_s15 + $0x630] sm:$0xff] %v648_v6 }
  0xd7   : > { %651 = vst [vmem:[%s8458_s15 + $0x638] sm:$0xff] %v650_v7 }
  0xd8   : > { %653 = vst [vmem:[%s8458_s15 + $0x640] sm:$0xff] %v652_v8 }
  0xd9   : > { %655 = vst [vmem:[%s8458_s15 + $0x648] sm:$0xff] %v654_v9 }
  0xda   : > { %657 = vst [vmem:[%s8458_s15 + $0x650] sm:$0xff] %v656_v10 }
  0xdb   : > { %659 = vst [vmem:[%s8458_s15 + $0x658] sm:$0xff] %v658_v11 }
  0xdc   : > { %661 = vst [vmem:[%s8458_s15 + $0x660] sm:$0xff] %v660_v12 }
  0xdd   : > { %663 = vst [vmem:[%s8458_s15 + $0x668] sm:$0xff] %v662_v13 }
  0xde   : > { %665 = vst [vmem:[%s8458_s15 + $0x670] sm:$0xff] %v664_v14 }
  0xdf   : > { %667 = vst [vmem:[%s8458_s15 + $0x678] sm:$0xff] %v666_v15 }
  0xe0   : > { %669 = vst [vmem:[%s8458_s15 + $0x680] sm:$0xff] %v668_v16 }
  0xe1   : > { %671 = vst [vmem:[%s8458_s15 + $0x688] sm:$0xff] %v670_v17 }
  0xe2   : > { %673 = vst [vmem:[%s8458_s15 + $0x690] sm:$0xff] %v672_v18 }
  0xe3   : > { %675 = vst [vmem:[%s8458_s15 + $0x698] sm:$0xff] %v674_v19 }
  0xe4   : > { %677 = vst [vmem:[%s8458_s15 + $0x6a0] sm:$0xff] %v676_v20 }
  0xe5   : > { %679 = vst [vmem:[%s8458_s15 + $0x6a8] sm:$0xff] %v678_v21 }
  0xe6   : > { %681 = vst [vmem:[%s8458_s15 + $0x6b0] sm:$0xff] %v680_v22 }
  0xe7   : > { %683 = vst [vmem:[%s8458_s15 + $0x6b8] sm:$0xff] %v682_v23 }
  0xe8   : > { %685 = vst [vmem:[%s8458_s15 + $0x6c0] sm:$0xff] %v684_v24 }
  0xe9   : > { %687 = vst [vmem:[%s8458_s15 + $0x6c8] sm:$0xff] %v686_v25 }
  0xea   : > { %689 = vst [vmem:[%s8458_s15 + $0x6d0] sm:$0xff] %v688_v26 }
  0xeb   : > { %691 = vst [vmem:[%s8458_s15 + $0x6d8] sm:$0xff] %v690_v27 }
  0xec   : > { %693 = vst [vmem:[%s8458_s15 + $0x6e0] sm:$0xff] %v692_v28 }
  0xed   : > { %695 = vst [vmem:[%s8458_s15 + $0x6e8] sm:$0xff] %v694_v29 }
  0xee   : > { %697 = vst [vmem:[%s8458_s15 + $0x6f0] sm:$0xff] %v696_v30 }
  0xef   : > { %699 = vst [vmem:[%s8458_s15 + $0x6f8] sm:$0xff] %v698_v31 }
  0xf0   : > { %701 = vst [vmem:[%s8458_s15 + $0x700] sm:$0xff] %v700_v32 }
  0xf1   : > { %703 = vst [vmem:[%s8458_s15 + $0x708] sm:$0xff] %v702_v33 }
  0xf2   : > { %705 = vst [vmem:[%s8458_s15 + $0x710] sm:$0xff] %v704_v34 }
  0xf3   : > { %707 = vst [vmem:[%s8458_s15 + $0x718] sm:$0xff] %v706_v35 }
  0xf4   : > { %709 = vst [vmem:[%s8458_s15 + $0x720] sm:$0xff] %v708_v36 }
  0xf5   : > { %711 = vst [vmem:[%s8458_s15 + $0x728] sm:$0xff] %v710_v37 }
  0xf6   : > { %713 = vst [vmem:[%s8458_s15 + $0x730] sm:$0xff] %v712_v38 }
  0xf7   : > { %715 = vst [vmem:[%s8458_s15 + $0x738] sm:$0xff] %v714_v39 }
  0xf8   : > { %717 = vst [vmem:[%s8458_s15 + $0x740] sm:$0xff] %v716_v40 }
  0xf9   : > { %719 = vst [vmem:[%s8458_s15 + $0x748] sm:$0xff] %v718_v41 }
  0xfa   : > { %721 = vst [vmem:[%s8458_s15 + $0x750] sm:$0xff] %v720_v42 }
  0xfb   : > { %723 = vst [vmem:[%s8458_s15 + $0x758] sm:$0xff] %v722_v43 }
  0xfc   : > { %725 = vst [vmem:[%s8458_s15 + $0x760] sm:$0xff] %v724_v44 }
  0xfd   : > { %727 = vst [vmem:[%s8458_s15 + $0x768] sm:$0xff] %v726_v45 }
  0xfe   : > { %729 = vst [vmem:[%s8458_s15 + $0x770] sm:$0xff] %v728_v46 }
  0xff   : > { %731 = vst [vmem:[%s8458_s15 + $0x778] sm:$0xff] %v730_v47 }
 0x100   : > { %733 = vst [vmem:[%s8458_s15 + $0x780] sm:$0xff] %v732_v48 }
 0x101   : > { %735 = vst [vmem:[%s8458_s15 + $0x788] sm:$0xff] %v734_v49 }
 0x102   : > { %737 = vst [vmem:[%s8458_s15 + $0x790] sm:$0xff] %v736_v50 }
 0x103   : > { %739 = vst [vmem:[%s8458_s15 + $0x798] sm:$0xff] %v738_v51 }
 0x104   : > { %741 = vst [vmem:[%s8458_s15 + $0x7a0] sm:$0xff] %v740_v52 }
 0x105   : > { %743 = vst [vmem:[%s8458_s15 + $0x7a8] sm:$0xff] %v742_v53 }
 0x106   : > { %745 = vst [vmem:[%s8458_s15 + $0x7b0] sm:$0xff] %v744_v54 }
 0x107   : > { %747 = vst [vmem:[%s8458_s15 + $0x7b8] sm:$0xff] %v746_v55 }
 0x108   : > { %749 = vst [vmem:[%s8458_s15 + $0x7c0] sm:$0xff] %v748_v56 }
 0x109   : > { %751 = vst [vmem:[%s8458_s15 + $0x7c8] sm:$0xff] %v750_v57 }
 0x10a   : > { %753 = vst [vmem:[%s8458_s15 + $0x7d0] sm:$0xff] %v752_v58 }
 0x10b   : > { %755 = vst [vmem:[%s8458_s15 + $0x7d8] sm:$0xff] %v754_v59 }
 0x10c   : > { %757 = vst [vmem:[%s8458_s15 + $0x7e0] sm:$0xff] %v756_v60 }
 0x10d   : > { %759 = vst [vmem:[%s8458_s15 + $0x7e8] sm:$0xff] %v758_v61 }
 0x10e   : > { %761 = vst [vmem:[%s8458_s15 + $0x7f0] sm:$0xff] %v760_v62 }
 0x10f   : > { %763 = vst [vmem:[%s8458_s15 + $0x7f8] sm:$0xff] %v762_v63 }
 0x110 PF: > { %p5434_p5 = scmp.ge.s32.totalorder %s8377_s26, 1  ;;  %p776_p6 = scmp.lt.s32.totalorder %s8377_s26, 3 }
 0x112   : > { %p777_p7 = pnand %p5434_p5, %p776_p6 }
 0x113   : > { %s783_s12 = sand.u32 (!%p777_p7), 1, %s8369_s24   ;;  %s11452_s24 = sshll.u32 (!%p777_p7), %s5427_s27, 4 }
 0x114   : > { %780 = sbr.rel (%p777_p7) target bundleno = 1173 (0x495), region = 67  ;;  %s5435_s13 = sshll.u32 (!%p777_p7), %s783_s12, 11 }
 0x115   : > { %s10992_s14 = scalar_lea.vmem (!%p777_p7), [#allocation2], %s5435_s13  ;;  %p820_p8 = scmp.lt.s32.totalorder (!%p777_p7), %s11452_s24, 31 }
 0x119   : > { %v5553_v0 = vld [vmem:[%s11640_s1 + $0xe0] sm:$0xf]  ;;  %v7776_v1 = vld [vmem:[%s11640_s1 + $0xec] sm:$0xf0]  ;;  %s11651_s24 = smov (!%p820_p8, %s11452_s24), 31  ;;  %vm5333_vm0 = vcmask 1041408  }
 0x11a   : > { %v5681_v2 = vld [vmem:[%s11640_s1 + $0x1e0] sm:$0xf]  ;;  %v5554_v3 = vor.u32 %v7776_v1, %v5553_v0  ;;  %v7808_v4 = vld [vmem:[%s11640_s1 + $0x1ec] sm:$0xf0]  ;;  %s11502_s15 = scalar_lea.vmem %s11645_s6, %s11651_s24  ;;  %s5438_s16 = sshll.u32 %s11651_s24, 1  ;;  %vm5335_vm1 = vcmask 1045508  }
 0x11b   : > { %v5809_v5 = vld [vmem:[%s11640_s1 + $0x2e0] sm:$0xf]  ;;  %v7840_v6 = vld [vmem:[%s11640_s1 + $0x2ec] sm:$0xf0]  ;;  %v5682_v7 = vor.u32 %v7808_v4, %v5681_v2  ;;  %vm5337_vm2 = vcmask 1043456   ;;  %s11563_s19 = scalar_lea.vmem %s11646_s7, %s5438_s16 }
 0x11c   : > { %v5810_v8 = vor.u32 %v7840_v6, %v5809_v5  ;;  %v5937_v9 = vld [vmem:[%s11640_s1 + $0x3e0] sm:$0xf]  ;;  %v7872_v10 = vld [vmem:[%s11640_s1 + $0x3ec] sm:$0xf0]  ;;  %2395 = vmatpush.bf16.msra.mxu0 %v5554_v3 }
 0x11d   : > { %v5537_v11 = vld [vmem:[%s11640_s1 + $0xc0] sm:$0xf]  ;;  %v5938_v12 = vor.u32 %v7872_v10, %v5937_v9  ;;  %v7772_v13 = vld [vmem:[%s11640_s1 + $0xcc] sm:$0xf0]  ;;  %2408 = vmatpush.bf16.msra.mxu1 %v5682_v7 }
 0x11e   : > { %v5665_v14 = vld [vmem:[%s11640_s1 + $0x1c0] sm:$0xf]  ;;  %v7804_v15 = vld [vmem:[%s11640_s1 + $0x1cc] sm:$0xf0]  ;;  %2421 = vmatpush.bf16.msra.mxu2 %v5810_v8  ;;  %v5538_v16 = vor.u32 %v7772_v13, %v5537_v11 }
 0x11f   : > { %v5666_v17 = vor.u32 %v7804_v15, %v5665_v14  ;;  %v5793_v18 = vld [vmem:[%s11640_s1 + $0x2c0] sm:$0xf]  ;;  %v7836_v19 = vld [vmem:[%s11640_s1 + $0x2cc] sm:$0xf0]  ;;  %2434 = vmatpush.bf16.msra.mxu3 %v5938_v12 }
 0x120   : > { %v5921_v20 = vld [vmem:[%s11640_s1 + $0x3c0] sm:$0xf]  ;;  %v5794_v21 = vor.u32 %v7836_v19, %v5793_v18  ;;  %v7868_v22 = vld [vmem:[%s11640_s1 + $0x3cc] sm:$0xf0]  ;;  %2396 = vmatpush.bf16.msra.mxu0 %v5538_v16 }
 0x121   : > { %v5521_v23 = vld [vmem:[%s11640_s1 + $0xa0] sm:$0xf]  ;;  %v7768_v24 = vld [vmem:[%s11640_s1 + $0xac] sm:$0xf0]  ;;  %v5922_v25 = vor.u32 %v7868_v22, %v5921_v20  ;;  %2409 = vmatpush.bf16.msra.mxu1 %v5666_v17 }
 0x122   : > { %v5649_v26 = vld [vmem:[%s11640_s1 + $0x1a0] sm:$0xf]  ;;  %v7800_v27 = vld [vmem:[%s11640_s1 + $0x1ac] sm:$0xf0]  ;;  %v5522_v29 = vor.u32 %v7768_v24, %v5521_v23  ;;  %2422 = vmatpush.bf16.msra.mxu2 %v5794_v21 }
 0x123   : > { %v5777_v28 = vld [vmem:[%s11640_s1 + $0x2a0] sm:$0xf]  ;;  %v7832_v30 = vld [vmem:[%s11640_s1 + $0x2ac] sm:$0xf0]  ;;  %v5650_v33 = vor.u32 %v7800_v27, %v5649_v26  ;;  %2435 = vmatpush.bf16.msra.mxu3 %v5922_v25 }
 0x124   : > { %v5905_v31 = vld [vmem:[%s11640_s1 + $0x3a0] sm:$0xf]  ;;  %v7864_v32 = vld [vmem:[%s11640_s1 + $0x3ac] sm:$0xf0]  ;;  %v5778_v34 = vor.u32 %v7832_v30, %v5777_v28  ;;  %2397 = vmatpush.bf16.msra.mxu0 %v5522_v29 }
 0x125   : > { %v5505_v35 = vld [vmem:[%s11640_s1 + $0x80] sm:$0xf]  ;;  %v7764_v36 = vld [vmem:[%s11640_s1 + $0x8c] sm:$0xf0]  ;;  %v5906_v38 = vor.u32 %v7864_v32, %v5905_v31  ;;  %2410 = vmatpush.bf16.msra.mxu1 %v5650_v33 }
 0x126   : > { %v5633_v37 = vld [vmem:[%s11640_s1 + $0x180] sm:$0xf]  ;;  %v7796_v39 = vld [vmem:[%s11640_s1 + $0x18c] sm:$0xf0]  ;;  %v5506_v44 = vor.u32 %v7764_v36, %v5505_v35  ;;  %2423 = vmatpush.bf16.msra.mxu2 %v5778_v34 }
 0x127   : > { %v5761_v40 = vld [vmem:[%s11640_s1 + $0x280] sm:$0xf]  ;;  %v7828_v41 = vld [vmem:[%s11640_s1 + $0x28c] sm:$0xf0]  ;;  %v5634_v45 = vor.u32 %v7796_v39, %v5633_v37  ;;  %2436 = vmatpush.bf16.msra.mxu3 %v5906_v38 }
 0x128   : > { %v5889_v42 = vld [vmem:[%s11640_s1 + $0x380] sm:$0xf]  ;;  %v7860_v43 = vld [vmem:[%s11640_s1 + $0x38c] sm:$0xf0]  ;;  %v5762_v46 = vor.u32 %v7828_v41, %v5761_v40  ;;  %2398 = vmatpush.bf16.msra.mxu0 %v5506_v44 }
 0x129   : > { %v5489_v47 = vld [vmem:[%s11640_s1 + $0x60] sm:$0xf]  ;;  %v7760_v48 = vld [vmem:[%s11640_s1 + $0x6c] sm:$0xf0]  ;;  %v5890_v50 = vor.u32 %v7860_v43, %v5889_v42  ;;  %2411 = vmatpush.bf16.msra.mxu1 %v5634_v45 }
 0x12a   : > { %v5617_v49 = vld [vmem:[%s11640_s1 + $0x160] sm:$0xf]  ;;  %v7792_v51 = vld [vmem:[%s11640_s1 + $0x16c] sm:$0xf0]  ;;  %v5490_v56 = vor.u32 %v7760_v48, %v5489_v47  ;;  %2424 = vmatpush.bf16.msra.mxu2 %v5762_v46 }
 0x12b   : > { %v5745_v52 = vld [vmem:[%s11640_s1 + $0x260] sm:$0xf]  ;;  %v7824_v53 = vld [vmem:[%s11640_s1 + $0x26c] sm:$0xf0]  ;;  %v5618_v57 = vor.u32 %v7792_v51, %v5617_v49  ;;  %2437 = vmatpush.bf16.msra.mxu3 %v5890_v50 }
 0x12c   : > { %v5873_v54 = vld [vmem:[%s11640_s1 + $0x360] sm:$0xf]  ;;  %v7856_v55 = vld [vmem:[%s11640_s1 + $0x36c] sm:$0xf0]  ;;  %v5746_v58 = vor.u32 %v7824_v53, %v5745_v52  ;;  %2399 = vmatpush.bf16.msra.mxu0 %v5490_v56 }
 0x12d   : > { %v5473_v59 = vld [vmem:[%s11640_s1 + $0x40] sm:$0xf]  ;;  %v7756_v60 = vld [vmem:[%s11640_s1 + $0x4c] sm:$0xf0]  ;;  %v5874_v62 = vor.u32 %v7856_v55, %v5873_v54  ;;  %2412 = vmatpush.bf16.msra.mxu1 %v5618_v57 }
 0x12e   : > { %v5601_v61 = vld [vmem:[%s11640_s1 + $0x140] sm:$0xf]  ;;  %v7788_v63 = vld [vmem:[%s11640_s1 + $0x14c] sm:$0xf0]  ;;  %v5474_v4 = vor.u32 %v7756_v60, %v5473_v59  ;;  %2425 = vmatpush.bf16.msra.mxu2 %v5746_v58 }
 0x12f   : > { %v5729_v0 = vld [vmem:[%s11640_s1 + $0x240] sm:$0xf]  ;;  %v7820_v1 = vld [vmem:[%s11640_s1 + $0x24c] sm:$0xf0]  ;;  %v5602_v5 = vor.u32 %v7788_v63, %v5601_v61  ;;  %2438 = vmatpush.bf16.msra.mxu3 %v5874_v62 }
 0x130   : > { %v5857_v2 = vld [vmem:[%s11640_s1 + $0x340] sm:$0xf]  ;;  %v7852_v3 = vld [vmem:[%s11640_s1 + $0x34c] sm:$0xf0]  ;;  %v5730_v6 = vor.u32 %v7820_v1, %v5729_v0  ;;  %2400 = vmatpush.bf16.msra.mxu0 %v5474_v4 }
 0x131   : > { %v5457_v7 = vld [vmem:[%s11640_s1 + $0x20] sm:$0xf]  ;;  %v7752_v8 = vld [vmem:[%s11640_s1 + $0x2c] sm:$0xf0]  ;;  %v5858_v10 = vor.u32 %v7852_v3, %v5857_v2  ;;  %2413 = vmatpush.bf16.msra.mxu1 %v5602_v5 }
 0x132   : > { %v5585_v9 = vld [vmem:[%s11640_s1 + $0x120] sm:$0xf]  ;;  %v7784_v11 = vld [vmem:[%s11640_s1 + $0x12c] sm:$0xf0]  ;;  %v5458_v16 = vor.u32 %v7752_v8, %v5457_v7  ;;  %2426 = vmatpush.bf16.msra.mxu2 %v5730_v6 }
 0x133   : > { %v5713_v12 = vld [vmem:[%s11640_s1 + $0x220] sm:$0xf]  ;;  %v7816_v13 = vld [vmem:[%s11640_s1 + $0x22c] sm:$0xf0]  ;;  %v5586_v19 = vor.u32 %v7784_v11, %v5585_v9  ;;  %2439 = vmatpush.bf16.msra.mxu3 %v5858_v10 }
 0x134   : > { %v5841_v14 = vld [vmem:[%s11640_s1 + $0x320] sm:$0xf]  ;;  %v7848_v15 = vld [vmem:[%s11640_s1 + $0x32c] sm:$0xf0]  ;;  %v5714_v20 = vor.u32 %v7816_v13, %v5713_v12  ;;  %2401 = vmatpush.bf16.msra.mxu0 %v5458_v16 }
 0x135   : > { %v5441_v17 = vld [vmem:[%s11640_s1] sm:$0xf]  ;;  %v7748_v18 = vld [vmem:[%s11640_s1 + $0xc] sm:$0xf0]  ;;  %v5842_v24 = vor.u32 %v7848_v15, %v5841_v14  ;;  %2414 = vmatpush.bf16.msra.mxu1 %v5586_v19 }
 0x136   : > { %v5569_v21 = vld [vmem:[%s11640_s1 + $0x100] sm:$0xf]  ;;  %v7780_v22 = vld [vmem:[%s11640_s1 + $0x10c] sm:$0xf0]  ;;  %v5442_v31 = vor.u32 %v7748_v18, %v5441_v17  ;;  %2427 = vmatpush.bf16.msra.mxu2 %v5714_v20 }
 0x137   : > { %v5697_v23 = vld [vmem:[%s11640_s1 + $0x200] sm:$0xf]  ;;  %v7812_v25 = vld [vmem:[%s11640_s1 + $0x20c] sm:$0xf0]  ;;  %v5570_v35 = vor.u32 %v7780_v22, %v5569_v21  ;;  %2440 = vmatpush.bf16.msra.mxu3 %v5842_v24 }
 0x138   : > { %v5825_v26 = vld [vmem:[%s11640_s1 + $0x300] sm:$0xf]  ;;  %v7844_v27 = vld [vmem:[%s11640_s1 + $0x30c] sm:$0xf0]  ;;  %v5698_v36 = vor.u32 %v7812_v25, %v5697_v23  ;;  %2402 = vmatpush.bf16.msra.mxu0 %v5442_v31 }
 0x139   : > { %v6065_v28 = vld [vmem:[%s11640_s1 + $0x4e0] sm:$0xf]  ;;  %v7904_v29 = vld [vmem:[%s11640_s1 + $0x4ec] sm:$0xf0]  ;;  %v5826_v39 = vor.u32 %v7844_v27, %v5825_v26  ;;  %2415 = vmatpush.bf16.msra.mxu1 %v5570_v35 }
 0x13a   : > { %v6193_v30 = vld [vmem:[%s11640_s1 + $0x5e0] sm:$0xf]  ;;  %v7936_v32 = vld [vmem:[%s11640_s1 + $0x5ec] sm:$0xf0]  ;;  %v6066_v40 = vor.u32 %v7904_v29, %v6065_v28  ;;  %2428 = vmatpush.bf16.msra.mxu2 %v5698_v36 }
 0x13b   : > { %v6321_v33 = vld [vmem:[%s11640_s1 + $0x6e0] sm:$0xf]  ;;  %v7968_v34 = vld [vmem:[%s11640_s1 + $0x6ec] sm:$0xf0]  ;;  %v6194_v41 = vor.u32 %v7936_v32, %v6193_v30  ;;  %2441 = vmatpush.bf16.msra.mxu3 %v5826_v39 }
 0x13c   : > { %v6449_v37 = vld [vmem:[%s11640_s1 + $0x7e0] sm:$0xf]  ;;  %v8000_v38 = vld [vmem:[%s11640_s1 + $0x7ec] sm:$0xf0]  ;;  %v6322_v42 = vor.u32 %v7968_v34, %v6321_v33  ;;  %2447 = vmatpush.bf16.msrb.mxu0 %v6066_v40 }
 0x13d   : > { %v6049_v43 = vld [vmem:[%s11640_s1 + $0x4c0] sm:$0xf]  ;;  %v7900_v44 = vld [vmem:[%s11640_s1 + $0x4cc] sm:$0xf0]  ;;  %v6450_v46 = vor.u32 %v8000_v38, %v6449_v37  ;;  %2460 = vmatpush.bf16.msrb.mxu1 %v6194_v41 }
 0x13e   : > { %v6177_v45 = vld [vmem:[%s11640_s1 + $0x5c0] sm:$0xf]  ;;  %v7932_v47 = vld [vmem:[%s11640_s1 + $0x5cc] sm:$0xf0]  ;;  %v6050_v52 = vor.u32 %v7900_v44, %v6049_v43  ;;  %2473 = vmatpush.bf16.msrb.mxu2 %v6322_v42 }
 0x13f   : > { %v6305_v48 = vld [vmem:[%s11640_s1 + $0x6c0] sm:$0xf]  ;;  %v7964_v49 = vld [vmem:[%s11640_s1 + $0x6cc] sm:$0xf0]  ;;  %v6178_v53 = vor.u32 %v7932_v47, %v6177_v45  ;;  %2486 = vmatpush.bf16.msrb.mxu3 %v6450_v46 }
 0x140   : > { %v6433_v50 = vld [vmem:[%s11640_s1 + $0x7c0] sm:$0xf]  ;;  %v7996_v51 = vld [vmem:[%s11640_s1 + $0x7cc] sm:$0xf0]  ;;  %v6306_v54 = vor.u32 %v7964_v49, %v6305_v48  ;;  %2448 = vmatpush.bf16.msrb.mxu0 %v6050_v52 }
 0x141   : > { %v6033_v55 = vld [vmem:[%s11640_s1 + $0x4a0] sm:$0xf]  ;;  %v7896_v56 = vld [vmem:[%s11640_s1 + $0x4ac] sm:$0xf0]  ;;  %v6434_v58 = vor.u32 %v7996_v51, %v6433_v50  ;;  %2461 = vmatpush.bf16.msrb.mxu1 %v6178_v53 }
 0x142   : > { %v6161_v57 = vld [vmem:[%s11640_s1 + $0x5a0] sm:$0xf]  ;;  %v7928_v59 = vld [vmem:[%s11640_s1 + $0x5ac] sm:$0xf0]  ;;  %v6034_v0 = vor.u32 %v7896_v56, %v6033_v55  ;;  %2474 = vmatpush.bf16.msrb.mxu2 %v6306_v54 }
 0x143   : > { %v6289_v60 = vld [vmem:[%s11640_s1 + $0x6a0] sm:$0xf]  ;;  %v7960_v61 = vld [vmem:[%s11640_s1 + $0x6ac] sm:$0xf0]  ;;  %v6162_v3 = vor.u32 %v7928_v59, %v6161_v57  ;;  %2487 = vmatpush.bf16.msrb.mxu3 %v6434_v58 }
 0x144   : > { %v6417_v62 = vld [vmem:[%s11640_s1 + $0x7a0] sm:$0xf]  ;;  %v7992_v63 = vld [vmem:[%s11640_s1 + $0x7ac] sm:$0xf0]  ;;  %v6290_v4 = vor.u32 %v7960_v61, %v6289_v60  ;;  %2449 = vmatpush.bf16.msrb.mxu0 %v6034_v0 }
 0x145   : > { %v6017_v1 = vld [vmem:[%s11640_s1 + $0x480] sm:$0xf]  ;;  %v7892_v5 = vld [vmem:[%s11640_s1 + $0x48c] sm:$0xf0]  ;;  %v6418_v7 = vor.u32 %v7992_v63, %v6417_v62  ;;  %2462 = vmatpush.bf16.msrb.mxu1 %v6162_v3  ;;  %v7806_v3 = vld [vmem:[%s11640_s1 + $0x1e4] sm:$0xf] }
 0x146   : > { %v830_v2 = vld [vmem:[%s11639_s0] sm:$0xff]  ;;  %v7924_v8 = vld [vmem:[%s11640_s1 + $0x58c] sm:$0xf0]  ;;  %v6018_v13 = vor.u32 %v7892_v5, %v6017_v1  ;;  %2475 = vmatpush.bf16.msrb.mxu2 %v6290_v4  ;;  %v5683_v5 = vld [vmem:[%s11640_s1 + $0x1f0] sm:$0xf0] }
 0x147   : > { %v6145_v6 = vld [vmem:[%s11640_s1 + $0x580] sm:$0xf]  ;;  %1098 = vst [vmem:[#allocation1] ss:$9 sm:$0xff] %v830_v2  ;;  %v7956_v10 = vld [vmem:[%s11640_s1 + $0x68c] sm:$0xf0]  ;;  %2488 = vmatpush.bf16.msrb.mxu3 %v6418_v7 }
 0x148   : > { %v6273_v9 = vld [vmem:[%s11640_s1 + $0x680] sm:$0xf]  ;;  %v7988_v12 = vld [vmem:[%s11640_s1 + $0x78c] sm:$0xf0]  ;;  %v6146_v14 = vor.u32 %v7924_v8, %v6145_v6  ;;  %2450 = vmatpush.bf16.msrb.mxu0 %v6018_v13  ;;  %v7774_v1 = vld [vmem:[%s11640_s1 + $0xe4] sm:$0xf] }
 0x149   : > { %v6401_v11 = vld [vmem:[%s11640_s1 + $0x780] sm:$0xf]  ;;  %v6274_v15 = vor.u32 %v7956_v10, %v6273_v9  ;;  %v7888_v17 = vld [vmem:[%s11640_s1 + $0x46c] sm:$0xf0]  ;;  %v5555_v2 = vld [vmem:[%s11640_s1 + $0xf0] sm:$0xf0] }
 0x14a   : > { %v6001_v16 = vld [vmem:[%s11640_s1 + $0x460] sm:$0xf]  ;;  %v6402_v19 = vor.u32 %v7988_v12, %v6401_v11  ;;  %v7920_v20 = vld [vmem:[%s11640_s1 + $0x56c] sm:$0xf0]  ;;  %2463 = vmatpush.bf16.msrb.mxu1 %v6146_v14  ;;  %v7838_v6 = vld [vmem:[%s11640_s1 + $0x2e4] sm:$0xf]  ;;  %v5558_v13 = vor.u32 %v7774_v1, %v5555_v2  ;;  %v5686_v14 = vor.u32 %v7806_v3, %v5683_v5 }
 0x14b   : > { %v6129_v18 = vld [vmem:[%s11640_s1 + $0x560] sm:$0xf]  ;;  %v7952_v22 = vld [vmem:[%s11640_s1 + $0x66c] sm:$0xf0]  ;;  %v6002_v26 = vor.u32 %v7888_v17, %v6001_v16  ;;  %2476 = vmatpush.bf16.msrb.mxu2 %v6274_v15  ;;  %v5811_v7 = vld [vmem:[%s11640_s1 + $0x2f0] sm:$0xf0] }
 0x14c   : > { %v6257_v21 = vld [vmem:[%s11640_s1 + $0x660] sm:$0xf]  ;;  %v7984_v24 = vld [vmem:[%s11640_s1 + $0x76c] sm:$0xf0]  ;;  %v6130_v30 = vor.u32 %v7920_v20, %v6129_v18  ;;  %2489 = vmatpush.bf16.msrb.mxu3 %v6402_v19  ;;  %v7870_v10 = vld [vmem:[%s11640_s1 + $0x3e4] sm:$0xf]  ;;  %v5814_v15 = vor.u32 %v7838_v6, %v5811_v7 }
 0x14d   : > { %v6385_v23 = vld [vmem:[%s11640_s1 + $0x760] sm:$0xf]  ;;  %v6258_v31 = vor.u32 %v7952_v22, %v6257_v21  ;;  %v7884_v32 = vld [vmem:[%s11640_s1 + $0x44c] sm:$0xf0]  ;;  %2451 = vmatpush.bf16.msrb.mxu0 %v6002_v26  ;;  %v5939_v11 = vld [vmem:[%s11640_s1 + $0x3f0] sm:$0xf0] }
 0x14e   : > { %v5985_v25 = vld [vmem:[%s11640_s1 + $0x440] sm:$0xf]  ;;  %v9289_v27 = vld [vmem:[#allocation1 + $0x12] sm:$0xff]  ;;  %v9301_v34 = vld [vmem:[#allocation1 + $0x9] sm:$0xff]  ;;  %v6386_v35 = vor.u32 %v7984_v24, %v6385_v23  ;;  %2464 = vmatpush.bf16.msrb.mxu1 %v6130_v30  ;;  %v5942_v19 = vor.u32 %v7870_v10, %v5939_v11 }
 0x14f   : > { %v9291_v28 = vld [vmem:[#allocation1] sm:$0xff]  ;;  %v7916_v36 = vld [vmem:[%s11640_s1 + $0x54c] sm:$0xf0]  ;;  %2429 = vmatmul.bf16.vlgmr.msra.gmra.mxu2 %v9289_v27  ;;  %v5986_v41 = vor.u32 %v7884_v32, %v5985_v25  ;;  %2416 = vmatmul.bf16.vlgmr.msra.gmra.mxu1 %v9301_v34  ;;  %v5539_v17 = vld [vmem:[%s11640_s1 + $0xd0] sm:$0xf0] }
 0x150   : > { %v9293_v29 = vld [vmem:[#allocation1 + $0x1b] sm:$0xff]  ;;  %v7948_v38 = vld [vmem:[%s11640_s1 + $0x64c] sm:$0xf0]  ;;  %2403 = vmatmul.bf16.vlgmr.msra.gmra.mxu0 %v9291_v28  ;;  %2477 = vmatpush.bf16.msrb.mxu2 %v6258_v31  ;;  %v7770_v16 = vld [vmem:[%s11640_s1 + $0xc4] sm:$0xf] }
 0x151   : > { %v6113_v33 = vld [vmem:[%s11640_s1 + $0x540] sm:$0xf]  ;;  %v7980_v40 = vld [vmem:[%s11640_s1 + $0x74c] sm:$0xf0]  ;;  %2442 = vmatmul.bf16.vlgmr.msra.gmra.mxu3 %v9293_v29  ;;  %2452 = vmatpush.bf16.msrb.mxu0 %v5986_v41  ;;  %v7802_v18 = vld [vmem:[%s11640_s1 + $0x1c4] sm:$0xf]  ;;  %v5542_v26 = vor.u32 %v7770_v16, %v5539_v17 }
 0x152   : > { %v6241_v37 = vld [vmem:[%s11640_s1 + $0x640] sm:$0xf]  ;;  %v6114_v42 = vor.u32 %v7916_v36, %v6113_v33  ;;  %v7880_v45 = vld [vmem:[%s11640_s1 + $0x42c] sm:$0xf0]  ;;  %2490 = vmatpush.bf16.msrb.mxu3 %v6386_v35  ;;  %v5667_v20 = vld [vmem:[%s11640_s1 + $0x1d0] sm:$0xf0] }
 0x153   : > { %v6369_v39 = vld [vmem:[%s11640_s1 + $0x740] sm:$0xf]  ;;  %v6242_v43 = vor.u32 %v7948_v38, %v6241_v37  ;;  %v7912_v48 = vld [vmem:[%s11640_s1 + $0x52c] sm:$0xf0]  ;;  %v7834_v21 = vld [vmem:[%s11640_s1 + $0x2c4] sm:$0xf]  ;;  %v5670_v33 = vor.u32 %v7802_v18, %v5667_v20 }
 0x154   : > { %v5969_v44 = vld [vmem:[%s11640_s1 + $0x420] sm:$0xf]  ;;  %v6370_v47 = vor.u32 %v7980_v40, %v6369_v39  ;;  %v7944_v50 = vld [vmem:[%s11640_s1 + $0x62c] sm:$0xf0]  ;;  %2465 = vmatpush.bf16.msrb.mxu1 %v6114_v42  ;;  %v5795_v22 = vld [vmem:[%s11640_s1 + $0x2d0] sm:$0xf0] }
 0x155   : > { %v6097_v46 = vld [vmem:[%s11640_s1 + $0x520] sm:$0xf]  ;;  %v7976_v52 = vld [vmem:[%s11640_s1 + $0x72c] sm:$0xf0]  ;;  %v5970_v53 = vor.u32 %v7880_v45, %v5969_v44  ;;  %2478 = vmatpush.bf16.msrb.mxu2 %v6242_v43  ;;  %v7866_v23 = vld [vmem:[%s11640_s1 + $0x3c4] sm:$0xf]  ;;  %v5798_v35 = vor.u32 %v7834_v21, %v5795_v22 }
 0x156   : > { %v6225_v49 = vld [vmem:[%s11640_s1 + $0x620] sm:$0xf]  ;;  %v7876_v55 = vld [vmem:[%s11640_s1 + $0x40c] sm:$0xf0]  ;;  %v6098_v56 = vor.u32 %v7912_v48, %v6097_v46  ;;  %2491 = vmatpush.bf16.msrb.mxu3 %v6370_v47  ;;  %v5923_v24 = vld [vmem:[%s11640_s1 + $0x3d0] sm:$0xf0] }
 0x157   : > { %v6353_v51 = vld [vmem:[%s11640_s1 + $0x720] sm:$0xf]  ;;  %v6226_v57 = vor.u32 %v7944_v50, %v6225_v49  ;;  %v7908_v59 = vld [vmem:[%s11640_s1 + $0x50c] sm:$0xf0]  ;;  %2453 = vmatpush.bf16.msrb.mxu0 %v5970_v53  ;;  %v9418_v25 = vld [vmem:[#allocation1 + $0x36] sm:$0xff]  ;;  %v5926_v39 = vor.u32 %v7866_v23, %v5923_v24 }
 0x158   : > { %v5953_v54 = vld [vmem:[%s11640_s1 + $0x400] sm:$0xf]  ;;  %v6354_v61 = vor.u32 %v7976_v52, %v6353_v51  ;;  %v7940_v62 = vld [vmem:[%s11640_s1 + $0x60c] sm:$0xf0]  ;;  %2466 = vmatpush.bf16.msrb.mxu1 %v6098_v56  ;;  %v7766_v30 = vld [vmem:[%s11640_s1 + $0xa4] sm:$0xf] }
 0x159   : > { %v6081_v58 = vld [vmem:[%s11640_s1 + $0x500] sm:$0xf]  ;;  %v7972_v0 = vld [vmem:[%s11640_s1 + $0x70c] sm:$0xf0]  ;;  %v5954_v4 = vor.u32 %v7876_v55, %v5953_v54  ;;  %2479 = vmatpush.bf16.msrb.mxu2 %v6226_v57  ;;  %v9423_v31 = vld [vmem:[#allocation1 + $0x24] sm:$0xff] }
 0x15a   : > { %v6209_v60 = vld [vmem:[%s11640_s1 + $0x600] sm:$0xf]  ;;  %v6082_v8 = vor.u32 %v7908_v59, %v6081_v58  ;;  %2492 = vmatpush.bf16.msrb.mxu3 %v6354_v61  ;;  %v5523_v36 = vld [vmem:[%s11640_s1 + $0xb0] sm:$0xf0]  ;;  %v7798_v37 = vld [vmem:[%s11640_s1 + $0x1a4] sm:$0xf] }
 0x15b   : > { %v6337_v63 = vld [vmem:[%s11640_s1 + $0x700] sm:$0xf]  ;;  %v6210_v9 = vor.u32 %v7940_v62, %v6209_v60  ;;  %2454 = vmatpush.bf16.msrb.mxu0 %v5954_v4  ;;  %v9433_v38 = vld [vmem:[#allocation1 + $0x2d] sm:$0xff]  ;;  %v7830_v41 = vld [vmem:[%s11640_s1 + $0x2a4] sm:$0xf]  ;;  %v5526_v45 = vor.u32 %v7766_v30, %v5523_v36 }
 0x15c   : > { %v6338_v12 = vor.u32 %v7972_v0, %v6337_v63  ;;  %2467 = vmatpush.bf16.msrb.mxu1 %v6082_v8  ;;  %v9425_v32 = vld [vmem:[#allocation1 + $0x3f] sm:$0xff]  ;;  %v5651_v40 = vld [vmem:[%s11640_s1 + $0x1b0] sm:$0xf0] }
 0x15d   : > { %2480 = vmatpush.bf16.msrb.mxu2 %v6210_v9  ;;  %v5779_v42 = vld [vmem:[%s11640_s1 + $0x2b0] sm:$0xf0]  ;;  %v7862_v43 = vld [vmem:[%s11640_s1 + $0x3a4] sm:$0xf]  ;;  %v5654_v46 = vor.u32 %v7798_v37, %v5651_v40 }
 0x15e   : > { %2493 = vmatpush.bf16.msrb.mxu3 %v6338_v12  ;;  %v5907_v44 = vld [vmem:[%s11640_s1 + $0x3b0] sm:$0xf0]  ;;  %v5782_v47 = vor.u32 %v7830_v41, %v5779_v42  ;;  %v7762_v48 = vld [vmem:[%s11640_s1 + $0x84] sm:$0xf] }
 0x15f   : > { %2499 = vmatpush.bf16.msra.mxu0 %v5558_v13  ;;  %2468 = vmatmul.bf16.vlgmr.msrb.gmra.mxu1 %v9433_v38  ;;  %v5507_v49 = vld [vmem:[%s11640_s1 + $0x90] sm:$0xf0]  ;;  %v7794_v50 = vld [vmem:[%s11640_s1 + $0x184] sm:$0xf]  ;;  %v5910_v51 = vor.u32 %v7862_v43, %v5907_v44 }
 0x160   : > { %2512 = vmatpush.bf16.msra.mxu1 %v5686_v14  ;;  %2481 = vmatmul.bf16.vlgmr.msrb.gmra.mxu2 %v9418_v25  ;;  %v5635_v52 = vld [vmem:[%s11640_s1 + $0x190] sm:$0xf0]  ;;  %v7826_v53 = vld [vmem:[%s11640_s1 + $0x284] sm:$0xf]  ;;  %v5510_v57 = vor.u32 %v7762_v48, %v5507_v49 }
 0x161   : > { %2525 = vmatpush.bf16.msra.mxu2 %v5814_v15  ;;  %2455 = vmatmul.bf16.vlgmr.msrb.gmra.mxu0 %v9423_v31  ;;  %v5763_v54 = vld [vmem:[%s11640_s1 + $0x290] sm:$0xf0]  ;;  %v7858_v55 = vld [vmem:[%s11640_s1 + $0x384] sm:$0xf]  ;;  %v5638_v58 = vor.u32 %v7794_v50, %v5635_v52 }
 0x162   : > { %2538 = vmatpush.bf16.msra.mxu3 %v5942_v19  ;;  %v5891_v56 = vld [vmem:[%s11640_s1 + $0x390] sm:$0xf0]  ;;  %v5766_v59 = vor.u32 %v7826_v53, %v5763_v54  ;;  %v7758_v60 = vld [vmem:[%s11640_s1 + $0x64] sm:$0xf] }
 0x163   : > { %2494 = vmatmul.bf16.vlgmr.msrb.gmra.mxu3 %v9425_v32  ;;  %2500 = vmatpush.bf16.msra.mxu0 %v5542_v26  ;;  %v5491_v61 = vld [vmem:[%s11640_s1 + $0x70] sm:$0xf0]  ;;  %v7790_v62 = vld [vmem:[%s11640_s1 + $0x164] sm:$0xf]  ;;  %v5894_v63 = vor.u32 %v7858_v55, %v5891_v56 }
 0x164   : > { %2513 = vmatpush.bf16.msra.mxu1 %v5670_v33  ;;  %v5619_v0 = vld [vmem:[%s11640_s1 + $0x170] sm:$0xf0]  ;;  %v7822_v1 = vld [vmem:[%s11640_s1 + $0x264] sm:$0xf]  ;;  %v5494_v5 = vor.u32 %v7758_v60, %v5491_v61 }
 0x165   : > { %2526 = vmatpush.bf16.msra.mxu2 %v5798_v35  ;;  %v5747_v2 = vld [vmem:[%s11640_s1 + $0x270] sm:$0xf0]  ;;  %v7854_v3 = vld [vmem:[%s11640_s1 + $0x364] sm:$0xf]  ;;  %v5622_v6 = vor.u32 %v7790_v62, %v5619_v0 }
 0x166   : > { %2539 = vmatpush.bf16.msra.mxu3 %v5926_v39  ;;  %v5875_v4 = vld [vmem:[%s11640_s1 + $0x370] sm:$0xf0]  ;;  %v5750_v7 = vor.u32 %v7822_v1, %v5747_v2  ;;  %v7754_v8 = vld [vmem:[%s11640_s1 + $0x44] sm:$0xf] }
 0x167   : > { %2501 = vmatpush.bf16.msra.mxu0 %v5526_v45  ;;  %v5475_v9 = vld [vmem:[%s11640_s1 + $0x50] sm:$0xf0]  ;;  %v7786_v10 = vld [vmem:[%s11640_s1 + $0x144] sm:$0xf]  ;;  %v5878_v11 = vor.u32 %v7854_v3, %v5875_v4 }
 0x168   : > { %2514 = vmatpush.bf16.msra.mxu1 %v5654_v46  ;;  %v5603_v12 = vld [vmem:[%s11640_s1 + $0x150] sm:$0xf0]  ;;  %v7818_v13 = vld [vmem:[%s11640_s1 + $0x244] sm:$0xf]  ;;  %v5478_v17 = vor.u32 %v7754_v8, %v5475_v9 }
 0x169   : > { %2527 = vmatpush.bf16.msra.mxu2 %v5782_v47  ;;  %v5731_v14 = vld [vmem:[%s11640_s1 + $0x250] sm:$0xf0]  ;;  %v7850_v15 = vld [vmem:[%s11640_s1 + $0x344] sm:$0xf]  ;;  %v5606_v18 = vor.u32 %v7786_v10, %v5603_v12 }
 0x16a   : > { %2540 = vmatpush.bf16.msra.mxu3 %v5910_v51  ;;  %v5859_v16 = vld [vmem:[%s11640_s1 + $0x350] sm:$0xf0]  ;;  %v5734_v19 = vor.u32 %v7818_v13, %v5731_v14  ;;  %v7750_v20 = vld [vmem:[%s11640_s1 + $0x24] sm:$0xf] }
 0x16b   : > { %2502 = vmatpush.bf16.msra.mxu0 %v5510_v57  ;;  %v5459_v21 = vld [vmem:[%s11640_s1 + $0x30] sm:$0xf0]  ;;  %v7782_v22 = vld [vmem:[%s11640_s1 + $0x124] sm:$0xf]  ;;  %v5862_v23 = vor.u32 %v7850_v15, %v5859_v16 }
 0x16c   : > { %2515 = vmatpush.bf16.msra.mxu1 %v5638_v58  ;;  %v5587_v24 = vld [vmem:[%s11640_s1 + $0x130] sm:$0xf0]  ;;  %v7814_v26 = vld [vmem:[%s11640_s1 + $0x224] sm:$0xf]  ;;  %v5462_v36 = vor.u32 %v7750_v20, %v5459_v21 }
 0x16d   : > { %2528 = vmatpush.bf16.msra.mxu2 %v5766_v59  ;;  %v5715_v30 = vld [vmem:[%s11640_s1 + $0x230] sm:$0xf0]  ;;  %v7846_v33 = vld [vmem:[%s11640_s1 + $0x324] sm:$0xf]  ;;  %v5590_v40 = vor.u32 %v7782_v22, %v5587_v24 }
 0x16e   : > { %2541 = vmatpush.bf16.msra.mxu3 %v5894_v63  ;;  %v5843_v35 = vld [vmem:[%s11640_s1 + $0x330] sm:$0xf0]  ;;  %v7746_v37 = vld [vmem:[%s11640_s1 + $0x4] sm:$0xf]  ;;  %v5718_v41 = vor.u32 %v7814_v26, %v5715_v30 }
 0x16f   : > { %2503 = vmatpush.bf16.msra.mxu0 %v5494_v5  ;;  %v5443_v39 = vld [vmem:[%s11640_s1 + $0x10] sm:$0xf0]  ;;  %v7778_v42 = vld [vmem:[%s11640_s1 + $0x104] sm:$0xf]  ;;  %v5846_v45 = vor.u32 %v7846_v33, %v5843_v35 }
 0x170   : > { %2516 = vmatpush.bf16.msra.mxu1 %v5622_v6  ;;  %v5571_v43 = vld [vmem:[%s11640_s1 + $0x110] sm:$0xf0]  ;;  %v7810_v44 = vld [vmem:[%s11640_s1 + $0x204] sm:$0xf]  ;;  %v5446_v52 = vor.u32 %v7746_v37, %v5443_v39 }
 0x171   : > { %2529 = vmatpush.bf16.msra.mxu2 %v5750_v7  ;;  %v5699_v46 = vld [vmem:[%s11640_s1 + $0x210] sm:$0xf0]  ;;  %v7842_v47 = vld [vmem:[%s11640_s1 + $0x304] sm:$0xf]  ;;  %v5574_v56 = vor.u32 %v7778_v42, %v5571_v43 }
 0x172   : > { %2542 = vmatpush.bf16.msra.mxu3 %v5878_v11  ;;  %v5827_v48 = vld [vmem:[%s11640_s1 + $0x310] sm:$0xf0]  ;;  %v7902_v49 = vld [vmem:[%s11640_s1 + $0x4e4] sm:$0xf]  ;;  %v5702_v57 = vor.u32 %v7810_v44, %v5699_v46 }
 0x173   : > { %2504 = vmatpush.bf16.msra.mxu0 %v5478_v17  ;;  %v6067_v50 = vld [vmem:[%s11640_s1 + $0x4f0] sm:$0xf0]  ;;  %v7934_v51 = vld [vmem:[%s11640_s1 + $0x5e4] sm:$0xf]  ;;  %v5830_v60 = vor.u32 %v7842_v47, %v5827_v48 }
 0x174   : > { %2517 = vmatpush.bf16.msra.mxu1 %v5606_v18  ;;  %v6195_v53 = vld [vmem:[%s11640_s1 + $0x5f0] sm:$0xf0]  ;;  %v7966_v54 = vld [vmem:[%s11640_s1 + $0x6e4] sm:$0xf]  ;;  %v6070_v61 = vor.u32 %v7902_v49, %v6067_v50 }
 0x175   : > { %2530 = vmatpush.bf16.msra.mxu2 %v5734_v19  ;;  %v6323_v55 = vld [vmem:[%s11640_s1 + $0x6f0] sm:$0xf0]  ;;  %v7998_v58 = vld [vmem:[%s11640_s1 + $0x7e4] sm:$0xf]  ;;  %v6198_v62 = vor.u32 %v7934_v51, %v6195_v53 }
 0x176   : > { %2543 = vmatpush.bf16.msra.mxu3 %v5862_v23  ;;  %v6451_v59 = vld [vmem:[%s11640_s1 + $0x7f0] sm:$0xf0]  ;;  %v6326_v63 = vor.u32 %v7966_v54, %v6323_v55  ;;  %v7898_v0 = vld [vmem:[%s11640_s1 + $0x4c4] sm:$0xf] }
 0x177   : > { %2505 = vmatpush.bf16.msra.mxu0 %v5462_v36  ;;  %v6051_v1 = vld [vmem:[%s11640_s1 + $0x4d0] sm:$0xf0]  ;;  %v7930_v2 = vld [vmem:[%s11640_s1 + $0x5c4] sm:$0xf]  ;;  %v6454_v3 = vor.u32 %v7998_v58, %v6451_v59 }
 0x178   : > { %2518 = vmatpush.bf16.msra.mxu1 %v5590_v40  ;;  %v6179_v4 = vld [vmem:[%s11640_s1 + $0x5d0] sm:$0xf0]  ;;  %v7962_v5 = vld [vmem:[%s11640_s1 + $0x6c4] sm:$0xf]  ;;  %v6054_v9 = vor.u32 %v7898_v0, %v6051_v1 }
 0x179   : > { %2531 = vmatpush.bf16.msra.mxu2 %v5718_v41  ;;  %v6307_v6 = vld [vmem:[%s11640_s1 + $0x6d0] sm:$0xf0]  ;;  %v7994_v7 = vld [vmem:[%s11640_s1 + $0x7c4] sm:$0xf]  ;;  %v6182_v10 = vor.u32 %v7930_v2, %v6179_v4 }
 0x17a   : > { %2544 = vmatpush.bf16.msra.mxu3 %v5846_v45  ;;  %v6435_v8 = vld [vmem:[%s11640_s1 + $0x7d0] sm:$0xf0]  ;;  %v6310_v11 = vor.u32 %v7962_v5, %v6307_v6  ;;  %v7894_v12 = vld [vmem:[%s11640_s1 + $0x4a4] sm:$0xf] }
 0x17b   : > { %2506 = vmatpush.bf16.msra.mxu0 %v5446_v52  ;;  %v6035_v13 = vld [vmem:[%s11640_s1 + $0x4b0] sm:$0xf0]  ;;  %v7926_v14 = vld [vmem:[%s11640_s1 + $0x5a4] sm:$0xf]  ;;  %v6438_v15 = vor.u32 %v7994_v7, %v6435_v8 }
 0x17c   : > { %2519 = vmatpush.bf16.msra.mxu1 %v5574_v56  ;;  %v6163_v16 = vld [vmem:[%s11640_s1 + $0x5b0] sm:$0xf0]  ;;  %v7958_v17 = vld [vmem:[%s11640_s1 + $0x6a4] sm:$0xf]  ;;  %v6038_v21 = vor.u32 %v7894_v12, %v6035_v13 }
 0x17d   : > { %2532 = vmatpush.bf16.msra.mxu2 %v5702_v57  ;;  %v6291_v18 = vld [vmem:[%s11640_s1 + $0x6b0] sm:$0xf0]  ;;  %v7990_v19 = vld [vmem:[%s11640_s1 + $0x7a4] sm:$0xf]  ;;  %v6166_v22 = vor.u32 %v7926_v14, %v6163_v16 }
 0x17e   : > { %2545 = vmatpush.bf16.msra.mxu3 %v5830_v60  ;;  %v6419_v20 = vld [vmem:[%s11640_s1 + $0x7b0] sm:$0xf0]  ;;  %2507 = vmatmul.bf16.vlgmr.msra.gmra.mxu0 %v9291_v28  ;;  %v6294_v23 = vor.u32 %v7958_v17, %v6291_v18  ;;  %v7890_v24 = vld [vmem:[%s11640_s1 + $0x484] sm:$0xf] }
 0x17f   : > { %2551 = vmatpush.bf16.msrb.mxu0 %v6070_v61  ;;  %2520 = vmatmul.bf16.vlgmr.msra.gmra.mxu1 %v9301_v34  ;;  %v6019_v26 = vld [vmem:[%s11640_s1 + $0x490] sm:$0xf0]  ;;  %v7922_v30 = vld [vmem:[%s11640_s1 + $0x584] sm:$0xf]  ;;  %v6422_v33 = vor.u32 %v7990_v19, %v6419_v20 }
 0x180   : > { %2564 = vmatpush.bf16.msrb.mxu1 %v6198_v62  ;;  %2533 = vmatmul.bf16.vlgmr.msra.gmra.mxu2 %v9289_v27  ;;  %v6147_v35 = vld [vmem:[%s11640_s1 + $0x590] sm:$0xf0]  ;;  %v7954_v36 = vld [vmem:[%s11640_s1 + $0x684] sm:$0xf]  ;;  %v6022_v41 = vor.u32 %v7890_v24, %v6019_v26  ;;  %v5561_v26 = vld [vmem:[%s11640_s1 + $0xe8] sm:$0xf] }
 0x181   : > { %2577 = vmatpush.bf16.msrb.mxu2 %v6326_v63  ;;  %2546 = vmatmul.bf16.vlgmr.msra.gmra.mxu3 %v9293_v29  ;;  %v6275_v37 = vld [vmem:[%s11640_s1 + $0x690] sm:$0xf0]  ;;  %v7986_v39 = vld [vmem:[%s11640_s1 + $0x784] sm:$0xf]  ;;  %v6150_v42 = vor.u32 %v7922_v30, %v6147_v35  ;;  %v7777_v30 = vld [vmem:[%s11640_s1 + $0xf4] sm:$0xf0] }
 0x182   : > { %2590 = vmatpush.bf16.msrb.mxu3 %v6454_v3  ;;  %v6403_v40 = vld [vmem:[%s11640_s1 + $0x790] sm:$0xf0]  ;;  %v6278_v43 = vor.u32 %v7954_v36, %v6275_v37  ;;  %v7886_v44 = vld [vmem:[%s11640_s1 + $0x464] sm:$0xf]  ;;  %v7809_v36 = vld [vmem:[%s11640_s1 + $0x1f4] sm:$0xf0] }
 0x183   : > { %2552 = vmatpush.bf16.msrb.mxu0 %v6054_v9  ;;  %v6003_v45 = vld [vmem:[%s11640_s1 + $0x470] sm:$0xf0]  ;;  %v7918_v46 = vld [vmem:[%s11640_s1 + $0x564] sm:$0xf]  ;;  %v6406_v47 = vor.u32 %v7986_v39, %v6403_v40  ;;  %v5817_v37 = vld [vmem:[%s11640_s1 + $0x2e8] sm:$0xf] }
 0x184   : > { %2565 = vmatpush.bf16.msrb.mxu1 %v6182_v10  ;;  %v6131_v48 = vld [vmem:[%s11640_s1 + $0x570] sm:$0xf0]  ;;  %v7950_v49 = vld [vmem:[%s11640_s1 + $0x664] sm:$0xf]  ;;  %v6006_v53 = vor.u32 %v7886_v44, %v6003_v45  ;;  %v7841_v39 = vld [vmem:[%s11640_s1 + $0x2f4] sm:$0xf0]  ;;  %v5562_v45 = vor.u32 %v7777_v30, %v5561_v26 }
 0x185   : > { %2578 = vmatpush.bf16.msrb.mxu2 %v6310_v11  ;;  %v6259_v50 = vld [vmem:[%s11640_s1 + $0x670] sm:$0xf0]  ;;  %v7982_v51 = vld [vmem:[%s11640_s1 + $0x764] sm:$0xf]  ;;  %v6134_v54 = vor.u32 %v7918_v46, %v6131_v48  ;;  %v5545_v48 = vld [vmem:[%s11640_s1 + $0xc8] sm:$0xf] }
 0x186   : > { %2591 = vmatpush.bf16.msrb.mxu3 %v6438_v15  ;;  %v6387_v52 = vld [vmem:[%s11640_s1 + $0x770] sm:$0xf0]  ;;  %v6262_v55 = vor.u32 %v7950_v49, %v6259_v50  ;;  %v7882_v56 = vld [vmem:[%s11640_s1 + $0x444] sm:$0xf]  ;;  %v7773_v49 = vld [vmem:[%s11640_s1 + $0xd4] sm:$0xf0] }
 0x187   : > { %2553 = vmatpush.bf16.msrb.mxu0 %v6038_v21  ;;  %v5987_v57 = vld [vmem:[%s11640_s1 + $0x450] sm:$0xf0]  ;;  %v7914_v58 = vld [vmem:[%s11640_s1 + $0x544] sm:$0xf]  ;;  %v6390_v59 = vor.u32 %v7982_v51, %v6387_v52  ;;  %v5673_v50 = vld [vmem:[%s11640_s1 + $0x1c8] sm:$0xf] }
 0x188   : > { %2566 = vmatpush.bf16.msrb.mxu1 %v6166_v22  ;;  %v6115_v60 = vld [vmem:[%s11640_s1 + $0x550] sm:$0xf0]  ;;  %v7946_v61 = vld [vmem:[%s11640_s1 + $0x644] sm:$0xf]  ;;  %v5990_v1 = vor.u32 %v7882_v56, %v5987_v57  ;;  %v7805_v52 = vld [vmem:[%s11640_s1 + $0x1d4] sm:$0xf0]  ;;  %v5546_v57 = vor.u32 %v7773_v49, %v5545_v48 }
 0x189   : > { %2579 = vmatpush.bf16.msrb.mxu2 %v6294_v23  ;;  %v6243_v62 = vld [vmem:[%s11640_s1 + $0x650] sm:$0xf0]  ;;  %v7978_v63 = vld [vmem:[%s11640_s1 + $0x744] sm:$0xf]  ;;  %v6118_v2 = vor.u32 %v7914_v58, %v6115_v60  ;;  %v7869_v56 = vld [vmem:[%s11640_s1 + $0x3d4] sm:$0xf0]  ;;  %v5674_v58 = vor.u32 %v7805_v52, %v5673_v50 }
 0x18a   : > { %2592 = vmatpush.bf16.msrb.mxu3 %v6422_v33  ;;  %v6371_v0 = vld [vmem:[%s11640_s1 + $0x750] sm:$0xf0]  ;;  %v6246_v3 = vor.u32 %v7946_v61, %v6243_v62  ;;  %v7878_v4 = vld [vmem:[%s11640_s1 + $0x424] sm:$0xf]  ;;  %v5689_v33 = vld [vmem:[%s11640_s1 + $0x1e8] sm:$0xf] }
 0x18b   : > { %2554 = vmatpush.bf16.msrb.mxu0 %v6022_v41  ;;  %v5971_v5 = vld [vmem:[%s11640_s1 + $0x430] sm:$0xf0]  ;;  %v7910_v6 = vld [vmem:[%s11640_s1 + $0x524] sm:$0xf]  ;;  %v6374_v7 = vor.u32 %v7978_v63, %v6371_v0  ;;  %v5690_v46 = vor.u32 %v7809_v36, %v5689_v33  ;;  %v5529_v60 = vld [vmem:[%s11640_s1 + $0xa8] sm:$0xf] }
 0x18c   : > { %2567 = vmatpush.bf16.msrb.mxu1 %v6150_v42  ;;  %v6099_v8 = vld [vmem:[%s11640_s1 + $0x530] sm:$0xf0]  ;;  %v7942_v9 = vld [vmem:[%s11640_s1 + $0x624] sm:$0xf]  ;;  %v5974_v13 = vor.u32 %v7878_v4, %v5971_v5  ;;  %v5945_v42 = vld [vmem:[%s11640_s1 + $0x3e8] sm:$0xf] }
 0x18d   : > { %2580 = vmatpush.bf16.msrb.mxu2 %v6278_v43  ;;  %v6227_v10 = vld [vmem:[%s11640_s1 + $0x630] sm:$0xf0]  ;;  %v7974_v11 = vld [vmem:[%s11640_s1 + $0x724] sm:$0xf]  ;;  %v6102_v16 = vor.u32 %v7910_v6, %v6099_v8  ;;  %v7873_v43 = vld [vmem:[%s11640_s1 + $0x3f4] sm:$0xf0] }
 0x18e   : > { %2593 = vmatpush.bf16.msrb.mxu3 %v6406_v47  ;;  %v6355_v12 = vld [vmem:[%s11640_s1 + $0x730] sm:$0xf0]  ;;  %v7874_v14 = vld [vmem:[%s11640_s1 + $0x404] sm:$0xf]  ;;  %v6230_v17 = vor.u32 %v7942_v9, %v6227_v10  ;;  %v5818_v47 = vor.u32 %v7841_v39, %v5817_v37  ;;  %v5946_v51 = vor.u32 %v7873_v43, %v5945_v42  ;;  %v7769_v61 = vld [vmem:[%s11640_s1 + $0xb4] sm:$0xf0] }
 0x18f   : > { %2555 = vmatpush.bf16.msrb.mxu0 %v6006_v53  ;;  %v5955_v15 = vld [vmem:[%s11640_s1 + $0x410] sm:$0xf0]  ;;  %v7906_v18 = vld [vmem:[%s11640_s1 + $0x504] sm:$0xf]  ;;  %v6358_v21 = vor.u32 %v7974_v11, %v6355_v12  ;;  %v5801_v53 = vld [vmem:[%s11640_s1 + $0x2c8] sm:$0xf]  ;;  %v5530_v4 = vor.u32 %v7769_v61, %v5529_v60 }
 0x190   : > { %2568 = vmatpush.bf16.msrb.mxu1 %v6134_v54  ;;  %v6083_v19 = vld [vmem:[%s11640_s1 + $0x510] sm:$0xf0]  ;;  %v7938_v20 = vld [vmem:[%s11640_s1 + $0x604] sm:$0xf]  ;;  %v5958_v35 = vor.u32 %v7874_v14, %v5955_v15  ;;  %v7837_v54 = vld [vmem:[%s11640_s1 + $0x2d4] sm:$0xf0] }
 0x191   : > { %2581 = vmatpush.bf16.msrb.mxu2 %v6262_v55  ;;  %v6211_v22 = vld [vmem:[%s11640_s1 + $0x610] sm:$0xf0]  ;;  %v7970_v23 = vld [vmem:[%s11640_s1 + $0x704] sm:$0xf]  ;;  %v6086_v40 = vor.u32 %v7906_v18, %v6083_v19  ;;  %v5929_v55 = vld [vmem:[%s11640_s1 + $0x3c8] sm:$0xf] }
 0x192   : > { %2594 = vmatpush.bf16.msrb.mxu3 %v6390_v59  ;;  %v6339_v24 = vld [vmem:[%s11640_s1 + $0x710] sm:$0xf0]  ;;  %v6214_v41 = vor.u32 %v7938_v20, %v6211_v22  ;;  %v5802_v59 = vor.u32 %v7837_v54, %v5801_v53  ;;  %v5657_v62 = vld [vmem:[%s11640_s1 + $0x1a8] sm:$0xf]  ;;  %v5930_v63 = vor.u32 %v7869_v56, %v5929_v55  ;;  %v7801_v0 = vld [vmem:[%s11640_s1 + $0x1b4] sm:$0xf0] }
 0x193   : > { %2556 = vmatpush.bf16.msrb.mxu0 %v5990_v1  ;;  %v6342_v44 = vor.u32 %v7970_v23, %v6339_v24  ;;  %v5785_v1 = vld [vmem:[%s11640_s1 + $0x2a8] sm:$0xf]  ;;  %v5658_v5 = vor.u32 %v7801_v0, %v5657_v62  ;;  %v7765_v8 = vld [vmem:[%s11640_s1 + $0x94] sm:$0xf0] }
 0x194   : > { %2569 = vmatpush.bf16.msrb.mxu1 %v6118_v2  ;;  %v7833_v2 = vld [vmem:[%s11640_s1 + $0x2b4] sm:$0xf0]  ;;  %v5769_v9 = vld [vmem:[%s11640_s1 + $0x288] sm:$0xf] }
 0x195   : > { %2582 = vmatpush.bf16.msrb.mxu2 %v6246_v3  ;;  %v5913_v3 = vld [vmem:[%s11640_s1 + $0x3a8] sm:$0xf]  ;;  %v5786_v6 = vor.u32 %v7833_v2, %v5785_v1  ;;  %v7829_v10 = vld [vmem:[%s11640_s1 + $0x294] sm:$0xf0] }
 0x196   : > { %2595 = vmatpush.bf16.msrb.mxu3 %v6374_v7  ;;  %v5513_v7 = vld [vmem:[%s11640_s1 + $0x88] sm:$0xf]  ;;  %v7861_v12 = vld [vmem:[%s11640_s1 + $0x394] sm:$0xf0]  ;;  %v5770_v15 = vor.u32 %v7829_v10, %v5769_v9 }
 0x197   : > { %2557 = vmatpush.bf16.msrb.mxu0 %v5974_v13  ;;  %v5897_v11 = vld [vmem:[%s11640_s1 + $0x388] sm:$0xf]  ;;  %v5514_v13 = vor.u32 %v7765_v8, %v5513_v7  ;;  %v7793_v20 = vld [vmem:[%s11640_s1 + $0x174] sm:$0xf0] }
 0x198   : > { %2570 = vmatpush.bf16.msrb.mxu1 %v6102_v16  ;;  %v5497_v16 = vld [vmem:[%s11640_s1 + $0x68] sm:$0xf]  ;;  %v5898_v19 = vor.u32 %v7861_v12, %v5897_v11  ;;  %v7825_v22 = vld [vmem:[%s11640_s1 + $0x274] sm:$0xf0] }
 0x199   : > { %2583 = vmatpush.bf16.msrb.mxu2 %v6230_v17  ;;  %v7761_v17 = vld [vmem:[%s11640_s1 + $0x74] sm:$0xf0]  ;;  %v5625_v18 = vld [vmem:[%s11640_s1 + $0x168] sm:$0xf] }
 0x19a   : > { %2596 = vmatpush.bf16.msrb.mxu3 %v6358_v21  ;;  %v5753_v21 = vld [vmem:[%s11640_s1 + $0x268] sm:$0xf]  ;;  %v7857_v24 = vld [vmem:[%s11640_s1 + $0x374] sm:$0xf0]  ;;  %v5498_v26 = vor.u32 %v7761_v17, %v5497_v16  ;;  %v5626_v30 = vor.u32 %v7793_v20, %v5625_v18 }
 0x19b   : > { %2558 = vmatpush.bf16.msrb.mxu0 %v5958_v35  ;;  %v5881_v23 = vld [vmem:[%s11640_s1 + $0x368] sm:$0xf]  ;;  %v5754_v33 = vor.u32 %v7825_v22, %v5753_v21  ;;  %v7757_v36 = vld [vmem:[%s11640_s1 + $0x54] sm:$0xf0] }
 0x19c   : > { %2571 = vmatpush.bf16.msrb.mxu1 %v6086_v40  ;;  %v5481_v35 = vld [vmem:[%s11640_s1 + $0x48] sm:$0xf]  ;;  %v5882_v39 = vor.u32 %v7857_v24, %v5881_v23  ;;  %v7789_v40 = vld [vmem:[%s11640_s1 + $0x154] sm:$0xf0] }
 0x19d   : > { %2584 = vmatpush.bf16.msrb.mxu2 %v6214_v41  ;;  %v5609_v37 = vld [vmem:[%s11640_s1 + $0x148] sm:$0xf]  ;;  %v7821_v42 = vld [vmem:[%s11640_s1 + $0x254] sm:$0xf0] }
 0x19e   : > { %2597 = vmatpush.bf16.msrb.mxu3 %v6342_v44  ;;  %2559 = vmatmul.bf16.vlgmr.msrb.gmra.mxu0 %v9423_v31  ;;  %v5641_v31 = vld [vmem:[%s11640_s1 + $0x188] sm:$0xf]  ;;  %v7853_v44 = vld [vmem:[%s11640_s1 + $0x354] sm:$0xf0] }
 0x19f   : > { %2603 = vmatpush.bf16.msra.mxu0 %v5562_v45  ;;  %2572 = vmatmul.bf16.vlgmr.msrb.gmra.mxu1 %v9433_v38  ;;  %v7797_v38 = vld [vmem:[%s11640_s1 + $0x194] sm:$0xf0]  ;;  %v5737_v41 = vld [vmem:[%s11640_s1 + $0x248] sm:$0xf]  ;;  %v5482_v45 = vor.u32 %v7757_v36, %v5481_v35 }
 0x1a0   : > { %2616 = vmatpush.bf16.msra.mxu1 %v5690_v46  ;;  %2585 = vmatmul.bf16.vlgmr.msrb.gmra.mxu2 %v9418_v25  ;;  %v7865_v25 = vld [vmem:[%s11640_s1 + $0x3b4] sm:$0xf0]  ;;  %v5642_v14 = vor.u32 %v7797_v38, %v5641_v31  ;;  %v5865_v43 = vld [vmem:[%s11640_s1 + $0x348] sm:$0xf]  ;;  %v5610_v46 = vor.u32 %v7789_v40, %v5609_v37 }
 0x1a1   : > { %2629 = vmatpush.bf16.msra.mxu2 %v5818_v47  ;;  %2598 = vmatmul.bf16.vlgmr.msrb.gmra.mxu3 %v9425_v32  ;;  %v5914_v32 = vor.u32 %v7865_v25, %v5913_v3  ;;  %v5738_v47 = vor.u32 %v7821_v42, %v5737_v41  ;;  %v5465_v48 = vld [vmem:[%s11640_s1 + $0x28] sm:$0xf]  ;;  %v7753_v49 = vld [vmem:[%s11640_s1 + $0x34] sm:$0xf0] }
 0x1a2   : > { %2642 = vmatpush.bf16.msra.mxu3 %v5946_v51  ;;  %v5593_v50 = vld [vmem:[%s11640_s1 + $0x128] sm:$0xf]  ;;  %v5866_v51 = vor.u32 %v7853_v44, %v5865_v43  ;;  %v7785_v52 = vld [vmem:[%s11640_s1 + $0x134] sm:$0xf0] }
 0x1a3   : > { %2604 = vmatpush.bf16.msra.mxu0 %v5546_v57  ;;  %v5721_v53 = vld [vmem:[%s11640_s1 + $0x228] sm:$0xf]  ;;  %v7817_v54 = vld [vmem:[%s11640_s1 + $0x234] sm:$0xf0]  ;;  %v5466_v57 = vor.u32 %v7753_v49, %v5465_v48  ;;  %v5594_v60 = vor.u32 %v7785_v52, %v5593_v50 }
 0x1a4   : > { %2617 = vmatpush.bf16.msra.mxu1 %v5674_v58  ;;  %v5849_v55 = vld [vmem:[%s11640_s1 + $0x328] sm:$0xf]  ;;  %v7849_v56 = vld [vmem:[%s11640_s1 + $0x334] sm:$0xf0]  ;;  %v5722_v61 = vor.u32 %v7817_v54, %v5721_v53 }
 0x1a5   : > { %2630 = vmatpush.bf16.msra.mxu2 %v5802_v59  ;;  %v5449_v58 = vld [vmem:[%s11640_s1 + $0x8] sm:$0xf]  ;;  %v7749_v59 = vld [vmem:[%s11640_s1 + $0x14] sm:$0xf0]  ;;  %v5850_v1 = vor.u32 %v7849_v56, %v5849_v55 }
 0x1a6   : > { %2643 = vmatpush.bf16.msra.mxu3 %v5930_v63  ;;  %v5577_v62 = vld [vmem:[%s11640_s1 + $0x108] sm:$0xf]  ;;  %v7781_v63 = vld [vmem:[%s11640_s1 + $0x114] sm:$0xf0]  ;;  %v5450_v7 = vor.u32 %v7749_v59, %v5449_v58 }
 0x1a7   : > { %2605 = vmatpush.bf16.msra.mxu0 %v5530_v4  ;;  %v5705_v0 = vld [vmem:[%s11640_s1 + $0x208] sm:$0xf]  ;;  %v7813_v2 = vld [vmem:[%s11640_s1 + $0x214] sm:$0xf0]  ;;  %v5578_v38 = vor.u32 %v7781_v63, %v5577_v62 }
 0x1a8   : > { %2618 = vmatpush.bf16.msra.mxu1 %v5658_v5  ;;  %v5833_v3 = vld [vmem:[%s11640_s1 + $0x308] sm:$0xf]  ;;  %v7845_v25 = vld [vmem:[%s11640_s1 + $0x314] sm:$0xf0]  ;;  %v5706_v9 = vor.u32 %v7813_v2, %v5705_v0 }
 0x1a9   : > { %2631 = vmatpush.bf16.msra.mxu2 %v5786_v6  ;;  %v6073_v4 = vld [vmem:[%s11640_s1 + $0x4e8] sm:$0xf]  ;;  %v7905_v5 = vld [vmem:[%s11640_s1 + $0x4f4] sm:$0xf0]  ;;  %v5834_v12 = vor.u32 %v7845_v25, %v5833_v3 }
 0x1aa   : > { %2644 = vmatpush.bf16.msra.mxu3 %v5914_v32  ;;  %v6201_v6 = vld [vmem:[%s11640_s1 + $0x5e8] sm:$0xf]  ;;  %v7937_v8 = vld [vmem:[%s11640_s1 + $0x5f4] sm:$0xf0] }
 0x1ab   : > { %2606 = vmatpush.bf16.msra.mxu0 %v5514_v13  ;;  %v6329_v31 = vld [vmem:[%s11640_s1 + $0x6e8] sm:$0xf]  ;;  %v7969_v32 = vld [vmem:[%s11640_s1 + $0x6f4] sm:$0xf0]  ;;  %v6074_v13 = vor.u32 %v7905_v5, %v6073_v4 }
 0x1ac   : > { %2619 = vmatpush.bf16.msra.mxu1 %v5642_v14  ;;  %v6457_v10 = vld [vmem:[%s11640_s1 + $0x7e8] sm:$0xf]  ;;  %v8001_v11 = vld [vmem:[%s11640_s1 + $0x7f4] sm:$0xf0]  ;;  %v6202_v14 = vor.u32 %v7937_v8, %v6201_v6 }
 0x1ad   : > { %2632 = vmatpush.bf16.msra.mxu2 %v5770_v15  ;;  %v6330_v15 = vor.u32 %v7969_v32, %v6329_v31  ;;  %v6057_v16 = vld [vmem:[%s11640_s1 + $0x4c8] sm:$0xf]  ;;  %v7901_v17 = vld [vmem:[%s11640_s1 + $0x4d4] sm:$0xf0]  ;;  %v10111_v32 = vld [vmem:[%s11641_s2] sm:$0xf] }
 0x1ae   : > { %2645 = vmatpush.bf16.msra.mxu3 %v5898_v19  ;;  %v6185_v18 = vld [vmem:[%s11640_s1 + $0x5c8] sm:$0xf]  ;;  %v6458_v19 = vor.u32 %v8001_v11, %v6457_v10  ;;  %v7933_v20 = vld [vmem:[%s11640_s1 + $0x5d4] sm:$0xf0] }
 0x1af   : > { %2607 = vmatpush.bf16.msra.mxu0 %v5498_v26  ;;  %v6313_v21 = vld [vmem:[%s11640_s1 + $0x6c8] sm:$0xf]  ;;  %v7965_v22 = vld [vmem:[%s11640_s1 + $0x6d4] sm:$0xf0]  ;;  %v6058_v26 = vor.u32 %v7901_v17, %v6057_v16  ;;  %v1089_v16 = vperm.slane %v10111_v32, 0 }
 0x1b0   : > { %2620 = vmatpush.bf16.msra.mxu1 %v5626_v30  ;;  %v6441_v23 = vld [vmem:[%s11640_s1 + $0x7c8] sm:$0xf]  ;;  %v7997_v24 = vld [vmem:[%s11640_s1 + $0x7d4] sm:$0xf0]  ;;  %v6186_v30 = vor.u32 %v7933_v20, %v6185_v18 }
 0x1b1   : > { %2633 = vmatpush.bf16.msra.mxu2 %v5754_v33  ;;  %v6314_v33 = vor.u32 %v7965_v22, %v6313_v21  ;;  %v6041_v35 = vld [vmem:[%s11640_s1 + $0x4a8] sm:$0xf]  ;;  %v7897_v36 = vld [vmem:[%s11640_s1 + $0x4b4] sm:$0xf0] }
 0x1b2   : > { %2646 = vmatpush.bf16.msra.mxu3 %v5882_v39  ;;  %v6169_v37 = vld [vmem:[%s11640_s1 + $0x5a8] sm:$0xf]  ;;  %v6442_v39 = vor.u32 %v7997_v24, %v6441_v23  ;;  %v7929_v40 = vld [vmem:[%s11640_s1 + $0x5b4] sm:$0xf0] }
 0x1b3   : > { %2608 = vmatpush.bf16.msra.mxu0 %v5482_v45  ;;  %v6297_v41 = vld [vmem:[%s11640_s1 + $0x6a8] sm:$0xf]  ;;  %v7961_v42 = vld [vmem:[%s11640_s1 + $0x6b4] sm:$0xf0]  ;;  %v6042_v45 = vor.u32 %v7897_v36, %v6041_v35 }
 0x1b4   : > { %2621 = vmatpush.bf16.msra.mxu1 %v5610_v46  ;;  %v6425_v43 = vld [vmem:[%s11640_s1 + $0x7a8] sm:$0xf]  ;;  %v7993_v44 = vld [vmem:[%s11640_s1 + $0x7b4] sm:$0xf0]  ;;  %v6170_v46 = vor.u32 %v7929_v40, %v6169_v37 }
 0x1b5   : > { %2634 = vmatpush.bf16.msra.mxu2 %v5738_v47  ;;  %v6025_v47 = vld [vmem:[%s11640_s1 + $0x488] sm:$0xf]  ;;  %v7893_v48 = vld [vmem:[%s11640_s1 + $0x494] sm:$0xf0] }
 0x1b6   : > { %2647 = vmatpush.bf16.msra.mxu3 %v5866_v51  ;;  %v6281_v49 = vld [vmem:[%s11640_s1 + $0x688] sm:$0xf]  ;;  %v7957_v50 = vld [vmem:[%s11640_s1 + $0x694] sm:$0xf0]  ;;  %v6026_v53 = vor.u32 %v7893_v48, %v6025_v47  ;;  %v7807_v47 = vld [vmem:[%s11640_s1 + $0x1ec] sm:$0xf] }
 0x1b7   : > { %2609 = vmatpush.bf16.msra.mxu0 %v5466_v57  ;;  %v6409_v51 = vld [vmem:[%s11640_s1 + $0x788] sm:$0xf]  ;;  %v7989_v52 = vld [vmem:[%s11640_s1 + $0x794] sm:$0xf0]  ;;  %v6282_v55 = vor.u32 %v7957_v50, %v6281_v49  ;;  %v5819_v49 = vld [vmem:[%s11640_s1 + $0x2f8] sm:$0xf0] }
 0x1b8   : > { %2622 = vmatpush.bf16.msra.mxu1 %v5594_v60  ;;  %v6009_v56 = vld [vmem:[%s11640_s1 + $0x468] sm:$0xf]  ;;  %v7889_v57 = vld [vmem:[%s11640_s1 + $0x474] sm:$0xf0]  ;;  %v6410_v59 = vor.u32 %v7989_v52, %v6409_v51  ;;  %v7871_v52 = vld [vmem:[%s11640_s1 + $0x3ec] sm:$0xf] }
 0x1b9   : > { %2635 = vmatpush.bf16.msra.mxu2 %v5722_v61  ;;  %v6137_v58 = vld [vmem:[%s11640_s1 + $0x568] sm:$0xf]  ;;  %v7921_v60 = vld [vmem:[%s11640_s1 + $0x574] sm:$0xf0] }
 0x1ba   : > { %2648 = vmatpush.bf16.msra.mxu3 %v5850_v1  ;;  %v6265_v61 = vld [vmem:[%s11640_s1 + $0x668] sm:$0xf]  ;;  %v7953_v62 = vld [vmem:[%s11640_s1 + $0x674] sm:$0xf0]  ;;  %v6010_v1 = vor.u32 %v7889_v57, %v6009_v56  ;;  %v6138_v3 = vor.u32 %v7921_v60, %v6137_v58 }
 0x1bb   : > { %2610 = vmatpush.bf16.msra.mxu0 %v5450_v7  ;;  %v6393_v63 = vld [vmem:[%s11640_s1 + $0x768] sm:$0xf]  ;;  %v7985_v0 = vld [vmem:[%s11640_s1 + $0x774] sm:$0xf0]  ;;  %v6266_v25 = vor.u32 %v7953_v62, %v6265_v61  ;;  %v7771_v61 = vld [vmem:[%s11640_s1 + $0xcc] sm:$0xf] }
 0x1bc   : > { %2623 = vmatpush.bf16.msra.mxu1 %v5578_v38  ;;  %v5993_v2 = vld [vmem:[%s11640_s1 + $0x448] sm:$0xf]  ;;  %v7885_v4 = vld [vmem:[%s11640_s1 + $0x454] sm:$0xf0]  ;;  %v6394_v7 = vor.u32 %v7985_v0, %v6393_v63  ;;  %v5547_v62 = vld [vmem:[%s11640_s1 + $0xd8] sm:$0xf0] }
 0x1bd   : > { %2636 = vmatpush.bf16.msra.mxu2 %v5706_v9  ;;  %v6121_v5 = vld [vmem:[%s11640_s1 + $0x548] sm:$0xf]  ;;  %v7917_v6 = vld [vmem:[%s11640_s1 + $0x554] sm:$0xf0]  ;;  %v5994_v10 = vor.u32 %v7885_v4, %v5993_v2  ;;  %v7803_v63 = vld [vmem:[%s11640_s1 + $0x1cc] sm:$0xf] }
 0x1be   : > { %2649 = vmatpush.bf16.msra.mxu3 %v5834_v12  ;;  %2611 = vmatmul.bf16.vlgmr.msra.gmra.mxu0 %v9291_v28  ;;  %v6153_v28 = vld [vmem:[%s11640_s1 + $0x588] sm:$0xf]  ;;  %v7949_v31 = vld [vmem:[%s11640_s1 + $0x654] sm:$0xf0]  ;;  %v6122_v12 = vor.u32 %v7917_v6, %v6121_v5  ;;  %v7835_v2 = vld [vmem:[%s11640_s1 + $0x2cc] sm:$0xf] }
 0x1bf   : > { %2655 = vmatpush.bf16.msrb.mxu0 %v6074_v13  ;;  %2624 = vmatmul.bf16.vlgmr.msra.gmra.mxu1 %v9301_v34  ;;  %v7925_v34 = vld [vmem:[%s11640_s1 + $0x594] sm:$0xf0]  ;;  %v6249_v8 = vld [vmem:[%s11640_s1 + $0x648] sm:$0xf]  ;;  %v7867_v5 = vld [vmem:[%s11640_s1 + $0x3cc] sm:$0xf] }
 0x1c0   : > { %2668 = vmatpush.bf16.msrb.mxu1 %v6202_v14  ;;  %2637 = vmatmul.bf16.vlgmr.msra.gmra.mxu2 %v9289_v27  ;;  %v6298_v27 = vor.u32 %v7961_v42, %v6297_v41  ;;  %v6154_v54 = vor.u32 %v7925_v34, %v6153_v28  ;;  %v6377_v38 = vld [vmem:[%s11640_s1 + $0x748] sm:$0xf]  ;;  %v7981_v9 = vld [vmem:[%s11640_s1 + $0x754] sm:$0xf0]  ;;  %v6250_v13 = vor.u32 %v7949_v31, %v6249_v8  ;;  %v7839_v34 = vld [vmem:[%s11640_s1 + $0x2ec] sm:$0xf] }
 0x1c1   : > { %2681 = vmatpush.bf16.msrb.mxu2 %v6330_v15  ;;  %2650 = vmatmul.bf16.vlgmr.msra.gmra.mxu3 %v9293_v29  ;;  %v6426_v29 = vor.u32 %v7993_v44, %v6425_v43  ;;  %v5977_v11 = vld [vmem:[%s11640_s1 + $0x428] sm:$0xf]  ;;  %v7881_v14 = vld [vmem:[%s11640_s1 + $0x434] sm:$0xf0]  ;;  %v6378_v17 = vor.u32 %v7981_v9, %v6377_v38  ;;  %v5822_v60 = vor.u32 %v7839_v34, %v5819_v49  ;;  %v5931_v6 = vld [vmem:[%s11640_s1 + $0x3d8] sm:$0xf0] }
 0x1c2   : > { %2694 = vmatpush.bf16.msrb.mxu3 %v6458_v19  ;;  %v6105_v15 = vld [vmem:[%s11640_s1 + $0x528] sm:$0xf]  ;;  %v7913_v18 = vld [vmem:[%s11640_s1 + $0x534] sm:$0xf0]  ;;  %v5978_v23 = vor.u32 %v7881_v14, %v5977_v11  ;;  %v5550_v8 = vor.u32 %v7771_v61, %v5547_v62  ;;  %v7767_v9 = vld [vmem:[%s11640_s1 + $0xac] sm:$0xf] }
 0x1c3   : > { %2656 = vmatpush.bf16.msrb.mxu0 %v6058_v26  ;;  %v6233_v19 = vld [vmem:[%s11640_s1 + $0x628] sm:$0xf]  ;;  %v7945_v20 = vld [vmem:[%s11640_s1 + $0x634] sm:$0xf0]  ;;  %v7799_v11 = vld [vmem:[%s11640_s1 + $0x1ac] sm:$0xf] }
 0x1c4   : > { %2669 = vmatpush.bf16.msrb.mxu1 %v6186_v30  ;;  %v6361_v21 = vld [vmem:[%s11640_s1 + $0x728] sm:$0xf]  ;;  %v7977_v22 = vld [vmem:[%s11640_s1 + $0x734] sm:$0xf0]  ;;  %v6234_v35 = vor.u32 %v7945_v20, %v6233_v19  ;;  %v5659_v14 = vld [vmem:[%s11640_s1 + $0x1b8] sm:$0xf0] }
 0x1c5   : > { %2682 = vmatpush.bf16.msrb.mxu2 %v6314_v33  ;;  %v5961_v24 = vld [vmem:[%s11640_s1 + $0x408] sm:$0xf]  ;;  %v7877_v26 = vld [vmem:[%s11640_s1 + $0x414] sm:$0xf0]  ;;  %v6106_v33 = vor.u32 %v7913_v18, %v6105_v15  ;;  %v6362_v42 = vor.u32 %v7977_v22, %v6361_v21  ;;  %v7831_v15 = vld [vmem:[%s11640_s1 + $0x2ac] sm:$0xf] }
 0x1c6   : > { %2695 = vmatpush.bf16.msrb.mxu3 %v6442_v39  ;;  %v6089_v36 = vld [vmem:[%s11640_s1 + $0x508] sm:$0xf]  ;;  %v7909_v37 = vld [vmem:[%s11640_s1 + $0x514] sm:$0xf0]  ;;  %v5962_v28 = vor.u32 %v7877_v26, %v5961_v24  ;;  %v10240_v18 = vld [vmem:[#allocation1 + $0x3f] sm:$0xff]  ;;  %v5662_v26 = vor.u32 %v7799_v11, %v5659_v14 }
 0x1c7   : > { %2657 = vmatpush.bf16.msrb.mxu0 %v6042_v45  ;;  %v6217_v39 = vld [vmem:[%s11640_s1 + $0x608] sm:$0xf]  ;;  %v7941_v43 = vld [vmem:[%s11640_s1 + $0x614] sm:$0xf0]  ;;  %v6090_v50 = vor.u32 %v7909_v37, %v6089_v36  ;;  %v7863_v19 = vld [vmem:[%s11640_s1 + $0x3ac] sm:$0xf] }
 0x1c8   : > { %2670 = vmatpush.bf16.msrb.mxu1 %v6170_v46  ;;  %v6345_v44 = vld [vmem:[%s11640_s1 + $0x708] sm:$0xf]  ;;  %v7973_v45 = vld [vmem:[%s11640_s1 + $0x714] sm:$0xf0]  ;;  %v7775_v46 = vld [vmem:[%s11640_s1 + $0xec] sm:$0xf]  ;;  %v6218_v51 = vor.u32 %v7941_v43, %v6217_v39 }
 0x1c9   : > { %2683 = vmatpush.bf16.msrb.mxu2 %v6298_v27  ;;  %v5563_v27 = vld [vmem:[%s11640_s1 + $0xf8] sm:$0xf0]  ;;  %v10249_v22 = vld [vmem:[#allocation1 + $0x2d] sm:$0xff] }
 0x1ca   : > { %2696 = vmatpush.bf16.msrb.mxu3 %v6426_v29  ;;  %v5691_v29 = vld [vmem:[%s11640_s1 + $0x1f8] sm:$0xf0]  ;;  %v5566_v56 = vor.u32 %v7775_v46, %v5563_v27  ;;  %v7795_v36 = vld [vmem:[%s11640_s1 + $0x18c] sm:$0xf] }
 0x1cb   : > { %2658 = vmatpush.bf16.msrb.mxu0 %v6026_v53  ;;  %v5947_v53 = vld [vmem:[%s11640_s1 + $0x3f8] sm:$0xf0]  ;;  %v7787_v61 = vld [vmem:[%s11640_s1 + $0x14c] sm:$0xf] }
 0x1cc   : > { %2671 = vmatpush.bf16.msrb.mxu1 %v6154_v54  ;;  %v2417_v41 = vpop.f32.mrf.mxu1  ;;  %v5950_v0 = vor.u32 %v7871_v52, %v5947_v53  ;;  %v5915_v20 = vld [vmem:[%s11640_s1 + $0x3b8] sm:$0xf0]  ;;  %v7855_v53 = vld [vmem:[%s11640_s1 + $0x36c] sm:$0xf] }
 0x1cd   : > { %2684 = vmatpush.bf16.msrb.mxu2 %v6282_v55  ;;  %v2404_v30 = vpop.f32.mrf.mxu0  ;;  %v6346_v55 = vor.u32 %v7973_v45, %v6345_v44  ;;  %v5918_v37 = vor.u32 %v7863_v19, %v5915_v20  ;;  %v5643_v39 = vld [vmem:[%s11640_s1 + $0x198] sm:$0xf0]  ;;  %v7783_v11 = vld [vmem:[%s11640_s1 + $0x12c] sm:$0xf] }
 0x1ce   : > { %2697 = vmatpush.bf16.msrb.mxu3 %v6410_v59  ;;  %v2405_v40 = vadd.f32 %v2404_v30, %v1089_v16  ;;  %v5694_v59 = vor.u32 %v7807_v47, %v5691_v29  ;;  %v5787_v16 = vld [vmem:[%s11640_s1 + $0x2b8] sm:$0xf0]  ;;  %v5646_v46 = vor.u32 %v7795_v36, %v5643_v39  ;;  %v7759_v47 = vld [vmem:[%s11640_s1 + $0x6c] sm:$0xf] }
 0x1cf   : > { %2659 = vmatpush.bf16.msrb.mxu0 %v6010_v1  ;;  %v5675_v1 = vld [vmem:[%s11640_s1 + $0x1d8] sm:$0xf0]  ;;  %v5790_v30 = vor.u32 %v7831_v15, %v5787_v16  ;;  %v7815_v16 = vld [vmem:[%s11640_s1 + $0x22c] sm:$0xf] }
 0x1d0   : > { %2672 = vmatpush.bf16.msrb.mxu1 %v6138_v3  ;;  %v2418_v48 = vadd.f32 %v2417_v41, %v2405_v40  ;;  %v5803_v3 = vld [vmem:[%s11640_s1 + $0x2d8] sm:$0xf0]  ;;  %v5678_v31 = vor.u32 %v7803_v63, %v5675_v1  ;;  %v7827_v40 = vld [vmem:[%s11640_s1 + $0x28c] sm:$0xf] }
 0x1d1   : > { %2685 = vmatpush.bf16.msrb.mxu2 %v6266_v25  ;;  %v5806_v38 = vor.u32 %v7835_v2, %v5803_v3  ;;  %v5771_v41 = vld [vmem:[%s11640_s1 + $0x298] sm:$0xf0]  ;;  %v7819_v1 = vld [vmem:[%s11640_s1 + $0x24c] sm:$0xf] }
 0x1d2   : > { %2698 = vmatpush.bf16.msrb.mxu3 %v6394_v7  ;;  %v2430_v54 = vpop.f32.mrf.mxu2  ;;  %v5899_v43 = vld [vmem:[%s11640_s1 + $0x398] sm:$0xf0]  ;;  %v5774_v27 = vor.u32 %v7827_v40, %v5771_v41  ;;  %v7847_v20 = vld [vmem:[%s11640_s1 + $0x32c] sm:$0xf] }
 0x1d3   : > { %2660 = vmatpush.bf16.msrb.mxu0 %v5994_v10  ;;  %v2431_v57 = vadd.f32 %v2430_v54, %v2418_v48  ;;  %v5531_v10 = vld [vmem:[%s11640_s1 + $0xb8] sm:$0xf0] }
 0x1d4   : > { %2673 = vmatpush.bf16.msrb.mxu1 %v6122_v12  ;;  %v2443_v58 = vpop.f32.mrf.mxu3  ;;  %v2419_v7 = vpop.f32.mrf.mxu1  ;;  %v10225_v12 = vld [vmem:[#allocation1 + $0x36] sm:$0xff] }
 0x1d5   : > { %2686 = vmatpush.bf16.msrb.mxu2 %v6250_v13  ;;  %v2444_v25 = vadd.f32 %v2443_v58, %v2431_v57  ;;  %v2406_v4 = vpop.f32.mrf.mxu0  ;;  %v5934_v13 = vor.u32 %v7867_v5, %v5931_v6  ;;  %v5499_v48 = vld [vmem:[%s11640_s1 + $0x78] sm:$0xf0] }
 0x1d6   : > { %2699 = vmatpush.bf16.msrb.mxu3 %v6378_v17  ;;  %v10237_v17 = vld [vmem:[#allocation1 + $0x24] sm:$0xff]  ;;  %v5755_v52 = vld [vmem:[%s11640_s1 + $0x278] sm:$0xf0]  ;;  %v7851_v4 = vld [vmem:[%s11640_s1 + $0x34c] sm:$0xf] }
 0x1d7   : > { %2661 = vmatpush.bf16.msrb.mxu0 %v5978_v23  ;;  %v5534_v23 = vor.u32 %v7767_v9, %v5531_v10  ;;  %v5883_v54 = vld [vmem:[%s11640_s1 + $0x378] sm:$0xf0]  ;;  %v7751_v9 = vld [vmem:[%s11640_s1 + $0x2c] sm:$0xf] }
 0x1d8   : > { %2674 = vmatpush.bf16.msrb.mxu1 %v6106_v33  ;;  %v7763_v33 = vld [vmem:[%s11640_s1 + $0x8c] sm:$0xf]  ;;  %v5886_v63 = vor.u32 %v7855_v53, %v5883_v54  ;;  %v5739_v2 = vld [vmem:[%s11640_s1 + $0x258] sm:$0xf0] }
 0x1d9   : > { %2687 = vmatpush.bf16.msrb.mxu2 %v6234_v35  ;;  %v5515_v35 = vld [vmem:[%s11640_s1 + $0x98] sm:$0xf0] }
 0x1da   : > { %2700 = vmatpush.bf16.msrb.mxu3 %v6362_v42  ;;  %v2432_v21 = vpop.f32.mrf.mxu2  ;;  %v7859_v42 = vld [vmem:[%s11640_s1 + $0x38c] sm:$0xf]  ;;  %v5518_v44 = vor.u32 %v7763_v33, %v5515_v35  ;;  %v5867_v5 = vld [vmem:[%s11640_s1 + $0x358] sm:$0xf0] }
 0x1db   : > { %2662 = vmatpush.bf16.msrb.mxu0 %v5962_v28  ;;  %v7791_v28 = vld [vmem:[%s11640_s1 + $0x16c] sm:$0xf]  ;;  %v5902_v49 = vor.u32 %v7859_v42, %v5899_v43  ;;  %v5467_v10 = vld [vmem:[%s11640_s1 + $0x38] sm:$0xf0]  ;;  %v5870_v14 = vor.u32 %v7851_v4, %v5867_v5 }
 0x1dc   : > { %2675 = vmatpush.bf16.msrb.mxu1 %v6090_v50  ;;  %v2445_v24 = vpop.f32.mrf.mxu3  ;;  %v2469_v34 = vpop.f32.mrf.mxu1  ;;  %v5627_v50 = vld [vmem:[%s11640_s1 + $0x178] sm:$0xf0]  ;;  %v7779_v35 = vld [vmem:[%s11640_s1 + $0x10c] sm:$0xf] }
 0x1dd   : > { %2688 = vmatpush.bf16.msrb.mxu2 %v6218_v51  ;;  %v7823_v51 = vld [vmem:[%s11640_s1 + $0x26c] sm:$0xf]  ;;  %v5630_v57 = vor.u32 %v7791_v28, %v5627_v50  ;;  %v5595_v15 = vld [vmem:[%s11640_s1 + $0x138] sm:$0xf0] }
 0x1de   : > { %2701 = vmatpush.bf16.msrb.mxu3 %v6346_v55  ;;  %2663 = vmatmul.bf16.vlgmr.msrb.gmra.mxu0 %v10237_v17  ;;  %v2456_v45 = vpop.f32.mrf.mxu0  ;;  %v5758_v58 = vor.u32 %v7823_v51, %v5755_v52  ;;  %v5723_v19 = vld [vmem:[%s11640_s1 + $0x238] sm:$0xf0]  ;;  %v7747_v24 = vld [vmem:[%s11640_s1 + $0xc] sm:$0xf] }
 0x1df   : > { %2707 = vmatpush.bf16.msra.mxu0 %v5566_v56  ;;  %2676 = vmatmul.bf16.vlgmr.msrb.gmra.mxu1 %v10249_v22  ;;  %v2457_v29 = vadd.f32 %v2456_v45, %v2444_v25  ;;  %v5502_v56 = vor.u32 %v7759_v47, %v5499_v48  ;;  %v5851_v21 = vld [vmem:[%s11640_s1 + $0x338] sm:$0xf0]  ;;  %v5726_v33 = vor.u32 %v7815_v16, %v5723_v19  ;;  %v7843_v42 = vld [vmem:[%s11640_s1 + $0x30c] sm:$0xf] }
 0x1e0   : > { %2720 = vmatpush.bf16.msra.mxu1 %v5694_v59  ;;  %2689 = vmatmul.bf16.vlgmr.msrb.gmra.mxu2 %v10225_v12  ;;  %v7755_v59 = vld [vmem:[%s11640_s1 + $0x4c] sm:$0xf]  ;;  %v5579_v36 = vld [vmem:[%s11640_s1 + $0x118] sm:$0xf0]  ;;  %v5854_v40 = vor.u32 %v7847_v20, %v5851_v21 }
 0x1e1   : > { %2733 = vmatpush.bf16.msra.mxu2 %v5822_v60  ;;  %2702 = vmatmul.bf16.vlgmr.msrb.gmra.mxu3 %v10240_v18  ;;  %v2470_v55 = vadd.f32 %v2469_v34, %v2457_v29  ;;  %v5483_v60 = vld [vmem:[%s11640_s1 + $0x58] sm:$0xf0]  ;;  %v7903_v45 = vld [vmem:[%s11640_s1 + $0x4ec] sm:$0xf]  ;;  %v5582_v34 = vor.u32 %v7779_v35, %v5579_v36 }
 0x1e2   : > { %2746 = vmatpush.bf16.msra.mxu3 %v5950_v0  ;;  %v5611_v0 = vld [vmem:[%s11640_s1 + $0x158] sm:$0xf0]  ;;  %v5486_v6 = vor.u32 %v7755_v59, %v5483_v60  ;;  %v7967_v28 = vld [vmem:[%s11640_s1 + $0x6ec] sm:$0xf] }
 0x1e3   : > { %2708 = vmatpush.bf16.msra.mxu0 %v5550_v8  ;;  %v2482_v62 = vpop.f32.mrf.mxu2  ;;  %v5707_v41 = vld [vmem:[%s11640_s1 + $0x218] sm:$0xf0]  ;;  %v7999_v50 = vld [vmem:[%s11640_s1 + $0x7ec] sm:$0xf] }
 0x1e4   : > { %2721 = vmatpush.bf16.msra.mxu1 %v5678_v31  ;;  %v2483_v3 = vadd.f32 %v2482_v62, %v2470_v55  ;;  %v5614_v31 = vor.u32 %v7787_v61, %v5611_v0  ;;  %v5835_v43 = vld [vmem:[%s11640_s1 + $0x318] sm:$0xf0]  ;;  %v7963_v61 = vld [vmem:[%s11640_s1 + $0x6cc] sm:$0xf] }
 0x1e5   : > { %2734 = vmatpush.bf16.msra.mxu2 %v5806_v38  ;;  %v5742_v38 = vor.u32 %v7819_v1, %v5739_v2  ;;  %v6203_v48 = vld [vmem:[%s11640_s1 + $0x5f8] sm:$0xf0]  ;;  %v5838_v52 = vor.u32 %v7843_v42, %v5835_v43  ;;  %v7927_v5 = vld [vmem:[%s11640_s1 + $0x5ac] sm:$0xf] }
 0x1e6   : > { %2747 = vmatpush.bf16.msra.mxu3 %v5934_v13  ;;  %v2495_v25 = vpop.f32.mrf.mxu3  ;;  %v2458_v8 = vpop.f32.mrf.mxu0  ;;  %v6331_v29 = vld [vmem:[%s11640_s1 + $0x6f8] sm:$0xf0]  ;;  %v8353_v16 = vld [vmem:[#allocation1 + $0x9] sm:$0xff] }
 0x1e7   : > { %2709 = vmatpush.bf16.msra.mxu0 %v5534_v23  ;;  %v10324_v7 = vadd.f32 %v2495_v25, %v2483_v3  ;;  %v2471_v13 = vpop.f32.mrf.mxu1  ;;  %v5470_v23 = vor.u32 %v7751_v9, %v5467_v10  ;;  %v6459_v51 = vld [vmem:[%s11640_s1 + $0x7f8] sm:$0xf0]  ;;  %v6334_v55 = vor.u32 %v7967_v28, %v6331_v29  ;;  %v7895_v25 = vld [vmem:[%s11640_s1 + $0x4ac] sm:$0xf]  ;;  %v8350_v8 = vld [vmem:[#allocation1 + $0x12] sm:$0xff] }
 0x1e8   : > { %2722 = vmatpush.bf16.msra.mxu1 %v5662_v26  ;;  %v5451_v26 = vld [vmem:[%s11640_s1 + $0x18] sm:$0xf0]  ;;  %v6462_v59 = vor.u32 %v7999_v50, %v6459_v51  ;;  %v7991_v10 = vld [vmem:[%s11640_s1 + $0x7ac] sm:$0xf]  ;;  %v8351_v13 = vld [vmem:[#allocation1] sm:$0xff] }
 0x1e9   : > { %2735 = vmatpush.bf16.msra.mxu2 %v5790_v30  ;;  %v5598_v30 = vor.u32 %v7783_v11, %v5595_v15  ;;  %v5454_v47 = vor.u32 %v7747_v24, %v5451_v26  ;;  %v6187_v60 = vld [vmem:[%s11640_s1 + $0x5d8] sm:$0xf0]  ;;  %v7891_v21 = vld [vmem:[%s11640_s1 + $0x48c] sm:$0xf] }
 0x1ea   : > { %2748 = vmatpush.bf16.msra.mxu3 %v5918_v37  ;;  %v7811_v37 = vld [vmem:[%s11640_s1 + $0x20c] sm:$0xf]  ;;  %v6315_v62 = vld [vmem:[%s11640_s1 + $0x6d8] sm:$0xf0] }
 0x1eb   : > { %2710 = vmatpush.bf16.msra.mxu0 %v5518_v44  ;;  %v2484_v39 = vpop.f32.mrf.mxu2  ;;  %v6443_v0 = vld [vmem:[%s11640_s1 + $0x7d8] sm:$0xf0]  ;;  %v6318_v3 = vor.u32 %v7963_v61, %v6315_v62  ;;  %v7923_v24 = vld [vmem:[%s11640_s1 + $0x58c] sm:$0xf] }
 0x1ec   : > { %2723 = vmatpush.bf16.msra.mxu1 %v5646_v46  ;;  %v6075_v46 = vld [vmem:[%s11640_s1 + $0x4f8] sm:$0xf0]  ;;  %v7987_v36 = vld [vmem:[%s11640_s1 + $0x78c] sm:$0xf] }
 0x1ed   : > { %2736 = vmatpush.bf16.msra.mxu2 %v5774_v27  ;;  %v7935_v27 = vld [vmem:[%s11640_s1 + $0x5ec] sm:$0xf]  ;;  %v6078_v53 = vor.u32 %v7903_v45, %v6075_v46  ;;  %v6043_v4 = vld [vmem:[%s11640_s1 + $0x4b8] sm:$0xf0] }
 0x1ee   : > { %2749 = vmatpush.bf16.msra.mxu3 %v5902_v49  ;;  %v2497_v44 = vpop.f32.mrf.mxu3  ;;  %v5710_v49 = vor.u32 %v7811_v37, %v5707_v41  ;;  %v6206_v54 = vor.u32 %v7935_v27, %v6203_v48  ;;  %v6299_v9 = vld [vmem:[%s11640_s1 + $0x6b8] sm:$0xf0]  ;;  %v6046_v15 = vor.u32 %v7895_v25, %v6043_v4  ;;  %v7887_v43 = vld [vmem:[%s11640_s1 + $0x46c] sm:$0xf] }
 0x1ef   : > { %2711 = vmatpush.bf16.msra.mxu0 %v5502_v56  ;;  %v7899_v56 = vld [vmem:[%s11640_s1 + $0x4cc] sm:$0xf]  ;;  %v6427_v11 = vld [vmem:[%s11640_s1 + $0x7b8] sm:$0xf0] }
 0x1f0   : > { %2724 = vmatpush.bf16.msra.mxu1 %v5630_v57  ;;  %v6059_v57 = vld [vmem:[%s11640_s1 + $0x4d8] sm:$0xf0]  ;;  %v6430_v26 = vor.u32 %v7991_v10, %v6427_v11  ;;  %v7919_v45 = vld [vmem:[%s11640_s1 + $0x56c] sm:$0xf]  ;;  %v1090_v11 = vperm.slane %v10111_v32, 1 }
 0x1f1   : > { %2737 = vmatpush.bf16.msra.mxu2 %v5758_v58  ;;  %v7931_v58 = vld [vmem:[%s11640_s1 + $0x5cc] sm:$0xf]  ;;  %v6062_v1 = vor.u32 %v7899_v56, %v6059_v57  ;;  %v6283_v35 = vld [vmem:[%s11640_s1 + $0x698] sm:$0xf0] }
 0x1f2   : > { %2750 = vmatpush.bf16.msra.mxu3 %v5886_v63  ;;  %v7995_v63 = vld [vmem:[%s11640_s1 + $0x7cc] sm:$0xf]  ;;  %v6190_v2 = vor.u32 %v7931_v58, %v6187_v60  ;;  %v6411_v37 = vld [vmem:[%s11640_s1 + $0x798] sm:$0xf0] }
 0x1f3   : > { %2712 = vmatpush.bf16.msra.mxu0 %v5486_v6  ;;  %v6446_v6 = vor.u32 %v7995_v63, %v6443_v0  ;;  %v6011_v44 = vld [vmem:[%s11640_s1 + $0x478] sm:$0xf0]  ;;  %v6414_v27 = vor.u32 %v7987_v36, %v6411_v37  ;;  %v7951_v48 = vld [vmem:[%s11640_s1 + $0x66c] sm:$0xf]  ;;  %v6521_v36 = vld [vmem:[%s11642_s3 + $0x70] sm:$0xf] }
 0x1f4   : > { %2725 = vmatpush.bf16.msra.mxu1 %v5614_v31  ;;  %v6171_v31 = vld [vmem:[%s11640_s1 + $0x5b8] sm:$0xf0]  ;;  %v7983_v29 = vld [vmem:[%s11640_s1 + $0x76c] sm:$0xf]  ;;  %v8017_v37 = vld [vmem:[%s11642_s3 + $0x74] sm:$0xf0] }
 0x1f5   : > { %2738 = vmatpush.bf16.msra.mxu2 %v5742_v38  ;;  %v7959_v38 = vld [vmem:[%s11640_s1 + $0x6ac] sm:$0xf]  ;;  %v6174_v19 = vor.u32 %v7927_v5, %v6171_v31  ;;  %v6267_v28 = vld [vmem:[%s11640_s1 + $0x678] sm:$0xf0] }
 0x1f6   : > { %2751 = vmatpush.bf16.msra.mxu3 %v5870_v14  ;;  %v8352_v14 = vld [vmem:[#allocation1 + $0x1b] sm:$0xff]  ;;  %v6302_v20 = vor.u32 %v7959_v38, %v6299_v9  ;;  %v6270_v51 = vor.u32 %v7951_v48, %v6267_v28  ;;  %v7947_v58 = vld [vmem:[%s11640_s1 + $0x64c] sm:$0xf] }
 0x1f7   : > { %2713 = vmatpush.bf16.msra.mxu0 %v5470_v23  ;;  %v6027_v23 = vld [vmem:[%s11640_s1 + $0x498] sm:$0xf0]  ;;  %v7979_v61 = vld [vmem:[%s11640_s1 + $0x74c] sm:$0xf]  ;;  %v6513_v28 = vld [vmem:[%s11642_s3 + $0x60] sm:$0xf] }
 0x1f8   : > { %2726 = vmatpush.bf16.msra.mxu1 %v5598_v30  ;;  %v6155_v30 = vld [vmem:[%s11640_s1 + $0x598] sm:$0xf0]  ;;  %v6030_v39 = vor.u32 %v7891_v21, %v6027_v23  ;;  %v7911_v4 = vld [vmem:[%s11640_s1 + $0x52c] sm:$0xf] }
 0x1f9   : > { %2739 = vmatpush.bf16.msra.mxu2 %v5726_v33  ;;  %v7955_v33 = vld [vmem:[%s11640_s1 + $0x68c] sm:$0xf]  ;;  %v6158_v41 = vor.u32 %v7923_v24, %v6155_v30  ;;  %v6123_v57 = vld [vmem:[%s11640_s1 + $0x558] sm:$0xf0] }
 0x1fa   : > { %2752 = vmatpush.bf16.msra.mxu3 %v5854_v40  ;;  %v6286_v42 = vor.u32 %v7955_v33, %v6283_v35  ;;  %v6379_v62 = vld [vmem:[%s11640_s1 + $0x758] sm:$0xf0]  ;;  %v7943_v31 = vld [vmem:[%s11640_s1 + $0x62c] sm:$0xf] }
 0x1fb   : > { %2714 = vmatpush.bf16.msra.mxu0 %v5454_v47  ;;  %v10470_v40 = vpop.f32.mrf.mxu0  ;;  %v6139_v47 = vld [vmem:[%s11640_s1 + $0x578] sm:$0xf0]  ;;  %v7975_v9 = vld [vmem:[%s11640_s1 + $0x72c] sm:$0xf] }
 0x1fc   : > { %2727 = vmatpush.bf16.msra.mxu1 %v5582_v34  ;;  %v10481_v46 = vpop.f32.mrf.mxu1  ;;  %v6395_v34 = vld [vmem:[%s11640_s1 + $0x778] sm:$0xf0]  ;;  %v6142_v50 = vor.u32 %v7919_v45, %v6139_v47  ;;  %v7939_v24 = vld [vmem:[%s11640_s1 + $0x60c] sm:$0xf]  ;;  %v6522_v47 = vor.u32 %v8017_v37, %v6521_v36  ;;  %v6537_v36 = vld [vmem:[%s11642_s3 + $0x90] sm:$0xf] }
 0x1fd   : > { %2740 = vmatpush.bf16.msra.mxu2 %v5710_v49  ;;  %v6014_v49 = vor.u32 %v7887_v43, %v6011_v44  ;;  %v6398_v56 = vor.u32 %v7983_v29, %v6395_v34  ;;  %v5979_v25 = vld [vmem:[%s11640_s1 + $0x438] sm:$0xf0]  ;;  %v7971_v30 = vld [vmem:[%s11640_s1 + $0x70c] sm:$0xf]  ;;  %v8033_v43 = vld [vmem:[%s11642_s3 + $0xf4] sm:$0xf0] }
 0x1fe   : > { %2753 = vmatpush.bf16.msra.mxu3 %v5838_v52  ;;  %2715 = vmatmul.bf16.vlgmr.msra.gmra.mxu0 %v8351_v13  ;;  %v7883_v52 = vld [vmem:[%s11640_s1 + $0x44c] sm:$0xf]  ;;  %v6235_v38 = vld [vmem:[%s11640_s1 + $0x638] sm:$0xf0]  ;;  %v8015_v29 = vld [vmem:[%s11642_s3 + $0x64] sm:$0xf0] }
 0x1ff   : > { %2759 = vmatpush.bf16.msrb.mxu0 %v6078_v53  ;;  %2728 = vmatmul.bf16.vlgmr.msra.gmra.mxu1 %v8353_v16  ;;  %v5995_v53 = vld [vmem:[%s11640_s1 + $0x458] sm:$0xf0]  ;;  %v6238_v16 = vor.u32 %v7943_v31, %v6235_v38  ;;  %v6577_v34 = vld [vmem:[%s11642_s3 + $0xe0] sm:$0xf] }
 0x200   : > { %2772 = vmatpush.bf16.msrb.mxu1 %v6206_v54  ;;  %2741 = vmatmul.bf16.vlgmr.msra.gmra.mxu2 %v8350_v8  ;;  %v7915_v54 = vld [vmem:[%s11640_s1 + $0x54c] sm:$0xf]  ;;  %v5998_v63 = vor.u32 %v7883_v52, %v5995_v53  ;;  %v6107_v8 = vld [vmem:[%s11640_s1 + $0x538] sm:$0xf0]  ;;  %v6505_v52 = vld [vmem:[%s11642_s3 + $0x50] sm:$0xf] }
 0x201   : > { %2785 = vmatpush.bf16.msrb.mxu2 %v6334_v55  ;;  %2754 = vmatmul.bf16.vlgmr.msra.gmra.mxu3 %v8352_v14  ;;  %v6363_v10 = vld [vmem:[%s11640_s1 + $0x738] sm:$0xf0]  ;;  %v7875_v14 = vld [vmem:[%s11640_s1 + $0x40c] sm:$0xf]  ;;  %v8013_v53 = vld [vmem:[%s11642_s3 + $0x54] sm:$0xf0] }
 0x202   : > { %2798 = vmatpush.bf16.msrb.mxu3 %v6462_v59  ;;  %v6251_v59 = vld [vmem:[%s11640_s1 + $0x658] sm:$0xf0]  ;;  %v6366_v23 = vor.u32 %v7975_v9, %v6363_v10 }
 0x203   : > { %2760 = vmatpush.bf16.msrb.mxu0 %v6062_v1  ;;  %v10507_v55 = vpop.f32.mrf.mxu2  ;;  %v2510_v0 = vpop.f32.mrf.mxu0  ;;  %v6126_v1 = vor.u32 %v7915_v54, %v6123_v57  ;;  %v6091_v32 = vld [vmem:[%s11640_s1 + $0x518] sm:$0xf0]  ;;  %v6569_v54 = vld [vmem:[%s11642_s3 + $0xd0] sm:$0xf] }
 0x204   : > { %2773 = vmatpush.bf16.msrb.mxu1 %v6190_v2  ;;  %v10518_v60 = vpop.f32.mrf.mxu3  ;;  %v6254_v2 = vor.u32 %v7947_v58, %v6251_v59  ;;  %v2523_v5 = vpop.f32.mrf.mxu1  ;;  %v6347_v35 = vld [vmem:[%s11640_s1 + $0x718] sm:$0xf0]  ;;  %v6561_v58 = vld [vmem:[%s11642_s3 + $0xc0] sm:$0xf]  ;;  %v6649_v59 = vld [vmem:[%s11642_s3 + $0x170] sm:$0xf] }
 0x205   : > { %2786 = vmatpush.bf16.msrb.mxu2 %v6318_v3  ;;  %v7879_v3 = vld [vmem:[%s11640_s1 + $0x42c] sm:$0xf]  ;;  %v8025_v5 = vld [vmem:[%s11642_s3 + $0xb4] sm:$0xf0] }
 0x206   : > { %2799 = vmatpush.bf16.msrb.mxu3 %v6446_v6  ;;  %v6382_v6 = vor.u32 %v7979_v61, %v6379_v62  ;;  %v5982_v13 = vor.u32 %v7879_v3, %v5979_v25  ;;  %v6553_v3 = vld [vmem:[%s11642_s3 + $0xb0] sm:$0xf] }
 0x207   : > { %2761 = vmatpush.bf16.msrb.mxu0 %v6046_v15  ;;  %v6110_v15 = vor.u32 %v7911_v4, %v6107_v8  ;;  %v8047_v8 = vld [vmem:[%s11642_s3 + $0x164] sm:$0xf0]  ;;  %v6554_v10 = vor.u32 %v8025_v5, %v6553_v3  ;;  %v8037_v3 = vld [vmem:[%s11642_s3 + $0x114] sm:$0xf0]  ;;  %v6507_v5 = vld [vmem:[%s11642_s3 + $0x58] sm:$0xf0] }
 0x208   : > { %2774 = vmatpush.bf16.msrb.mxu1 %v6174_v19  ;;  %v5963_v19 = vld [vmem:[%s11640_s1 + $0x418] sm:$0xf0] }
 0x209   : > { %2787 = vmatpush.bf16.msrb.mxu2 %v6302_v20  ;;  %v7907_v20 = vld [vmem:[%s11640_s1 + $0x50c] sm:$0xf] }
 0x20a   : > { %2800 = vmatpush.bf16.msrb.mxu3 %v6430_v26  ;;  %v6219_v26 = vld [vmem:[%s11640_s1 + $0x618] sm:$0xf0]  ;;  %v6094_v44 = vor.u32 %v7907_v20, %v6091_v32  ;;  %v6633_v20 = vld [vmem:[%s11642_s3 + $0x150] sm:$0xf]  ;;  %v8045_v32 = vld [vmem:[%s11642_s3 + $0x154] sm:$0xf0] }
 0x20b   : > { %2762 = vmatpush.bf16.msrb.mxu0 %v6030_v39  ;;  %v2536_v21 = vpop.f32.mrf.mxu2  ;;  %v2509_v39 = vadd.f32 %v10470_v40, %v1090_v11  ;;  %v6222_v45 = vor.u32 %v7939_v24, %v6219_v26  ;;  %v6481_v11 = vld [vmem:[%s11642_s3 + $0x20] sm:$0xf] }
 0x20c   : > { %2775 = vmatpush.bf16.msrb.mxu1 %v6158_v41  ;;  %v2549_v33 = vpop.f32.mrf.mxu3  ;;  %v5966_v41 = vor.u32 %v7875_v14, %v5963_v19  ;;  %v6545_v14 = vld [vmem:[%s11642_s3 + $0xa0] sm:$0xf]  ;;  %v6634_v21 = vor.u32 %v8045_v32, %v6633_v20  ;;  %v8026_v20 = vld [vmem:[%s11642_s3 + $0xc4] sm:$0xf]  ;;  %v6563_v32 = vld [vmem:[%s11642_s3 + $0xc8] sm:$0xf0] }
 0x20d   : > { %2788 = vmatpush.bf16.msrb.mxu2 %v6286_v42  ;;  %v6585_v42 = vld [vmem:[%s11642_s3 + $0xf0] sm:$0xf]  ;;  %v2522_v40 = vadd.f32 %v10481_v46, %v2509_v39  ;;  %v6514_v46 = vor.u32 %v8015_v29, %v6513_v28  ;;  %v8021_v39 = vld [vmem:[%s11642_s3 + $0x94] sm:$0xf0]  ;;  %v8019_v28 = vld [vmem:[%s11642_s3 + $0x84] sm:$0xf0] }
 0x20e   : > { %2801 = vmatpush.bf16.msrb.mxu3 %v6414_v27  ;;  %v6350_v27 = vor.u32 %v7971_v30, %v6347_v35  ;;  %v6586_v48 = vor.u32 %v8033_v43, %v6585_v42  ;;  %v6473_v33 = vld [vmem:[%s11642_s3 + $0x10] sm:$0xf]  ;;  %v8005_v35 = vld [vmem:[%s11642_s3 + $0x14] sm:$0xf0]  ;;  %v8043_v42 = vld [vmem:[%s11642_s3 + $0x144] sm:$0xf0] }
 0x20f   : > { %2763 = vmatpush.bf16.msrb.mxu0 %v6014_v49  ;;  %v8031_v49 = vld [vmem:[%s11642_s3 + $0xe4] sm:$0xf0]  ;;  %v8016_v29 = vld [vmem:[%s11642_s3 + $0x74] sm:$0xf] }
 0x210   : > { %2776 = vmatpush.bf16.msrb.mxu1 %v6142_v50  ;;  %v6578_v50 = vor.u32 %v8031_v49, %v6577_v34  ;;  %v6523_v49 = vld [vmem:[%s11642_s3 + $0x78] sm:$0xf0] }
 0x211   : > { %2789 = vmatpush.bf16.msrb.mxu2 %v6270_v51  ;;  %v2535_v51 = vadd.f32 %v10507_v55, %v2522_v40  ;;  %v6506_v55 = vor.u32 %v8013_v53, %v6505_v52  ;;  %v6529_v40 = vld [vmem:[%s11642_s3 + $0x80] sm:$0xf]  ;;  %v8032_v52 = vld [vmem:[%s11642_s3 + $0xf4] sm:$0xf]  ;;  %v6587_v53 = vld [vmem:[%s11642_s3 + $0xf8] sm:$0xf0] }
 0x212   : > { %2802 = vmatpush.bf16.msrb.mxu3 %v6398_v56 }
 0x213   : > { %2764 = vmatpush.bf16.msrb.mxu0 %v5998_v63  ;;  %v2548_v56 = vadd.f32 %v10518_v60, %v2535_v51  ;;  %v8049_v60 = vld [vmem:[%s11642_s3 + $0x174] sm:$0xf0] }
 0x214   : > { %2777 = vmatpush.bf16.msrb.mxu1 %v6126_v1  ;;  %v6650_v61 = vor.u32 %v8049_v60, %v6649_v59  ;;  %v6489_v1 = vld [vmem:[%s11642_s3 + $0x30] sm:$0xf]  ;;  %v8041_v51 = vld [vmem:[%s11642_s3 + $0x134] sm:$0xf0]  ;;  %v6609_v59 = vld [vmem:[%s11642_s3 + $0x120] sm:$0xf] }
 0x215   : > { %2790 = vmatpush.bf16.msrb.mxu2 %v6254_v2  ;;  %v8009_v2 = vld [vmem:[%s11642_s3 + $0x34] sm:$0xf0]  ;;  %v8030_v60 = vld [vmem:[%s11642_s3 + $0xe4] sm:$0xf] }
 0x216   : > { %2803 = vmatpush.bf16.msrb.mxu3 %v6382_v6  ;;  %v6641_v6 = vld [vmem:[%s11642_s3 + $0x160] sm:$0xf]  ;;  %v6490_v38 = vor.u32 %v8009_v2, %v6489_v1  ;;  %v6601_v2 = vld [vmem:[%s11642_s3 + $0x110] sm:$0xf] }
 0x217   : > { %2765 = vmatpush.bf16.msrb.mxu0 %v5982_v13  ;;  %v6642_v31 = vor.u32 %v8047_v8, %v6641_v6  ;;  %v8007_v13 = vld [vmem:[%s11642_s3 + $0x24] sm:$0xf0]  ;;  %v8028_v6 = vld [vmem:[%s11642_s3 + $0xd4] sm:$0xf]  ;;  %v6602_v8 = vor.u32 %v8037_v3, %v6601_v2  ;;  %v6531_v2 = vld [vmem:[%s11642_s3 + $0x88] sm:$0xf0] }
 0x218   : > { %2778 = vmatpush.bf16.msrb.mxu1 %v6110_v15 }
 0x219   : > { %2791 = vmatpush.bf16.msrb.mxu2 %v6238_v16  ;;  %v8023_v16 = vld [vmem:[%s11642_s3 + $0xa4] sm:$0xf0] }
 0x21a   : > { %2804 = vmatpush.bf16.msrb.mxu3 %v6366_v23  ;;  %v6482_v23 = vor.u32 %v8007_v13, %v6481_v11  ;;  %v6546_v30 = vor.u32 %v8023_v16, %v6545_v14  ;;  %v6651_v11 = vld [vmem:[%s11642_s3 + $0x178] sm:$0xf0]  ;;  %v6499_v16 = vld [vmem:[%s11642_s3 + $0x48] sm:$0xf0] }
 0x21b   : > { %2766 = vmatpush.bf16.msrb.mxu0 %v5966_v41  ;;  %v2560_v63 = vpop.f32.mrf.mxu0  ;;  %v6625_v41 = vld [vmem:[%s11642_s3 + $0x140] sm:$0xf] }
 0x21c   : > { %2779 = vmatpush.bf16.msrb.mxu1 %v6094_v44  ;;  %v2561_v25 = vadd.f32 %v2560_v63, %v2548_v56  ;;  %v2573_v4 = vpop.f32.mrf.mxu1  ;;  %v6626_v43 = vor.u32 %v8043_v42, %v6625_v41  ;;  %v2811_v56 = vmax.f32 %v10324_v7, 0.0  ;;  %v8039_v7 = vld [vmem:[%s11642_s3 + $0x124] sm:$0xf0]  ;;  %v6643_v41 = vld [vmem:[%s11642_s3 + $0x168] sm:$0xf0] }
 0x21d   : > { %2792 = vmatpush.bf16.msrb.mxu2 %v6222_v45  ;;  %v6474_v45 = vor.u32 %v8005_v35, %v6473_v33  ;;  %v8024_v33 = vld [vmem:[%s11642_s3 + $0xb4] sm:$0xf] }
 0x21e   : > { %2805 = vmatpush.bf16.msrb.mxu3 %v6350_v27  ;;  %2767 = vmatmul.bf16.vlgmr.msrb.gmra.mxu0 %v10237_v17  ;;  %v8029_v17 = vld [vmem:[%s11642_s3 + $0xd4] sm:$0xf0]  ;;  %v2574_v9 = vadd.f32 %v2573_v4, %v2561_v25  ;;  %v6465_v27 = vld [vmem:[%s11642_s3] sm:$0xf]  ;;  %v8012_v4 = vld [vmem:[%s11642_s3 + $0x54] sm:$0xf] }
 0x21f   : > { %3209 = vmatpush.bf16.msra.mxu0 %v6522_v47  ;;  %2780 = vmatmul.bf16.vlgmr.msrb.gmra.mxu1 %v10249_v22  ;;  %v6570_v57 = vor.u32 %v8029_v17, %v6569_v54  ;;  %v8011_v22 = vld [vmem:[%s11642_s3 + $0x44] sm:$0xf0]  ;;  %v6510_v13 = vor.u32 %v8012_v4, %v6507_v5  ;;  %v8038_v5 = vld [vmem:[%s11642_s3 + $0x124] sm:$0xf] }
 0x220   : > { %3222 = vmatpush.bf16.msra.mxu1 %v6586_v48  ;;  %2793 = vmatmul.bf16.vlgmr.msrb.gmra.mxu2 %v10225_v12  ;;  %v6497_v12 = vld [vmem:[%s11642_s3 + $0x40] sm:$0xf]  ;;  %v8003_v47 = vld [vmem:[%s11642_s3 + $0x4] sm:$0xf0]  ;;  %v6538_v48 = vor.u32 %v8021_v39, %v6537_v36  ;;  %v6555_v36 = vld [vmem:[%s11642_s3 + $0xb8] sm:$0xf0] }
 0x221   : > { %2806 = vmatmul.bf16.vlgmr.msrb.gmra.mxu3 %v10240_v18  ;;  %v8027_v18 = vld [vmem:[%s11642_s3 + $0xc4] sm:$0xf0]  ;;  %v6498_v62 = vor.u32 %v8011_v22, %v6497_v12  ;;  %3235 = vmatpush.bf16.msra.mxu2 %v6650_v61  ;;  %v6526_v12 = vor.u32 %v8016_v29, %v6523_v49  ;;  %v8014_v22 = vld [vmem:[%s11642_s3 + $0x64] sm:$0xf]  ;;  %v6579_v61 = vld [vmem:[%s11642_s3 + $0xe8] sm:$0xf0] }
 0x222   : > { %v6562_v0 = vor.u32 %v8027_v18, %v6561_v58  ;;  %v6590_v58 = vor.u32 %v8032_v52, %v6587_v53  ;;  %v6515_v18 = vld [vmem:[%s11642_s3 + $0x68] sm:$0xf0]  ;;  %v6582_v25 = vor.u32 %v8030_v60, %v6579_v61  ;;  %v8046_v39 = vld [vmem:[%s11642_s3 + $0x164] sm:$0xf]  ;;  %v6635_v29 = vld [vmem:[%s11642_s3 + $0x158] sm:$0xf0] }
 0x223   : > { %3210 = vmatpush.bf16.msra.mxu0 %v6514_v46  ;;  %v2586_v15 = vpop.f32.mrf.mxu2  ;;  %v2562_v26 = vpop.f32.mrf.mxu0  ;;  %v6518_v1 = vor.u32 %v8014_v22, %v6515_v18  ;;  %v6646_v42 = vor.u32 %v8046_v39, %v6643_v41  ;;  %v6475_v52 = vld [vmem:[%s11642_s3 + $0x18] sm:$0xf0]  ;;  %v8020_v53 = vld [vmem:[%s11642_s3 + $0x94] sm:$0xf]  ;;  %v6467_v60 = vld [vmem:[%s11642_s3 + $0x8] sm:$0xf0] }
 0x224   : > { %3223 = vmatpush.bf16.msra.mxu1 %v6578_v50  ;;  %v2599_v19 = vpop.f32.mrf.mxu3  ;;  %v2587_v24 = vadd.f32 %v2586_v15, %v2574_v9  ;;  %v2575_v37 = vpop.f32.mrf.mxu1  ;;  %v6617_v50 = vld [vmem:[%s11642_s3 + $0x130] sm:$0xf]  ;;  %v8035_v9 = vld [vmem:[%s11642_s3 + $0x104] sm:$0xf0]  ;;  %v8010_v15 = vld [vmem:[%s11642_s3 + $0x44] sm:$0xf] }
 0x225   : > { %3236 = vmatpush.bf16.msra.mxu2 %v6642_v31  ;;  %v6618_v54 = vor.u32 %v8041_v51, %v6617_v50  ;;  %v6571_v31 = vld [vmem:[%s11642_s3 + $0xd8] sm:$0xf0]  ;;  %v8008_v26 = vld [vmem:[%s11642_s3 + $0x34] sm:$0xf] }
 0x226   : > { %v2600_v44 = vadd.f32 %v2599_v19, %v2587_v24  ;;  %v6574_v14 = vor.u32 %v8028_v6, %v6571_v31  ;;  %v6566_v24 = vor.u32 %v8026_v20, %v6563_v32  ;;  %v8004_v51 = vld [vmem:[%s11642_s3 + $0x14] sm:$0xf]  ;;  %v6611_v6 = vld [vmem:[%s11642_s3 + $0x128] sm:$0xf0]  ;;  %v8034_v20 = vld [vmem:[%s11642_s3 + $0x104] sm:$0xf] }
 0x227   : > { %3211 = vmatpush.bf16.msra.mxu0 %v6506_v55  ;;  %v6466_v55 = vor.u32 %v8003_v47, %v6465_v27  ;;  %v6483_v27 = vld [vmem:[%s11642_s3 + $0x28] sm:$0xf0]  ;;  %v8022_v47 = vld [vmem:[%s11642_s3 + $0xa4] sm:$0xf]  ;;  %v6478_v22 = vor.u32 %v8004_v51, %v6475_v52  ;;  %v8040_v61 = vld [vmem:[%s11642_s3 + $0x134] sm:$0xf] }
 0x228   : > { %3224 = vmatpush.bf16.msra.mxu1 %v6570_v57  ;;  %v2812_v17 = vmax.f32 %v2600_v44, 0.0  ;;  %v6530_v57 = vor.u32 %v8019_v28, %v6529_v40  ;;  %v6558_v44 = vor.u32 %v8024_v33, %v6555_v36  ;;  %v8044_v28 = vld [vmem:[%s11642_s3 + $0x154] sm:$0xf]  ;;  %v6595_v32 = vld [vmem:[%s11642_s3 + $0x108] sm:$0xf0] }
 0x229   : > { %3237 = vmatpush.bf16.msra.mxu2 %v6634_v21  ;;  %v6638_v49 = vor.u32 %v8044_v28, %v6635_v29  ;;  %v6697_v33 = vld [vmem:[%s11642_s3 + $0x1d0] sm:$0xf]  ;;  %v8055_v51 = vld [vmem:[%s11642_s3 + $0x1a4] sm:$0xf0] }
 0x22a   : > { %v10740_v63 = vpack.c.bf16 %v2812_v17, %v2812_v17  ;;  %v6539_v17 = vld [vmem:[%s11642_s3 + $0x98] sm:$0xf0] }
 0x22b   : > { %3212 = vmatpush.bf16.msra.mxu0 %v6498_v62  ;;  %v2588_v34 = vpop.f32.mrf.mxu2  ;;  %v6610_v62 = vor.u32 %v8039_v7, %v6609_v59  ;;  %v8002_v59 = vld [vmem:[%s11642_s3 + $0x4] sm:$0xf]  ;;  %v6542_v7 = vor.u32 %v8020_v53, %v6539_v17 }
 0x22c   : > { %3225 = vmatpush.bf16.msra.mxu1 %v6562_v0  ;;  %v2601_v46 = vpop.f32.mrf.mxu3  ;;  %v10742_v0 = vpack.c.bf16 %v2811_v56, %v2811_v56  ;;  %v8042_v56 = vld [vmem:[%s11642_s3 + $0x144] sm:$0xf] }
 0x22d   : > { %3238 = vmatpush.bf16.msra.mxu2 %v6626_v43 }
 0x22f   : > { %3213 = vmatpush.bf16.msra.mxu0 %v6490_v38  ;;  %v6593_v38 = vld [vmem:[%s11642_s3 + $0x100] sm:$0xf] }
 0x230   : > { %3226 = vmatpush.bf16.msra.mxu1 %v6554_v10  ;;  %v8048_v10 = vld [vmem:[%s11642_s3 + $0x174] sm:$0xf]  ;;  %v6594_v19 = vor.u32 %v8035_v9, %v6593_v38  ;;  %v6470_v38 = vor.u32 %v8002_v59, %v6467_v60  ;;  %v8065_v9 = vld [vmem:[%s11642_s3 + $0x1f4] sm:$0xf0] }
 0x231   : > { %3239 = vmatpush.bf16.msra.mxu2 %v6618_v54  ;;  %v6654_v21 = vor.u32 %v8048_v10, %v6651_v11  ;;  %v8064_v59 = vld [vmem:[%s11642_s3 + $0x1f4] sm:$0xf] }
 0x233   : > { %3214 = vmatpush.bf16.msra.mxu0 %v6482_v23  ;;  %v6502_v23 = vor.u32 %v8010_v15, %v6499_v16  ;;  %v6603_v15 = vld [vmem:[%s11642_s3 + $0x118] sm:$0xf0] }
 0x234   : > { %3227 = vmatpush.bf16.msra.mxu1 %v6546_v30  ;;  %v6491_v30 = vld [vmem:[%s11642_s3 + $0x38] sm:$0xf0] }
 0x235   : > { %3240 = vmatpush.bf16.msra.mxu2 %v6610_v62  ;;  %v6494_v43 = vor.u32 %v8008_v26, %v6491_v30  ;;  %v6619_v62 = vld [vmem:[%s11642_s3 + $0x138] sm:$0xf0]  ;;  %v6705_v26 = vld [vmem:[%s11642_s3 + $0x1e0] sm:$0xf] }
 0x237   : > { %3215 = vmatpush.bf16.msra.mxu0 %v6474_v45  ;;  %v8006_v45 = vld [vmem:[%s11642_s3 + $0x24] sm:$0xf] }
 0x238   : > { %3228 = vmatpush.bf16.msra.mxu1 %v6538_v48  ;;  %v6547_v48 = vld [vmem:[%s11642_s3 + $0xa8] sm:$0xf0]  ;;  %v6486_v46 = vor.u32 %v8006_v45, %v6483_v27 }
 0x239   : > { %3241 = vmatpush.bf16.msra.mxu2 %v6602_v8  ;;  %v6550_v50 = vor.u32 %v8022_v47, %v6547_v48  ;;  %v6713_v8 = vld [vmem:[%s11642_s3 + $0x1f0] sm:$0xf] }
 0x23a   : > { %v6714_v11 = vor.u32 %v8065_v9, %v6713_v8  ;;  %v6681_v48 = vld [vmem:[%s11642_s3 + $0x1b0] sm:$0xf] }
 0x23b   : > { %3216 = vmatpush.bf16.msra.mxu0 %v6466_v55  ;;  %v2612_v35 = vpop.f32.mrf.mxu0 }
 0x23c   : > { %3229 = vmatpush.bf16.msra.mxu1 %v6530_v57  ;;  %v10800_v37 = vpop.f32.mrf.mxu1  ;;  %v6627_v57 = vld [vmem:[%s11642_s3 + $0x148] sm:$0xf0]  ;;  %3248 = vmatpush.bf16.msra.mxu3 %v6714_v11 }
 0x23d   : > { %3242 = vmatpush.bf16.msra.mxu2 %v6594_v19 }
 0x23e   : > { %3217 = vmatmul.bf16.vlgmr.msra.gmra.mxu0 %v10742_v0 }
 0x23f   : > { %3261 = vmatpush.bf16.msrb.mxu0 %v6526_v12  ;;  %3230 = vmatmul.bf16.vlgmr.msra.gmra.mxu1 %v10740_v63  ;;  %v6630_v12 = vor.u32 %v8042_v56, %v6627_v57  ;;  %v8053_v56 = vld [vmem:[%s11642_s3 + $0x194] sm:$0xf0] }
 0x240   : > { %3274 = vmatpush.bf16.msrb.mxu1 %v6590_v58  ;;  %v10847_v58 = vld [vmem:[%s11641_s2] sm:$0xf] }
 0x241   : > { %3287 = vmatpush.bf16.msrb.mxu2 %v6654_v21  ;;  %v1091_v18 = vperm.slane %v10847_v58, 2 }
 0x243   : > { %3262 = vmatpush.bf16.msrb.mxu0 %v6518_v1  ;;  %v2638_v40 = vpop.f32.mrf.mxu2  ;;  %v2614_v54 = vpop.f32.mrf.mxu0  ;;  %v8018_v1 = vld [vmem:[%s11642_s3 + $0x84] sm:$0xf]  ;;  %v2613_v31 = vadd.f32 %v2612_v35, %v1091_v18 }
 0x244   : > { %3275 = vmatpush.bf16.msrb.mxu1 %v6582_v25  ;;  %v2651_v34 = vpop.f32.mrf.mxu3  ;;  %v2627_v55 = vpop.f32.mrf.mxu1  ;;  %v6622_v25 = vor.u32 %v8040_v61, %v6619_v62  ;;  %v6534_v10 = vor.u32 %v8018_v1, %v6531_v2  ;;  %v8062_v61 = vld [vmem:[%s11642_s3 + $0x1e4] sm:$0xf]  ;;  %v6707_v62 = vld [vmem:[%s11642_s3 + $0x1e8] sm:$0xf0] }
 0x245   : > { %3288 = vmatpush.bf16.msrb.mxu2 %v6646_v42  ;;  %v2626_v16 = vadd.f32 %v10800_v37, %v2613_v31  ;;  %v6689_v42 = vld [vmem:[%s11642_s3 + $0x1c0] sm:$0xf]  ;;  %v6665_v55 = vld [vmem:[%s11642_s3 + $0x190] sm:$0xf]  ;;  %v6710_v2 = vor.u32 %v8062_v61, %v6707_v62  ;;  %v8058_v31 = vld [vmem:[%s11642_s3 + $0x1c4] sm:$0xf] }
 0x246   : > { %v6666_v57 = vor.u32 %v8053_v56, %v6665_v55 }
 0x247   : > { %3263 = vmatpush.bf16.msrb.mxu0 %v6510_v13  ;;  %v6614_v13 = vor.u32 %v8038_v5, %v6611_v6  ;;  %v2639_v21 = vadd.f32 %v2638_v40, %v2626_v16  ;;  %v8057_v40 = vld [vmem:[%s11642_s3 + $0x1b4] sm:$0xf0] }
 0x248   : > { %3276 = vmatpush.bf16.msrb.mxu1 %v6574_v14  ;;  %v8036_v14 = vld [vmem:[%s11642_s3 + $0x114] sm:$0xf] }
 0x249   : > { %3289 = vmatpush.bf16.msrb.mxu2 %v6638_v49  ;;  %v6606_v19 = vor.u32 %v8036_v14, %v6603_v15  ;;  %v6682_v49 = vor.u32 %v8057_v40, %v6681_v48  ;;  %v6683_v14 = vld [vmem:[%s11642_s3 + $0x1b8] sm:$0xf0]  ;;  %v1092_v15 = vperm.slane %v10847_v58, 3 }
 0x24a   : > { %v6667_v58 = vld [vmem:[%s11642_s3 + $0x198] sm:$0xf0] }
 0x24b   : > { %3264 = vmatpush.bf16.msrb.mxu0 %v6502_v23  ;;  %v2640_v3 = vpop.f32.mrf.mxu2  ;;  %v6598_v23 = vor.u32 %v8034_v20, %v6595_v32  ;;  %v6675_v20 = vld [vmem:[%s11642_s3 + $0x1a8] sm:$0xf0] }
 0x24c   : > { %3277 = vmatpush.bf16.msrb.mxu1 %v6566_v24  ;;  %v2653_v4 = vpop.f32.mrf.mxu3  ;;  %v2652_v24 = vadd.f32 %v2651_v34, %v2639_v21 }
 0x24d   : > { %3290 = vmatpush.bf16.msrb.mxu2 %v6630_v12  ;;  %v6657_v12 = vld [vmem:[%s11642_s3 + $0x180] sm:$0xf]  ;;  %v6699_v4 = vld [vmem:[%s11642_s3 + $0x1d8] sm:$0xf0] }
 0x24f   : > { %3265 = vmatpush.bf16.msrb.mxu0 %v6494_v43  ;;  %v8059_v43 = vld [vmem:[%s11642_s3 + $0x1c4] sm:$0xf0] }
 0x250   : > { %3278 = vmatpush.bf16.msrb.mxu1 %v6558_v44  ;;  %v6690_v45 = vor.u32 %v8059_v43, %v6689_v42 }
 0x251   : > { %3291 = vmatpush.bf16.msrb.mxu2 %v6622_v25  ;;  %v8060_v25 = vld [vmem:[%s11642_s3 + $0x1d4] sm:$0xf] }
 0x252   : > { %v6702_v5 = vor.u32 %v8060_v25, %v6699_v4  ;;  %v8162_v25 = vld [vmem:[%s10992_s14 + $0x304] sm:$0xf] }
 0x253   : > { %3266 = vmatpush.bf16.msrb.mxu0 %v6486_v46 }
 0x254   : > { %3279 = vmatpush.bf16.msrb.mxu1 %v6550_v50  ;;  %v6673_v50 = vld [vmem:[%s11642_s3 + $0x1a0] sm:$0xf] }
 0x255   : > { %3292 = vmatpush.bf16.msrb.mxu2 %v6614_v13  ;;  %v6674_v54 = vor.u32 %v8055_v51, %v6673_v50  ;;  %v8056_v13 = vld [vmem:[%s11642_s3 + $0x1b4] sm:$0xf] }
 0x256   : > { %v6686_v16 = vor.u32 %v8056_v13, %v6683_v14 }
 0x257   : > { %3267 = vmatpush.bf16.msrb.mxu0 %v6478_v22  ;;  %v8051_v22 = vld [vmem:[%s11642_s3 + $0x184] sm:$0xf0] }
 0x258   : > { %3280 = vmatpush.bf16.msrb.mxu1 %v6542_v7  ;;  %v6658_v18 = vor.u32 %v8051_v22, %v6657_v12  ;;  %v6715_v7 = vld [vmem:[%s11642_s3 + $0x1f8] sm:$0xf0]  ;;  %v8186_v12 = vld [vmem:[%s10992_s14 + $0x3bc] sm:$0xf0]  ;;  %v8178_v22 = vld [vmem:[%s10992_s14 + $0x384] sm:$0xf] }
 0x259   : > { %3293 = vmatpush.bf16.msrb.mxu2 %v6606_v19  ;;  %v6718_v60 = vor.u32 %v8064_v59, %v6715_v7  ;;  %v8054_v19 = vld [vmem:[%s11642_s3 + $0x1a4] sm:$0xf]  ;;  %v7171_v59 = vld [vmem:[%s10992_s14 + $0x3c0] sm:$0xf0] }
 0x25a   : > { %v7174_v7 = vor.u32 %v8178_v22, %v7171_v59  ;;  %v6721_v22 = vld [vmem:[%s10992_s14] sm:$0xf] }
 0x25b   : > { %3268 = vmatpush.bf16.msrb.mxu0 %v6470_v38  ;;  %v2664_v35 = vpop.f32.mrf.mxu0  ;;  %v6691_v38 = vld [vmem:[%s11642_s3 + $0x1c8] sm:$0xf0] }
 0x25c   : > { %3281 = vmatpush.bf16.msrb.mxu1 %v6534_v10  ;;  %v2665_v36 = vadd.f32 %v2664_v35, %v2652_v24  ;;  %v2677_v37 = vpop.f32.mrf.mxu1  ;;  %v6694_v10 = vor.u32 %v8058_v31, %v6691_v38  ;;  %v8052_v24 = vld [vmem:[%s11642_s3 + $0x194] sm:$0xf]  ;;  %v8146_v38 = vld [vmem:[%s10992_s14 + $0x284] sm:$0xf] }
 0x25d   : > { %3294 = vmatpush.bf16.msrb.mxu2 %v6598_v23  ;;  %v6678_v23 = vor.u32 %v8054_v19, %v6675_v20  ;;  %v8130_v19 = vld [vmem:[%s10992_s14 + $0x204] sm:$0xf] }
 0x25e   : > { %3269 = vmatmul.bf16.vlgmr.msrb.gmra.mxu0 %v10742_v0  ;;  %v8063_v0 = vld [vmem:[%s11642_s3 + $0x1e4] sm:$0xf0]  ;;  %v2678_v41 = vadd.f32 %v2677_v37, %v2665_v36 }
 0x25f   : > { %3282 = vmatmul.bf16.vlgmr.msrb.gmra.mxu1 %v10740_v63  ;;  %v6706_v30 = vor.u32 %v8063_v0, %v6705_v26  ;;  %v8061_v63 = vld [vmem:[%s11642_s3 + $0x1d4] sm:$0xf0]  ;;  %v6670_v0 = vor.u32 %v8052_v24, %v6667_v58  ;;  %v7681_v58 = vld [vmem:[%s10992_s14 + $0x780] sm:$0xf] }
 0x260   : > { %v6698_v39 = vor.u32 %v8061_v63, %v6697_v33  ;;  %v6659_v33 = vld [vmem:[%s11642_s3 + $0x188] sm:$0xf0] }
 0x261   : > { %3249 = vmatpush.bf16.msra.mxu3 %v6706_v30  ;;  %v8050_v30 = vld [vmem:[%s11642_s3 + $0x184] sm:$0xf] }
 0x262   : > { %v6662_v35 = vor.u32 %v8050_v30, %v6659_v33 }
 0x263   : > { %v2690_v44 = vpop.f32.mrf.mxu2  ;;  %v2666_v29 = vpop.f32.mrf.mxu0 }
 0x264   : > { %v2691_v27 = vadd.f32 %v2690_v44, %v2678_v41  ;;  %v2703_v47 = vpop.f32.mrf.mxu3  ;;  %v2679_v34 = vpop.f32.mrf.mxu1 }
 0x265   : > { %3250 = vmatpush.bf16.msra.mxu3 %v6698_v39 }
 0x266   : > { %v2704_v28 = vadd.f32 %v2703_v47, %v2691_v27 }
 0x268   : > { %v2813_v46 = vmax.f32 %v2704_v28, 0.0 }
 0x269   : > { %3251 = vmatpush.bf16.msra.mxu3 %v6690_v45 }
 0x26a   : > { %v2817_v52 = vpack.c.bf16 %v2813_v46, %v2813_v46  ;;  %v2883_v46 = vld [vmem:[%s11643_s4] sm:$0x3] }
 0x26b   : > { %v2692_v53 = vpop.f32.mrf.mxu2  ;;  %v2885_v50 = vperm.slane %v2883_v46, 0  ;;  %v2886_v56 = vperm.slane %v2883_v46, 1  ;;  %v8090_v46 = vld [vmem:[%s10992_s14 + $0xbc] sm:$0xf0] }
 0x26c   : > { %3243 = vmatmul.bf16.vlgmr.msra.gmra.mxu2 %v2817_v52  ;;  %v2705_v17 = vpop.f32.mrf.mxu3 }
 0x26d   : > { %3252 = vmatpush.bf16.msra.mxu3 %v6682_v49  ;;  %4915 = vmatpush.bf16.msra.mxu2 %v7174_v7  ;;  %v7489_v7 = vld [vmem:[%s10992_s14 + $0x600] sm:$0xf] }
 0x271   : > { %3253 = vmatpush.bf16.msra.mxu3 %v6674_v54 }
 0x275   : > { %3254 = vmatpush.bf16.msra.mxu3 %v6666_v57  ;;  %v7169_v57 = vld [vmem:[%s10992_s14 + $0x380] sm:$0xf] }
 0x279   : > { %3255 = vmatpush.bf16.msra.mxu3 %v6658_v18  ;;  %v7170_v18 = vor.u32 %v8186_v12, %v7169_v57  ;;  %v7555_v12 = vld [vmem:[%s10992_s14 + $0x6c0] sm:$0xf0] }
 0x27b   : > { %v2716_v1 = vpop.f32.mrf.mxu0  ;;  %4889 = vmatpush.bf16.msra.mxu0 %v7170_v18  ;;  %v8074_v18 = vld [vmem:[%s10992_s14 + $0x3c] sm:$0xf0] }
 0x27c   : > { %3295 = vmatmul.bf16.vlgmr.msrb.gmra.mxu2 %v2817_v52  ;;  %v2729_v3 = vpop.f32.mrf.mxu1  ;;  %v2717_v26 = vadd.f32 %v2716_v1, %v1092_v15  ;;  %v6977_v15 = vld [vmem:[%s10992_s14 + $0x200] sm:$0xf] }
 0x27d   : > { %3300 = vmatpush.bf16.msrb.mxu3 %v6718_v60 }
 0x27e   : > { %v2730_v63 = vadd.f32 %v2729_v3, %v2717_v26  ;;  %v8170_v3 = vld [vmem:[%s10992_s14 + $0x33c] sm:$0xf0] }
 0x27f   : > { %v8314_v26 = vld [vmem:[%s10992_s14 + $0x7bc] sm:$0xf0] }
 0x280   : > { %v7682_v33 = vor.u32 %v8314_v26, %v7681_v58  ;;  %v7361_v26 = vld [vmem:[%s10992_s14 + $0x500] sm:$0xf] }
 0x281   : > { %3301 = vmatpush.bf16.msrb.mxu3 %v6710_v2  ;;  %v7105_v2 = vld [vmem:[%s10992_s14 + $0x300] sm:$0xf] }
 0x282   : > { %v7106_v4 = vor.u32 %v8170_v3, %v7105_v2  ;;  %4902 = vmatpush.bf16.msra.mxu1 %v7682_v33  ;;  %v8258_v2 = vld [vmem:[%s10992_s14 + $0x604] sm:$0xf] }
 0x283   : > { %v2742_v6 = vpop.f32.mrf.mxu2  ;;  %v2718_v9 = vpop.f32.mrf.mxu0  ;;  %v7491_v3 = vld [vmem:[%s10992_s14 + $0x640] sm:$0xf0] }
 0x284   : > { %v2755_v8 = vpop.f32.mrf.mxu3  ;;  %v2731_v11 = vpop.f32.mrf.mxu1  ;;  %v2743_v36 = vadd.f32 %v2742_v6, %v2730_v63  ;;  %v7041_v6 = vld [vmem:[%s10992_s14 + $0x280] sm:$0xf]  ;;  %v7043_v9 = vld [vmem:[%s10992_s14 + $0x2c0] sm:$0xf0]  ;;  %4890 = vmatpush.bf16.msra.mxu0 %v7106_v4  ;;  %v6722_v4 = vor.u32 %v8074_v18, %v6721_v22  ;;  %v7689_v22 = vld [vmem:[%s10992_s14 + $0x788] sm:$0xf] }
 0x285   : > { %3302 = vmatpush.bf16.msrb.mxu3 %v6702_v5  ;;  %v7107_v5 = vld [vmem:[%s10992_s14 + $0x340] sm:$0xf0]  ;;  %v7046_v13 = vor.u32 %v8146_v38, %v7043_v9  ;;  %v7494_v9 = vor.u32 %v8258_v2, %v7491_v3  ;;  %v8315_v18 = vld [vmem:[%s10992_s14 + $0x7c4] sm:$0xf0]  ;;  %v8307_v2 = vld [vmem:[%s10992_s14 + $0x78c] sm:$0xf] }
 0x286   : > { %v2756_v37 = vadd.f32 %v2755_v8, %v2743_v36  ;;  %v8154_v8 = vld [vmem:[%s10992_s14 + $0x2bc] sm:$0xf0]  ;;  %v7110_v31 = vor.u32 %v8162_v25, %v7107_v5  ;;  %v6915_v63 = vld [vmem:[%s10992_s14 + $0x1c0] sm:$0xf0]  ;;  %v7691_v3 = vld [vmem:[%s10992_s14 + $0x7c8] sm:$0xf0] }
 0x287   : > { %v7683_v36 = vld [vmem:[%s10992_s14 + $0x7c0] sm:$0xf0] }
 0x288   : > { %4916 = vmatpush.bf16.msra.mxu2 %v7110_v31  ;;  %v8179_v31 = vld [vmem:[%s10992_s14 + $0x38c] sm:$0xf] }
 0x289   : > { %3303 = vmatpush.bf16.msrb.mxu3 %v6694_v10  ;;  %v7042_v10 = vor.u32 %v8154_v8, %v7041_v6  ;;  %v7177_v6 = vld [vmem:[%s10992_s14 + $0x388] sm:$0xf] }
 0x28a   : > { %v8187_v8 = vld [vmem:[%s10992_s14 + $0x3c4] sm:$0xf0] }
 0x28b   : > { %v2744_v32 = vpop.f32.mrf.mxu2  ;;  %4891 = vmatpush.bf16.msra.mxu0 %v7042_v10  ;;  %v7179_v10 = vld [vmem:[%s10992_s14 + $0x3c8] sm:$0xf0] }
 0x28c   : > { %v2757_v21 = vpop.f32.mrf.mxu3  ;;  %4917 = vmatpush.bf16.msra.mxu2 %v7046_v13  ;;  %v6979_v32 = vld [vmem:[%s10992_s14 + $0x240] sm:$0xf0]  ;;  %v8250_v13 = vld [vmem:[%s10992_s14 + $0x5bc] sm:$0xf0] }
 0x28d   : > { %3304 = vmatpush.bf16.msrb.mxu3 %v6686_v16  ;;  %v8138_v16 = vld [vmem:[%s10992_s14 + $0x23c] sm:$0xf0]  ;;  %v6982_v24 = vor.u32 %v8130_v19, %v6979_v32  ;;  %v7427_v19 = vld [vmem:[%s10992_s14 + $0x5c0] sm:$0xf0]  ;;  %v8171_v32 = vld [vmem:[%s10992_s14 + $0x344] sm:$0xf0] }
 0x28e   : > { %v6978_v20 = vor.u32 %v8138_v16, %v6977_v15  ;;  %v6913_v21 = vld [vmem:[%s10992_s14 + $0x180] sm:$0xf]  ;;  %v7182_v15 = vor.u32 %v8179_v31, %v7179_v10  ;;  %v8242_v16 = vld [vmem:[%s10992_s14 + $0x584] sm:$0xf]  ;;  %v6857_v31 = vld [vmem:[%s10992_s14 + $0x108] sm:$0xf]  ;;  %v7694_v10 = vor.u32 %v8307_v2, %v7691_v3 }
 0x28f   : > { %v7430_v58 = vor.u32 %v8242_v16, %v7427_v19  ;;  %v7627_v16 = vld [vmem:[%s10992_s14 + $0x748] sm:$0xf0] }
 0x290   : > { %4892 = vmatpush.bf16.msra.mxu0 %v6978_v20  ;;  %4918 = vmatpush.bf16.msra.mxu2 %v6982_v24  ;;  %v7113_v20 = vld [vmem:[%s10992_s14 + $0x308] sm:$0xf]  ;;  %v7307_v2 = vld [vmem:[%s10992_s14 + $0x4c8] sm:$0xf0] }
 0x291   : > { %3305 = vmatpush.bf16.msrb.mxu3 %v6678_v23  ;;  %v8122_v23 = vld [vmem:[%s10992_s14 + $0x1bc] sm:$0xf0] }
 0x292   : > { %v6914_v30 = vor.u32 %v8122_v23, %v6913_v21  ;;  %v8163_v21 = vld [vmem:[%s10992_s14 + $0x30c] sm:$0xf] }
 0x293   : > { %v7115_v23 = vld [vmem:[%s10992_s14 + $0x348] sm:$0xf0] }
 0x294   : > { %4893 = vmatpush.bf16.msra.mxu0 %v6914_v30  ;;  %v7114_v30 = vor.u32 %v8171_v32, %v7113_v20  ;;  %v7118_v33 = vor.u32 %v8163_v21, %v7115_v23 }
 0x295   : > { %3306 = vmatpush.bf16.msrb.mxu3 %v6670_v0  ;;  %v8114_v0 = vld [vmem:[%s10992_s14 + $0x184] sm:$0xf] }
 0x299   : > { %3307 = vmatpush.bf16.msrb.mxu3 %v6662_v35  ;;  %v8306_v35 = vld [vmem:[%s10992_s14 + $0x784] sm:$0xf] }
 0x29b   : > { %v2768_v39 = vpop.f32.mrf.mxu0 }
 0x29c   : > { %v2781_v41 = vpop.f32.mrf.mxu1  ;;  %v2769_v42 = vadd.f32 %v2768_v39, %v2756_v37  ;;  %v6918_v37 = vor.u32 %v8114_v0, %v6915_v63  ;;  %v7686_v39 = vor.u32 %v8306_v35, %v7683_v36  ;;  %v8234_v0 = vld [vmem:[%s10992_s14 + $0x53c] sm:$0xf0]  ;;  %v8226_v63 = vld [vmem:[%s10992_s14 + $0x504] sm:$0xf]  ;;  %v7049_v36 = vld [vmem:[%s10992_s14 + $0x288] sm:$0xf] }
 0x29d   : > { %v7363_v35 = vld [vmem:[%s10992_s14 + $0x540] sm:$0xf0] }
 0x29e   : > { %v2782_v43 = vadd.f32 %v2781_v41, %v2769_v42  ;;  %v6849_v41 = vld [vmem:[%s10992_s14 + $0x100] sm:$0xf]  ;;  %4919 = vmatpush.bf16.msra.mxu2 %v6918_v37  ;;  %v8155_v37 = vld [vmem:[%s10992_s14 + $0x2c4] sm:$0xf0] }
 0x29f   : > { %v8106_v42 = vld [vmem:[%s10992_s14 + $0x13c] sm:$0xf0] }
 0x2a3   : > { %v2794_v44 = vpop.f32.mrf.mxu2  ;;  %v2770_v47 = vpop.f32.mrf.mxu0 }
 0x2a4   : > { %v2795_v45 = vadd.f32 %v2794_v44, %v2782_v43  ;;  %v2807_v27 = vpop.f32.mrf.mxu3  ;;  %v2783_v48 = vpop.f32.mrf.mxu1  ;;  %v7617_v43 = vld [vmem:[%s10992_s14 + $0x700] sm:$0xf]  ;;  %v6850_v44 = vor.u32 %v8106_v42, %v6849_v41  ;;  %v6851_v47 = vld [vmem:[%s10992_s14 + $0x140] sm:$0xf0]  ;;  %v7051_v41 = vld [vmem:[%s10992_s14 + $0x2c8] sm:$0xf0] }
 0x2a6   : > { %v2808_v40 = vadd.f32 %v2807_v27, %v2795_v45  ;;  %v8298_v45 = vld [vmem:[%s10992_s14 + $0x73c] sm:$0xf0]  ;;  %v8098_v27 = vld [vmem:[%s10992_s14 + $0x104] sm:$0xf]  ;;  %4894 = vmatpush.bf16.msra.mxu0 %v6850_v44  ;;  %v7366_v44 = vor.u32 %v8226_v63, %v7363_v35  ;;  %v6795_v63 = vld [vmem:[%s10992_s14 + $0xc8] sm:$0xf0] }
 0x2a7   : > { %v7618_v48 = vor.u32 %v8298_v45, %v7617_v43  ;;  %v7362_v43 = vor.u32 %v8234_v0, %v7361_v26  ;;  %v7297_v45 = vld [vmem:[%s10992_s14 + $0x480] sm:$0xf]  ;;  %v7561_v26 = vld [vmem:[%s10992_s14 + $0x688] sm:$0xf] }
 0x2a8   : > { %v2814_v28 = vmax.f32 %v2808_v40, 0.0  ;;  %v6854_v40 = vor.u32 %v8098_v27, %v6851_v47  ;;  %v8218_v27 = vld [vmem:[%s10992_s14 + $0x4bc] sm:$0xf0]  ;;  %v7050_v47 = vor.u32 %v8155_v37, %v7049_v36  ;;  %v8275_v37 = vld [vmem:[%s10992_s14 + $0x68c] sm:$0xf] }
 0x2a9   : > { %4903 = vmatpush.bf16.msra.mxu1 %v7618_v48 }
 0x2aa   : > { %v2818_v29 = vpack.c.bf16 %v2814_v28, %v2814_v28  ;;  %v8290_v28 = vld [vmem:[%s10992_s14 + $0x704] sm:$0xf]  ;;  %4920 = vmatpush.bf16.msra.mxu2 %v6854_v40 }
 0x2ab   : > { %v2796_v34 = vpop.f32.mrf.mxu2  ;;  %v8210_v40 = vld [vmem:[%s10992_s14 + $0x484] sm:$0xf] }
 0x2ac   : > { %v2809_v49 = vpop.f32.mrf.mxu3  ;;  %3256 = vmatmul.bf16.vlgmr.msra.gmra.mxu3 %v2818_v29  ;;  %v6785_v34 = vld [vmem:[%s10992_s14 + $0x80] sm:$0xf] }
 0x2ad   : > { %4928 = vmatpush.bf16.msra.mxu3 %v7686_v39  ;;  %v8147_v39 = vld [vmem:[%s10992_s14 + $0x28c] sm:$0xf] }
 0x2ae   : > { %v7054_v48 = vor.u32 %v8147_v39, %v7051_v41  ;;  %v7563_v39 = vld [vmem:[%s10992_s14 + $0x6c8] sm:$0xf0] }
 0x2af   : > { %v7566_v41 = vor.u32 %v8275_v37, %v7563_v39  ;;  %v6993_v39 = vld [vmem:[%s10992_s14 + $0x210] sm:$0xf] }
 0x2bb   : > { %v3218_v51 = vpop.f32.mrf.mxu0 }
 0x2bc   : > { %v3219_v52 = vadd.f32 %v3218_v51, %v2885_v50  ;;  %v3231_v53 = vpop.f32.mrf.mxu1  ;;  %3308 = vmatmul.bf16.vlgmr.msrb.gmra.mxu3 %v2818_v29  ;;  %v7619_v29 = vld [vmem:[%s10992_s14 + $0x740] sm:$0xf0]  ;;  %v7553_v50 = vld [vmem:[%s10992_s14 + $0x680] sm:$0xf] }
 0x2bd   : > { %v7622_v49 = vor.u32 %v8290_v28, %v7619_v29  ;;  %v8282_v51 = vld [vmem:[%s10992_s14 + $0x6bc] sm:$0xf0]  ;;  %v7299_v28 = vld [vmem:[%s10992_s14 + $0x4c0] sm:$0xf0]  ;;  %v6985_v29 = vld [vmem:[%s10992_s14 + $0x208] sm:$0xf] }
 0x2be   : > { %v10989_v54 = vadd.f32 %v3231_v53, %v3219_v52  ;;  %v6786_v52 = vor.u32 %v8090_v46, %v6785_v34  ;;  %v7554_v53 = vor.u32 %v8282_v51, %v7553_v50  ;;  %v8139_v34 = vld [vmem:[%s10992_s14 + $0x244] sm:$0xf0]  ;;  %v6987_v46 = vld [vmem:[%s10992_s14 + $0x248] sm:$0xf0]  ;;  %v7298_v50 = vor.u32 %v8218_v27, %v7297_v45  ;;  %v7233_v51 = vld [vmem:[%s10992_s14 + $0x400] sm:$0xf] }
 0x2bf   : > { %4929 = vmatpush.bf16.msra.mxu3 %v7622_v49  ;;  %v8131_v49 = vld [vmem:[%s10992_s14 + $0x20c] sm:$0xf]  ;;  %v8267_v27 = vld [vmem:[%s10992_s14 + $0x644] sm:$0xf0] }
 0x2c0   : > { %4895 = vmatpush.bf16.msra.mxu0 %v6786_v52  ;;  %4904 = vmatpush.bf16.msra.mxu1 %v7554_v53  ;;  %v7302_v52 = vor.u32 %v8210_v40, %v7299_v28  ;;  %v8202_v53 = vld [vmem:[%s10992_s14 + $0x43c] sm:$0xf0] }
 0x2c3   : > { %v3220_v17 = vpop.f32.mrf.mxu0 }
 0x2c4   : > { %v3233_v55 = vpop.f32.mrf.mxu1  ;;  %v8082_v17 = vld [vmem:[%s10992_s14 + $0x84] sm:$0xf]  ;;  %4896 = vmatpush.bf16.msra.mxu0 %v6722_v4 }
 0x2c5   : > { %v6787_v55 = vld [vmem:[%s10992_s14 + $0xc0] sm:$0xf0] }
 0x2c6   : > { %v6790_v57 = vor.u32 %v8082_v17, %v6787_v55  ;;  %v8194_v17 = vld [vmem:[%s10992_s14 + $0x404] sm:$0xf] }
 0x2c7   : > { %v7235_v55 = vld [vmem:[%s10992_s14 + $0x440] sm:$0xf0] }
 0x2c8   : > { %4921 = vmatpush.bf16.msra.mxu2 %v6790_v57  ;;  %v6990_v57 = vor.u32 %v8131_v49, %v6987_v46  ;;  %v7238_v4 = vor.u32 %v8194_v17, %v7235_v55  ;;  %v7433_v46 = vld [vmem:[%s10992_s14 + $0x588] sm:$0xf] }
 0x2c9   : > { %v7369_v55 = vld [vmem:[%s10992_s14 + $0x508] sm:$0xf] }
 0x2db   : > { %v3270_v60 = vpop.f32.mrf.mxu0 }
 0x2dc   : > { %v3271_v61 = vadd.f32 %v3270_v60, %v2886_v56  ;;  %v3283_v62 = vpop.f32.mrf.mxu1  ;;  %v8274_v56 = vld [vmem:[%s10992_s14 + $0x684] sm:$0xf]  ;;  %v8266_v60 = vld [vmem:[%s10992_s14 + $0x63c] sm:$0xf0] }
 0x2dd   : > { %v7558_v59 = vor.u32 %v8274_v56, %v7555_v12  ;;  %v7490_v5 = vor.u32 %v8266_v60, %v7489_v7  ;;  %v6986_v56 = vor.u32 %v8139_v34, %v6985_v29  ;;  %v6921_v12 = vld [vmem:[%s10992_s14 + $0x188] sm:$0xf]  ;;  %v8115_v7 = vld [vmem:[%s10992_s14 + $0x18c] sm:$0xf] }
 0x2de   : > { %v10998_v1 = vadd.f32 %v3283_v62, %v3271_v61  ;;  %v8066_v61 = vld [vmem:[%s10992_s14 + $0x4] sm:$0xf]  ;;  %v6923_v60 = vld [vmem:[%s10992_s14 + $0x1c8] sm:$0xf0] }
 0x2df   : > { %v6723_v62 = vld [vmem:[%s10992_s14 + $0x40] sm:$0xf0]  ;;  %4930 = vmatpush.bf16.msra.mxu3 %v7558_v59  ;;  %4905 = vmatpush.bf16.msra.mxu1 %v7490_v5  ;;  %v8123_v59 = vld [vmem:[%s10992_s14 + $0x1c4] sm:$0xf0]  ;;  %v7690_v5 = vor.u32 %v8315_v18, %v7689_v22  ;;  %v8259_v29 = vld [vmem:[%s10992_s14 + $0x60c] sm:$0xf] }
 0x2e0   : > { %v6726_v38 = vor.u32 %v8066_v61, %v6723_v62  ;;  %v7234_v62 = vor.u32 %v8202_v53, %v7233_v51  ;;  %v7499_v34 = vld [vmem:[%s10992_s14 + $0x648] sm:$0xf0] }
 0x2e1   : > { %v7502_v49 = vor.u32 %v8259_v29, %v7499_v34  ;;  %v8243_v51 = vld [vmem:[%s10992_s14 + $0x58c] sm:$0xf]  ;;  %v7697_v29 = vld [vmem:[%s10992_s14 + $0x790] sm:$0xf] }
 0x2e2   : > { %4922 = vmatpush.bf16.msra.mxu2 %v6726_v38  ;;  %v7625_v38 = vld [vmem:[%s10992_s14 + $0x708] sm:$0xf]  ;;  %v7435_v53 = vld [vmem:[%s10992_s14 + $0x5c8] sm:$0xf0]  ;;  %v8316_v34 = vld [vmem:[%s10992_s14 + $0x7cc] sm:$0xf0] }
 0x2e3   : > { %v3272_v11 = vpop.f32.mrf.mxu0  ;;  %4931 = vmatpush.bf16.msra.mxu3 %v7494_v9  ;;  %v8299_v9 = vld [vmem:[%s10992_s14 + $0x744] sm:$0xf0]  ;;  %v7438_v17 = vor.u32 %v8243_v51, %v7435_v53  ;;  %v7371_v22 = vld [vmem:[%s10992_s14 + $0x548] sm:$0xf0]  ;;  %v8308_v51 = vld [vmem:[%s10992_s14 + $0x794] sm:$0xf]  ;;  %v7698_v53 = vor.u32 %v8316_v34, %v7697_v29 }
 0x2e4   : > { %v3285_v14 = vpop.f32.mrf.mxu1  ;;  %v7425_v11 = vld [vmem:[%s10992_s14 + $0x580] sm:$0xf]  ;;  %v7626_v19 = vor.u32 %v8299_v9, %v7625_v38 }
 0x2e5   : > { %v7178_v14 = vor.u32 %v8187_v8, %v7177_v6  ;;  %v7426_v24 = vor.u32 %v8250_v13, %v7425_v11  ;;  %v6922_v6 = vor.u32 %v8123_v59, %v6921_v12  ;;  %v6926_v8 = vor.u32 %v8115_v7, %v6923_v60  ;;  %v8107_v11 = vld [vmem:[%s10992_s14 + $0x144] sm:$0xf0]  ;;  %v8099_v13 = vld [vmem:[%s10992_s14 + $0x10c] sm:$0xf] }
 0x2e6   : > { %4967 = vmatpush.bf16.msrb.mxu2 %v7182_v15  ;;  %v8291_v15 = vld [vmem:[%s10992_s14 + $0x70c] sm:$0xf]  ;;  %v6858_v20 = vor.u32 %v8107_v11, %v6857_v31  ;;  %v7305_v59 = vld [vmem:[%s10992_s14 + $0x488] sm:$0xf]  ;;  %v7185_v11 = vld [vmem:[%s10992_s14 + $0x390] sm:$0xf] }
 0x2e7   : > { %4941 = vmatpush.bf16.msrb.mxu0 %v7178_v14  ;;  %4906 = vmatpush.bf16.msra.mxu1 %v7426_v24  ;;  %v6859_v14 = vld [vmem:[%s10992_s14 + $0x148] sm:$0xf0]  ;;  %v7630_v21 = vor.u32 %v8291_v15, %v7627_v16  ;;  %v6793_v24 = vld [vmem:[%s10992_s14 + $0x88] sm:$0xf]  ;;  %v8180_v15 = vld [vmem:[%s10992_s14 + $0x394] sm:$0xf] }
 0x2e8   : > { %4932 = vmatpush.bf16.msra.mxu3 %v7430_v58  ;;  %v6862_v32 = vor.u32 %v8099_v13, %v6859_v14  ;;  %v8091_v58 = vld [vmem:[%s10992_s14 + $0xc4] sm:$0xf0]  ;;  %v8211_v60 = vld [vmem:[%s10992_s14 + $0x48c] sm:$0xf]  ;;  %v8188_v14 = vld [vmem:[%s10992_s14 + $0x3cc] sm:$0xf0] }
 0x2e9   : > { %v6794_v0 = vor.u32 %v8091_v58, %v6793_v24  ;;  %v8219_v7 = vld [vmem:[%s10992_s14 + $0x4c4] sm:$0xf0]  ;;  %v7310_v3 = vor.u32 %v8211_v60, %v7307_v2  ;;  %v7243_v31 = vld [vmem:[%s10992_s14 + $0x448] sm:$0xf0]  ;;  %v7187_v16 = vld [vmem:[%s10992_s14 + $0x3d0] sm:$0xf0] }
 0x2ea   : > { %4968 = vmatpush.bf16.msrb.mxu2 %v7118_v33  ;;  %v8083_v33 = vld [vmem:[%s10992_s14 + $0x8c] sm:$0xf]  ;;  %v8172_v24 = vld [vmem:[%s10992_s14 + $0x34c] sm:$0xf0]  ;;  %v8164_v58 = vld [vmem:[%s10992_s14 + $0x314] sm:$0xf] }
 0x2eb   : > { %4942 = vmatpush.bf16.msrb.mxu0 %v7114_v30  ;;  %4907 = vmatpush.bf16.msra.mxu1 %v7362_v43  ;;  %v8283_v30 = vld [vmem:[%s10992_s14 + $0x6c4] sm:$0xf0]  ;;  %v6798_v36 = vor.u32 %v8083_v33, %v6795_v63  ;;  %v8156_v33 = vld [vmem:[%s10992_s14 + $0x2cc] sm:$0xf0]  ;;  %v8148_v63 = vld [vmem:[%s10992_s14 + $0x294] sm:$0xf] }
 0x2ec   : > { %4933 = vmatpush.bf16.msra.mxu3 %v7366_v44  ;;  %v7562_v35 = vor.u32 %v8283_v30, %v7561_v26  ;;  %v8075_v43 = vld [vmem:[%s10992_s14 + $0x44] sm:$0xf0]  ;;  %v7123_v26 = vld [vmem:[%s10992_s14 + $0x350] sm:$0xf0]  ;;  %v7057_v30 = vld [vmem:[%s10992_s14 + $0x290] sm:$0xf] }
 0x2ed   : > { %v7497_v44 = vld [vmem:[%s10992_s14 + $0x608] sm:$0xf]  ;;  %v7635_v60 = vld [vmem:[%s10992_s14 + $0x750] sm:$0xf0] }
 0x2ee   : > { %4969 = vmatpush.bf16.msrb.mxu2 %v7054_v48  ;;  %v6731_v48 = vld [vmem:[%s10992_s14 + $0x48] sm:$0xf0]  ;;  %v7498_v40 = vor.u32 %v8267_v27, %v7497_v44 }
 0x2ef   : > { %v11044_v25 = vpop.f32.mrf.mxu2  ;;  %4943 = vmatpush.bf16.msrb.mxu0 %v7050_v47  ;;  %4908 = vmatpush.bf16.msra.mxu1 %v7298_v50  ;;  %v8067_v47 = vld [vmem:[%s10992_s14 + $0xc] sm:$0xf]  ;;  %v8251_v50 = vld [vmem:[%s10992_s14 + $0x5c4] sm:$0xf0] }
 0x2f0   : > { %4934 = vmatpush.bf16.msra.mxu3 %v7302_v52  ;;  %v6734_v28 = vor.u32 %v8067_v47, %v6731_v48  ;;  %v7434_v52 = vor.u32 %v8251_v50, %v7433_v46  ;;  %v3245_v9 = vadd.f32 %v11044_v25, %v10989_v54  ;;  %v6931_v46 = vld [vmem:[%s10992_s14 + $0x1d0] sm:$0xf0] }
 0x2f2   : > { %4970 = vmatpush.bf16.msrb.mxu2 %v6990_v57  ;;  %v8227_v57 = vld [vmem:[%s10992_s14 + $0x50c] sm:$0xf] }
 0x2f3   : > { %4944 = vmatpush.bf16.msrb.mxu0 %v6986_v56  ;;  %4909 = vmatpush.bf16.msra.mxu1 %v7234_v62  ;;  %v8235_v56 = vld [vmem:[%s10992_s14 + $0x544] sm:$0xf0]  ;;  %v7374_v18 = vor.u32 %v8227_v57, %v7371_v22  ;;  %v7306_v62 = vor.u32 %v8219_v7, %v7305_v59  ;;  %v8300_v22 = vld [vmem:[%s10992_s14 + $0x74c] sm:$0xf0]  ;;  %v6867_v59 = vld [vmem:[%s10992_s14 + $0x150] sm:$0xf0] }
 0x2f4   : > { %4935 = vmatpush.bf16.msra.mxu3 %v7238_v4  ;;  %v7370_v12 = vor.u32 %v8235_v56, %v7369_v55  ;;  %v7241_v4 = vld [vmem:[%s10992_s14 + $0x408] sm:$0xf]  ;;  %v8108_v55 = vld [vmem:[%s10992_s14 + $0x14c] sm:$0xf0]  ;;  %v8292_v7 = vld [vmem:[%s10992_s14 + $0x714] sm:$0xf] }
 0x2f6   : > { %4971 = vmatpush.bf16.msrb.mxu2 %v6926_v8 }
 0x2f7   : > { %v3246_v42 = vpop.f32.mrf.mxu2  ;;  %4954 = vmatpush.bf16.msrb.mxu1 %v7690_v5  ;;  %4945 = vmatpush.bf16.msrb.mxu0 %v6922_v6  ;;  %v8203_v5 = vld [vmem:[%s10992_s14 + $0x444] sm:$0xf0]  ;;  %v8195_v6 = vld [vmem:[%s10992_s14 + $0x40c] sm:$0xf] }
 0x2f8   : > { %4980 = vmatpush.bf16.msrb.mxu3 %v7694_v10  ;;  %v6729_v42 = vld [vmem:[%s10992_s14 + $0x8] sm:$0xf]  ;;  %v7242_v8 = vor.u32 %v8203_v5, %v7241_v4  ;;  %v7246_v38 = vor.u32 %v8195_v6, %v7243_v31  ;;  %v6801_v4 = vld [vmem:[%s10992_s14 + $0x90] sm:$0xf] }
 0x2f9   : > { %v6730_v45 = vor.u32 %v8075_v43, %v6729_v42  ;;  %v8132_v42 = vld [vmem:[%s10992_s14 + $0x214] sm:$0xf]  ;;  %v8092_v5 = vld [vmem:[%s10992_s14 + $0xcc] sm:$0xf0] }
 0x2fa   : > { %4972 = vmatpush.bf16.msrb.mxu2 %v6862_v32  ;;  %v7190_v32 = vor.u32 %v8180_v15, %v7187_v16  ;;  %v6995_v43 = vld [vmem:[%s10992_s14 + $0x250] sm:$0xf0]  ;;  %v7569_v31 = vld [vmem:[%s10992_s14 + $0x690] sm:$0xf] }
 0x2fb   : > { %4955 = vmatpush.bf16.msrb.mxu1 %v7626_v19  ;;  %4946 = vmatpush.bf16.msrb.mxu0 %v6858_v20  ;;  %v7186_v20 = vor.u32 %v8188_v14, %v7185_v11  ;;  %v6998_v47 = vor.u32 %v8132_v42, %v6995_v43  ;;  %v8276_v11 = vld [vmem:[%s10992_s14 + $0x694] sm:$0xf]  ;;  %v6802_v14 = vor.u32 %v8092_v5, %v6801_v4  ;;  %v6737_v16 = vld [vmem:[%s10992_s14 + $0x10] sm:$0xf]  ;;  %v8133_v4 = vld [vmem:[%s10992_s14 + $0x21c] sm:$0xf] }
 0x2fc   : > { %4981 = vmatpush.bf16.msrb.mxu3 %v7630_v21  ;;  %v7121_v21 = vld [vmem:[%s10992_s14 + $0x310] sm:$0xf]  ;;  %v7003_v5 = vld [vmem:[%s10992_s14 + $0x258] sm:$0xf0] }
 0x2fd   : > { %v7122_v25 = vor.u32 %v8172_v24, %v7121_v21  ;;  %v8268_v24 = vld [vmem:[%s10992_s14 + $0x64c] sm:$0xf0] }
 0x2fe   : > { %4973 = vmatpush.bf16.msrb.mxu2 %v6798_v36  ;;  %v7058_v36 = vor.u32 %v8156_v33, %v7057_v30  ;;  %v8189_v30 = vld [vmem:[%s10992_s14 + $0x3d4] sm:$0xf0]  ;;  %v8181_v33 = vld [vmem:[%s10992_s14 + $0x39c] sm:$0xf]  ;;  %v8252_v42 = vld [vmem:[%s10992_s14 + $0x5cc] sm:$0xf0] }
 0x2ff   : > { %v11084_v61 = vpop.f32.mrf.mxu2  ;;  %4947 = vmatpush.bf16.msrb.mxu0 %v6794_v0  ;;  %4956 = vmatpush.bf16.msrb.mxu1 %v7562_v35  ;;  %v7126_v0 = vor.u32 %v8164_v58, %v7123_v26  ;;  %v7059_v35 = vld [vmem:[%s10992_s14 + $0x2d0] sm:$0xf0] }
 0x300   : > { %4982 = vmatpush.bf16.msrb.mxu3 %v7566_v41  ;;  %v7062_v37 = vor.u32 %v8148_v63, %v7059_v35  ;;  %v8140_v41 = vld [vmem:[%s10992_s14 + $0x24c] sm:$0xf0]  ;;  %v3297_v44 = vadd.f32 %v11084_v61, %v10998_v1  ;;  %v7699_v1 = vld [vmem:[%s10992_s14 + $0x7d0] sm:$0xf0]  ;;  %v7195_v63 = vld [vmem:[%s10992_s14 + $0x3d8] sm:$0xf0] }
 0x301   : > { %v6994_v27 = vor.u32 %v8140_v41, %v6993_v39  ;;  %v7702_v57 = vor.u32 %v8308_v51, %v7699_v1  ;;  %v8068_v58 = vld [vmem:[%s10992_s14 + $0x14] sm:$0xf]  ;;  %v7441_v41 = vld [vmem:[%s10992_s14 + $0x590] sm:$0xf] }
 0x302   : > { %4974 = vmatpush.bf16.msrb.mxu2 %v6734_v28  ;;  %v8124_v28 = vld [vmem:[%s10992_s14 + $0x1cc] sm:$0xf0]  ;;  %v6739_v26 = vld [vmem:[%s10992_s14 + $0x50] sm:$0xf0]  ;;  %v7442_v29 = vor.u32 %v8252_v42, %v7441_v41  ;;  %v8293_v41 = vld [vmem:[%s10992_s14 + $0x71c] sm:$0xf] }
 0x303   : > { %4948 = vmatpush.bf16.msrb.mxu0 %v6730_v45  ;;  %4957 = vmatpush.bf16.msrb.mxu1 %v7498_v40  ;;  %v6929_v40 = vld [vmem:[%s10992_s14 + $0x190] sm:$0xf]  ;;  %v8228_v1 = vld [vmem:[%s10992_s14 + $0x514] sm:$0xf]  ;;  %v7643_v42 = vld [vmem:[%s10992_s14 + $0x758] sm:$0xf0] }
 0x304   : > { %4983 = vmatpush.bf16.msrb.mxu3 %v7502_v49  ;;  %v8116_v49 = vld [vmem:[%s10992_s14 + $0x194] sm:$0xf] }
 0x305   : > { %v6934_v56 = vor.u32 %v8116_v49, %v6931_v46  ;;  %v7377_v49 = vld [vmem:[%s10992_s14 + $0x510] sm:$0xf] }
 0x306   : > { %v8236_v46 = vld [vmem:[%s10992_s14 + $0x54c] sm:$0xf0] }
 0x307   : > { %v3298_v23 = vpop.f32.mrf.mxu2  ;;  %4958 = vmatpush.bf16.msrb.mxu1 %v7434_v52  ;;  %v6930_v52 = vor.u32 %v8124_v28, %v6929_v40  ;;  %v8165_v40 = vld [vmem:[%s10992_s14 + $0x31c] sm:$0xf] }
 0x308   : > { %4984 = vmatpush.bf16.msrb.mxu3 %v7438_v17  ;;  %v6865_v17 = vld [vmem:[%s10992_s14 + $0x110] sm:$0xf]  ;;  %v7131_v28 = vld [vmem:[%s10992_s14 + $0x358] sm:$0xf0] }
 0x309   : > { %v6866_v2 = vor.u32 %v8108_v55, %v6865_v17  ;;  %v7134_v51 = vor.u32 %v8165_v40, %v7131_v28  ;;  %v8157_v17 = vld [vmem:[%s10992_s14 + $0x2d4] sm:$0xf0]  ;;  %v8149_v55 = vld [vmem:[%s10992_s14 + $0x29c] sm:$0xf]  ;;  %v7646_v40 = vor.u32 %v8293_v41, %v7643_v42 }
 0x30a   : > { %v8093_v28 = vld [vmem:[%s10992_s14 + $0xd4] sm:$0xf0]  ;;  %v7323_v42 = vld [vmem:[%s10992_s14 + $0x4d8] sm:$0xf0] }
 0x30b   : > { %4959 = vmatpush.bf16.msrb.mxu1 %v7370_v12  ;;  %v7633_v12 = vld [vmem:[%s10992_s14 + $0x710] sm:$0xf] }
 0x30c   : > { %4985 = vmatpush.bf16.msrb.mxu3 %v7374_v18  ;;  %v8100_v18 = vld [vmem:[%s10992_s14 + $0x114] sm:$0xf] }
 0x30d   : > { %v6870_v6 = vor.u32 %v8100_v18, %v6867_v59  ;;  %v8220_v18 = vld [vmem:[%s10992_s14 + $0x4cc] sm:$0xf0] }
 0x30f   : > { %4960 = vmatpush.bf16.msrb.mxu1 %v7306_v62 }
 0x310   : > { %4986 = vmatpush.bf16.msrb.mxu3 %v7310_v3  ;;  %v7634_v3 = vor.u32 %v8300_v22, %v7633_v12  ;;  %v7313_v22 = vld [vmem:[%s10992_s14 + $0x490] sm:$0xf] }
 0x313   : > { %4961 = vmatpush.bf16.msrb.mxu1 %v7242_v8  ;;  %v7638_v8 = vor.u32 %v8292_v7, %v7635_v60  ;;  %v8212_v60 = vld [vmem:[%s10992_s14 + $0x494] sm:$0xf] }
 0x314   : > { %4987 = vmatpush.bf16.msrb.mxu3 %v7246_v38  ;;  %v8284_v38 = vld [vmem:[%s10992_s14 + $0x6cc] sm:$0xf0] }
 0x315   : > { %v7570_v15 = vor.u32 %v8284_v38, %v7569_v31  ;;  %v8204_v38 = vld [vmem:[%s10992_s14 + $0x44c] sm:$0xf0] }
 0x32f   : > { %v3257_v10 = vpop.f32.mrf.mxu3 }
 0x330   : > { %v3258_v13 = vadd.f32 %v3257_v10, %v3245_v9  ;;  %v8084_v9 = vld [vmem:[%s10992_s14 + $0x94] sm:$0xf] }
 0x331   : > { %v6803_v10 = vld [vmem:[%s10992_s14 + $0xd0] sm:$0xf0] }
 0x332   : > { %v3313_v19 = vmax.f32 %v3258_v13, 0.0  ;;  %v7571_v13 = vld [vmem:[%s10992_s14 + $0x6d0] sm:$0xf0] }
 0x333   : > { %v7574_v21 = vor.u32 %v8276_v11, %v7571_v13  ;;  %v7006_v13 = vor.u32 %v8133_v4, %v7003_v5 }
 0x334   : > { %v11135_v23 = vpack.c.bf16 %v3313_v19, %v3313_v19  ;;  %v8076_v19 = vld [vmem:[%s10992_s14 + $0x4c] sm:$0xf0] }
 0x335   : > { %v6738_v35 = vor.u32 %v8076_v19, %v6737_v16  ;;  %v8317_v16 = vld [vmem:[%s10992_s14 + $0x7d4] sm:$0xf0] }
 0x336   : > { %4897 = vmatmul.bf16.vlgmr.msra.gmra.mxu0 %v11135_v23  ;;  %4923 = vmatmul.bf16.vlgmr.msra.gmra.mxu2 %v11135_v23  ;;  %v8125_v19 = vld [vmem:[%s10992_s14 + $0x1d4] sm:$0xf0] }
 0x337   : > { %4993 = vmatpush.bf16.msra.mxu0 %v7186_v20  ;;  %5019 = vmatpush.bf16.msra.mxu2 %v7190_v32  ;;  %v3259_v54 = vpop.f32.mrf.mxu3  ;;  %v7505_v20 = vld [vmem:[%s10992_s14 + $0x610] sm:$0xf]  ;;  %v6806_v32 = vor.u32 %v8084_v9, %v6803_v10  ;;  %v8196_v9 = vld [vmem:[%s10992_s14 + $0x414] sm:$0xf] }
 0x338   : > { %v8260_v54 = vld [vmem:[%s10992_s14 + $0x614] sm:$0xf] }
 0x339   : > { %v7251_v10 = vld [vmem:[%s10992_s14 + $0x450] sm:$0xf0] }
 0x33b   : > { %4994 = vmatpush.bf16.msra.mxu0 %v7122_v25  ;;  %5020 = vmatpush.bf16.msra.mxu2 %v7126_v0  ;;  %v7507_v25 = vld [vmem:[%s10992_s14 + $0x650] sm:$0xf0]  ;;  %v7193_v0 = vld [vmem:[%s10992_s14 + $0x398] sm:$0xf] }
 0x33c   : > { %v7510_v39 = vor.u32 %v8260_v54, %v7507_v25  ;;  %v7194_v43 = vor.u32 %v8189_v30, %v7193_v0  ;;  %v6873_v30 = vld [vmem:[%s10992_s14 + $0x118] sm:$0xf] }
 0x33f   : > { %4995 = vmatpush.bf16.msra.mxu0 %v7058_v36  ;;  %5021 = vmatpush.bf16.msra.mxu2 %v7062_v37  ;;  %v3309_v45 = vpop.f32.mrf.mxu3  ;;  %v7506_v36 = vor.u32 %v8268_v24, %v7505_v20  ;;  %v6742_v37 = vor.u32 %v8068_v58, %v6739_v26  ;;  %v8117_v20 = vld [vmem:[%s10992_s14 + $0x19c] sm:$0xf]  ;;  %v7254_v26 = vor.u32 %v8196_v9, %v7251_v10 }
 0x340   : > { %v3310_v48 = vadd.f32 %v3309_v45, %v3297_v44  ;;  %v7198_v44 = vor.u32 %v8181_v33, %v7195_v63  ;;  %v8244_v45 = vld [vmem:[%s10992_s14 + $0x594] sm:$0xf]  ;;  %v8309_v24 = vld [vmem:[%s10992_s14 + $0x79c] sm:$0xf]  ;;  %v7641_v33 = vld [vmem:[%s10992_s14 + $0x718] sm:$0xf] }
 0x341   : > { %v7707_v58 = vld [vmem:[%s10992_s14 + $0x7d8] sm:$0xf0]  ;;  %v8301_v63 = vld [vmem:[%s10992_s14 + $0x754] sm:$0xf0] }
 0x342   : > { %v3314_v50 = vmax.f32 %v3310_v48, 0.0  ;;  %v8173_v48 = vld [vmem:[%s10992_s14 + $0x354] sm:$0xf0]  ;;  %v7451_v10 = vld [vmem:[%s10992_s14 + $0x5d8] sm:$0xf0] }
 0x343   : > { %4996 = vmatpush.bf16.msra.mxu0 %v6994_v27  ;;  %5022 = vmatpush.bf16.msra.mxu2 %v6998_v47  ;;  %v7443_v27 = vld [vmem:[%s10992_s14 + $0x5d0] sm:$0xf0]  ;;  %v7129_v47 = vld [vmem:[%s10992_s14 + $0x318] sm:$0xf] }
 0x344   : > { %v11160_v61 = vpack.c.bf16 %v3314_v50, %v3314_v50  ;;  %v7446_v34 = vor.u32 %v8244_v45, %v7443_v27  ;;  %v7130_v50 = vor.u32 %v8173_v48, %v7129_v47  ;;  %v6809_v27 = vld [vmem:[%s10992_s14 + $0x98] sm:$0xf] }
 0x345   : > { %v7577_v47 = vld [vmem:[%s10992_s14 + $0x698] sm:$0xf] }
 0x346   : > { %4910 = vmatmul.bf16.vlgmr.msra.gmra.mxu1 %v11160_v61  ;;  %4936 = vmatmul.bf16.vlgmr.msra.gmra.mxu3 %v11160_v61  ;;  %v8285_v48 = vld [vmem:[%s10992_s14 + $0x6d4] sm:$0xf0] }
 0x347   : > { %4949 = vmatmul.bf16.vlgmr.msrb.gmra.mxu0 %v11135_v23  ;;  %4975 = vmatmul.bf16.vlgmr.msrb.gmra.mxu2 %v11135_v23  ;;  %v3311_v62 = vpop.f32.mrf.mxu3 }
 0x348   : > { %4997 = vmatpush.bf16.msra.mxu0 %v6930_v52  ;;  %5006 = vmatpush.bf16.msra.mxu1 %v7698_v53  ;;  %v7379_v52 = vld [vmem:[%s10992_s14 + $0x550] sm:$0xf0]  ;;  %v7065_v53 = vld [vmem:[%s10992_s14 + $0x298] sm:$0xf] }
 0x349   : > { %5023 = vmatpush.bf16.msra.mxu2 %v6934_v56  ;;  %5032 = vmatpush.bf16.msra.mxu3 %v7702_v57  ;;  %v7067_v56 = vld [vmem:[%s10992_s14 + $0x2d8] sm:$0xf0]  ;;  %v7378_v57 = vor.u32 %v8236_v46, %v7377_v49  ;;  %v7382_v12 = vor.u32 %v8228_v1, %v7379_v52  ;;  %v7066_v59 = vor.u32 %v8157_v17, %v7065_v53  ;;  %v7315_v62 = vld [vmem:[%s10992_s14 + $0x4d0] sm:$0xf0]  ;;  %v8077_v53 = vld [vmem:[%s10992_s14 + $0x54] sm:$0xf0] }
 0x34a   : > { %v7070_v7 = vor.u32 %v8149_v55, %v7067_v56  ;;  %v7318_v31 = vor.u32 %v8212_v60, %v7315_v62  ;;  %v8277_v49 = vld [vmem:[%s10992_s14 + $0x69c] sm:$0xf]  ;;  %v6810_v1 = vor.u32 %v8093_v28, %v6809_v27  ;;  %v7513_v17 = vld [vmem:[%s10992_s14 + $0x618] sm:$0xf]  ;;  %v8182_v62 = vld [vmem:[%s10992_s14 + $0x3a4] sm:$0xf] }
 0x34b   : > { %v7579_v46 = vld [vmem:[%s10992_s14 + $0x6d8] sm:$0xf0]  ;;  %v8269_v55 = vld [vmem:[%s10992_s14 + $0x654] sm:$0xf0]  ;;  %v7011_v27 = vld [vmem:[%s10992_s14 + $0x260] sm:$0xf0] }
 0x34c   : > { %4998 = vmatpush.bf16.msra.mxu0 %v6866_v2  ;;  %5007 = vmatpush.bf16.msra.mxu1 %v7634_v3  ;;  %v7001_v2 = vld [vmem:[%s10992_s14 + $0x218] sm:$0xf]  ;;  %v7582_v56 = vor.u32 %v8277_v49, %v7579_v46  ;;  %v7514_v60 = vor.u32 %v8269_v55, %v7513_v17  ;;  %v7259_v49 = vld [vmem:[%s10992_s14 + $0x458] sm:$0xf0]  ;;  %v6947_v17 = vld [vmem:[%s10992_s14 + $0x1e0] sm:$0xf0] }
 0x34d   : > { %5024 = vmatpush.bf16.msra.mxu2 %v6870_v6  ;;  %5033 = vmatpush.bf16.msra.mxu3 %v7638_v8  ;;  %v8141_v3 = vld [vmem:[%s10992_s14 + $0x254] sm:$0xf0]  ;;  %v7314_v6 = vor.u32 %v8220_v18, %v7313_v22  ;;  %v7249_v8 = vld [vmem:[%s10992_s14 + $0x410] sm:$0xf]  ;;  %v8261_v22 = vld [vmem:[%s10992_s14 + $0x61c] sm:$0xf] }
 0x34e   : > { %v7002_v11 = vor.u32 %v8141_v3, %v7001_v2  ;;  %v7515_v18 = vld [vmem:[%s10992_s14 + $0x658] sm:$0xf0]  ;;  %v7203_v2 = vld [vmem:[%s10992_s14 + $0x3e0] sm:$0xf0] }
 0x34f   : > { %v7518_v5 = vor.u32 %v8261_v22, %v7515_v18  ;;  %v7206_v9 = vor.u32 %v8182_v62, %v7203_v2  ;;  %v7649_v62 = vld [vmem:[%s10992_s14 + $0x720] sm:$0xf] }
 0x350   : > { %4999 = vmatpush.bf16.msra.mxu0 %v6802_v14  ;;  %5008 = vmatpush.bf16.msra.mxu1 %v7570_v15  ;;  %v6937_v14 = vld [vmem:[%s10992_s14 + $0x198] sm:$0xf] }
 0x351   : > { %5025 = vmatpush.bf16.msra.mxu2 %v6806_v32  ;;  %5034 = vmatpush.bf16.msra.mxu3 %v7574_v21  ;;  %v7705_v15 = vld [vmem:[%s10992_s14 + $0x798] sm:$0xf]  ;;  %v6939_v32 = vld [vmem:[%s10992_s14 + $0x1d8] sm:$0xf0]  ;;  %v7250_v21 = vor.u32 %v8204_v38, %v7249_v8  ;;  %v6938_v25 = vor.u32 %v8125_v19, %v6937_v14  ;;  %v8166_v14 = vld [vmem:[%s10992_s14 + $0x324] sm:$0xf] }
 0x352   : > { %v7706_v54 = vor.u32 %v8317_v16, %v7705_v15  ;;  %v6942_v0 = vor.u32 %v8117_v20, %v6939_v32  ;;  %v7449_v8 = vld [vmem:[%s10992_s14 + $0x598] sm:$0xf]  ;;  %v8245_v38 = vld [vmem:[%s10992_s14 + $0x59c] sm:$0xf]  ;;  %v7139_v15 = vld [vmem:[%s10992_s14 + $0x360] sm:$0xf0] }
 0x353   : > { %v7454_v19 = vor.u32 %v8245_v38, %v7451_v10  ;;  %v7385_v32 = vld [vmem:[%s10992_s14 + $0x518] sm:$0xf]  ;;  %v6817_v10 = vld [vmem:[%s10992_s14 + $0xa0] sm:$0xf] }
 0x354   : > { %5000 = vmatpush.bf16.msra.mxu0 %v6738_v35  ;;  %5009 = vmatpush.bf16.msra.mxu1 %v7506_v36  ;;  %v7710_v35 = vor.u32 %v8309_v24, %v7707_v58  ;;  %v8109_v36 = vld [vmem:[%s10992_s14 + $0x154] sm:$0xf0]  ;;  %v8229_v24 = vld [vmem:[%s10992_s14 + $0x51c] sm:$0xf]  ;;  %v7142_v58 = vor.u32 %v8166_v14, %v7139_v15  ;;  %v8286_v15 = vld [vmem:[%s10992_s14 + $0x6dc] sm:$0xf0] }
 0x355   : > { %5026 = vmatpush.bf16.msra.mxu2 %v6742_v37  ;;  %5035 = vmatpush.bf16.msra.mxu3 %v7510_v39  ;;  %v8101_v37 = vld [vmem:[%s10992_s14 + $0x11c] sm:$0xf] }
 0x356   : > { %4962 = vmatmul.bf16.vlgmr.msrb.gmra.mxu1 %v11160_v61  ;;  %4988 = vmatmul.bf16.vlgmr.msrb.gmra.mxu3 %v11160_v61  ;;  %v6875_v39 = vld [vmem:[%s10992_s14 + $0x158] sm:$0xf0] }
 0x357   : > { %5001 = vmatmul.bf16.vlgmr.msra.gmra.mxu0 %v11135_v23  ;;  %v6878_v45 = vor.u32 %v8101_v37, %v6875_v39  ;;  %v8221_v37 = vld [vmem:[%s10992_s14 + $0x4d4] sm:$0xf0]  ;;  %v8213_v39 = vld [vmem:[%s10992_s14 + $0x49c] sm:$0xf] }
 0x358   : > { %5045 = vmatpush.bf16.msrb.mxu0 %v7194_v43  ;;  %5010 = vmatpush.bf16.msra.mxu1 %v7442_v29  ;;  %v7642_v43 = vor.u32 %v8301_v63, %v7641_v33  ;;  %v8085_v29 = vld [vmem:[%s10992_s14 + $0x9c] sm:$0xf] }
 0x359   : > { %5071 = vmatpush.bf16.msrb.mxu2 %v7198_v44  ;;  %5036 = vmatpush.bf16.msra.mxu3 %v7446_v34  ;;  %v6874_v44 = vor.u32 %v8109_v36, %v6873_v30  ;;  %v6811_v34 = vld [vmem:[%s10992_s14 + $0xd8] sm:$0xf0]  ;;  %v7075_v30 = vld [vmem:[%s10992_s14 + $0x2e0] sm:$0xf0]  ;;  %v7321_v36 = vld [vmem:[%s10992_s14 + $0x498] sm:$0xf] }
 0x35a   : > { %5027 = vmatmul.bf16.vlgmr.msra.gmra.mxu2 %v11135_v23  ;;  %v6814_v52 = vor.u32 %v8085_v29, %v6811_v34  ;;  %v8205_v29 = vld [vmem:[%s10992_s14 + $0x454] sm:$0xf0]  ;;  %v8197_v34 = vld [vmem:[%s10992_s14 + $0x41c] sm:$0xf] }
 0x35c   : > { %5046 = vmatpush.bf16.msrb.mxu0 %v7130_v50  ;;  %5011 = vmatpush.bf16.msra.mxu1 %v7378_v57  ;;  %v7578_v50 = vor.u32 %v8285_v48, %v7577_v47  ;;  %v8069_v57 = vld [vmem:[%s10992_s14 + $0x1c] sm:$0xf]  ;;  %v7322_v47 = vor.u32 %v8221_v37, %v7321_v36  ;;  %v7257_v48 = vld [vmem:[%s10992_s14 + $0x418] sm:$0xf]  ;;  %v7523_v36 = vld [vmem:[%s10992_s14 + $0x660] sm:$0xf0] }
 0x35d   : > { %5072 = vmatpush.bf16.msrb.mxu2 %v7134_v51  ;;  %5037 = vmatpush.bf16.msra.mxu3 %v7382_v12  ;;  %v6745_v51 = vld [vmem:[%s10992_s14 + $0x18] sm:$0xf]  ;;  %v6747_v12 = vld [vmem:[%s10992_s14 + $0x58] sm:$0xf0]  ;;  %v7258_v55 = vor.u32 %v8205_v29, %v7257_v48  ;;  %v7209_v37 = vld [vmem:[%s10992_s14 + $0x3a8] sm:$0xf] }
 0x35e   : > { %v6746_v3 = vor.u32 %v8077_v53, %v6745_v51  ;;  %v6750_v4 = vor.u32 %v8069_v57, %v6747_v12  ;;  %v8126_v51 = vld [vmem:[%s10992_s14 + $0x1dc] sm:$0xf0]  ;;  %v8118_v53 = vld [vmem:[%s10992_s14 + $0x1a4] sm:$0xf]  ;;  %v7262_v12 = vor.u32 %v8197_v34, %v7259_v49  ;;  %v7145_v49 = vld [vmem:[%s10992_s14 + $0x328] sm:$0xf] }
 0x35f   : > { %v7715_v57 = vld [vmem:[%s10992_s14 + $0x7e0] sm:$0xf0]  ;;  %v7457_v48 = vld [vmem:[%s10992_s14 + $0x5a0] sm:$0xf] }
 0x360   : > { %5047 = vmatpush.bf16.msrb.mxu0 %v7066_v59  ;;  %5012 = vmatpush.bf16.msra.mxu1 %v7314_v6  ;;  %v7201_v59 = vld [vmem:[%s10992_s14 + $0x3a0] sm:$0xf]  ;;  %v7459_v34 = vld [vmem:[%s10992_s14 + $0x5e0] sm:$0xf0] }
 0x361   : > { %5073 = vmatpush.bf16.msrb.mxu2 %v7070_v7  ;;  %5038 = vmatpush.bf16.msra.mxu3 %v7318_v31  ;;  %v8190_v7 = vld [vmem:[%s10992_s14 + $0x3dc] sm:$0xf0]  ;;  %v8253_v31 = vld [vmem:[%s10992_s14 + $0x5d4] sm:$0xf0] }
 0x362   : > { %v7202_v6 = vor.u32 %v8190_v7, %v7201_v59  ;;  %v7450_v16 = vor.u32 %v8253_v31, %v7449_v8  ;;  %v6950_v59 = vor.u32 %v8118_v53, %v6947_v17  ;;  %v6881_v7 = vld [vmem:[%s10992_s14 + $0x120] sm:$0xf]  ;;  %v7651_v8 = vld [vmem:[%s10992_s14 + $0x760] sm:$0xf0] }
 0x363   : > { %v7393_v17 = vld [vmem:[%s10992_s14 + $0x520] sm:$0xf] }
 0x364   : > { %5048 = vmatpush.bf16.msrb.mxu0 %v7002_v11  ;;  %5013 = vmatpush.bf16.msra.mxu1 %v7250_v21  ;;  %v7137_v11 = vld [vmem:[%s10992_s14 + $0x320] sm:$0xf]  ;;  %v8237_v21 = vld [vmem:[%s10992_s14 + $0x554] sm:$0xf0] }
 0x365   : > { %5074 = vmatpush.bf16.msrb.mxu2 %v7006_v13  ;;  %5039 = vmatpush.bf16.msra.mxu3 %v7254_v26  ;;  %v8174_v13 = vld [vmem:[%s10992_s14 + $0x35c] sm:$0xf0]  ;;  %v7387_v26 = vld [vmem:[%s10992_s14 + $0x558] sm:$0xf0]  ;;  %v7386_v33 = vor.u32 %v8237_v21, %v7385_v32  ;;  %v7587_v32 = vld [vmem:[%s10992_s14 + $0x6e0] sm:$0xf0] }
 0x366   : > { %v7138_v20 = vor.u32 %v8174_v13, %v7137_v11  ;;  %v7390_v63 = vor.u32 %v8229_v24, %v7387_v26  ;;  %v8094_v11 = vld [vmem:[%s10992_s14 + $0xdc] sm:$0xf0] }
 0x367   : > { %5014 = vmatmul.bf16.vlgmr.msra.gmra.mxu1 %v11160_v61  ;;  %v7585_v13 = vld [vmem:[%s10992_s14 + $0x6a0] sm:$0xf]  ;;  %v6818_v21 = vor.u32 %v8094_v11, %v6817_v10  ;;  %v7019_v10 = vld [vmem:[%s10992_s14 + $0x268] sm:$0xf0] }
 0x368   : > { %5058 = vmatpush.bf16.msrb.mxu1 %v7706_v54  ;;  %5049 = vmatpush.bf16.msrb.mxu0 %v6938_v25  ;;  %v7073_v54 = vld [vmem:[%s10992_s14 + $0x2a0] sm:$0xf] }
 0x369   : > { %5075 = vmatpush.bf16.msrb.mxu2 %v6942_v0  ;;  %5084 = vmatpush.bf16.msrb.mxu3 %v7710_v35  ;;  %v8158_v25 = vld [vmem:[%s10992_s14 + $0x2dc] sm:$0xf0]  ;;  %v8150_v0 = vld [vmem:[%s10992_s14 + $0x2a4] sm:$0xf] }
 0x36a   : > { %5040 = vmatmul.bf16.vlgmr.msra.gmra.mxu3 %v11160_v61  ;;  %v7074_v35 = vor.u32 %v8158_v25, %v7073_v54  ;;  %v7078_v41 = vor.u32 %v8150_v0, %v7075_v30  ;;  %v6753_v24 = vld [vmem:[%s10992_s14 + $0x20] sm:$0xf] }
 0x36b   : > { %v8078_v54 = vld [vmem:[%s10992_s14 + $0x5c] sm:$0xf0] }
 0x36c   : > { %5059 = vmatpush.bf16.msrb.mxu1 %v7642_v43  ;;  %5050 = vmatpush.bf16.msrb.mxu0 %v6874_v44  ;;  %v7009_v43 = vld [vmem:[%s10992_s14 + $0x220] sm:$0xf] }
 0x36d   : > { %5076 = vmatpush.bf16.msrb.mxu2 %v6878_v45  ;;  %5085 = vmatpush.bf16.msrb.mxu3 %v7646_v40  ;;  %v8142_v44 = vld [vmem:[%s10992_s14 + $0x25c] sm:$0xf0]  ;;  %v8134_v45 = vld [vmem:[%s10992_s14 + $0x224] sm:$0xf]  ;;  %v7326_v40 = vor.u32 %v8213_v39, %v7323_v42  ;;  %v8191_v39 = vld [vmem:[%s10992_s14 + $0x3e4] sm:$0xf0] }
 0x36e   : > { %v7010_v28 = vor.u32 %v8142_v44, %v7009_v43  ;;  %v7014_v46 = vor.u32 %v8134_v45, %v7011_v27  ;;  %v7521_v25 = vld [vmem:[%s10992_s14 + $0x620] sm:$0xf]  ;;  %v8183_v42 = vld [vmem:[%s10992_s14 + $0x3ac] sm:$0xf] }
 0x36f   : > { %v8270_v0 = vld [vmem:[%s10992_s14 + $0x65c] sm:$0xf0]  ;;  %v7211_v43 = vld [vmem:[%s10992_s14 + $0x3e8] sm:$0xf0] }
 0x370   : > { %5060 = vmatpush.bf16.msrb.mxu1 %v7578_v50  ;;  %5051 = vmatpush.bf16.msrb.mxu0 %v6810_v1  ;;  %v6945_v50 = vld [vmem:[%s10992_s14 + $0x1a0] sm:$0xf]  ;;  %v7522_v44 = vor.u32 %v8270_v0, %v7521_v25  ;;  %v7214_v29 = vor.u32 %v8183_v42, %v7211_v43  ;;  %v6955_v25 = vld [vmem:[%s10992_s14 + $0x1e8] sm:$0xf0]  ;;  %v7657_v42 = vld [vmem:[%s10992_s14 + $0x728] sm:$0xf] }
 0x371   : > { %5077 = vmatpush.bf16.msrb.mxu2 %v6814_v52  ;;  %5086 = vmatpush.bf16.msrb.mxu3 %v7582_v56  ;;  %v7713_v1 = vld [vmem:[%s10992_s14 + $0x7a0] sm:$0xf]  ;;  %v8310_v56 = vld [vmem:[%s10992_s14 + $0x7a4] sm:$0xf]  ;;  %v6946_v22 = vor.u32 %v8126_v51, %v6945_v50  ;;  %v8167_v50 = vld [vmem:[%s10992_s14 + $0x32c] sm:$0xf] }
 0x372   : > { %v8318_v52 = vld [vmem:[%s10992_s14 + $0x7dc] sm:$0xf0]  ;;  %v7718_v2 = vor.u32 %v8310_v56, %v7715_v57  ;;  %v7147_v51 = vld [vmem:[%s10992_s14 + $0x368] sm:$0xf0]  ;;  %v8230_v56 = vld [vmem:[%s10992_s14 + $0x524] sm:$0xf] }
 0x373   : > { %v7714_v18 = vor.u32 %v8318_v52, %v7713_v1  ;;  %v7150_v57 = vor.u32 %v8167_v50, %v7147_v51  ;;  %v8287_v51 = vld [vmem:[%s10992_s14 + $0x6e4] sm:$0xf0] }
 0x374   : > { %5061 = vmatpush.bf16.msrb.mxu1 %v7514_v60  ;;  %5052 = vmatpush.bf16.msrb.mxu0 %v6746_v3  ;;  %v8110_v60 = vld [vmem:[%s10992_s14 + $0x15c] sm:$0xf0] }
 0x375   : > { %5078 = vmatpush.bf16.msrb.mxu2 %v6750_v4  ;;  %5087 = vmatpush.bf16.msrb.mxu3 %v7518_v5  ;;  %v8302_v3 = vld [vmem:[%s10992_s14 + $0x75c] sm:$0xf0]  ;;  %v8102_v4 = vld [vmem:[%s10992_s14 + $0x124] sm:$0xf]  ;;  %v6882_v31 = vor.u32 %v8110_v60, %v6881_v7  ;;  %v7083_v7 = vld [vmem:[%s10992_s14 + $0x2e8] sm:$0xf0] }
 0x376   : > { %v6883_v5 = vld [vmem:[%s10992_s14 + $0x160] sm:$0xf0]  ;;  %v7650_v38 = vor.u32 %v8302_v3, %v7649_v62  ;;  %v7329_v3 = vld [vmem:[%s10992_s14 + $0x4a0] sm:$0xf] }
 0x377   : > { %5053 = vmatmul.bf16.vlgmr.msrb.gmra.mxu0 %v11135_v23 }
 0x378   : > { %5097 = vmatpush.bf16.msra.mxu0 %v7202_v6  ;;  %5079 = vmatmul.bf16.vlgmr.msrb.gmra.mxu2 %v11135_v23  ;;  %v8294_v6 = vld [vmem:[%s10992_s14 + $0x724] sm:$0xf] }
 0x379   : > { %5123 = vmatpush.bf16.msra.mxu2 %v7206_v9  ;;  %5062 = vmatpush.bf16.msrb.mxu1 %v7450_v16  ;;  %v6886_v9 = vor.u32 %v8102_v4, %v6883_v5  ;;  %v7654_v14 = vor.u32 %v8294_v6, %v7651_v8  ;;  %v8086_v16 = vld [vmem:[%s10992_s14 + $0xa4] sm:$0xf]  ;;  %v8222_v4 = vld [vmem:[%s10992_s14 + $0x4dc] sm:$0xf0] }
 0x37a   : > { %5088 = vmatpush.bf16.msrb.mxu3 %v7454_v19  ;;  %v6819_v19 = vld [vmem:[%s10992_s14 + $0xe0] sm:$0xf0]  ;;  %v7330_v11 = vor.u32 %v8222_v4, %v7329_v3  ;;  %v7531_v3 = vld [vmem:[%s10992_s14 + $0x668] sm:$0xf0]  ;;  %v7217_v4 = vld [vmem:[%s10992_s14 + $0x3b0] sm:$0xf] }
 0x37b   : > { %v6822_v26 = vor.u32 %v8086_v16, %v6819_v19  ;;  %v8214_v5 = vld [vmem:[%s10992_s14 + $0x4a4] sm:$0xf]  ;;  %v8206_v16 = vld [vmem:[%s10992_s14 + $0x45c] sm:$0xf0] }
 0x37c   : > { %5098 = vmatpush.bf16.msra.mxu0 %v7138_v20  ;;  %v8278_v20 = vld [vmem:[%s10992_s14 + $0x6a4] sm:$0xf] }
 0x37d   : > { %5124 = vmatpush.bf16.msra.mxu2 %v7142_v58  ;;  %5063 = vmatpush.bf16.msrb.mxu1 %v7386_v33  ;;  %v7586_v58 = vor.u32 %v8286_v15, %v7585_v13  ;;  %v7590_v30 = vor.u32 %v8278_v20, %v7587_v32  ;;  %v8070_v33 = vld [vmem:[%s10992_s14 + $0x24] sm:$0xf]  ;;  %v7265_v13 = vld [vmem:[%s10992_s14 + $0x420] sm:$0xf] }
 0x37e   : > { %5089 = vmatpush.bf16.msrb.mxu3 %v7390_v63  ;;  %v6755_v63 = vld [vmem:[%s10992_s14 + $0x60] sm:$0xf0]  ;;  %v7266_v0 = vor.u32 %v8206_v16, %v7265_v13  ;;  %v7465_v13 = vld [vmem:[%s10992_s14 + $0x5a8] sm:$0xf] }
 0x37f   : > { %v6758_v45 = vor.u32 %v8070_v33, %v6755_v63  ;;  %v7331_v8 = vld [vmem:[%s10992_s14 + $0x4e0] sm:$0xf0]  ;;  %v7723_v33 = vld [vmem:[%s10992_s14 + $0x7e8] sm:$0xf0] }
 0x380   : > { %5099 = vmatpush.bf16.msra.mxu0 %v7074_v35  ;;  %v8262_v35 = vld [vmem:[%s10992_s14 + $0x624] sm:$0xf] }
 0x381   : > { %5125 = vmatpush.bf16.msra.mxu2 %v7078_v41  ;;  %5064 = vmatpush.bf16.msrb.mxu1 %v7322_v47  ;;  %v6754_v41 = vor.u32 %v8078_v54, %v6753_v24  ;;  %v7526_v27 = vor.u32 %v8262_v35, %v7523_v36  ;;  %v7210_v47 = vor.u32 %v8191_v39, %v7209_v37  ;;  %v8198_v19 = vld [vmem:[%s10992_s14 + $0x424] sm:$0xf]  ;;  %v8127_v24 = vld [vmem:[%s10992_s14 + $0x1e4] sm:$0xf0]  ;;  %v8119_v54 = vld [vmem:[%s10992_s14 + $0x1ac] sm:$0xf] }
 0x382   : > { %5090 = vmatpush.bf16.msrb.mxu3 %v7326_v40  ;;  %v8254_v40 = vld [vmem:[%s10992_s14 + $0x5dc] sm:$0xf0]  ;;  %v7267_v20 = vld [vmem:[%s10992_s14 + $0x460] sm:$0xf0]  ;;  %v6958_v37 = vor.u32 %v8119_v54, %v6955_v25  ;;  %v6889_v39 = vld [vmem:[%s10992_s14 + $0x128] sm:$0xf] }
 0x383   : > { %v7458_v1 = vor.u32 %v8254_v40, %v7457_v48  ;;  %v7270_v63 = vor.u32 %v8198_v19, %v7267_v20  ;;  %v7659_v48 = vld [vmem:[%s10992_s14 + $0x768] sm:$0xf0]  ;;  %v7153_v20 = vld [vmem:[%s10992_s14 + $0x330] sm:$0xf]  ;;  %v7401_v25 = vld [vmem:[%s10992_s14 + $0x528] sm:$0xf] }
 0x384   : > { %5100 = vmatpush.bf16.msra.mxu0 %v7010_v28  ;;  %v8246_v28 = vld [vmem:[%s10992_s14 + $0x5a4] sm:$0xf]  ;;  %v7467_v19 = vld [vmem:[%s10992_s14 + $0x5e8] sm:$0xf0] }
 0x385   : > { %5126 = vmatpush.bf16.msra.mxu2 %v7014_v46  ;;  %5065 = vmatpush.bf16.msrb.mxu1 %v7258_v55  ;;  %v8175_v46 = vld [vmem:[%s10992_s14 + $0x364] sm:$0xf0]  ;;  %v7462_v52 = vor.u32 %v8246_v28, %v7459_v34  ;;  %v8238_v55 = vld [vmem:[%s10992_s14 + $0x55c] sm:$0xf0] }
 0x386   : > { %5091 = vmatpush.bf16.msrb.mxu3 %v7262_v12  ;;  %v7146_v53 = vor.u32 %v8175_v46, %v7145_v49  ;;  %v7395_v12 = vld [vmem:[%s10992_s14 + $0x560] sm:$0xf0]  ;;  %v7394_v60 = vor.u32 %v8238_v55, %v7393_v17  ;;  %v6825_v34 = vld [vmem:[%s10992_s14 + $0xa8] sm:$0xf]  ;;  %v7595_v17 = vld [vmem:[%s10992_s14 + $0x6e8] sm:$0xf0] }
 0x387   : > { %v7398_v62 = vor.u32 %v8230_v56, %v7395_v12  ;;  %v8095_v49 = vld [vmem:[%s10992_s14 + $0xe4] sm:$0xf0] }
 0x388   : > { %5101 = vmatpush.bf16.msra.mxu0 %v6946_v22  ;;  %5066 = vmatmul.bf16.vlgmr.msrb.gmra.mxu1 %v11160_v61  ;;  %v7081_v22 = vld [vmem:[%s10992_s14 + $0x2a8] sm:$0xf]  ;;  %v6826_v55 = vor.u32 %v8095_v49, %v6825_v34  ;;  %v8136_v34 = vld [vmem:[%s10992_s14 + $0x234] sm:$0xf] }
 0x389   : > { %5110 = vmatpush.bf16.msra.mxu1 %v7714_v18  ;;  %5127 = vmatpush.bf16.msra.mxu2 %v6950_v59  ;;  %v8159_v18 = vld [vmem:[%s10992_s14 + $0x2e4] sm:$0xf0]  ;;  %v8151_v59 = vld [vmem:[%s10992_s14 + $0x2ac] sm:$0xf]  ;;  %v7027_v49 = vld [vmem:[%s10992_s14 + $0x270] sm:$0xf0] }
 0x38a   : > { %5136 = vmatpush.bf16.msra.mxu3 %v7718_v2  ;;  %v7082_v2 = vor.u32 %v8159_v18, %v7081_v22  ;;  %v7086_v6 = vor.u32 %v8151_v59, %v7083_v7  ;;  %v7593_v46 = vld [vmem:[%s10992_s14 + $0x6a8] sm:$0xf] }
 0x38b   : > { %5092 = vmatmul.bf16.vlgmr.msrb.gmra.mxu3 %v11160_v61  ;;  %v6761_v56 = vld [vmem:[%s10992_s14 + $0x28] sm:$0xf] }
 0x38c   : > { %5102 = vmatpush.bf16.msra.mxu0 %v6882_v31  ;;  %v7017_v31 = vld [vmem:[%s10992_s14 + $0x228] sm:$0xf] }
 0x38d   : > { %5111 = vmatpush.bf16.msra.mxu1 %v7650_v38  ;;  %5128 = vmatpush.bf16.msra.mxu2 %v6886_v9  ;;  %v8143_v38 = vld [vmem:[%s10992_s14 + $0x264] sm:$0xf0]  ;;  %v8135_v9 = vld [vmem:[%s10992_s14 + $0x22c] sm:$0xf] }
 0x38e   : > { %5137 = vmatpush.bf16.msra.mxu3 %v7654_v14  ;;  %v7334_v14 = vor.u32 %v8214_v5, %v7331_v8  ;;  %v7018_v15 = vor.u32 %v8143_v38, %v7017_v31  ;;  %v7022_v32 = vor.u32 %v8135_v9, %v7019_v10  ;;  %v8079_v22 = vld [vmem:[%s10992_s14 + $0x64] sm:$0xf0]  ;;  %v8192_v5 = vld [vmem:[%s10992_s14 + $0x3ec] sm:$0xf0]  ;;  %v8184_v8 = vld [vmem:[%s10992_s14 + $0x3b4] sm:$0xf] }
 0x38f   : > { %v7529_v18 = vld [vmem:[%s10992_s14 + $0x628] sm:$0xf]  ;;  %v7219_v31 = vld [vmem:[%s10992_s14 + $0x3f0] sm:$0xf0] }
 0x390   : > { %5103 = vmatpush.bf16.msra.mxu0 %v6818_v21  ;;  %v6953_v21 = vld [vmem:[%s10992_s14 + $0x1a8] sm:$0xf]  ;;  %v7222_v16 = vor.u32 %v8184_v8, %v7219_v31  ;;  %v6897_v31 = vld [vmem:[%s10992_s14 + $0x130] sm:$0xf] }
 0x391   : > { %5112 = vmatpush.bf16.msra.mxu1 %v7586_v58  ;;  %5129 = vmatpush.bf16.msra.mxu2 %v6822_v26  ;;  %v7721_v58 = vld [vmem:[%s10992_s14 + $0x7a8] sm:$0xf]  ;;  %v6954_v35 = vor.u32 %v8127_v24, %v6953_v21  ;;  %v8168_v21 = vld [vmem:[%s10992_s14 + $0x334] sm:$0xf] }
 0x392   : > { %5138 = vmatpush.bf16.msra.mxu3 %v7590_v30  ;;  %v8319_v26 = vld [vmem:[%s10992_s14 + $0x7e4] sm:$0xf0]  ;;  %v8311_v30 = vld [vmem:[%s10992_s14 + $0x7ac] sm:$0xf]  ;;  %v7155_v24 = vld [vmem:[%s10992_s14 + $0x370] sm:$0xf0] }
 0x393   : > { %v7722_v36 = vor.u32 %v8319_v26, %v7721_v58  ;;  %v7726_v43 = vor.u32 %v8311_v30, %v7723_v33  ;;  %v8271_v59 = vld [vmem:[%s10992_s14 + $0x664] sm:$0xf0]  ;;  %v8231_v30 = vld [vmem:[%s10992_s14 + $0x52c] sm:$0xf]  ;;  %v7158_v33 = vor.u32 %v8168_v21, %v7155_v24  ;;  %v6833_v21 = vld [vmem:[%s10992_s14 + $0xb0] sm:$0xf] }
 0x394   : > { %5104 = vmatpush.bf16.msra.mxu0 %v6754_v41  ;;  %v8111_v41 = vld [vmem:[%s10992_s14 + $0x164] sm:$0xf0]  ;;  %v7530_v38 = vor.u32 %v8271_v59, %v7529_v18  ;;  %v8320_v18 = vld [vmem:[%s10992_s14 + $0x7ec] sm:$0xf0]  ;;  %v8120_v59 = vld [vmem:[%s10992_s14 + $0x1b4] sm:$0xf] }
 0x395   : > { %5113 = vmatpush.bf16.msra.mxu1 %v7522_v44  ;;  %5130 = vmatpush.bf16.msra.mxu2 %v6758_v45  ;;  %v8303_v44 = vld [vmem:[%s10992_s14 + $0x764] sm:$0xf0]  ;;  %v8103_v45 = vld [vmem:[%s10992_s14 + $0x12c] sm:$0xf]  ;;  %v6890_v40 = vor.u32 %v8111_v41, %v6889_v39  ;;  %v7091_v39 = vld [vmem:[%s10992_s14 + $0x2f0] sm:$0xf0] }
 0x396   : > { %5139 = vmatpush.bf16.msra.mxu3 %v7526_v27  ;;  %v6891_v27 = vld [vmem:[%s10992_s14 + $0x168] sm:$0xf0]  ;;  %v7658_v28 = vor.u32 %v8303_v44, %v7657_v42  ;;  %v8096_v24 = vld [vmem:[%s10992_s14 + $0xec] sm:$0xf0] }
 0x397   : > { %5105 = vmatmul.bf16.vlgmr.msra.gmra.mxu0 %v11135_v23 }
 0x398   : > { %5149 = vmatpush.bf16.msrb.mxu0 %v7210_v47  ;;  %5131 = vmatmul.bf16.vlgmr.msra.gmra.mxu2 %v11135_v23  ;;  %v8295_v47 = vld [vmem:[%s10992_s14 + $0x72c] sm:$0xf] }
 0x399   : > { %5175 = vmatpush.bf16.msrb.mxu2 %v7214_v29  ;;  %5114 = vmatpush.bf16.msra.mxu1 %v7458_v1  ;;  %v6894_v29 = vor.u32 %v8103_v45, %v6891_v27  ;;  %v7662_v50 = vor.u32 %v8295_v47, %v7659_v48  ;;  %v8087_v1 = vld [vmem:[%s10992_s14 + $0xac] sm:$0xf]  ;;  %v7337_v45 = vld [vmem:[%s10992_s14 + $0x4a8] sm:$0xf] }
 0x39a   : > { %5140 = vmatpush.bf16.msra.mxu3 %v7462_v52  ;;  %v6827_v52 = vld [vmem:[%s10992_s14 + $0xe8] sm:$0xf0]  ;;  %v8223_v27 = vld [vmem:[%s10992_s14 + $0x4e4] sm:$0xf0] }
 0x39b   : > { %v6830_v12 = vor.u32 %v8087_v1, %v6827_v52  ;;  %v8215_v47 = vld [vmem:[%s10992_s14 + $0x4ac] sm:$0xf]  ;;  %v8207_v52 = vld [vmem:[%s10992_s14 + $0x464] sm:$0xf0] }
 0x39c   : > { %5150 = vmatpush.bf16.msrb.mxu0 %v7146_v53  ;;  %v8279_v53 = vld [vmem:[%s10992_s14 + $0x6ac] sm:$0xf] }
 0x39d   : > { %5176 = vmatpush.bf16.msrb.mxu2 %v7150_v57  ;;  %5115 = vmatpush.bf16.msra.mxu1 %v7394_v60  ;;  %v7594_v57 = vor.u32 %v8287_v51, %v7593_v46  ;;  %v7598_v7 = vor.u32 %v8279_v53, %v7595_v17  ;;  %v8071_v60 = vld [vmem:[%s10992_s14 + $0x2c] sm:$0xf]  ;;  %v7338_v46 = vor.u32 %v8223_v27, %v7337_v45  ;;  %v7537_v45 = vld [vmem:[%s10992_s14 + $0x630] sm:$0xf] }
 0x39e   : > { %5141 = vmatpush.bf16.msra.mxu3 %v7398_v62  ;;  %v6763_v62 = vld [vmem:[%s10992_s14 + $0x68] sm:$0xf0]  ;;  %v8272_v27 = vld [vmem:[%s10992_s14 + $0x66c] sm:$0xf0] }
 0x39f   : > { %v6766_v9 = vor.u32 %v8071_v60, %v6763_v62  ;;  %v8199_v53 = vld [vmem:[%s10992_s14 + $0x42c] sm:$0xf]  ;;  %v8312_v62 = vld [vmem:[%s10992_s14 + $0x7b4] sm:$0xf] }
 0x3a0   : > { %5151 = vmatpush.bf16.msrb.mxu0 %v7082_v2  ;;  %v8263_v2 = vld [vmem:[%s10992_s14 + $0x62c] sm:$0xf] }
 0x3a1   : > { %5177 = vmatpush.bf16.msrb.mxu2 %v7086_v6  ;;  %5116 = vmatpush.bf16.msra.mxu1 %v7330_v11  ;;  %v6762_v6 = vor.u32 %v8079_v22, %v6761_v56  ;;  %v7534_v10 = vor.u32 %v8263_v2, %v7531_v3  ;;  %v7218_v11 = vor.u32 %v8192_v5, %v7217_v4  ;;  %v7275_v17 = vld [vmem:[%s10992_s14 + $0x468] sm:$0xf0]  ;;  %v6961_v56 = vld [vmem:[%s10992_s14 + $0x1b0] sm:$0xf]  ;;  %v7731_v2 = vld [vmem:[%s10992_s14 + $0x7f0] sm:$0xf0] }
 0x3a2   : > { %5142 = vmatpush.bf16.msra.mxu3 %v7334_v14  ;;  %v8255_v14 = vld [vmem:[%s10992_s14 + $0x5e4] sm:$0xf0]  ;;  %v7278_v3 = vor.u32 %v8199_v53, %v7275_v17 }
 0x3a3   : > { %v7466_v58 = vor.u32 %v8255_v14, %v7465_v13  ;;  %v8104_v13 = vld [vmem:[%s10992_s14 + $0x134] sm:$0xf] }
 0x3a4   : > { %5152 = vmatpush.bf16.msrb.mxu0 %v7018_v15  ;;  %v8247_v15 = vld [vmem:[%s10992_s14 + $0x5ac] sm:$0xf]  ;;  %v6899_v14 = vld [vmem:[%s10992_s14 + $0x170] sm:$0xf0] }
 0x3a5   : > { %5178 = vmatpush.bf16.msrb.mxu2 %v7022_v32  ;;  %5117 = vmatpush.bf16.msra.mxu1 %v7266_v0  ;;  %v8176_v32 = vld [vmem:[%s10992_s14 + $0x36c] sm:$0xf0]  ;;  %v7470_v26 = vor.u32 %v8247_v15, %v7467_v19  ;;  %v8239_v0 = vld [vmem:[%s10992_s14 + $0x564] sm:$0xf0]  ;;  %v8296_v15 = vld [vmem:[%s10992_s14 + $0x734] sm:$0xf] }
 0x3a6   : > { %5143 = vmatpush.bf16.msra.mxu3 %v7270_v63  ;;  %v7154_v54 = vor.u32 %v8176_v32, %v7153_v20  ;;  %v7403_v63 = vld [vmem:[%s10992_s14 + $0x568] sm:$0xf0]  ;;  %v7402_v41 = vor.u32 %v8239_v0, %v7401_v25  ;;  %v6902_v32 = vor.u32 %v8104_v13, %v6899_v14  ;;  %v8288_v25 = vld [vmem:[%s10992_s14 + $0x6ec] sm:$0xf0]  ;;  %v8088_v0 = vld [vmem:[%s10992_s14 + $0xb4] sm:$0xf] }
 0x3a7   : > { %v7406_v42 = vor.u32 %v8231_v30, %v7403_v63  ;;  %v6835_v30 = vld [vmem:[%s10992_s14 + $0xf0] sm:$0xf0]  ;;  %v7097_v14 = vld [vmem:[%s10992_s14 + $0x2b8] sm:$0xf] }
 0x3a8   : > { %5153 = vmatpush.bf16.msrb.mxu0 %v6954_v35  ;;  %5118 = vmatmul.bf16.vlgmr.msra.gmra.mxu1 %v11160_v61  ;;  %v7089_v35 = vld [vmem:[%s10992_s14 + $0x2b0] sm:$0xf]  ;;  %v7603_v63 = vld [vmem:[%s10992_s14 + $0x6f0] sm:$0xf0] }
 0x3a9   : > { %5162 = vmatpush.bf16.msrb.mxu1 %v7722_v36  ;;  %5179 = vmatpush.bf16.msrb.mxu2 %v6958_v37  ;;  %v8160_v36 = vld [vmem:[%s10992_s14 + $0x2ec] sm:$0xf0]  ;;  %v8152_v37 = vld [vmem:[%s10992_s14 + $0x2b4] sm:$0xf] }
 0x3aa   : > { %5188 = vmatpush.bf16.msrb.mxu3 %v7726_v43  ;;  %v7090_v43 = vor.u32 %v8160_v36, %v7089_v35  ;;  %v7094_v48 = vor.u32 %v8152_v37, %v7091_v39  ;;  %v6834_v35 = vor.u32 %v8096_v24, %v6833_v21  ;;  %v6769_v37 = vld [vmem:[%s10992_s14 + $0x30] sm:$0xf]  ;;  %v7411_v13 = vld [vmem:[%s10992_s14 + $0x570] sm:$0xf0] }
 0x3ab   : > { %5144 = vmatmul.bf16.vlgmr.msra.gmra.mxu3 %v11160_v61 }
 0x3ac   : > { %5154 = vmatpush.bf16.msrb.mxu0 %v6890_v40  ;;  %v7339_v40 = vld [vmem:[%s10992_s14 + $0x4e8] sm:$0xf0] }
 0x3ad   : > { %5163 = vmatpush.bf16.msrb.mxu1 %v7658_v28  ;;  %5180 = vmatpush.bf16.msrb.mxu2 %v6894_v29  ;;  %v7025_v28 = vld [vmem:[%s10992_s14 + $0x230] sm:$0xf]  ;;  %v7342_v51 = vor.u32 %v8215_v47, %v7339_v40  ;;  %v6771_v40 = vld [vmem:[%s10992_s14 + $0x70] sm:$0xf0] }
 0x3ae   : > { %5189 = vmatpush.bf16.msrb.mxu3 %v7662_v50  ;;  %v8144_v29 = vld [vmem:[%s10992_s14 + $0x26c] sm:$0xf0]  ;;  %v7273_v50 = vld [vmem:[%s10992_s14 + $0x428] sm:$0xf] }
 0x3af   : > { %v7026_v1 = vor.u32 %v8144_v29, %v7025_v28  ;;  %v7274_v60 = vor.u32 %v8207_v52, %v7273_v50  ;;  %v8264_v28 = vld [vmem:[%s10992_s14 + $0x634] sm:$0xf]  ;;  %v8185_v50 = vld [vmem:[%s10992_s14 + $0x3bc] sm:$0xf] }
 0x3b0   : > { %5155 = vmatpush.bf16.msrb.mxu0 %v6826_v55  ;;  %v7030_v55 = vor.u32 %v8136_v34, %v7027_v49  ;;  %v7539_v29 = vld [vmem:[%s10992_s14 + $0x670] sm:$0xf0]  ;;  %v7225_v34 = vld [vmem:[%s10992_s14 + $0x3b8] sm:$0xf] }
 0x3b1   : > { %5164 = vmatpush.bf16.msrb.mxu1 %v7594_v57  ;;  %5181 = vmatpush.bf16.msrb.mxu2 %v6830_v12  ;;  %v8128_v57 = vld [vmem:[%s10992_s14 + $0x1ec] sm:$0xf0]  ;;  %v8193_v49 = vld [vmem:[%s10992_s14 + $0x3f4] sm:$0xf0]  ;;  %v7542_v53 = vor.u32 %v8264_v28, %v7539_v29 }
 0x3b2   : > { %5190 = vmatpush.bf16.msrb.mxu3 %v7598_v7  ;;  %v7729_v12 = vld [vmem:[%s10992_s14 + $0x7b0] sm:$0xf]  ;;  %v6963_v7 = vld [vmem:[%s10992_s14 + $0x1f0] sm:$0xf0]  ;;  %v6962_v4 = vor.u32 %v8128_v57, %v6961_v56  ;;  %v7226_v17 = vor.u32 %v8193_v49, %v7225_v34 }
 0x3b3   : > { %v11418_v44 = vpop.f32.mrf.mxu0  ;;  %v6966_v8 = vor.u32 %v8120_v59, %v6963_v7  ;;  %v7473_v56 = vld [vmem:[%s10992_s14 + $0x5b0] sm:$0xf]  ;;  %v7475_v7 = vld [vmem:[%s10992_s14 + $0x5f0] sm:$0xf0] }
 0x3b4   : > { %5156 = vmatpush.bf16.msrb.mxu0 %v6762_v6  ;;  %v7730_v6 = vor.u32 %v8320_v18, %v7729_v12  ;;  %v8256_v57 = vld [vmem:[%s10992_s14 + $0x5ec] sm:$0xf0]  ;;  %v8248_v12 = vld [vmem:[%s10992_s14 + $0x5b4] sm:$0xf] }
 0x3b5   : > { %5165 = vmatpush.bf16.msrb.mxu1 %v7530_v38  ;;  %5182 = vmatpush.bf16.msrb.mxu2 %v6766_v9  ;;  %v8112_v38 = vld [vmem:[%s10992_s14 + $0x16c] sm:$0xf0] }
 0x3b6   : > { %5191 = vmatpush.bf16.msrb.mxu3 %v7534_v10  ;;  %v7665_v9 = vld [vmem:[%s10992_s14 + $0x730] sm:$0xf]  ;;  %v7734_v10 = vor.u32 %v8312_v62, %v7731_v2  ;;  %v6898_v19 = vor.u32 %v8112_v38, %v6897_v31  ;;  %v8177_v62 = vld [vmem:[%s10992_s14 + $0x374] sm:$0xf0] }
 0x3b7   : > { %5157 = vmatmul.bf16.vlgmr.msrb.gmra.mxu0 %v11135_v23  ;;  %v7409_v38 = vld [vmem:[%s10992_s14 + $0x530] sm:$0xf] }
 0x3b8   : > { %5201 = vmatpush.bf16.msra.mxu0 %v7218_v11  ;;  %5183 = vmatmul.bf16.vlgmr.msrb.gmra.mxu2 %v11135_v23  ;;  %v8304_v11 = vld [vmem:[%s10992_s14 + $0x76c] sm:$0xf0] }
 0x3b9   : > { %5227 = vmatpush.bf16.msra.mxu2 %v7222_v16  ;;  %5166 = vmatpush.bf16.msrb.mxu1 %v7466_v58  ;;  %v11435_v22 = vpop.f32.mrf.mxu2  ;;  %v7667_v16 = vld [vmem:[%s10992_s14 + $0x770] sm:$0xf0]  ;;  %v7666_v20 = vor.u32 %v8304_v11, %v7665_v9  ;;  %v7601_v58 = vld [vmem:[%s10992_s14 + $0x6b0] sm:$0xf] }
 0x3ba   : > { %5192 = vmatpush.bf16.msrb.mxu3 %v7470_v26  ;;  %v7670_v26 = vor.u32 %v8296_v15, %v7667_v16  ;;  %v7602_v39 = vor.u32 %v8288_v25, %v7601_v58  ;;  %v8240_v9 = vld [vmem:[%s10992_s14 + $0x56c] sm:$0xf0]  ;;  %v8161_v15 = vld [vmem:[%s10992_s14 + $0x2f4] sm:$0xf0] }
 0x3bb   : > { %v4900_v5 = vpop.f32.mrf.mxu0  ;;  %v11512_v16 = vld [vmem:[%s11502_s15] sm:$0xff]  ;;  %v7410_v21 = vor.u32 %v8240_v9, %v7409_v38  ;;  %v7098_v58 = vor.u32 %v8161_v15, %v7097_v14  ;;  %v8224_v25 = vld [vmem:[%s10992_s14 + $0x4ec] sm:$0xf0] }
 0x3bc   : > { %5202 = vmatpush.bf16.msra.mxu0 %v7154_v54  ;;  %v7474_v5 = vor.u32 %v8256_v57, %v7473_v56  ;;  %v8321_v57 = vld [vmem:[%s10992_s14 + $0x7f4] sm:$0xf0]  ;;  %v8105_v14 = vld [vmem:[%s10992_s14 + $0x13c] sm:$0xf] }
 0x3bd   : > { %5228 = vmatpush.bf16.msra.mxu2 %v7158_v33  ;;  %5167 = vmatpush.bf16.msrb.mxu1 %v7402_v41  ;;  %v8280_v33 = vld [vmem:[%s10992_s14 + $0x6b4] sm:$0xf]  ;;  %v6838_v41 = vor.u32 %v8088_v0, %v6835_v30  ;;  %v7673_v38 = vld [vmem:[%s10992_s14 + $0x738] sm:$0xf]  ;;  %v6907_v15 = vld [vmem:[%s10992_s14 + $0x178] sm:$0xf0] }
 0x3be   : > { %5193 = vmatpush.bf16.msrb.mxu3 %v7406_v42  ;;  %v7606_v47 = vor.u32 %v8280_v33, %v7603_v63  ;;  %v8216_v0 = vld [vmem:[%s10992_s14 + $0x4b4] sm:$0xf]  ;;  %v8305_v9 = vld [vmem:[%s10992_s14 + $0x774] sm:$0xf0] }
 0x3bf   : > { %v7347_v63 = vld [vmem:[%s10992_s14 + $0x4f0] sm:$0xf0] }
 0x3c0   : > { %5203 = vmatpush.bf16.msra.mxu0 %v7090_v43  ;;  %v8080_v43 = vld [vmem:[%s10992_s14 + $0x6c] sm:$0xf0]  ;;  %v7350_v29 = vor.u32 %v8216_v0, %v7347_v63  ;;  %v6841_v0 = vld [vmem:[%s10992_s14 + $0xb8] sm:$0xf] }
 0x3c1   : > { %5229 = vmatpush.bf16.msra.mxu2 %v7094_v48  ;;  %5168 = vmatpush.bf16.msrb.mxu1 %v7338_v46  ;;  %v4926_v54 = vpop.f32.mrf.mxu2  ;;  %v8072_v48 = vld [vmem:[%s10992_s14 + $0x34] sm:$0xf]  ;;  %v6770_v46 = vor.u32 %v8080_v43, %v6769_v37  ;;  %v8145_v37 = vld [vmem:[%s10992_s14 + $0x274] sm:$0xf0]  ;;  %v7035_v43 = vld [vmem:[%s10992_s14 + $0x278] sm:$0xf0] }
 0x3c2   : > { %5194 = vmatpush.bf16.msrb.mxu3 %v7342_v51  ;;  %v7227_v51 = vld [vmem:[%s10992_s14 + $0x3f8] sm:$0xf0]  ;;  %v6774_v52 = vor.u32 %v8072_v48, %v6771_v40  ;;  %v7345_v54 = vld [vmem:[%s10992_s14 + $0x4b0] sm:$0xf] }
 0x3c3   : > { %v11465_v36 = vpop.f32.mrf.mxu1  ;;  %v7230_v18 = vor.u32 %v8185_v50, %v7227_v51  ;;  %v7281_v40 = vld [vmem:[%s10992_s14 + $0x430] sm:$0xf]  ;;  %v8200_v50 = vld [vmem:[%s10992_s14 + $0x434] sm:$0xf] }
 0x3c4   : > { %5204 = vmatpush.bf16.msra.mxu0 %v7026_v1  ;;  %v11468_v42 = vpop.f32.mrf.mxu0  ;;  %v7538_v1 = vor.u32 %v8272_v27, %v7537_v45  ;;  %v3577_v45 = vperm.slane %v11512_v16, 0  ;;  %v3580_v27 = vperm.slane %v11512_v16, 3  ;;  %v7283_v51 = vld [vmem:[%s10992_s14 + $0x470] sm:$0xf0] }
 0x3c5   : > { %5230 = vmatpush.bf16.msra.mxu2 %v7030_v55  ;;  %5169 = vmatpush.bf16.msrb.mxu1 %v7274_v60  ;;  %v7161_v60 = vld [vmem:[%s10992_s14 + $0x338] sm:$0xf] }
 0x3c6   : > { %5195 = vmatpush.bf16.msrb.mxu3 %v7278_v3  ;;  %v8169_v3 = vld [vmem:[%s10992_s14 + $0x33c] sm:$0xf]  ;;  %v7162_v31 = vor.u32 %v8177_v62, %v7161_v60  ;;  %v7286_v60 = vor.u32 %v8200_v50, %v7283_v51  ;;  %v7545_v50 = vld [vmem:[%s10992_s14 + $0x638] sm:$0xf] }
 0x3c7   : > { %v8313_v62 = vld [vmem:[%s10992_s14 + $0x7bc] sm:$0xf] }
 0x3c8   : > { %5205 = vmatpush.bf16.msra.mxu0 %v6962_v4  ;;  %5170 = vmatmul.bf16.vlgmr.msrb.gmra.mxu1 %v11160_v61  ;;  %v7163_v4 = vld [vmem:[%s10992_s14 + $0x378] sm:$0xf0] }
 0x3c9   : > { %5214 = vmatpush.bf16.msra.mxu1 %v7730_v6  ;;  %5231 = vmatpush.bf16.msra.mxu2 %v6966_v8  ;;  %v11486_v55 = vpop.f32.mrf.mxu3  ;;  %v7478_v8 = vor.u32 %v8248_v12, %v7475_v7  ;;  %v7166_v11 = vor.u32 %v8169_v3, %v7163_v4  ;;  %v8121_v12 = vld [vmem:[%s10992_s14 + $0x1bc] sm:$0xf]  ;;  %v6905_v4 = vld [vmem:[%s10992_s14 + $0x138] sm:$0xf] }
 0x3ca   : > { %5240 = vmatpush.bf16.msra.mxu3 %v7734_v10  ;;  %v11491_v59 = vpop.f32.mrf.mxu2  ;;  %v8232_v10 = vld [vmem:[%s10992_s14 + $0x534] sm:$0xf] }
 0x3cb   : > { %5196 = vmatmul.bf16.vlgmr.msrb.gmra.mxu3 %v11160_v61  ;;  %v4913_v2 = vpop.f32.mrf.mxu1  ;;  %v7414_v24 = vor.u32 %v8232_v10, %v7411_v13  ;;  %v4977_v3 = vadd.f32 %v11491_v59, %v3580_v27  ;;  %v4899_v10 = vadd.f32 %v11418_v44, %v3577_v45  ;;  %v8281_v27 = vld [vmem:[%s10992_s14 + $0x6bc] sm:$0xf] }
 0x3cc   : > { %5206 = vmatpush.bf16.msra.mxu0 %v6898_v19  ;;  %v4952_v6 = vpop.f32.mrf.mxu0  ;;  %v8153_v19 = vld [vmem:[%s10992_s14 + $0x2bc] sm:$0xf] }
 0x3cd   : > { %5215 = vmatpush.bf16.msra.mxu1 %v7666_v20  ;;  %5232 = vmatpush.bf16.msra.mxu2 %v6902_v32  ;;  %v7099_v20 = vld [vmem:[%s10992_s14 + $0x2f8] sm:$0xf0]  ;;  %v3578_v32 = vperm.slane %v11512_v16, 1 }
 0x3ce   : > { %5241 = vmatpush.bf16.msra.mxu3 %v7670_v26  ;;  %v7102_v30 = vor.u32 %v8153_v19, %v7099_v20  ;;  %v7739_v2 = vld [vmem:[%s10992_s14 + $0x7f8] sm:$0xf0] }
 0x3cf   : > { %v4925_v28 = vadd.f32 %v11435_v22, %v3578_v32  ;;  %v8297_v32 = vld [vmem:[%s10992_s14 + $0x73c] sm:$0xf] }
 0x3d0   : > { %5207 = vmatpush.bf16.msra.mxu0 %v6834_v35  ;;  %v7033_v35 = vld [vmem:[%s10992_s14 + $0x238] sm:$0xf] }
 0x3d1   : > { %5216 = vmatpush.bf16.msra.mxu1 %v7602_v39  ;;  %5233 = vmatpush.bf16.msra.mxu2 %v6838_v41  ;;  %v4939_v26 = vpop.f32.mrf.mxu3  ;;  %v3579_v39 = vperm.slane %v11512_v16, 2  ;;  %v8137_v41 = vld [vmem:[%s10992_s14 + $0x23c] sm:$0xf]  ;;  %v7034_v49 = vor.u32 %v8145_v37, %v7033_v35  ;;  %v4938_v56 = vadd.f32 %v11486_v55, %v4925_v28 }
 0x3d2   : > { %5242 = vmatpush.bf16.msra.mxu3 %v7606_v47  ;;  %v4978_v33 = vpop.f32.mrf.mxu2  ;;  %v7346_v47 = vor.u32 %v8224_v25, %v7345_v54  ;;  %v7674_v25 = vor.u32 %v8305_v9, %v7673_v38  ;;  %v8233_v38 = vld [vmem:[%s10992_s14 + $0x53c] sm:$0xf] }
 0x3d3   : > { %v4963_v48 = vpop.f32.mrf.mxu1  ;;  %v4951_v22 = vadd.f32 %v11468_v42, %v3579_v39  ;;  %v5321_v59 = vrot.slane %v4938_v56, 6  ;;  %v7609_v33 = vld [vmem:[%s10992_s14 + $0x6b8] sm:$0xf]  ;;  %v8265_v56 = vld [vmem:[%s10992_s14 + $0x63c] sm:$0xf] }
 0x3d4   : > { %5208 = vmatpush.bf16.msra.mxu0 %v6770_v46  ;;  %v11531_v34 = vpop.f32.mrf.mxu0  ;;  %v8208_v46 = vld [vmem:[%s10992_s14 + $0x46c] sm:$0xf0]  ;;  %v8289_v39 = vld [vmem:[%s10992_s14 + $0x6f4] sm:$0xf0]  ;;  %v7419_v9 = vld [vmem:[%s10992_s14 + $0x578] sm:$0xf0] }
 0x3d5   : > { %5217 = vmatpush.bf16.msra.mxu1 %v7538_v1  ;;  %5234 = vmatpush.bf16.msra.mxu2 %v6774_v52  ;;  %v7038_v1 = vor.u32 %v8137_v41, %v7035_v43  ;;  %v6969_v52 = vld [vmem:[%s10992_s14 + $0x1b8] sm:$0xf]  ;;  %v7282_v7 = vor.u32 %v8208_v46, %v7281_v40  ;;  %v4964_v42 = vadd.f32 %v4963_v48, %v4951_v22  ;;  %v8089_v41 = vld [vmem:[%s10992_s14 + $0xbc] sm:$0xf] }
 0x3d6   : > { %5243 = vmatpush.bf16.msra.mxu3 %v7542_v53  ;;  %v8129_v53 = vld [vmem:[%s10992_s14 + $0x1f4] sm:$0xf0]  ;;  %v6843_v43 = vld [vmem:[%s10992_s14 + $0xf8] sm:$0xf0]  ;;  %v7610_v40 = vor.u32 %v8289_v39, %v7609_v33  ;;  %v3584_v39 = vperm.slane %v11512_v16, 7 }
 0x3d7   : > { %5209 = vmatmul.bf16.vlgmr.msra.gmra.mxu0 %v11135_v23  ;;  %v6970_v55 = vor.u32 %v8129_v53, %v6969_v52  ;;  %v5322_v44 = vrot.slane %v4964_v42, 4  ;;  %v6846_v28 = vor.u32 %v8089_v41, %v6843_v43  ;;  %v8081_v46 = vld [vmem:[%s10992_s14 + $0x74] sm:$0xf0]  ;;  %v8073_v52 = vld [vmem:[%s10992_s14 + $0x3c] sm:$0xf]  ;;  %v3581_v41 = vperm.slane %v11512_v16, 4 }
 0x3d8   : > { %5253 = vmatpush.bf16.msrb.mxu0 %v7226_v17  ;;  %5235 = vmatmul.bf16.vlgmr.msra.gmra.mxu2 %v11135_v23  ;;  %v7737_v17 = vld [vmem:[%s10992_s14 + $0x7b8] sm:$0xf]  ;;  %v6779_v53 = vld [vmem:[%s10992_s14 + $0x78] sm:$0xf0] }
 0x3d9   : > { %5279 = vmatpush.bf16.msrb.mxu2 %v7230_v18  ;;  %5218 = vmatpush.bf16.msra.mxu1 %v7474_v5  ;;  %v6971_v18 = vld [vmem:[%s10992_s14 + $0x1f8] sm:$0xf0]  ;;  %v7738_v5 = vor.u32 %v8321_v57, %v7737_v17 }
 0x3da   : > { %5244 = vmatpush.bf16.msra.mxu3 %v7478_v8  ;;  %v6974_v6 = vor.u32 %v8121_v12, %v6971_v18  ;;  %v4989_v8 = vpop.f32.mrf.mxu3  ;;  %v7547_v57 = vld [vmem:[%s10992_s14 + $0x678] sm:$0xf0] }
 0x3db   : > { %v4990_v13 = vadd.f32 %v4989_v8, %v4977_v3  ;;  %v4965_v20 = vpop.f32.mrf.mxu1  ;;  %v8249_v3 = vld [vmem:[%s10992_s14 + $0x5bc] sm:$0xf]  ;;  %v8241_v8 = vld [vmem:[%s10992_s14 + $0x574] sm:$0xf0] }
 0x3dc   : > { %5254 = vmatpush.bf16.msrb.mxu0 %v7162_v31  ;;  %v8113_v31 = vld [vmem:[%s10992_s14 + $0x174] sm:$0xf0]  ;;  %v5004_v26 = vpop.f32.mrf.mxu0  ;;  %v7483_v42 = vld [vmem:[%s10992_s14 + $0x5f8] sm:$0xf0] }
 0x3dd   : > { %5280 = vmatpush.bf16.msrb.mxu2 %v7166_v11  ;;  %5219 = vmatpush.bf16.msra.mxu1 %v7410_v21  ;;  %v7742_v11 = vor.u32 %v8313_v62, %v7739_v2  ;;  %v11555_v19 = vpop.f32.mrf.mxu2  ;;  %v7675_v21 = vld [vmem:[%s10992_s14 + $0x778] sm:$0xf0]  ;;  %v6906_v54 = vor.u32 %v8113_v31, %v6905_v4  ;;  %v7481_v62 = vld [vmem:[%s10992_s14 + $0x5b8] sm:$0xf]  ;;  %v7486_v4 = vor.u32 %v8249_v3, %v7483_v42 }
 0x3de   : > { %5245 = vmatpush.bf16.msra.mxu3 %v7414_v24  ;;  %v4912_v24 = vadd.f32 %v11465_v36, %v4899_v10  ;;  %v6910_v36 = vor.u32 %v8105_v14, %v6907_v15  ;;  %v7678_v37 = vor.u32 %v8297_v32, %v7675_v21  ;;  %v8257_v2 = vld [vmem:[%s10992_s14 + $0x5f4] sm:$0xf0]  ;;  %v8217_v14 = vld [vmem:[%s10992_s14 + $0x4bc] sm:$0xf] }
 0x3df   : > { %v7355_v15 = vld [vmem:[%s10992_s14 + $0x4f8] sm:$0xf0] }
 0x3e0   : > { %5255 = vmatpush.bf16.msrb.mxu0 %v7098_v58  ;;  %v5323_v58 = vrot.slane %v4990_v13, 2  ;;  %v5334_v63 = vsel %vm5333_vm0, %v4912_v24, %v5321_v59  ;;  %v7422_v59 = vor.u32 %v8233_v38, %v7419_v9  ;;  %v8225_v13 = vld [vmem:[%s10992_s14 + $0x4f4] sm:$0xf0]  ;;  %v7358_v21 = vor.u32 %v8217_v14, %v7355_v15  ;;  %v7291_v26 = vld [vmem:[%s10992_s14 + $0x478] sm:$0xf0] }
 0x3e1   : > { %5281 = vmatpush.bf16.msrb.mxu2 %v7102_v30  ;;  %5220 = vmatpush.bf16.msra.mxu1 %v7346_v47  ;;  %v8097_v30 = vld [vmem:[%s10992_s14 + $0xf4] sm:$0xf0]  ;;  %v7611_v47 = vld [vmem:[%s10992_s14 + $0x6f8] sm:$0xf0] }
 0x3e2   : > { %5246 = vmatpush.bf16.msra.mxu3 %v7350_v29  ;;  %v5336_v35 = vsel %vm5335_vm1, %v5322_v44, %v5323_v58  ;;  %v6842_v48 = vor.u32 %v8097_v30, %v6841_v0  ;;  %v4991_v29 = vpop.f32.mrf.mxu3  ;;  %v7614_v51 = vor.u32 %v8281_v27, %v7611_v47  ;;  %v7289_v44 = vld [vmem:[%s10992_s14 + $0x438] sm:$0xf]  ;;  %v3582_v30 = vperm.slane %v11512_v16, 5 }
 0x3e3   : > { %v5338_v45 = vsel %vm5337_vm2, %v5334_v63, %v5336_v35  ;;  %v8209_v58 = vld [vmem:[%s10992_s14 + $0x474] sm:$0xf0]  ;;  %v3583_v63 = vperm.slane %v11512_v16, 6 }
 0x3e4   : > { %5256 = vmatpush.bf16.msrb.mxu0 %v7034_v49  ;;  %5352 = vst [vmem:[%s11563_s19] sm:$0xff] %v5338_v45  ;;  %v6777_v49 = vld [vmem:[%s10992_s14 + $0x38] sm:$0xf]  ;;  %v11585_v22 = vpop.f32.mrf.mxu1 }
 0x3e5   : > { %5282 = vmatpush.bf16.msrb.mxu2 %v7038_v1  ;;  %5221 = vmatpush.bf16.msra.mxu1 %v7282_v7  ;;  %v8273_v1 = vld [vmem:[%s10992_s14 + $0x674] sm:$0xf0]  ;;  %v5030_v17 = vpop.f32.mrf.mxu2  ;;  %v6778_v12 = vor.u32 %v8081_v46, %v6777_v49  ;;  %v6782_v7 = vor.u32 %v8073_v52, %v6779_v53 }
 0x3e6   : > { %5247 = vmatpush.bf16.msra.mxu3 %v7286_v60  ;;  %v7546_v18 = vor.u32 %v8273_v1, %v7545_v50  ;;  %v7550_v60 = vor.u32 %v8265_v56, %v7547_v57 }
 0x3e8   : > { %5257 = vmatpush.bf16.msrb.mxu0 %v6970_v55  ;;  %5222 = vmatmul.bf16.vlgmr.msra.gmra.mxu1 %v11160_v61  ;;  %v7482_v55 = vor.u32 %v8257_v2, %v7481_v62  ;;  %v3574_v62 = vld [vmem:[%s11502_s15 + $0x8] sm:$0xff] }
 0x3e9   : > { %5266 = vmatpush.bf16.msrb.mxu1 %v7738_v5  ;;  %5283 = vmatpush.bf16.msrb.mxu2 %v6974_v6  ;;  %v7417_v6 = vld [vmem:[%s10992_s14 + $0x538] sm:$0xf]  ;;  %v3586_v2 = vperm.slane %v3574_v62, 1  ;;  %v3587_v42 = vperm.slane %v3574_v62, 2 }
 0x3ea   : > { %5292 = vmatpush.bf16.msrb.mxu3 %v7742_v11  ;;  %v7418_v10 = vor.u32 %v8241_v8, %v7417_v6  ;;  %v7353_v11 = vld [vmem:[%s10992_s14 + $0x4b8] sm:$0xf]  ;;  %v3585_v6 = vperm.slane %v3574_v62, 0 }
 0x3eb   : > { %5248 = vmatmul.bf16.vlgmr.msra.gmra.mxu3 %v11160_v61  ;;  %v7354_v32 = vor.u32 %v8225_v13, %v7353_v11 }
 0x3ec   : > { %5258 = vmatpush.bf16.msrb.mxu0 %v6906_v54  ;;  %v5017_v31 = vpop.f32.mrf.mxu1  ;;  %v7290_v54 = vor.u32 %v8209_v58, %v7289_v44 }
 0x3ed   : > { %5267 = vmatpush.bf16.msrb.mxu1 %v7674_v25  ;;  %5284 = vmatpush.bf16.msrb.mxu2 %v6910_v36  ;;  %v5041_v5 = vpop.f32.mrf.mxu3 }
 0x3ee   : > { %5293 = vmatpush.bf16.msrb.mxu3 %v7678_v37  ;;  %v5029_v37 = vadd.f32 %v11555_v19, %v3582_v30 }
 0x3f0   : > { %5259 = vmatpush.bf16.msrb.mxu0 %v6842_v48  ;;  %v5042_v43 = vadd.f32 %v5041_v5, %v5029_v37  ;;  %v3588_v5 = vperm.slane %v3574_v62, 3 }
 0x3f1   : > { %5268 = vmatpush.bf16.msrb.mxu1 %v7610_v40  ;;  %5285 = vmatpush.bf16.msrb.mxu2 %v6846_v28 }
 0x3f2   : > { %5294 = vmatpush.bf16.msrb.mxu3 %v7614_v51  ;;  %v5324_v40 = vrot.slane %v5042_v43, 6  ;;  %v3591_v43 = vperm.slane %v3574_v62, 6 }
 0x3f4   : > { %5260 = vmatpush.bf16.msrb.mxu0 %v6778_v12  ;;  %v5054_v20 = vpop.f32.mrf.mxu0 }
 0x3f5   : > { %5269 = vmatpush.bf16.msrb.mxu1 %v7546_v18  ;;  %5286 = vmatpush.bf16.msrb.mxu2 %v6782_v7  ;;  %v5043_v24 = vpop.f32.mrf.mxu3  ;;  %v5055_v45 = vadd.f32 %v5054_v20, %v3583_v63 }
 0x3f6   : > { %5295 = vmatpush.bf16.msrb.mxu3 %v7550_v60 }
 0x3f7   : > { %5261 = vmatmul.bf16.vlgmr.msrb.gmra.mxu0 %v11135_v23 }
 0x3f8   : > { %5287 = vmatmul.bf16.vlgmr.msrb.gmra.mxu2 %v11135_v23  ;;  %v8201_v23 = vld [vmem:[%s10992_s14 + $0x43c] sm:$0xf] }
 0x3f9   : > { %5270 = vmatpush.bf16.msrb.mxu1 %v7482_v55  ;;  %v7294_v25 = vor.u32 %v8201_v23, %v7291_v26 }
 0x3fa   : > { %5296 = vmatpush.bf16.msrb.mxu3 %v7486_v4 }
 0x3fb   : > { %v5080_v36 = vpop.f32.mrf.mxu2 }
 0x3fc   : > { %v5056_v0 = vpop.f32.mrf.mxu0  ;;  %v5081_v27 = vadd.f32 %v5080_v36, %v3584_v39  ;;  %v3590_v39 = vperm.slane %v3574_v62, 5 }
 0x3fd   : > { %5271 = vmatpush.bf16.msrb.mxu1 %v7418_v10 }
 0x3fe   : > { %5297 = vmatpush.bf16.msrb.mxu3 %v7422_v59 }
 0x401   : > { %5272 = vmatpush.bf16.msrb.mxu1 %v7354_v32 }
 0x402   : > { %5298 = vmatpush.bf16.msrb.mxu3 %v7358_v21 }
 0x403   : > { %v5082_v33 = vpop.f32.mrf.mxu2 }
 0x405   : > { %5273 = vmatpush.bf16.msrb.mxu1 %v7290_v54  ;;  %v5067_v35 = vpop.f32.mrf.mxu1 }
 0x406   : > { %5299 = vmatpush.bf16.msrb.mxu3 %v7294_v25  ;;  %v5068_v47 = vadd.f32 %v5067_v35, %v5055_v45 }
 0x408   : > { %5274 = vmatmul.bf16.vlgmr.msrb.gmra.mxu1 %v11160_v61  ;;  %v5325_v46 = vrot.slane %v5068_v47, 4  ;;  %v3592_v47 = vperm.slane %v3574_v62, 7 }
 0x409   : > { %5300 = vmatmul.bf16.vlgmr.msrb.gmra.mxu3 %v11160_v61  ;;  %v5003_v61 = vadd.f32 %v11531_v34, %v3581_v41 }
 0x40b   : > { %v5016_v49 = vadd.f32 %v11585_v22, %v5003_v61 }
 0x40d   : > { %v5069_v29 = vpop.f32.mrf.mxu1  ;;  %v5339_v19 = vsel %vm5333_vm0, %v5016_v49, %v5324_v40 }
 0x40e   : > { %v5093_v48 = vpop.f32.mrf.mxu3 }
 0x40f   : > { %v5094_v28 = vadd.f32 %v5093_v48, %v5081_v27  ;;  %v3589_v48 = vperm.slane %v3574_v62, 4 }
 0x411   : > { %v5326_v50 = vrot.slane %v5094_v28, 2 }
 0x413   : > { %v5340_v16 = vsel %vm5335_vm1, %v5325_v46, %v5326_v50 }
 0x414   : > { %v5341_v51 = vsel %vm5337_vm2, %v5339_v19, %v5340_v16  ;;  %v5106_v1 = vpop.f32.mrf.mxu0 }
 0x415   : > { %5353 = vst [vmem:[%s11563_s19 + $0x8] sm:$0xff] %v5341_v51  ;;  %v5107_v59 = vadd.f32 %v5106_v1, %v3585_v6 }
 0x416   : > { %v5095_v52 = vpop.f32.mrf.mxu3 }
 0x41b   : > { %v5132_v53 = vpop.f32.mrf.mxu2 }
 0x41c   : > { %v5108_v17 = vpop.f32.mrf.mxu0  ;;  %v5133_v4 = vadd.f32 %v5132_v53, %v3586_v2 }
 0x423   : > { %v5134_v34 = vpop.f32.mrf.mxu2 }
 0x425   : > { %v5119_v56 = vpop.f32.mrf.mxu1 }
 0x426   : > { %v5120_v15 = vadd.f32 %v5119_v56, %v5107_v59 }
 0x42d   : > { %v5121_v12 = vpop.f32.mrf.mxu1 }
 0x42e   : > { %v5145_v57 = vpop.f32.mrf.mxu3 }
 0x42f   : > { %v5146_v8 = vadd.f32 %v5145_v57, %v5133_v4 }
 0x431   : > { %v5327_v11 = vrot.slane %v5146_v8, 6 }
 0x433   : > { %v5342_v21 = vsel %vm5333_vm0, %v5120_v15, %v5327_v11 }
 0x434   : > { %v5158_v18 = vpop.f32.mrf.mxu0 }
 0x435   : > { %v5159_v31 = vadd.f32 %v5158_v18, %v3587_v42 }
 0x436   : > { %v5147_v22 = vpop.f32.mrf.mxu3 }
 0x43b   : > { %v5184_v7 = vpop.f32.mrf.mxu2 }
 0x43c   : > { %v5160_v60 = vpop.f32.mrf.mxu0  ;;  %v5185_v38 = vadd.f32 %v5184_v7, %v3588_v5 }
 0x443   : > { %v5186_v3 = vpop.f32.mrf.mxu2 }
 0x445   : > { %v5171_v55 = vpop.f32.mrf.mxu1 }
 0x446   : > { %v5172_v9 = vadd.f32 %v5171_v55, %v5159_v31 }
 0x448   : > { %v5328_v20 = vrot.slane %v5172_v9, 4 }
 0x44d   : > { %v5173_v14 = vpop.f32.mrf.mxu1 }
 0x44e   : > { %v5197_v10 = vpop.f32.mrf.mxu3 }
 0x44f   : > { %v5198_v13 = vadd.f32 %v5197_v10, %v5185_v38 }
 0x451   : > { %v5329_v32 = vrot.slane %v5198_v13, 2 }
 0x453   : > { %v5343_v24 = vsel %vm5335_vm1, %v5328_v20, %v5329_v32 }
 0x454   : > { %v5344_v44 = vsel %vm5337_vm2, %v5342_v21, %v5343_v24  ;;  %v5210_v58 = vpop.f32.mrf.mxu0 }
 0x455   : > { %5354 = vst [vmem:[%s11563_s19 + $0x10] sm:$0xff] %v5344_v44  ;;  %v5211_v46 = vadd.f32 %v5210_v58, %v3589_v48 }
 0x456   : > { %v5199_v23 = vpop.f32.mrf.mxu3 }
 0x45b   : > { %v5236_v26 = vpop.f32.mrf.mxu2 }
 0x45c   : > { %v5212_v54 = vpop.f32.mrf.mxu0  ;;  %v5237_v27 = vadd.f32 %v5236_v26, %v3590_v39 }
 0x463   : > { %v5238_v25 = vpop.f32.mrf.mxu2 }
 0x465   : > { %v5223_v36 = vpop.f32.mrf.mxu1 }
 0x466   : > { %v5224_v51 = vadd.f32 %v5223_v36, %v5211_v46 }
 0x46d   : > { %v5225_v30 = vpop.f32.mrf.mxu1 }
 0x46e   : > { %v5249_v0 = vpop.f32.mrf.mxu3 }
 0x46f   : > { %v5250_v61 = vadd.f32 %v5249_v0, %v5237_v27 }
 0x471   : > { %v5330_v50 = vrot.slane %v5250_v61, 6 }
 0x473   : > { %v5345_v53 = vsel %vm5333_vm0, %v5224_v51, %v5330_v50 }
 0x474   : > { %v5262_v33 = vpop.f32.mrf.mxu0 }
 0x475   : > { %v5263_v40 = vadd.f32 %v5262_v33, %v3591_v43 }
 0x476   : > { %v5251_v63 = vpop.f32.mrf.mxu3 }
 0x47b   : > { %v5288_v35 = vpop.f32.mrf.mxu2 }
 0x47c   : > { %v5264_v37 = vpop.f32.mrf.mxu0  ;;  %v5289_v28 = vadd.f32 %v5288_v35, %v3592_v47 }
 0x483   : > { %v5290_v41 = vpop.f32.mrf.mxu2 }
 0x485   : > { %v5275_v45 = vpop.f32.mrf.mxu1 }
 0x486   : > { %v5276_v29 = vadd.f32 %v5275_v45, %v5263_v40 }
 0x488   : > { %v5331_v1 = vrot.slane %v5276_v29, 4 }
 0x48c   : > { %v5301_v49 = vpop.f32.mrf.mxu3 }
 0x48d   : > { %v5302_v19 = vadd.f32 %v5301_v49, %v5289_v28  ;;  %v5277_v16 = vpop.f32.mrf.mxu1 }
 0x48f   : > { %v5332_v52 = vrot.slane %v5302_v19, 2 }
 0x491   : > { %v5346_v17 = vsel %vm5335_vm1, %v5331_v1, %v5332_v52 }
 0x492   : > { %v5347_v34 = vsel %vm5337_vm2, %v5345_v53, %v5346_v17 }
 0x493   : > { %5355 = vst [vmem:[%s11563_s19 + $0x18] sm:$0xff] %v5347_v34 }
 0x494   : > { %v5303_v56 = vpop.f32.mrf.mxu3 }
 0x495 PF: > { %p14_p9 = scmp.ge.s32.totalorder %s8436_s28, 4   ;;  %s11647_s24 = smov %s8373_s25 }
 0x496   : > { %s11648_s25 = smov %s8445_s8  ;;  %s11649_s26 = smov %s8436_s28 }
 0x497   :  { %16 = sbr.rel (!%p14_p9) target bundleno = 2 (0x2), region = 109 }

</bundles_post_ra>
